<compile_context>
chip_gen: v7x
topology: tpu7x:2x2x1
jax: 0.10.0
libtpu: 0.0.40
codegen_flags: <defaults>
</compile_context>

<pallas_src>
import functools

import jax
import jax.numpy as jnp
from jax.experimental import pallas as pl
from jax.experimental.pallas import tpu as pltpu

LEAKY_SLOPE = 0.2      # DGL GATConv default negative_slope
NEG_INF = -1e30


# ----------------------------------------------------------------------------
# In-kernel building blocks (operate on VMEM-resident values).
# ----------------------------------------------------------------------------
def _gat_layer(h_in, adj_bias, w, al_m, ar_m, *, num_heads, head_dim, flatten, apply_elu):
    """Dense GAT layer over packed nodes.

    adj_bias[i, j] = 0 iff edge j(src) -> i(dst), else -1e30; block-diagonal over the
    packed (graph x batch-slot) blocks so blocks never attend to each other. Padded
    nodes (no edges) produce harmless finite rows that never reach the readout.
    """
    # big matmuls in bf16 with f32 accumulation (MXU throughput), rest stays f32
    hb = h_in.astype(jnp.bfloat16)
    z = jnp.dot(hb, w, preferred_element_type=jnp.float32)                  # (N, H*D) f32
    zb = z.astype(jnp.bfloat16)

    # per-head attention terms via block matrices: el[n,h] = sum_d z[n,h*D+d]*a_l[h,d]
    el_t = jnp.transpose(
        jnp.dot(z, al_m, preferred_element_type=jnp.float32))               # (H, N) src term
    er = jnp.dot(z, ar_m, preferred_element_type=jnp.float32)               # (N, H) dst term

    outs = []
    for h in range(num_heads):                                              # static unroll, H=4
        e = er[:, h:h + 1] + el_t[h:h + 1, :]                               # e[i,j] = er[i]+el[j]
        e = jnp.where(e > 0, e, LEAKY_SLOPE * e)                            # leaky relu
        e = e + adj_bias                                                    # additive edge mask
        e = e - jnp.max(e, axis=1, keepdims=True)
        p = jnp.exp(e)                                                      # non-edges underflow to 0
        attn = p * pl.reciprocal(jnp.sum(p, axis=1, keepdims=True), approx=True)
        zh = zb[:, h * head_dim:(h + 1) * head_dim]                         # (N, D) bf16 lane slice
        outs.append(jnp.dot(attn.astype(jnp.bfloat16), zh,
                            preferred_element_type=jnp.float32))            # (N, D) f32
    if flatten:
        out = jnp.concatenate(outs, axis=1)                                 # (N, H*D) lane-dense
    else:
        out = sum(outs) * (1.0 / num_heads)                                 # (N, D)
    if apply_elu:
        out = jnp.where(out > 0, out, jnp.exp(jnp.minimum(out, 0.0)) - 1.0)
    return out


def _deepreac_kernel(x_ref, adjb_ref, w0_ref, al0_ref, ar0_ref,
                     w1_ref, al1_ref, ar1_ref,
                     read_w_ref, read_b_ref, seg_ref,
                     feats_ref, *,
                     num_heads, head_dim, g_num, tb, n_nodes):
    x = x_ref[0]                       # (N_pad, Fin) packed nodes: TB batch slots x g_num graphs
    adjb = adjb_ref[...]               # (N_pad, N_pad) additive block-diagonal edge bias

    # ---- 2-layer GAT (shared weights; block-diag adjacency keeps blocks independent)
    h = _gat_layer(x, adjb, w0_ref[...], al0_ref[...], ar0_ref[...],
                   num_heads=num_heads, head_dim=head_dim, flatten=True, apply_elu=True)
    h = _gat_layer(h, adjb, w1_ref[...], al1_ref[...], ar1_ref[...],
                   num_heads=num_heads, head_dim=head_dim, flatten=False, apply_elu=False)
    # h: (N_pad, gnn_out) f32

    # ---- WeightedSumAndMax readout, segmented per (graph, batch-slot)
    gate = jax.nn.sigmoid(
        jnp.dot(h, read_w_ref[...], preferred_element_type=jnp.float32) + read_b_ref[0])
    wsum = jnp.dot(seg_ref[...], gate * h, preferred_element_type=jnp.float32)  # (g_num*TB, F)

    offs = []
    off = 0
    for n in n_nodes:
        offs.append(off)
        off += n

    pieces = []                                   # torch order: [ws_0, max_0, ws_1, max_1, ...]
    for g in range(g_num):                        # static, small g_num
        ng = n_nodes[g]
        base = tb * offs[g]
        mx_rows = []
        for t in range(tb):                       # static TB; per-slot max over its node block
            r0 = base + t * ng
            mx_rows.append(jnp.max(h[r0:r0 + ng, :], axis=0, keepdims=True))   # (1, F)
        mx_g = mx_rows[0] if tb == 1 else jnp.concatenate(mx_rows, axis=0)     # (TB, F)
        pieces.append(wsum[g * tb:(g + 1) * tb, :])                            # (TB, F)
        pieces.append(mx_g)
    feats_ref[0] = jnp.concatenate(pieces, axis=1)                             # (TB, 2F*g_num)


# ----------------------------------------------------------------------------
# Host-side wrapper: pack graphs + batch slots, preprocess params, ONE kernel launch.
# ----------------------------------------------------------------------------
def _build_block_attn(a, num_heads, head_dim):
    """(H, D) attention vector -> (H*D, H) block matrix so z @ M gives per-head scores."""
    m = jnp.zeros((num_heads * head_dim, num_heads), jnp.float32)
    for h in range(num_heads):
        m = m.at[h * head_dim:(h + 1) * head_dim, h].set(a[h])
    return m


def deepreac_noboth_forward(params, hs, adjs, *, target_nodes=128):
    """hs: list of (B, n_i, Fin) node features; adjs: list of (n_i, n_i) dense (dst, src) masks.

    target_nodes: packed node count per grid step (~128 for v5e, sweep 128/256 on v6e/v7x).
    """
    B = hs[0].shape[0]
    g_num = len(hs)
    fin = hs[0].shape[-1]
    (w0, al0, ar0), (w1, al1, ar1) = params['gnn0']
    H, D = al0.shape
    gnn_out = D                                        # last agg mode is 'mean'
    feat_cols = 2 * gnn_out * g_num
    n_nodes = tuple(int(h.shape[1]) for h in hs)
    n_tot = sum(n_nodes)

    # ---- choose batch-packing factor TB: fill ~target_nodes lanes, keep >= 2 grid steps
    tb = max(1, target_nodes // n_tot)
    if B >= 2:
        tb = min(tb, (B + 1) // 2)                     # keep >=2 steps so v7x megacore stays busy
    tb = max(1, min(tb, B))
    num_steps = (B + tb - 1) // tb
    b_pad = num_steps * tb
    n_step = tb * n_tot
    n_pad = ((n_step + 7) // 8) * 8                    # sublane-aligned packed node count

    offs = []
    off = 0
    for n in n_nodes:
        offs.append(off)
        off += n

    # ---- pack node features: (num_steps, n_pad, fin), graph-major, slot-major within graph
    blocks = []
    for g in range(g_num):
        xg = hs[g].astype(jnp.float32)                                     # (B, n_g, Fin)
        if b_pad > B:
            xg = jnp.concatenate(
                [xg, jnp.zeros((b_pad - B, n_nodes[g], fin), jnp.float32)], axis=0)
        blocks.append(xg.reshape(num_steps, tb * n_nodes[g], fin))
    x_packed = jnp.concatenate(blocks, axis=1)                             # (steps, n_step, Fin)
    if n_pad > n_step:
        x_packed = jnp.concatenate(
            [x_packed, jnp.zeros((num_steps, n_pad - n_step, fin), jnp.float32)], axis=1)

    # ---- additive attention bias + segment-membership matrix (block-diag per graph x slot)
    adj_bias = jnp.full((n_pad, n_pad), NEG_INF, jnp.float32)
    seg = jnp.zeros((g_num * tb, n_pad), jnp.float32)
    for g in range(g_num):
        ng = n_nodes[g]
        bias_g = jnp.where(adjs[g] > 0, 0.0, NEG_INF).astype(jnp.float32)
        for t in range(tb):
            r0 = tb * offs[g] + t * ng
            adj_bias = adj_bias.at[r0:r0 + ng, r0:r0 + ng].set(bias_g)
            seg = seg.at[g * tb + t, r0:r0 + ng].set(1.0)

    al0_m = _build_block_attn(al0, H, D)
    ar0_m = _build_block_attn(ar0, H, D)
    al1_m = _build_block_attn(al1, H, D)
    ar1_m = _build_block_attn(ar1, H, D)
    w0_b = w0.astype(jnp.bfloat16)                      # MXU operands in bf16, f32 accumulation
    w1_b = w1.astype(jnp.bfloat16)

    kern = functools.partial(_deepreac_kernel, num_heads=H, head_dim=D,
                             g_num=g_num, tb=tb, n_nodes=n_nodes)
    smem_spec = pl.BlockSpec(memory_space=pltpu.MemorySpace.SMEM)
    feats3 = pl.pallas_call(
        kern,
        out_shape=jax.ShapeDtypeStruct((num_steps, tb, feat_cols), jnp.float32),
        grid=(num_steps,),
        in_specs=[
            pl.BlockSpec((1, n_pad, fin), lambda s: (s, 0, 0)),   # packed node feats (per step)
            pl.BlockSpec(adj_bias.shape, lambda s: (0, 0)),       # additive edge bias (resident)
            pl.BlockSpec(w0_b.shape, lambda s: (0, 0)),
            pl.BlockSpec(al0_m.shape, lambda s: (0, 0)),
            pl.BlockSpec(ar0_m.shape, lambda s: (0, 0)),
            pl.BlockSpec(w1_b.shape, lambda s: (0, 0)),
            pl.BlockSpec(al1_m.shape, lambda s: (0, 0)),
            pl.BlockSpec(ar1_m.shape, lambda s: (0, 0)),
            pl.BlockSpec(params['read_w'].shape, lambda s: (0, 0)),
            smem_spec,                                            # readout bias (scalar, SMEM)
            pl.BlockSpec(seg.shape, lambda s: (0, 0)),
        ],
        out_specs=pl.BlockSpec((1, tb, feat_cols), lambda s: (s, 0, 0)),   # lane-dense (TB, 192)
        compiler_params=pltpu.CompilerParams(dimension_semantics=("parallel",)),
    )(x_packed, adj_bias, w0_b, al0_m, ar0_m, w1_b, al1_m, ar1_m,
      params['read_w'], params['read_b'], seg)

    feats = feats3.reshape(b_pad, feat_cols)[:B]                  # drop batch padding
    # trivial predictor (Linear(feats_dim, 1)) done in the wrapper; XLA fuses the matvec
    pred = (jnp.dot(feats, params['pred_w']) + params['pred_b']).reshape(B, 1)
    return pred, feats


# ----------------------------------------------------------------------------
if __name__ == "__main__":
    key = jax.random.PRNGKey(0)
    B = 16
    g_num = 3
    n_nodes = [6, 5, 7]
    in_feats_0 = 16
    hidden0, heads0 = [32, 32], [4, 4]

    keys = jax.random.split(key, 10)

    def nrm(k, shape, scale=0.1):
        return scale * jax.random.normal(k, shape, dtype=jnp.float32)

    params = {}
    # stage-1 GAT (GAT_adj with adjs=None behaves like a plain 2-layer GAT)
    gnn0 = []
    fin = in_feats_0
    for l in range(2):
        H, D = heads0[l], hidden0[l]
        gnn0.append((nrm(keys[3 * l], (fin, H * D)),       # fc weight
                     nrm(keys[3 * l + 1], (H, D)),         # attn_l
                     nrm(keys[3 * l + 2], (H, D))))        # attn_r
        fin = H * D                                        # layer-0 agg is 'flatten'
    params['gnn0'] = gnn0
    gnn_out = hidden0[-1]                                  # last agg is 'mean'
    params['read_w'] = nrm(keys[6], (gnn_out, 1))
    params['read_b'] = jnp.zeros((1,), jnp.float32)
    feats_dim = 2 * gnn_out * g_num
    params['pred_w'] = nrm(keys[7], (feats_dim,))
    params['pred_b'] = jnp.zeros((1,), jnp.float32)

    # inputs: per-graph node features + bidirectional ring adjacencies (dst, src)
    hs, adjs = [], []
    k_in = jax.random.split(keys[8], g_num)
    for gi, n in enumerate(n_nodes):
        hs.append(jax.random.normal(k_in[gi], (B, n, in_feats_0), dtype=jnp.float32))
        idx = jnp.arange(n)
        adj = jnp.zeros((n, n), jnp.float32)
        adj = adj.at[idx, (idx + 1) % n].set(1.0)
        adj = adj.at[idx, (idx - 1) % n].set(1.0)
        adjs.append(adj)

    # TODO(synk): the conditions / ConditionEmbedding branch (c_num > 0), the
    # adjs/wanted indexed-attention branch of GAT_adj, and GATConv residual/bias
    # are not exercised by this configuration and are not modeled.
    pred, feats = deepreac_noboth_forward(params, hs, adjs)
    jax.block_until_ready((pred, feats))
    assert pred.shape == (B, 1) and feats.shape == (B, feats_dim)
    assert bool(jnp.all(jnp.isfinite(pred))) and bool(jnp.all(jnp.isfinite(feats)))
    print("KERNEL_OK")
</pallas_src>

<mosaic_0001>
module attributes {stable_mosaic.version = 11 : i64} {
  func.func @_deepreac_kernel(%arg0: i32, %arg1: memref<1x128x16xf32, #tpu.memory_space<vmem>>, %arg2: memref<128x128xf32, #tpu.memory_space<vmem>>, %arg3: memref<16x128xbf16, #tpu.memory_space<vmem>>, %arg4: memref<128x4xf32, #tpu.memory_space<vmem>>, %arg5: memref<128x4xf32, #tpu.memory_space<vmem>>, %arg6: memref<128x128xbf16, #tpu.memory_space<vmem>>, %arg7: memref<128x4xf32, #tpu.memory_space<vmem>>, %arg8: memref<128x4xf32, #tpu.memory_space<vmem>>, %arg9: memref<32x1xf32, #tpu.memory_space<vmem>>, %arg10: memref<1xf32, #tpu.memory_space<smem>>, %arg11: memref<21x128xf32, #tpu.memory_space<vmem>>, %arg12: memref<1x7x192xf32, #tpu.memory_space<vmem>>) attributes {dimension_semantics = [#tpu.dimension_semantics<parallel>], iteration_bounds = array<i64: 3>, scalar_prefetch = 0 : i64, scratch_operands = 0 : i64, tpu.core_type = #tpu.core_type<tc>, window_params = [{transform_indices = @transform_0, window_bounds = array<i64: 1, 128, 16>}, {pipeline_mode = #tpu.pipeline_mode<synchronous>, transform_indices = @transform_1, window_bounds = array<i64: 128, 128>}, {pipeline_mode = #tpu.pipeline_mode<synchronous>, transform_indices = @transform_2, window_bounds = array<i64: 16, 128>}, {pipeline_mode = #tpu.pipeline_mode<synchronous>, transform_indices = @transform_3, window_bounds = array<i64: 128, 4>}, {pipeline_mode = #tpu.pipeline_mode<synchronous>, transform_indices = @transform_4, window_bounds = array<i64: 128, 4>}, {pipeline_mode = #tpu.pipeline_mode<synchronous>, transform_indices = @transform_5, window_bounds = array<i64: 128, 128>}, {pipeline_mode = #tpu.pipeline_mode<synchronous>, transform_indices = @transform_6, window_bounds = array<i64: 128, 4>}, {pipeline_mode = #tpu.pipeline_mode<synchronous>, transform_indices = @transform_7, window_bounds = array<i64: 128, 4>}, {pipeline_mode = #tpu.pipeline_mode<synchronous>, transform_indices = @transform_8, window_bounds = array<i64: 32, 1>}, {transform_indices = @transform_9, window_bounds = array<i64: 1>}, {pipeline_mode = #tpu.pipeline_mode<synchronous>, transform_indices = @transform_10, window_bounds = array<i64: 21, 128>}, {transform_indices = @transform_11, window_bounds = array<i64: 1, 7, 192>}]} {
    %c0 = arith.constant 0 : index
    %c0_0 = arith.constant 0 : index
    %c0_1 = arith.constant 0 : index
    %0 = vector.load %arg1[%c0, %c0_0, %c0_1] : memref<1x128x16xf32, #tpu.memory_space<vmem>>, vector<1x128x16xf32>
    %1 = vector.shape_cast %0 : vector<1x128x16xf32> to vector<128x16xf32>
    %c0_2 = arith.constant 0 : index
    %c0_3 = arith.constant 0 : index
    %2 = vector.load %arg2[%c0_2, %c0_3] : memref<128x128xf32, #tpu.memory_space<vmem>>, vector<128x128xf32>
    %c0_4 = arith.constant 0 : index
    %c0_5 = arith.constant 0 : index
    %3 = vector.load %arg3[%c0_4, %c0_5] : memref<16x128xbf16, #tpu.memory_space<vmem>>, vector<16x128xbf16>
    %c0_6 = arith.constant 0 : index
    %c0_7 = arith.constant 0 : index
    %4 = vector.load %arg4[%c0_6, %c0_7] : memref<128x4xf32, #tpu.memory_space<vmem>>, vector<128x4xf32>
    %c0_8 = arith.constant 0 : index
    %c0_9 = arith.constant 0 : index
    %5 = vector.load %arg5[%c0_8, %c0_9] : memref<128x4xf32, #tpu.memory_space<vmem>>, vector<128x4xf32>
    %6 = arith.truncf %1 : vector<128x16xf32> to vector<128x16xbf16>
    %cst = arith.constant dense<0.000000e+00> : vector<128x128xf32>
    %7 = tpu.matmul %6, %3, %cst {dimension_numbers = #tpu.dot_dimension_numbers<[1], [0], [0], [1], [0, 0, 1, 1], [], []>} : vector<128x16xbf16>, vector<16x128xbf16>, vector<128x128xf32> -> vector<128x128xf32>
    %8 = arith.truncf %7 : vector<128x128xf32> to vector<128x128xbf16>
    %cst_10 = arith.constant dense<0.000000e+00> : vector<128x4xf32>
    %9 = tpu.matmul %7, %4, %cst_10 {dimension_numbers = #tpu.dot_dimension_numbers<[1], [0], [0], [1], [0, 0, 1, 1], [], []>} : vector<128x128xf32>, vector<128x4xf32>, vector<128x4xf32> -> vector<128x4xf32>
    %10 = tpu.transpose %9, [1, 0] : vector<128x4xf32> -> vector<4x128xf32>
    %cst_11 = arith.constant dense<0.000000e+00> : vector<128x4xf32>
    %11 = tpu.matmul %7, %5, %cst_11 {dimension_numbers = #tpu.dot_dimension_numbers<[1], [0], [0], [1], [0, 0, 1, 1], [], []>} : vector<128x128xf32>, vector<128x4xf32>, vector<128x4xf32> -> vector<128x4xf32>
    %12 = vector.extract_strided_slice %11 {offsets = [0, 0], sizes = [128, 1], strides = [1, 1]} : vector<128x4xf32> to vector<128x1xf32>
    %13 = vector.extract_strided_slice %10 {offsets = [0, 0], sizes = [1, 128], strides = [1, 1]} : vector<4x128xf32> to vector<1x128xf32>
    %14 = vector.broadcast %12 : vector<128x1xf32> to vector<128x128xf32>
    %15 = vector.broadcast %13 : vector<1x128xf32> to vector<128x128xf32>
    %16 = arith.addf %14, %15 : vector<128x128xf32>
    %cst_12 = arith.constant 0.000000e+00 : f32
    %17 = vector.broadcast %cst_12 : f32 to vector<128x128xf32>
    %18 = arith.cmpf ogt, %16, %17 : vector<128x128xf32>
    %cst_13 = arith.constant 2.000000e-01 : f32
    %19 = vector.broadcast %cst_13 : f32 to vector<128x128xf32>
    %20 = arith.mulf %19, %16 : vector<128x128xf32>
    %21 = arith.select %18, %16, %20 : vector<128x128xi1>, vector<128x128xf32>
    %22 = arith.addf %21, %2 : vector<128x128xf32>
    %cst_14 = arith.constant dense<0xFF800000> : vector<128xf32>
    %23 = vector.multi_reduction <maximumf>, %22, %cst_14 [1] : vector<128x128xf32> to vector<128xf32>
    %24 = vector.shape_cast %23 : vector<128xf32> to vector<128x1xf32>
    %25 = vector.broadcast %24 : vector<128x1xf32> to vector<128x128xf32>
    %26 = arith.subf %22, %25 : vector<128x128xf32>
    %27 = math.exp %26 : vector<128x128xf32>
    %cst_15 = arith.constant dense<0.000000e+00> : vector<128xf32>
    %28 = vector.multi_reduction <add>, %27, %cst_15 [1] : vector<128x128xf32> to vector<128xf32>
    %29 = vector.shape_cast %28 : vector<128xf32> to vector<128x1xf32>
    %30 = tpu.reciprocal %29 {approx = true} : vector<128x1xf32> -> vector<128x1xf32>
    %31 = vector.broadcast %30 : vector<128x1xf32> to vector<128x128xf32>
    %32 = arith.mulf %27, %31 : vector<128x128xf32>
    %33 = vector.extract_strided_slice %8 {offsets = [0, 0], sizes = [128, 32], strides = [1, 1]} : vector<128x128xbf16> to vector<128x32xbf16>
    %34 = arith.truncf %32 : vector<128x128xf32> to vector<128x128xbf16>
    %cst_16 = arith.constant dense<0.000000e+00> : vector<128x32xf32>
    %35 = tpu.matmul %34, %33, %cst_16 {dimension_numbers = #tpu.dot_dimension_numbers<[1], [0], [0], [1], [0, 0, 1, 1], [], []>} : vector<128x128xbf16>, vector<128x32xbf16>, vector<128x32xf32> -> vector<128x32xf32>
    %36 = vector.extract_strided_slice %11 {offsets = [0, 1], sizes = [128, 1], strides = [1, 1]} : vector<128x4xf32> to vector<128x1xf32>
    %37 = vector.extract_strided_slice %10 {offsets = [1, 0], sizes = [1, 128], strides = [1, 1]} : vector<4x128xf32> to vector<1x128xf32>
    %38 = vector.broadcast %36 : vector<128x1xf32> to vector<128x128xf32>
    %39 = vector.broadcast %37 : vector<1x128xf32> to vector<128x128xf32>
    %40 = arith.addf %38, %39 : vector<128x128xf32>
    %cst_17 = arith.constant 0.000000e+00 : f32
    %41 = vector.broadcast %cst_17 : f32 to vector<128x128xf32>
    %42 = arith.cmpf ogt, %40, %41 : vector<128x128xf32>
    %cst_18 = arith.constant 2.000000e-01 : f32
    %43 = vector.broadcast %cst_18 : f32 to vector<128x128xf32>
    %44 = arith.mulf %43, %40 : vector<128x128xf32>
    %45 = arith.select %42, %40, %44 : vector<128x128xi1>, vector<128x128xf32>
    %46 = arith.addf %45, %2 : vector<128x128xf32>
    %cst_19 = arith.constant dense<0xFF800000> : vector<128xf32>
    %47 = vector.multi_reduction <maximumf>, %46, %cst_19 [1] : vector<128x128xf32> to vector<128xf32>
    %48 = vector.shape_cast %47 : vector<128xf32> to vector<128x1xf32>
    %49 = vector.broadcast %48 : vector<128x1xf32> to vector<128x128xf32>
    %50 = arith.subf %46, %49 : vector<128x128xf32>
    %51 = math.exp %50 : vector<128x128xf32>
    %cst_20 = arith.constant dense<0.000000e+00> : vector<128xf32>
    %52 = vector.multi_reduction <add>, %51, %cst_20 [1] : vector<128x128xf32> to vector<128xf32>
    %53 = vector.shape_cast %52 : vector<128xf32> to vector<128x1xf32>
    %54 = tpu.reciprocal %53 {approx = true} : vector<128x1xf32> -> vector<128x1xf32>
    %55 = vector.broadcast %54 : vector<128x1xf32> to vector<128x128xf32>
    %56 = arith.mulf %51, %55 : vector<128x128xf32>
    %57 = vector.extract_strided_slice %8 {offsets = [0, 32], sizes = [128, 32], strides = [1, 1]} : vector<128x128xbf16> to vector<128x32xbf16>
    %58 = arith.truncf %56 : vector<128x128xf32> to vector<128x128xbf16>
    %cst_21 = arith.constant dense<0.000000e+00> : vector<128x32xf32>
    %59 = tpu.matmul %58, %57, %cst_21 {dimension_numbers = #tpu.dot_dimension_numbers<[1], [0], [0], [1], [0, 0, 1, 1], [], []>} : vector<128x128xbf16>, vector<128x32xbf16>, vector<128x32xf32> -> vector<128x32xf32>
    %60 = vector.extract_strided_slice %11 {offsets = [0, 2], sizes = [128, 1], strides = [1, 1]} : vector<128x4xf32> to vector<128x1xf32>
    %61 = vector.extract_strided_slice %10 {offsets = [2, 0], sizes = [1, 128], strides = [1, 1]} : vector<4x128xf32> to vector<1x128xf32>
    %62 = vector.broadcast %60 : vector<128x1xf32> to vector<128x128xf32>
    %63 = vector.broadcast %61 : vector<1x128xf32> to vector<128x128xf32>
    %64 = arith.addf %62, %63 : vector<128x128xf32>
    %cst_22 = arith.constant 0.000000e+00 : f32
    %65 = vector.broadcast %cst_22 : f32 to vector<128x128xf32>
    %66 = arith.cmpf ogt, %64, %65 : vector<128x128xf32>
    %cst_23 = arith.constant 2.000000e-01 : f32
    %67 = vector.broadcast %cst_23 : f32 to vector<128x128xf32>
    %68 = arith.mulf %67, %64 : vector<128x128xf32>
    %69 = arith.select %66, %64, %68 : vector<128x128xi1>, vector<128x128xf32>
    %70 = arith.addf %69, %2 : vector<128x128xf32>
    %cst_24 = arith.constant dense<0xFF800000> : vector<128xf32>
    %71 = vector.multi_reduction <maximumf>, %70, %cst_24 [1] : vector<128x128xf32> to vector<128xf32>
    %72 = vector.shape_cast %71 : vector<128xf32> to vector<128x1xf32>
    %73 = vector.broadcast %72 : vector<128x1xf32> to vector<128x128xf32>
    %74 = arith.subf %70, %73 : vector<128x128xf32>
    %75 = math.exp %74 : vector<128x128xf32>
    %cst_25 = arith.constant dense<0.000000e+00> : vector<128xf32>
    %76 = vector.multi_reduction <add>, %75, %cst_25 [1] : vector<128x128xf32> to vector<128xf32>
    %77 = vector.shape_cast %76 : vector<128xf32> to vector<128x1xf32>
    %78 = tpu.reciprocal %77 {approx = true} : vector<128x1xf32> -> vector<128x1xf32>
    %79 = vector.broadcast %78 : vector<128x1xf32> to vector<128x128xf32>
    %80 = arith.mulf %75, %79 : vector<128x128xf32>
    %81 = vector.extract_strided_slice %8 {offsets = [0, 64], sizes = [128, 32], strides = [1, 1]} : vector<128x128xbf16> to vector<128x32xbf16>
    %82 = arith.truncf %80 : vector<128x128xf32> to vector<128x128xbf16>
    %cst_26 = arith.constant dense<0.000000e+00> : vector<128x32xf32>
    %83 = tpu.matmul %82, %81, %cst_26 {dimension_numbers = #tpu.dot_dimension_numbers<[1], [0], [0], [1], [0, 0, 1, 1], [], []>} : vector<128x128xbf16>, vector<128x32xbf16>, vector<128x32xf32> -> vector<128x32xf32>
    %84 = vector.extract_strided_slice %11 {offsets = [0, 3], sizes = [128, 1], strides = [1, 1]} : vector<128x4xf32> to vector<128x1xf32>
    %85 = vector.extract_strided_slice %10 {offsets = [3, 0], sizes = [1, 128], strides = [1, 1]} : vector<4x128xf32> to vector<1x128xf32>
    %86 = vector.broadcast %84 : vector<128x1xf32> to vector<128x128xf32>
    %87 = vector.broadcast %85 : vector<1x128xf32> to vector<128x128xf32>
    %88 = arith.addf %86, %87 : vector<128x128xf32>
    %cst_27 = arith.constant 0.000000e+00 : f32
    %89 = vector.broadcast %cst_27 : f32 to vector<128x128xf32>
    %90 = arith.cmpf ogt, %88, %89 : vector<128x128xf32>
    %cst_28 = arith.constant 2.000000e-01 : f32
    %91 = vector.broadcast %cst_28 : f32 to vector<128x128xf32>
    %92 = arith.mulf %91, %88 : vector<128x128xf32>
    %93 = arith.select %90, %88, %92 : vector<128x128xi1>, vector<128x128xf32>
    %94 = arith.addf %93, %2 : vector<128x128xf32>
    %cst_29 = arith.constant dense<0xFF800000> : vector<128xf32>
    %95 = vector.multi_reduction <maximumf>, %94, %cst_29 [1] : vector<128x128xf32> to vector<128xf32>
    %96 = vector.shape_cast %95 : vector<128xf32> to vector<128x1xf32>
    %97 = vector.broadcast %96 : vector<128x1xf32> to vector<128x128xf32>
    %98 = arith.subf %94, %97 : vector<128x128xf32>
    %99 = math.exp %98 : vector<128x128xf32>
    %cst_30 = arith.constant dense<0.000000e+00> : vector<128xf32>
    %100 = vector.multi_reduction <add>, %99, %cst_30 [1] : vector<128x128xf32> to vector<128xf32>
    %101 = vector.shape_cast %100 : vector<128xf32> to vector<128x1xf32>
    %102 = tpu.reciprocal %101 {approx = true} : vector<128x1xf32> -> vector<128x1xf32>
    %103 = vector.broadcast %102 : vector<128x1xf32> to vector<128x128xf32>
    %104 = arith.mulf %99, %103 : vector<128x128xf32>
    %105 = vector.extract_strided_slice %8 {offsets = [0, 96], sizes = [128, 32], strides = [1, 1]} : vector<128x128xbf16> to vector<128x32xbf16>
    %106 = arith.truncf %104 : vector<128x128xf32> to vector<128x128xbf16>
    %cst_31 = arith.constant dense<0.000000e+00> : vector<128x32xf32>
    %107 = tpu.matmul %106, %105, %cst_31 {dimension_numbers = #tpu.dot_dimension_numbers<[1], [0], [0], [1], [0, 0, 1, 1], [], []>} : vector<128x128xbf16>, vector<128x32xbf16>, vector<128x32xf32> -> vector<128x32xf32>
    %108 = tpu.concatenate %35, %59, %83, %107 in 1 : vector<128x32xf32>, vector<128x32xf32>, vector<128x32xf32>, vector<128x32xf32> -> vector<128x128xf32>
    %cst_32 = arith.constant 0.000000e+00 : f32
    %109 = vector.broadcast %cst_32 : f32 to vector<128x128xf32>
    %110 = arith.cmpf ogt, %108, %109 : vector<128x128xf32>
    %cst_33 = arith.constant 0.000000e+00 : f32
    %111 = vector.broadcast %cst_33 : f32 to vector<128x128xf32>
    %112 = arith.minimumf %108, %111 : vector<128x128xf32>
    %113 = math.exp %112 : vector<128x128xf32>
    %cst_34 = arith.constant 1.000000e+00 : f32
    %114 = vector.broadcast %cst_34 : f32 to vector<128x128xf32>
    %115 = arith.subf %113, %114 : vector<128x128xf32>
    %116 = arith.select %110, %108, %115 : vector<128x128xi1>, vector<128x128xf32>
    %c0_35 = arith.constant 0 : index
    %c0_36 = arith.constant 0 : index
    %117 = vector.load %arg6[%c0_35, %c0_36] : memref<128x128xbf16, #tpu.memory_space<vmem>>, vector<128x128xbf16>
    %c0_37 = arith.constant 0 : index
    %c0_38 = arith.constant 0 : index
    %118 = vector.load %arg7[%c0_37, %c0_38] : memref<128x4xf32, #tpu.memory_space<vmem>>, vector<128x4xf32>
    %c0_39 = arith.constant 0 : index
    %c0_40 = arith.constant 0 : index
    %119 = vector.load %arg8[%c0_39, %c0_40] : memref<128x4xf32, #tpu.memory_space<vmem>>, vector<128x4xf32>
    %120 = arith.truncf %116 : vector<128x128xf32> to vector<128x128xbf16>
    %cst_41 = arith.constant dense<0.000000e+00> : vector<128x128xf32>
    %121 = tpu.matmul %120, %117, %cst_41 {dimension_numbers = #tpu.dot_dimension_numbers<[1], [0], [0], [1], [0, 0, 1, 1], [], []>} : vector<128x128xbf16>, vector<128x128xbf16>, vector<128x128xf32> -> vector<128x128xf32>
    %122 = arith.truncf %121 : vector<128x128xf32> to vector<128x128xbf16>
    %cst_42 = arith.constant dense<0.000000e+00> : vector<128x4xf32>
    %123 = tpu.matmul %121, %118, %cst_42 {dimension_numbers = #tpu.dot_dimension_numbers<[1], [0], [0], [1], [0, 0, 1, 1], [], []>} : vector<128x128xf32>, vector<128x4xf32>, vector<128x4xf32> -> vector<128x4xf32>
    %124 = tpu.transpose %123, [1, 0] : vector<128x4xf32> -> vector<4x128xf32>
    %cst_43 = arith.constant dense<0.000000e+00> : vector<128x4xf32>
    %125 = tpu.matmul %121, %119, %cst_43 {dimension_numbers = #tpu.dot_dimension_numbers<[1], [0], [0], [1], [0, 0, 1, 1], [], []>} : vector<128x128xf32>, vector<128x4xf32>, vector<128x4xf32> -> vector<128x4xf32>
    %126 = vector.extract_strided_slice %125 {offsets = [0, 0], sizes = [128, 1], strides = [1, 1]} : vector<128x4xf32> to vector<128x1xf32>
    %127 = vector.extract_strided_slice %124 {offsets = [0, 0], sizes = [1, 128], strides = [1, 1]} : vector<4x128xf32> to vector<1x128xf32>
    %128 = vector.broadcast %126 : vector<128x1xf32> to vector<128x128xf32>
    %129 = vector.broadcast %127 : vector<1x128xf32> to vector<128x128xf32>
    %130 = arith.addf %128, %129 : vector<128x128xf32>
    %cst_44 = arith.constant 0.000000e+00 : f32
    %131 = vector.broadcast %cst_44 : f32 to vector<128x128xf32>
    %132 = arith.cmpf ogt, %130, %131 : vector<128x128xf32>
    %cst_45 = arith.constant 2.000000e-01 : f32
    %133 = vector.broadcast %cst_45 : f32 to vector<128x128xf32>
    %134 = arith.mulf %133, %130 : vector<128x128xf32>
    %135 = arith.select %132, %130, %134 : vector<128x128xi1>, vector<128x128xf32>
    %136 = arith.addf %135, %2 : vector<128x128xf32>
    %cst_46 = arith.constant dense<0xFF800000> : vector<128xf32>
    %137 = vector.multi_reduction <maximumf>, %136, %cst_46 [1] : vector<128x128xf32> to vector<128xf32>
    %138 = vector.shape_cast %137 : vector<128xf32> to vector<128x1xf32>
    %139 = vector.broadcast %138 : vector<128x1xf32> to vector<128x128xf32>
    %140 = arith.subf %136, %139 : vector<128x128xf32>
    %141 = math.exp %140 : vector<128x128xf32>
    %cst_47 = arith.constant dense<0.000000e+00> : vector<128xf32>
    %142 = vector.multi_reduction <add>, %141, %cst_47 [1] : vector<128x128xf32> to vector<128xf32>
    %143 = vector.shape_cast %142 : vector<128xf32> to vector<128x1xf32>
    %144 = tpu.reciprocal %143 {approx = true} : vector<128x1xf32> -> vector<128x1xf32>
    %145 = vector.broadcast %144 : vector<128x1xf32> to vector<128x128xf32>
    %146 = arith.mulf %141, %145 : vector<128x128xf32>
    %147 = vector.extract_strided_slice %122 {offsets = [0, 0], sizes = [128, 32], strides = [1, 1]} : vector<128x128xbf16> to vector<128x32xbf16>
    %148 = arith.truncf %146 : vector<128x128xf32> to vector<128x128xbf16>
    %cst_48 = arith.constant dense<0.000000e+00> : vector<128x32xf32>
    %149 = tpu.matmul %148, %147, %cst_48 {dimension_numbers = #tpu.dot_dimension_numbers<[1], [0], [0], [1], [0, 0, 1, 1], [], []>} : vector<128x128xbf16>, vector<128x32xbf16>, vector<128x32xf32> -> vector<128x32xf32>
    %150 = vector.extract_strided_slice %125 {offsets = [0, 1], sizes = [128, 1], strides = [1, 1]} : vector<128x4xf32> to vector<128x1xf32>
    %151 = vector.extract_strided_slice %124 {offsets = [1, 0], sizes = [1, 128], strides = [1, 1]} : vector<4x128xf32> to vector<1x128xf32>
    %152 = vector.broadcast %150 : vector<128x1xf32> to vector<128x128xf32>
    %153 = vector.broadcast %151 : vector<1x128xf32> to vector<128x128xf32>
    %154 = arith.addf %152, %153 : vector<128x128xf32>
    %cst_49 = arith.constant 0.000000e+00 : f32
    %155 = vector.broadcast %cst_49 : f32 to vector<128x128xf32>
    %156 = arith.cmpf ogt, %154, %155 : vector<128x128xf32>
    %cst_50 = arith.constant 2.000000e-01 : f32
    %157 = vector.broadcast %cst_50 : f32 to vector<128x128xf32>
    %158 = arith.mulf %157, %154 : vector<128x128xf32>
    %159 = arith.select %156, %154, %158 : vector<128x128xi1>, vector<128x128xf32>
    %160 = arith.addf %159, %2 : vector<128x128xf32>
    %cst_51 = arith.constant dense<0xFF800000> : vector<128xf32>
    %161 = vector.multi_reduction <maximumf>, %160, %cst_51 [1] : vector<128x128xf32> to vector<128xf32>
    %162 = vector.shape_cast %161 : vector<128xf32> to vector<128x1xf32>
    %163 = vector.broadcast %162 : vector<128x1xf32> to vector<128x128xf32>
    %164 = arith.subf %160, %163 : vector<128x128xf32>
    %165 = math.exp %164 : vector<128x128xf32>
    %cst_52 = arith.constant dense<0.000000e+00> : vector<128xf32>
    %166 = vector.multi_reduction <add>, %165, %cst_52 [1] : vector<128x128xf32> to vector<128xf32>
    %167 = vector.shape_cast %166 : vector<128xf32> to vector<128x1xf32>
    %168 = tpu.reciprocal %167 {approx = true} : vector<128x1xf32> -> vector<128x1xf32>
    %169 = vector.broadcast %168 : vector<128x1xf32> to vector<128x128xf32>
    %170 = arith.mulf %165, %169 : vector<128x128xf32>
    %171 = vector.extract_strided_slice %122 {offsets = [0, 32], sizes = [128, 32], strides = [1, 1]} : vector<128x128xbf16> to vector<128x32xbf16>
    %172 = arith.truncf %170 : vector<128x128xf32> to vector<128x128xbf16>
    %cst_53 = arith.constant dense<0.000000e+00> : vector<128x32xf32>
    %173 = tpu.matmul %172, %171, %cst_53 {dimension_numbers = #tpu.dot_dimension_numbers<[1], [0], [0], [1], [0, 0, 1, 1], [], []>} : vector<128x128xbf16>, vector<128x32xbf16>, vector<128x32xf32> -> vector<128x32xf32>
    %174 = vector.extract_strided_slice %125 {offsets = [0, 2], sizes = [128, 1], strides = [1, 1]} : vector<128x4xf32> to vector<128x1xf32>
    %175 = vector.extract_strided_slice %124 {offsets = [2, 0], sizes = [1, 128], strides = [1, 1]} : vector<4x128xf32> to vector<1x128xf32>
    %176 = vector.broadcast %174 : vector<128x1xf32> to vector<128x128xf32>
    %177 = vector.broadcast %175 : vector<1x128xf32> to vector<128x128xf32>
    %178 = arith.addf %176, %177 : vector<128x128xf32>
    %cst_54 = arith.constant 0.000000e+00 : f32
    %179 = vector.broadcast %cst_54 : f32 to vector<128x128xf32>
    %180 = arith.cmpf ogt, %178, %179 : vector<128x128xf32>
    %cst_55 = arith.constant 2.000000e-01 : f32
    %181 = vector.broadcast %cst_55 : f32 to vector<128x128xf32>
    %182 = arith.mulf %181, %178 : vector<128x128xf32>
    %183 = arith.select %180, %178, %182 : vector<128x128xi1>, vector<128x128xf32>
    %184 = arith.addf %183, %2 : vector<128x128xf32>
    %cst_56 = arith.constant dense<0xFF800000> : vector<128xf32>
    %185 = vector.multi_reduction <maximumf>, %184, %cst_56 [1] : vector<128x128xf32> to vector<128xf32>
    %186 = vector.shape_cast %185 : vector<128xf32> to vector<128x1xf32>
    %187 = vector.broadcast %186 : vector<128x1xf32> to vector<128x128xf32>
    %188 = arith.subf %184, %187 : vector<128x128xf32>
    %189 = math.exp %188 : vector<128x128xf32>
    %cst_57 = arith.constant dense<0.000000e+00> : vector<128xf32>
    %190 = vector.multi_reduction <add>, %189, %cst_57 [1] : vector<128x128xf32> to vector<128xf32>
    %191 = vector.shape_cast %190 : vector<128xf32> to vector<128x1xf32>
    %192 = tpu.reciprocal %191 {approx = true} : vector<128x1xf32> -> vector<128x1xf32>
    %193 = vector.broadcast %192 : vector<128x1xf32> to vector<128x128xf32>
    %194 = arith.mulf %189, %193 : vector<128x128xf32>
    %195 = vector.extract_strided_slice %122 {offsets = [0, 64], sizes = [128, 32], strides = [1, 1]} : vector<128x128xbf16> to vector<128x32xbf16>
    %196 = arith.truncf %194 : vector<128x128xf32> to vector<128x128xbf16>
    %cst_58 = arith.constant dense<0.000000e+00> : vector<128x32xf32>
    %197 = tpu.matmul %196, %195, %cst_58 {dimension_numbers = #tpu.dot_dimension_numbers<[1], [0], [0], [1], [0, 0, 1, 1], [], []>} : vector<128x128xbf16>, vector<128x32xbf16>, vector<128x32xf32> -> vector<128x32xf32>
    %198 = vector.extract_strided_slice %125 {offsets = [0, 3], sizes = [128, 1], strides = [1, 1]} : vector<128x4xf32> to vector<128x1xf32>
    %199 = vector.extract_strided_slice %124 {offsets = [3, 0], sizes = [1, 128], strides = [1, 1]} : vector<4x128xf32> to vector<1x128xf32>
    %200 = vector.broadcast %198 : vector<128x1xf32> to vector<128x128xf32>
    %201 = vector.broadcast %199 : vector<1x128xf32> to vector<128x128xf32>
    %202 = arith.addf %200, %201 : vector<128x128xf32>
    %cst_59 = arith.constant 0.000000e+00 : f32
    %203 = vector.broadcast %cst_59 : f32 to vector<128x128xf32>
    %204 = arith.cmpf ogt, %202, %203 : vector<128x128xf32>
    %cst_60 = arith.constant 2.000000e-01 : f32
    %205 = vector.broadcast %cst_60 : f32 to vector<128x128xf32>
    %206 = arith.mulf %205, %202 : vector<128x128xf32>
    %207 = arith.select %204, %202, %206 : vector<128x128xi1>, vector<128x128xf32>
    %208 = arith.addf %207, %2 : vector<128x128xf32>
    %cst_61 = arith.constant dense<0xFF800000> : vector<128xf32>
    %209 = vector.multi_reduction <maximumf>, %208, %cst_61 [1] : vector<128x128xf32> to vector<128xf32>
    %210 = vector.shape_cast %209 : vector<128xf32> to vector<128x1xf32>
    %211 = vector.broadcast %210 : vector<128x1xf32> to vector<128x128xf32>
    %212 = arith.subf %208, %211 : vector<128x128xf32>
    %213 = math.exp %212 : vector<128x128xf32>
    %cst_62 = arith.constant dense<0.000000e+00> : vector<128xf32>
    %214 = vector.multi_reduction <add>, %213, %cst_62 [1] : vector<128x128xf32> to vector<128xf32>
    %215 = vector.shape_cast %214 : vector<128xf32> to vector<128x1xf32>
    %216 = tpu.reciprocal %215 {approx = true} : vector<128x1xf32> -> vector<128x1xf32>
    %217 = vector.broadcast %216 : vector<128x1xf32> to vector<128x128xf32>
    %218 = arith.mulf %213, %217 : vector<128x128xf32>
    %219 = vector.extract_strided_slice %122 {offsets = [0, 96], sizes = [128, 32], strides = [1, 1]} : vector<128x128xbf16> to vector<128x32xbf16>
    %220 = arith.truncf %218 : vector<128x128xf32> to vector<128x128xbf16>
    %cst_63 = arith.constant dense<0.000000e+00> : vector<128x32xf32>
    %221 = tpu.matmul %220, %219, %cst_63 {dimension_numbers = #tpu.dot_dimension_numbers<[1], [0], [0], [1], [0, 0, 1, 1], [], []>} : vector<128x128xbf16>, vector<128x32xbf16>, vector<128x32xf32> -> vector<128x32xf32>
    %cst_64 = arith.constant 0.000000e+00 : f32
    %222 = vector.broadcast %cst_64 : f32 to vector<128x32xf32>
    %223 = arith.addf %222, %149 : vector<128x32xf32>
    %224 = arith.addf %223, %173 : vector<128x32xf32>
    %225 = arith.addf %224, %197 : vector<128x32xf32>
    %226 = arith.addf %225, %221 : vector<128x32xf32>
    %cst_65 = arith.constant 2.500000e-01 : f32
    %227 = vector.broadcast %cst_65 : f32 to vector<128x32xf32>
    %228 = arith.mulf %226, %227 : vector<128x32xf32>
    %c0_66 = arith.constant 0 : index
    %c0_67 = arith.constant 0 : index
    %229 = vector.load %arg9[%c0_66, %c0_67] : memref<32x1xf32, #tpu.memory_space<vmem>>, vector<32x1xf32>
    %cst_68 = arith.constant dense<0.000000e+00> : vector<128x1xf32>
    %230 = tpu.matmul %228, %229, %cst_68 {dimension_numbers = #tpu.dot_dimension_numbers<[1], [0], [0], [1], [0, 0, 1, 1], [], []>} : vector<128x32xf32>, vector<32x1xf32>, vector<128x1xf32> -> vector<128x1xf32>
    %c0_69 = arith.constant 0 : index
    %231 = memref.load %arg10[%c0_69] : memref<1xf32, #tpu.memory_space<smem>>
    %232 = vector.broadcast %231 : f32 to vector<128x1xf32>
    %233 = arith.addf %230, %232 : vector<128x1xf32>
    %234 = arith.negf %233 : vector<128x1xf32>
    %235 = math.exp %234 : vector<128x1xf32>
    %cst_70 = arith.constant 1.000000e+00 : f32
    %236 = vector.broadcast %cst_70 : f32 to vector<128x1xf32>
    %237 = arith.addf %236, %235 : vector<128x1xf32>
    %238 = arith.divf %236, %237 : vector<128x1xf32>
    %c0_71 = arith.constant 0 : index
    %c0_72 = arith.constant 0 : index
    %239 = vector.load %arg11[%c0_71, %c0_72] : memref<21x128xf32, #tpu.memory_space<vmem>>, vector<21x128xf32>
    %240 = vector.broadcast %238 : vector<128x1xf32> to vector<128x32xf32>
    %241 = arith.mulf %240, %228 : vector<128x32xf32>
    %cst_73 = arith.constant dense<0.000000e+00> : vector<21x32xf32>
    %242 = tpu.matmul %239, %241, %cst_73 {dimension_numbers = #tpu.dot_dimension_numbers<[1], [0], [0], [1], [0, 0, 1, 1], [], []>} : vector<21x128xf32>, vector<128x32xf32>, vector<21x32xf32> -> vector<21x32xf32>
    %243 = vector.extract_strided_slice %228 {offsets = [0, 0], sizes = [6, 32], strides = [1, 1]} : vector<128x32xf32> to vector<6x32xf32>
    %cst_74 = arith.constant dense<0xFF800000> : vector<32xf32>
    %244 = vector.multi_reduction <maximumf>, %243, %cst_74 [0] : vector<6x32xf32> to vector<32xf32>
    %245 = vector.shape_cast %244 : vector<32xf32> to vector<1x32xf32>
    %246 = vector.extract_strided_slice %228 {offsets = [6, 0], sizes = [6, 32], strides = [1, 1]} : vector<128x32xf32> to vector<6x32xf32>
    %cst_75 = arith.constant dense<0xFF800000> : vector<32xf32>
    %247 = vector.multi_reduction <maximumf>, %246, %cst_75 [0] : vector<6x32xf32> to vector<32xf32>
    %248 = vector.shape_cast %247 : vector<32xf32> to vector<1x32xf32>
    %249 = vector.extract_strided_slice %228 {offsets = [12, 0], sizes = [6, 32], strides = [1, 1]} : vector<128x32xf32> to vector<6x32xf32>
    %cst_76 = arith.constant dense<0xFF800000> : vector<32xf32>
    %250 = vector.multi_reduction <maximumf>, %249, %cst_76 [0] : vector<6x32xf32> to vector<32xf32>
    %251 = vector.shape_cast %250 : vector<32xf32> to vector<1x32xf32>
    %252 = vector.extract_strided_slice %228 {offsets = [18, 0], sizes = [6, 32], strides = [1, 1]} : vector<128x32xf32> to vector<6x32xf32>
    %cst_77 = arith.constant dense<0xFF800000> : vector<32xf32>
    %253 = vector.multi_reduction <maximumf>, %252, %cst_77 [0] : vector<6x32xf32> to vector<32xf32>
    %254 = vector.shape_cast %253 : vector<32xf32> to vector<1x32xf32>
    %255 = vector.extract_strided_slice %228 {offsets = [24, 0], sizes = [6, 32], strides = [1, 1]} : vector<128x32xf32> to vector<6x32xf32>
    %cst_78 = arith.constant dense<0xFF800000> : vector<32xf32>
    %256 = vector.multi_reduction <maximumf>, %255, %cst_78 [0] : vector<6x32xf32> to vector<32xf32>
    %257 = vector.shape_cast %256 : vector<32xf32> to vector<1x32xf32>
    %258 = vector.extract_strided_slice %228 {offsets = [30, 0], sizes = [6, 32], strides = [1, 1]} : vector<128x32xf32> to vector<6x32xf32>
    %cst_79 = arith.constant dense<0xFF800000> : vector<32xf32>
    %259 = vector.multi_reduction <maximumf>, %258, %cst_79 [0] : vector<6x32xf32> to vector<32xf32>
    %260 = vector.shape_cast %259 : vector<32xf32> to vector<1x32xf32>
    %261 = vector.extract_strided_slice %228 {offsets = [36, 0], sizes = [6, 32], strides = [1, 1]} : vector<128x32xf32> to vector<6x32xf32>
    %cst_80 = arith.constant dense<0xFF800000> : vector<32xf32>
    %262 = vector.multi_reduction <maximumf>, %261, %cst_80 [0] : vector<6x32xf32> to vector<32xf32>
    %263 = vector.shape_cast %262 : vector<32xf32> to vector<1x32xf32>
    %264 = tpu.concatenate %245, %248, %251, %254, %257, %260, %263 in 0 : vector<1x32xf32>, vector<1x32xf32>, vector<1x32xf32>, vector<1x32xf32>, vector<1x32xf32>, vector<1x32xf32>, vector<1x32xf32> -> vector<7x32xf32>
    %265 = vector.extract_strided_slice %242 {offsets = [0, 0], sizes = [7, 32], strides = [1, 1]} : vector<21x32xf32> to vector<7x32xf32>
    %266 = vector.extract_strided_slice %228 {offsets = [42, 0], sizes = [5, 32], strides = [1, 1]} : vector<128x32xf32> to vector<5x32xf32>
    %cst_81 = arith.constant dense<0xFF800000> : vector<32xf32>
    %267 = vector.multi_reduction <maximumf>, %266, %cst_81 [0] : vector<5x32xf32> to vector<32xf32>
    %268 = vector.shape_cast %267 : vector<32xf32> to vector<1x32xf32>
    %269 = vector.extract_strided_slice %228 {offsets = [47, 0], sizes = [5, 32], strides = [1, 1]} : vector<128x32xf32> to vector<5x32xf32>
    %cst_82 = arith.constant dense<0xFF800000> : vector<32xf32>
    %270 = vector.multi_reduction <maximumf>, %269, %cst_82 [0] : vector<5x32xf32> to vector<32xf32>
    %271 = vector.shape_cast %270 : vector<32xf32> to vector<1x32xf32>
    %272 = vector.extract_strided_slice %228 {offsets = [52, 0], sizes = [5, 32], strides = [1, 1]} : vector<128x32xf32> to vector<5x32xf32>
    %cst_83 = arith.constant dense<0xFF800000> : vector<32xf32>
    %273 = vector.multi_reduction <maximumf>, %272, %cst_83 [0] : vector<5x32xf32> to vector<32xf32>
    %274 = vector.shape_cast %273 : vector<32xf32> to vector<1x32xf32>
    %275 = vector.extract_strided_slice %228 {offsets = [57, 0], sizes = [5, 32], strides = [1, 1]} : vector<128x32xf32> to vector<5x32xf32>
    %cst_84 = arith.constant dense<0xFF800000> : vector<32xf32>
    %276 = vector.multi_reduction <maximumf>, %275, %cst_84 [0] : vector<5x32xf32> to vector<32xf32>
    %277 = vector.shape_cast %276 : vector<32xf32> to vector<1x32xf32>
    %278 = vector.extract_strided_slice %228 {offsets = [62, 0], sizes = [5, 32], strides = [1, 1]} : vector<128x32xf32> to vector<5x32xf32>
    %cst_85 = arith.constant dense<0xFF800000> : vector<32xf32>
    %279 = vector.multi_reduction <maximumf>, %278, %cst_85 [0] : vector<5x32xf32> to vector<32xf32>
    %280 = vector.shape_cast %279 : vector<32xf32> to vector<1x32xf32>
    %281 = vector.extract_strided_slice %228 {offsets = [67, 0], sizes = [5, 32], strides = [1, 1]} : vector<128x32xf32> to vector<5x32xf32>
    %cst_86 = arith.constant dense<0xFF800000> : vector<32xf32>
    %282 = vector.multi_reduction <maximumf>, %281, %cst_86 [0] : vector<5x32xf32> to vector<32xf32>
    %283 = vector.shape_cast %282 : vector<32xf32> to vector<1x32xf32>
    %284 = vector.extract_strided_slice %228 {offsets = [72, 0], sizes = [5, 32], strides = [1, 1]} : vector<128x32xf32> to vector<5x32xf32>
    %cst_87 = arith.constant dense<0xFF800000> : vector<32xf32>
    %285 = vector.multi_reduction <maximumf>, %284, %cst_87 [0] : vector<5x32xf32> to vector<32xf32>
    %286 = vector.shape_cast %285 : vector<32xf32> to vector<1x32xf32>
    %287 = tpu.concatenate %268, %271, %274, %277, %280, %283, %286 in 0 : vector<1x32xf32>, vector<1x32xf32>, vector<1x32xf32>, vector<1x32xf32>, vector<1x32xf32>, vector<1x32xf32>, vector<1x32xf32> -> vector<7x32xf32>
    %288 = vector.extract_strided_slice %242 {offsets = [7, 0], sizes = [7, 32], strides = [1, 1]} : vector<21x32xf32> to vector<7x32xf32>
    %289 = vector.extract_strided_slice %228 {offsets = [77, 0], sizes = [7, 32], strides = [1, 1]} : vector<128x32xf32> to vector<7x32xf32>
    %cst_88 = arith.constant dense<0xFF800000> : vector<32xf32>
    %290 = vector.multi_reduction <maximumf>, %289, %cst_88 [0] : vector<7x32xf32> to vector<32xf32>
    %291 = vector.shape_cast %290 : vector<32xf32> to vector<1x32xf32>
    %292 = vector.extract_strided_slice %228 {offsets = [84, 0], sizes = [7, 32], strides = [1, 1]} : vector<128x32xf32> to vector<7x32xf32>
    %cst_89 = arith.constant dense<0xFF800000> : vector<32xf32>
    %293 = vector.multi_reduction <maximumf>, %292, %cst_89 [0] : vector<7x32xf32> to vector<32xf32>
    %294 = vector.shape_cast %293 : vector<32xf32> to vector<1x32xf32>
    %295 = vector.extract_strided_slice %228 {offsets = [91, 0], sizes = [7, 32], strides = [1, 1]} : vector<128x32xf32> to vector<7x32xf32>
    %cst_90 = arith.constant dense<0xFF800000> : vector<32xf32>
    %296 = vector.multi_reduction <maximumf>, %295, %cst_90 [0] : vector<7x32xf32> to vector<32xf32>
    %297 = vector.shape_cast %296 : vector<32xf32> to vector<1x32xf32>
    %298 = vector.extract_strided_slice %228 {offsets = [98, 0], sizes = [7, 32], strides = [1, 1]} : vector<128x32xf32> to vector<7x32xf32>
    %cst_91 = arith.constant dense<0xFF800000> : vector<32xf32>
    %299 = vector.multi_reduction <maximumf>, %298, %cst_91 [0] : vector<7x32xf32> to vector<32xf32>
    %300 = vector.shape_cast %299 : vector<32xf32> to vector<1x32xf32>
    %301 = vector.extract_strided_slice %228 {offsets = [105, 0], sizes = [7, 32], strides = [1, 1]} : vector<128x32xf32> to vector<7x32xf32>
    %cst_92 = arith.constant dense<0xFF800000> : vector<32xf32>
    %302 = vector.multi_reduction <maximumf>, %301, %cst_92 [0] : vector<7x32xf32> to vector<32xf32>
    %303 = vector.shape_cast %302 : vector<32xf32> to vector<1x32xf32>
    %304 = vector.extract_strided_slice %228 {offsets = [112, 0], sizes = [7, 32], strides = [1, 1]} : vector<128x32xf32> to vector<7x32xf32>
    %cst_93 = arith.constant dense<0xFF800000> : vector<32xf32>
    %305 = vector.multi_reduction <maximumf>, %304, %cst_93 [0] : vector<7x32xf32> to vector<32xf32>
    %306 = vector.shape_cast %305 : vector<32xf32> to vector<1x32xf32>
    %307 = vector.extract_strided_slice %228 {offsets = [119, 0], sizes = [7, 32], strides = [1, 1]} : vector<128x32xf32> to vector<7x32xf32>
    %cst_94 = arith.constant dense<0xFF800000> : vector<32xf32>
    %308 = vector.multi_reduction <maximumf>, %307, %cst_94 [0] : vector<7x32xf32> to vector<32xf32>
    %309 = vector.shape_cast %308 : vector<32xf32> to vector<1x32xf32>
    %310 = tpu.concatenate %291, %294, %297, %300, %303, %306, %309 in 0 : vector<1x32xf32>, vector<1x32xf32>, vector<1x32xf32>, vector<1x32xf32>, vector<1x32xf32>, vector<1x32xf32>, vector<1x32xf32> -> vector<7x32xf32>
    %311 = vector.extract_strided_slice %242 {offsets = [14, 0], sizes = [7, 32], strides = [1, 1]} : vector<21x32xf32> to vector<7x32xf32>
    %312 = tpu.concatenate %265, %264, %288, %287, %311, %310 in 1 : vector<7x32xf32>, vector<7x32xf32>, vector<7x32xf32>, vector<7x32xf32>, vector<7x32xf32>, vector<7x32xf32> -> vector<7x192xf32>
    %c0_95 = arith.constant 0 : index
    %c0_96 = arith.constant 0 : index
    %c0_97 = arith.constant 0 : index
    %313 = vector.load %arg12[%c0_95, %c0_96, %c0_97] : memref<1x7x192xf32, #tpu.memory_space<vmem>>, vector<1x7x192xf32>
    %314 = vector.shape_cast %313 : vector<1x7x192xf32> to vector<7x192xf32>
    %315 = vector.shape_cast %312 : vector<7x192xf32> to vector<1x7x192xf32>
    tpu.vector_store %arg12[%c0_95, %c0_96, %c0_97], %315 {strides = array<i32>} : memref<1x7x192xf32, #tpu.memory_space<vmem>>, vector<1x7x192xf32>,
    return
  }
  func.func @transform_0(%arg0: i32) -> (i32, i32, i32) {
    %c0_i32 = arith.constant 0 : i32
    %c0_i32_0 = arith.constant 0 : i32
    %c0_i32_1 = arith.constant 0 : i32
    return %arg0, %c0_i32, %c0_i32_0 : i32, i32, i32
  }
  func.func @transform_1(%arg0: i32) -> (i32, i32) {
    %c0_i32 = arith.constant 0 : i32
    %c0_i32_0 = arith.constant 0 : i32
    %c0_i32_1 = arith.constant 0 : i32
    return %c0_i32, %c0_i32_0 : i32, i32
  }
  func.func @transform_2(%arg0: i32) -> (i32, i32) {
    %c0_i32 = arith.constant 0 : i32
    %c0_i32_0 = arith.constant 0 : i32
    %c0_i32_1 = arith.constant 0 : i32
    return %c0_i32, %c0_i32_0 : i32, i32
  }
  func.func @transform_3(%arg0: i32) -> (i32, i32) {
    %c0_i32 = arith.constant 0 : i32
    %c0_i32_0 = arith.constant 0 : i32
    %c0_i32_1 = arith.constant 0 : i32
    return %c0_i32, %c0_i32_0 : i32, i32
  }
  func.func @transform_4(%arg0: i32) -> (i32, i32) {
    %c0_i32 = arith.constant 0 : i32
    %c0_i32_0 = arith.constant 0 : i32
    %c0_i32_1 = arith.constant 0 : i32
    return %c0_i32, %c0_i32_0 : i32, i32
  }
  func.func @transform_5(%arg0: i32) -> (i32, i32) {
    %c0_i32 = arith.constant 0 : i32
    %c0_i32_0 = arith.constant 0 : i32
    %c0_i32_1 = arith.constant 0 : i32
    return %c0_i32, %c0_i32_0 : i32, i32
  }
  func.func @transform_6(%arg0: i32) -> (i32, i32) {
    %c0_i32 = arith.constant 0 : i32
    %c0_i32_0 = arith.constant 0 : i32
    %c0_i32_1 = arith.constant 0 : i32
    return %c0_i32, %c0_i32_0 : i32, i32
  }
  func.func @transform_7(%arg0: i32) -> (i32, i32) {
    %c0_i32 = arith.constant 0 : i32
    %c0_i32_0 = arith.constant 0 : i32
    %c0_i32_1 = arith.constant 0 : i32
    return %c0_i32, %c0_i32_0 : i32, i32
  }
  func.func @transform_8(%arg0: i32) -> (i32, i32) {
    %c0_i32 = arith.constant 0 : i32
    %c0_i32_0 = arith.constant 0 : i32
    %c0_i32_1 = arith.constant 0 : i32
    return %c0_i32, %c0_i32_0 : i32, i32
  }
  func.func @transform_9(%arg0: i32) -> i32 {
    %c0_i32 = arith.constant 0 : i32
    %c0_i32_0 = arith.constant 0 : i32
    return %c0_i32 : i32
  }
  func.func @transform_10(%arg0: i32) -> (i32, i32) {
    %c0_i32 = arith.constant 0 : i32
    %c0_i32_0 = arith.constant 0 : i32
    %c0_i32_1 = arith.constant 0 : i32
    return %c0_i32, %c0_i32_0 : i32, i32
  }
  func.func @transform_11(%arg0: i32) -> (i32, i32, i32) {
    %c0_i32 = arith.constant 0 : i32
    %c0_i32_0 = arith.constant 0 : i32
    %c0_i32_1 = arith.constant 0 : i32
    return %arg0, %c0_i32, %c0_i32_0 : i32, i32, i32
  }
}

</mosaic_0001>

<bundles_post_ra>
// kernel: tpu_custom_call.1
= control target key start
LH: loop header
LB: loop body
LE: loop exit
PB: predicated region body
PF: predicated region fallthrough
CT: control target
= control target key end

     0   :  { %s11541_s0 = inlined_call_operand.vmem [shape: f32[3,128,16], index: 0, kind: input, shape index: {}]   ;;  %s11542_s1 = inlined_call_operand.vmem [shape: f32[128,128], index: 1, kind: input, shape index: {}]   ;;  %s11543_s2 = inlined_call_operand.vmem [shape: bf16[16,128], index: 2, kind: input, shape index: {}]   ;;  %s11544_s3 = inlined_call_operand.vmem [shape: f32[128,4], index: 3, kind: input, shape index: {}]   ;;  %s11545_s4 = inlined_call_operand.vmem [shape: f32[128,4], index: 4, kind: input, shape index: {}]   ;;  %s11546_s5 = inlined_call_operand.vmem [shape: bf16[128,128], index: 5, kind: input, shape index: {}]   ;;  %s11547_s6 = inlined_call_operand.vmem [shape: f32[128,4], index: 6, kind: input, shape index: {}]   ;;  %s11548_s7 = inlined_call_operand.vmem [shape: f32[128,4], index: 7, kind: input, shape index: {}]   ;;  %s11549_s8 = inlined_call_operand.vmem [shape: f32[32,1], index: 8, kind: input, shape index: {}]   ;;  %s11550_s9 = inlined_call_operand.<no memory space> [shape: f32[1], index: 9, kind: input, shape index: {}]   ;;  %s11551_s10 = inlined_call_operand.vmem [shape: f32[21,128], index: 10, kind: input, shape index: {}]   ;;  %s11552_s11 = inlined_call_operand.hbm [shape: f32[3,7,192], index: 11, kind: output, shape index: {}]  }
   0x1   :  { %16 = sst [smem:[#allocation2]] %s11550_s9 }
   0x2   :  { %17 = vsyncpa [#allocation4], 0 }
   0x3   :  { %19 = vsyncpa [#allocation4 + $0x1], 0  ;;  %s8152_s19 = smov 0   ;;  %s8154_s20 = smov 0  }
   0x4   :  { %s8156_s21 = smov 0   ;;  %s8158_s22 = smov 0  }
   0x5 LB: > { %s8173_s9 = sadd.s32 4294967295, %s8076_s22   ;;  %s5996_s23 = sadd.s32 4294967294, %s8076_s22   ;;  %s8076_s22 = sphi %s8158_s22, %s11982_s22   ;;  %s8072_s21 = sphi %s8156_s21, %s11981_s21   ;;  %s8068_s20 = sphi %s8154_s20, %s11980_s20   ;;  %s8064_s19 = sphi %s8152_s19, %s11979_s19  }
   0x6   : > { %s8177_s24 = sadd.s32 1, %s8076_s22   ;;  %s268_s25 = sadd.s32 1, %s8072_s21 }
   0x7   : > { %s265_s26 = ssub.s32 %s8076_s22, %s8177_s24  ;;  %p278_p0 = scmp.ne.s32.totalorder %s8072_s21, %s8068_s20 }
   0x8   : > { %p266_p1 = scmp.eq.s32.totalorder %s265_s26, 0  ;;  %p279_p2 = scmp.eq.s32.totalorder %s8173_s9, 2 }
   0x9   : > { %p284_p3 = scmp.ne.s32.totalorder %s8068_s20, %s8064_s19  ;;  %p285_p4 = scmp.eq.s32.totalorder %s5996_s23, 2 }
   0xa   : > { %s8188_s27 = scalar_select %p266_p1, %s8072_s21, %s268_s25  }
   0xb   : > { %p8190_p5 = por %p279_p2, %p278_p0  ;;  %p8194_p6 = por %p285_p4, %p284_p3 }
   0xc   : > { %p5999_p7 = scmp.ge.s32.totalorder %s8076_s22, 1  ;;  %p341_p8 = scmp.lt.s32.totalorder %s8076_s22, 4 }
   0xe   : > { %p342_p9 = pnand %p5999_p7, %p341_p8 }
  0x10   : > { %345 = sbr.rel (%p342_p9) target bundleno = 4462 (0x116e), region = 64 }
  0x17   : > { %v7381_v0 = vld [vmem:[%s11543_s2] sm:$0xff]   ;;  %p381_p10 = scmp.lt.s32.totalorder %s8173_s9, 2  ;;  %v422_v2 = vld [vmem:[%s11544_s3 + $0x8] sm:$0xff]  ;;  %v423_v3 = vld [vmem:[%s11544_s3 + $0x10] sm:$0xff]  ;;  %vm467_vm0 = vcmask 130048   ;;  %s11625_s26 = smov 64  }
  0x18   : > { %v421_v1 = vld [vmem:[%s11544_s3] sm:$0xff]  ;;  %6395 = vmatprep.subr.bf16.mxu0 %v7381_v0  ;;  %v424_v5 = vld [vmem:[%s11544_s3 + $0x18] sm:$0xff]  ;;  %v426_v8 = vld [vmem:[%s11544_s3 + $0x28] sm:$0xff]  ;;  %s11627_s30 = smov 96   ;;  %s11623_s14 = smov 32  }
  0x19   : > { %s382_s23 = scalar_select %p381_p10, %s8173_s9, 2  ;;  %v6998_v4 = vpack.c.bf16 %v422_v2, %v421_v1  ;;  %6396 = vmatpush3.bf16.msra.mxu0 %v7381_v0  ;;  %v7002_v6 = vpack.c.bf16 %v424_v5, %v423_v3  ;;  %v425_v7 = vld [vmem:[%s11544_s3 + $0x20] sm:$0xff]  ;;  %v427_v9 = vld [vmem:[%s11544_s3 + $0x30] sm:$0xff]  ;;  %v428_v10 = vld [vmem:[%s11544_s3 + $0x38] sm:$0xff] }
  0x1a   : > { %v7006_v14 = vpack.c.bf16 %v426_v8, %v425_v7  ;;  %v429_v21 = vld [vmem:[%s11544_s3 + $0x40] sm:$0xff]  ;;  %v7010_v24 = vpack.c.bf16 %v428_v10, %v427_v9  ;;  %v430_v25 = vld [vmem:[%s11544_s3 + $0x48] sm:$0xff]  ;;  %v431_v28 = vld [vmem:[%s11544_s3 + $0x50] sm:$0xff]  ;;  %s11890_s16 = smov 64   ;;  %s11916_s17 = smov 32  }
  0x1b   : > { %s6073_s15 = sshll.u32 %s382_s23, 7  ;;  %6999 = vmatprep.subr.bf16.mxu1 %v6998_v4  ;;  %v432_v29 = vld [vmem:[%s11544_s3 + $0x58] sm:$0xff]  ;;  %v7014_v31 = vpack.c.bf16 %v430_v25, %v429_v21  ;;  %v433_v34 = vld [vmem:[%s11544_s3 + $0x60] sm:$0xff]  ;;  %v434_v37 = vld [vmem:[%s11544_s3 + $0x68] sm:$0xff]  ;;  %s5209_s25 = sld [smem:[#allocation2]] }
  0x1c   : > { %s8226_s18 = scalar_lea.vmem %s11541_s0, %s6073_s15  ;;  %7001 = vmatpush3.bf16.msra.mxu1 %v6998_v4  ;;  %v7018_v33 = vpack.c.bf16 %v432_v29, %v431_v28  ;;  %v7022_v41 = vpack.c.bf16 %v434_v37, %v433_v34  ;;  %v435_v43 = vld [vmem:[%s11544_s3 + $0x70] sm:$0xff]  ;;  %v436_v44 = vld [vmem:[%s11544_s3 + $0x78] sm:$0xff]  ;;  %v437_v49 = vld [vmem:[%s11545_s4] sm:$0xff]  ;;  %v11557_v34 = vmov 0   ;;  %s378_s13 = sand.u32 1, %s8068_s20  }
  0x1d   : > { %v387_v11 = vld [vmem:[%s8226_s18] sm:$0xff]  ;;  %v388_v12 = vld [vmem:[%s8226_s18 + $0x8] sm:$0xff]  ;;  %v389_v13 = vld [vmem:[%s8226_s18 + $0x10] sm:$0xff]  ;;  %7003 = vmatprep.subr.bf16.mxu1 %v7002_v6  ;;  %v7026_v45 = vpack.c.bf16 %v436_v44, %v435_v43  ;;  %7271 = vset.pattern.permute.xlu0 %v11557_v34  ;;  %s6000_s15 = sshll.u32 %s378_s13, 4 }
  0x1e   : > { %v453_v15 = vpack.c.bf16 %v388_v12, %v387_v11  ;;  %v390_v16 = vld [vmem:[%s8226_s18 + $0x18] sm:$0xff]  ;;  %v391_v17 = vld [vmem:[%s8226_s18 + $0x20] sm:$0xff]  ;;  %v392_v18 = vld [vmem:[%s8226_s18 + $0x28] sm:$0xff] }
  0x1f   : > { %v454_v19 = vpack.c.bf16 %v390_v16, %v389_v13  ;;  %v455_v20 = vpack.c.bf16 %v392_v18, %v391_v17  ;;  %v393_v22 = vld [vmem:[%s8226_s18 + $0x30] sm:$0xff]  ;;  %v394_v23 = vld [vmem:[%s8226_s18 + $0x38] sm:$0xff]  ;;  %v395_v26 = vld [vmem:[%s8226_s18 + $0x40] sm:$0xff] }
  0x20   : > { %6397 = vmatprep.mubr.msk.bf16.mxu0 %vm467_vm0, %v453_v15  ;;  %7005 = vmatpush3.bf16.msra.mxu1 %v7002_v6  ;;  %v396_v27 = vld [vmem:[%s8226_s18 + $0x48] sm:$0xff]  ;;  %v456_v30 = vpack.c.bf16 %v394_v23, %v393_v22  ;;  %v397_v35 = vld [vmem:[%s8226_s18 + $0x50] sm:$0xff]  ;;  %v398_v36 = vld [vmem:[%s8226_s18 + $0x58] sm:$0xff] }
  0x21   : > { %6398 = vmatmul.mubr.msk.bf16.vlgmr.msra.gmra.mrb[0].mxu0 %vm467_vm0, %v454_v19  ;;  %7007 = vmatprep.subr.bf16.mxu1 %v7006_v14  ;;  %v457_v32 = vpack.c.bf16 %v396_v27, %v395_v26  ;;  %v399_v38 = vld [vmem:[%s8226_s18 + $0x60] sm:$0xff]  ;;  %v400_v39 = vld [vmem:[%s8226_s18 + $0x68] sm:$0xff]  ;;  %v458_v40 = vpack.c.bf16 %v398_v36, %v397_v35  ;;  %v401_v46 = vld [vmem:[%s8226_s18 + $0x70] sm:$0xff] }
  0x22   : > { %6401 = vmatprep.mubr.msk.bf16.mxu0 %vm467_vm0, %v455_v20  ;;  %v459_v42 = vpack.c.bf16 %v400_v39, %v399_v38  ;;  %v402_v47 = vld [vmem:[%s8226_s18 + $0x78] sm:$0xff]  ;;  %v438_v50 = vld [vmem:[%s11545_s4 + $0x8] sm:$0xff]  ;;  %v439_v53 = vld [vmem:[%s11545_s4 + $0x10] sm:$0xff]  ;;  %s11801_s18 = smov 96  }
  0x23   : > { %v460_v48 = vpack.c.bf16 %v402_v47, %v401_v46  ;;  %v7030_v51 = vpack.c.bf16 %v438_v50, %v437_v49  ;;  %v440_v54 = vld [vmem:[%s11545_s4 + $0x18] sm:$0xff]  ;;  %v441_v61 = vld [vmem:[%s11545_s4 + $0x20] sm:$0xff]  ;;  %v442_v62 = vld [vmem:[%s11545_s4 + $0x28] sm:$0xff] }
  0x24   : > { %7009 = vmatpush3.bf16.msra.mxu1 %v7006_v14  ;;  %v7034_v59 = vpack.c.bf16 %v440_v54, %v439_v53  ;;  %v7038_v63 = vpack.c.bf16 %v442_v62, %v441_v61  ;;  %v443_v1 = vld [vmem:[%s11545_s4 + $0x30] sm:$0xff]  ;;  %v444_v2 = vld [vmem:[%s11545_s4 + $0x38] sm:$0xff]  ;;  %v445_v9 = vld [vmem:[%s11545_s4 + $0x40] sm:$0xff] }
  0x25   : > { %7011 = vmatprep.subr.bf16.mxu1 %v7010_v24  ;;  %v7042_v7 = vpack.c.bf16 %v444_v2, %v443_v1  ;;  %v446_v10 = vld [vmem:[%s11545_s4 + $0x48] sm:$0xff]  ;;  %v447_v13 = vld [vmem:[%s11545_s4 + $0x50] sm:$0xff]  ;;  %v448_v14 = vld [vmem:[%s11545_s4 + $0x58] sm:$0xff] }
  0x26   : > { %v7046_v11 = vpack.c.bf16 %v446_v10, %v445_v9  ;;  %v7050_v19 = vpack.c.bf16 %v448_v14, %v447_v13  ;;  %v449_v21 = vld [vmem:[%s11545_s4 + $0x60] sm:$0xff]  ;;  %v450_v22 = vld [vmem:[%s11545_s4 + $0x68] sm:$0xff]  ;;  %v451_v25 = vld [vmem:[%s11545_s4 + $0x70] sm:$0xff]  ;;  %v11553_v9 = vmov 2  }
  0x27   : > { %v7054_v23 = vpack.c.bf16 %v450_v22, %v449_v21  ;;  %v452_v26 = vld [vmem:[%s11545_s4 + $0x78] sm:$0xff] }
  0x28   : > { %7013 = vmatpush3.bf16.msra.mxu1 %v7010_v24 }
  0x29   : > { %6402 = vmatmul.mubr.msk.bf16.gmra.mrb[4].mxu0 %vm467_vm0, %v456_v30  ;;  %7015 = vmatprep.subr.bf16.mxu1 %v7014_v31 }
  0x2a   : > { %6405 = vmatprep.mubr.msk.bf16.mxu0 %vm467_vm0, %v457_v32 }
  0x2c   : > { %7017 = vmatpush3.bf16.msra.mxu1 %v7014_v31  ;;  %v7058_v31 = vpack.c.bf16 %v452_v26, %v451_v25 }
  0x2d   : > { %7019 = vmatprep.subr.bf16.mxu1 %v7018_v33 }
  0x30   : > { %7021 = vmatpush3.bf16.msra.mxu1 %v7018_v33  ;;  %v11555_v33 = vmov 1  }
  0x31   : > { %6406 = vmatmul.mubr.msk.bf16.gmra.mrb[8].mxu0 %vm467_vm0, %v458_v40  ;;  %7023 = vmatprep.subr.bf16.mxu1 %v7022_v41 }
  0x32   : > { %6409 = vmatprep.mubr.msk.bf16.mxu0 %vm467_vm0, %v459_v42  ;;  %7272 = vset.pattern.permute.xlu1 %v11555_v33 }
  0x34   : > { %7025 = vmatpush3.bf16.msra.mxu1 %v7022_v41 }
  0x35   : > { %7027 = vmatprep.subr.bf16.mxu1 %v7026_v45 }
  0x38   : > { %7029 = vmatpush3.bf16.msra.mxu1 %v7026_v45 }
  0x39   : > { %6410 = vmatmul.mubr.msk.bf16.gmra.mrb[12].mxu0 %vm467_vm0, %v460_v48  ;;  %7031 = vmatprep.subr.bf16.mxu1 %v7030_v51 }
  0xf4   : > { %v8288_v52 = vpop.f32.mrb[0].mxu0 }
  0xf5   : > { %v8296_v55 = vpop.f32.mrb[1].mxu0 }
  0xf6   : > { %v8298_v56 = vpop.f32.mrb[2].mxu0  ;;  %6445 = vmatprep.mubr.f32.mxu1 %v8296_v55 }
  0xf7   : > { %v8303_v57 = vpack.c.bf16 %v8298_v56, %v8288_v52  ;;  %v8305_v58 = vpop.f32.mrb[3].mxu0 }
  0xf8   : > { %v8309_v60 = vpack.c.bf16 %v8305_v58, %v8296_v55  ;;  %6446 = vmatmul.mubr.f32.vlgmr.msra.gmra.mrb[0].mxu1 %v8305_v58 }
  0xf9   : > { %7033 = vmatpush3.bf16.msra.mxu1 %v7030_v51  ;;  %2063 = vrot.lane.b32.xlu0 %v8303_v57, %s11625_s26 }
  0xfa   : > { %1642 = vrot.lane.b32.xlu1 %v8303_v57, %s11627_s30  ;;  %6448 = vmatprep.mubr.f32.mxu1 %v8288_v52 }
  0xfb   : > { %7035 = vmatprep.subr.bf16.mxu1 %v7034_v59 }
  0xfc   : > { %v8323_v0 = vpop.f32.mrb[4].mxu0  ;;  %6449 = vmatmul.mubr.f32.gmra.mrb[2].mxu1 %v8298_v56 }
  0xfd   : > { %7037 = vmatpush3.bf16.msra.mxu1 %v7034_v59  ;;  %1640 = vrot.lane.b32.xlu0 %v8309_v60, %s11627_s30  ;;  %v8334_v3 = vpop.f32.mrb[5].mxu0 }
  0xfe   : > { %2484 = vrot.lane.b32.xlu1 %v8303_v57, %s11623_s14  ;;  %v8338_v4 = vpop.f32.mrb[6].mxu0  ;;  %6451 = vmatprep.mubr.f32.mxu1 %v8334_v3 }
  0xff   : > { %v8343_v5 = vpack.c.bf16 %v8338_v4, %v8323_v0  ;;  %v8345_v6 = vpop.f32.mrb[7].mxu0  ;;  %7039 = vmatprep.subr.bf16.mxu1 %v7038_v63 }
 0x100   : > { %v8349_v8 = vpack.c.bf16 %v8345_v6, %v8334_v3  ;;  %6452 = vmatmul.mubr.f32.gmra.mrb[4].mxu1 %v8345_v6 }
 0x101   : > { %7041 = vmatpush3.bf16.msra.mxu1 %v7038_v63  ;;  %2061 = vrot.lane.b32.xlu0 %v8309_v60, %s11625_s26 }
 0x102   : > { %2482 = vrot.lane.b32.xlu1 %v8309_v60, %s11623_s14  ;;  %6454 = vmatprep.mubr.f32.mxu1 %v8323_v0 }
 0x103   : > { %7043 = vmatprep.subr.bf16.mxu1 %v7042_v7 }
 0x104   : > { %v8363_v12 = vpop.f32.mrb[8].mxu0  ;;  %6455 = vmatmul.mubr.f32.gmra.mrb[6].mxu1 %v8338_v4 }
 0x105   : > { %7045 = vmatpush3.bf16.msra.mxu1 %v7042_v7  ;;  %1646 = vrot.lane.b32.xlu0 %v8343_v5, %s11627_s30  ;;  %v558_v15 = vpop.f32.mrb[9].mxu0 }
 0x106   : > { %2488 = vrot.lane.b32.xlu1 %v8343_v5, %s11623_s14  ;;  %v8376_v16 = vpop.f32.mrb[10].mxu0  ;;  %6457 = vmatprep.mubr.f32.mxu1 %v558_v15 }
 0x107   : > { %v8380_v17 = vpack.c.bf16 %v8376_v16, %v8363_v12  ;;  %v561_v18 = vpop.f32.mrb[11].mxu0  ;;  %7047 = vmatprep.subr.bf16.mxu1 %v7046_v11 }
 0x108   : > { %v593_v20 = vpack.c.bf16 %v561_v18, %v558_v15  ;;  %6458 = vmatmul.mubr.f32.gmra.mrb[8].mxu1 %v561_v18 }
 0x109   : > { %11689 = vst [vmem:[#allocation6_spill] sm:$0xff] %v8380_v17  ;;  %7049 = vmatpush3.bf16.msra.mxu1 %v7046_v11  ;;  %2067 = vrot.lane.b32.xlu0 %v8343_v5, %s11625_s26 }
 0x10a   : > { %1644 = vrot.lane.b32.xlu1 %v8349_v8, %s11627_s30  ;;  %6460 = vmatprep.mubr.f32.mxu1 %v8363_v12 }
 0x10b   : > { %7051 = vmatprep.subr.bf16.mxu1 %v7050_v19 }
 0x10c   : > { %v6411_v24 = vpop.f32.mrb[12].mxu0  ;;  %6461 = vmatmul.mubr.f32.gmra.mrb[10].mxu1 %v8376_v16 }
 0x10d   : > { %7053 = vmatpush3.bf16.msra.mxu1 %v7050_v19  ;;  %2065 = vrot.lane.b32.xlu0 %v8349_v8, %s11625_s26  ;;  %v574_v27 = vpop.f32.mrb[13].mxu0 }
 0x10e   : > { %2486 = vrot.lane.b32.xlu1 %v8349_v8, %s11623_s14  ;;  %v6412_v28 = vpop.f32.mrb[14].mxu0  ;;  %6463 = vmatprep.mubr.f32.mxu1 %v574_v27 }
 0x10f   : > { %v8404_v29 = vpack.c.bf16 %v6412_v28, %v6411_v24  ;;  %v577_v30 = vpop.f32.mrb[15].mxu0  ;;  %7055 = vmatprep.subr.bf16.mxu1 %v7054_v23 }
 0x110   : > { %v8406_v32 = vpack.c.bf16 %v577_v30, %v574_v27  ;;  %6464 = vmatmul.mubr.f32.gmra.mrb[12].mxu1 %v577_v30 }
 0x111   : > { %11690 = vst [vmem:[#allocation7_spill] sm:$0xff] %v8404_v29  ;;  %7057 = vmatpush3.bf16.msra.mxu1 %v7054_v23  ;;  %2069 = vrot.lane.b32.xlu0 %v593_v20, %s11625_s26 }
 0x112   : > { %11691 = vst [vmem:[#allocation8_spill] sm:$0xff] %v8406_v32  ;;  %1650 = vrot.lane.b32.xlu1 %v8380_v17, %s11627_s30  ;;  %6466 = vmatprep.mubr.f32.mxu1 %v6411_v24 }
 0x113   : > { %7059 = vmatprep.subr.bf16.mxu1 %v7058_v31 }
 0x114   : > { %6467 = vmatmul.mubr.f32.gmra.mrb[14].mxu1 %v6412_v28 }
 0x115   : > { %7061 = vmatpush3.bf16.msra.mxu1 %v7058_v31  ;;  %6501 = vmatprep.mubr.f32.mxu1 %v8296_v55 }
 0x116   : > { %6525 = vmatprep.subr.bf16.mxu1 %v8309_v60  ;;  %1648 = vrot.lane.b32.xlu1 %v593_v20, %s11627_s30 }
 0x117   : > { %1652 = vrot.lane.b32.xlu0 %v8406_v32, %s11627_s30 }
 0x118   : > { %6502 = vmatmul.mubr.f32.vlgmr.msra.gmra.mrb[16].mxu1 %v8305_v58 }
 0x119   : > { %6526 = vmatpush3.bf16.msra.mxu1 %v8309_v60  ;;  %6504 = vmatprep.mubr.f32.mxu1 %v8288_v52 }
 0x11a   : > { %2490 = vrot.lane.b32.xlu1 %v593_v20, %s11623_s14  ;;  %6527 = vmatprep.subr.bf16.mxu1 %v8303_v57 }
 0x11c   : > { %6505 = vmatmul.mubr.f32.gmra.mrb[18].mxu1 %v8298_v56 }
 0x11d   : > { %6528 = vmatpush3.bf16.msra.mxu1 %v8303_v57  ;;  %6507 = vmatprep.mubr.f32.mxu1 %v8334_v3 }
 0x11e   : > { %1654 = vrot.lane.b32.xlu1 %v8404_v29, %s11627_s30  ;;  %6529 = vmatprep.subr.bf16.mxu1 %v8349_v8 }
 0x120   : > { %6508 = vmatmul.mubr.f32.gmra.mrb[20].mxu1 %v8345_v6 }
 0x121   : > { %6530 = vmatpush3.bf16.msra.mxu1 %v8349_v8  ;;  %6510 = vmatprep.mubr.f32.mxu1 %v8323_v0 }
 0x122   : > { %6531 = vmatprep.subr.bf16.mxu1 %v8343_v5 }
 0x124   : > { %6511 = vmatmul.mubr.f32.gmra.mrb[22].mxu1 %v8338_v4 }
 0x125   : > { %6532 = vmatpush3.bf16.msra.mxu1 %v8343_v5  ;;  %6513 = vmatprep.mubr.f32.mxu1 %v558_v15 }
 0x126   : > { %6533 = vmatprep.subr.bf16.mxu1 %v593_v20 }
 0x128   : > { %6514 = vmatmul.mubr.f32.gmra.mrb[24].mxu1 %v561_v18 }
 0x129   : > { %6534 = vmatpush3.bf16.msra.mxu1 %v593_v20  ;;  %6516 = vmatprep.mubr.f32.mxu1 %v8363_v12  ;;  %v11559_v12 = vmov 3  }
 0x12a   : > { %6535 = vmatprep.subr.bf16.mxu1 %v8380_v17 }
 0x12c   : > { %6517 = vmatmul.mubr.f32.gmra.mrb[26].mxu1 %v8376_v16 }
 0x12d   : > { %6536 = vmatpush3.bf16.msra.mxu1 %v8380_v17  ;;  %6519 = vmatprep.mubr.f32.mxu1 %v574_v27 }
 0x12e   : > { %6537 = vmatprep.subr.bf16.mxu1 %v8406_v32 }
 0x130   : > { %6520 = vmatmul.mubr.f32.gmra.mrb[28].mxu1 %v577_v30 }
 0x131   : > { %6538 = vmatpush3.bf16.msra.mxu1 %v8406_v32  ;;  %6522 = vmatprep.mubr.f32.mxu1 %v6411_v24 }
 0x132   : > { %6539 = vmatprep.subr.bf16.mxu1 %v8404_v29 }
 0x134   : > { %6523 = vmatmul.mubr.f32.gmra.mrb[30].mxu1 %v6412_v28 }
 0x135   : > { %6540 = vmatpush3.bf16.msra.mxu1 %v8404_v29 }
 0x16b   : > { %v8443_v35 = vpop.permute.xlu0 %2063 }
 0x16c   : > { %11692 = vst [vmem:[#allocation9_spill] sm:$0xff] %v8443_v35  ;;  %v1643_v36 = vpop.permute.xlu1 %1642 }
 0x16f   : > { %v1641_v37 = vpop.permute.xlu0 %1640 }
 0x170   : > { %v8445_v38 = vpop.permute.xlu1 %2484  ;;  %6557 = vmatprep.subr.bf16.mxu0 %v1641_v37 }
 0x171   : > { %11693 = vst [vmem:[#allocation10_spill] sm:$0xff] %v8445_v38  ;;  %6558 = vmatpush3.bf16.msra.mxu0 %v1641_v37 }
 0x172   : > { %6559 = vmatprep.subr.bf16.mxu0 %v1643_v36 }
 0x173   : > { %v8447_v39 = vpop.permute.xlu0 %2061 }
 0x174   : > { %11694 = vst [vmem:[#allocation11_spill] sm:$0xff] %v8447_v39  ;;  %v8449_v40 = vpop.permute.xlu1 %2482  ;;  %6589 = vmatprep.subr.bf16.mxu1 %v8447_v39 }
 0x175   : > { %11695 = vst [vmem:[#allocation12_spill] sm:$0xff] %v8449_v40  ;;  %6560 = vmatpush3.bf16.msra.mxu0 %v1643_v36 }
 0x177   : > { %v1647_v41 = vpop.permute.xlu0 %1646 }
 0x178   : > { %v8452_v42 = vpop.permute.xlu1 %2488 }
 0x179   : > { %11696 = vst [vmem:[#allocation13_spill] sm:$0xff] %v8452_v42 }
 0x17b   : > { %v8454_v43 = vpop.permute.xlu0 %2067 }
 0x17c   : > { %11697 = vst [vmem:[#allocation14_spill] sm:$0xff] %v8454_v43  ;;  %v1645_v44 = vpop.permute.xlu1 %1644 }
 0x17d   : > { %6561 = vmatprep.subr.bf16.mxu0 %v1645_v44 }
 0x17e   : > { %6562 = vmatpush3.bf16.msra.mxu0 %v1645_v44 }
 0x17f   : > { %6563 = vmatprep.subr.bf16.mxu0 %v1647_v41  ;;  %v8458_v46 = vpop.permute.xlu0 %2065 }
 0x180   : > { %v8456_v45 = vpop.permute.xlu1 %2486  ;;  %11699 = vst [vmem:[#allocation16_spill] sm:$0xff] %v8458_v46 }
 0x181   : > { %11698 = vst [vmem:[#allocation15_spill] sm:$0xff] %v8456_v45 }
 0x182   : > { %6564 = vmatpush3.bf16.msra.mxu0 %v1647_v41 }
 0x183   : > { %v8460_v48 = vpop.permute.xlu0 %2069 }
 0x184   : > { %v1651_v47 = vpop.permute.xlu1 %1650  ;;  %11700 = vst [vmem:[#allocation17_spill] sm:$0xff] %v8460_v48 }
 0x188   : > { %v1649_v49 = vpop.permute.xlu1 %1648 }
 0x189   : > { %6565 = vmatprep.subr.bf16.mxu0 %v1649_v49  ;;  %v1653_v51 = vpop.permute.xlu0 %1652 }
 0x18a   : > { %6566 = vmatpush3.bf16.msra.mxu0 %v1649_v49 }
 0x18b   : > { %6567 = vmatprep.subr.bf16.mxu0 %v1651_v47 }
 0x18c   : > { %v8462_v50 = vpop.permute.xlu1 %2490 }
 0x18d   : > { %11701 = vst [vmem:[#allocation18_spill] sm:$0xff] %v8462_v50 }
 0x18e   : > { %6568 = vmatpush3.bf16.msra.mxu0 %v1651_v47 }
 0x18f   : > { %6569 = vmatprep.subr.bf16.mxu0 %v1653_v51 }
 0x190   : > { %v1655_v52 = vpop.permute.xlu1 %1654 }
 0x192   : > { %6570 = vmatpush3.bf16.msra.mxu0 %v1653_v51 }
 0x193   : > { %6571 = vmatprep.subr.bf16.mxu0 %v1655_v52 }
 0x196   : > { %6572 = vmatpush3.bf16.msra.mxu0 %v1655_v52 }
 0x197   : > { %6621 = vmatprep.subr.bf16.mxu0 %v8449_v40 }
 0x1cb   : > { %v8465_v53 = vpop.f32.mrb[0].mxu1 }
 0x1cc   : > { %v8467_v54 = vpop.f32.mrb[1].mxu1 }
 0x1cf   : > { %v8469_v55 = vpop.f32.mrb[2].mxu1 }
 0x1d0   : > { %v8471_v56 = vpop.f32.mrb[3].mxu1 }
 0x1d3   : > { %v8473_v57 = vpop.f32.mrb[4].mxu1 }
 0x1d4   : > { %v8475_v58 = vpop.f32.mrb[5].mxu1 }
 0x1d7   : > { %v8477_v59 = vpop.f32.mrb[6].mxu1 }
 0x1d8   : > { %v8479_v60 = vpop.f32.mrb[7].mxu1 }
 0x1db   : > { %v8481_v61 = vpop.f32.mrb[8].mxu1 }
 0x1dc   : > { %v8483_v62 = vpop.f32.mrb[9].mxu1 }
 0x1df   : > { %v8485_v63 = vpop.f32.mrb[10].mxu1 }
 0x1e0   : > { %v8487_v0 = vpop.f32.mrb[11].mxu1 }
 0x1e3   : > { %v8489_v1 = vpop.f32.mrb[12].mxu1 }
 0x1e4   : > { %v8491_v2 = vpop.f32.mrb[13].mxu1 }
 0x1e7   : > { %v8493_v3 = vpop.f32.mrb[14].mxu1 }
 0x1e8   : > { %v8495_v4 = vpop.f32.mrb[15].mxu1 }
 0x1eb   : > { %v6503_v5 = vpop.f32.mrb[16].mxu1 }
 0x1ec   : > { %1337 = vperm.xlu1 %7272, %v6503_v5   ;;  %v840_v6 = vpop.f32.mrb[17].mxu1  ;;  %926 = vperm.xlu0 %7271, %v6503_v5  }
 0x1ef   : > { %v6506_v7 = vpop.f32.mrb[18].mxu1 }
 0x1f0   : > { %7279 = vset.pattern.permute.xlu1 %v11557_v34  ;;  %v850_v8 = vpop.f32.mrb[19].mxu1  ;;  %7273 = vset.pattern.permute.xlu0 %v11553_v9 }
 0x1f1   : > { %936 = vperm.xlu1 %7279, %v6506_v7   ;;  %1766 = vperm.xlu0 %7273, %v6503_v5  }
 0x1f3   : > { %v6509_v10 = vpop.f32.mrb[20].mxu1 }
 0x1f4   : > { %v8499_v11 = vpop.f32.mrb[21].mxu1 }
 0x1f5   : > { %931 = vperm.xlu1 %7279, %v850_v8   ;;  %7274 = vset.pattern.permute.xlu0 %v11559_v12 }
 0x1f6   : > { %2187 = vperm.xlu0 %7274, %v6503_v5  }
 0x1f7   : > { %v8502_v13 = vpop.f32.mrb[22].mxu1 }
 0x1f8   : > { %v8504_v14 = vpop.f32.mrb[23].mxu1 }
 0x1f9   : > { %7283 = vset.pattern.permute.xlu1 %v11555_v33 }
 0x1fa   : > { %1341 = vperm.xlu1 %7283, %v850_v8   ;;  %7275 = vset.pattern.permute.xlu0 %v11557_v34 }
 0x1fb   : > { %v8508_v15 = vpop.f32.mrb[24].mxu1  ;;  %921 = vperm.xlu0 %7275, %v840_v6  }
 0x1fc   : > { %v8510_v16 = vpop.f32.mrb[25].mxu1 }
 0x1fe   : > { %1353 = vperm.xlu1 %7283, %v6509_v10  }
 0x1ff   : > { %v8512_v18 = vpop.f32.mrb[26].mxu1  ;;  %7276 = vset.pattern.permute.xlu0 %v11555_v33 }
 0x200   : > { %v8515_v19 = vpop.f32.mrb[27].mxu1  ;;  %1333 = vperm.xlu0 %7276, %v840_v6  }
 0x202   : > { %7289 = vset.pattern.permute.xlu1 %v11557_v34 }
 0x203   : > { %941 = vperm.xlu1 %7289, %v8499_v11   ;;  %v8519_v20 = vpop.f32.mrb[28].mxu1 }
 0x204   : > { %v8521_v21 = vpop.f32.mrb[29].mxu1  ;;  %7277 = vset.pattern.permute.xlu0 %v11553_v9 }
 0x205   : > { %1762 = vperm.xlu0 %7277, %v840_v6  }
 0x207   : > { %956 = vperm.xlu1 %7289, %v8502_v13   ;;  %v8525_v22 = vpop.f32.mrb[30].mxu1 }
 0x208   : > { %v8527_v23 = vpop.f32.mrb[31].mxu1 }
 0x209   : > { %7278 = vset.pattern.permute.xlu0 %v11559_v12 }
 0x20a   : > { %2183 = vperm.xlu0 %7278, %v840_v6  }
 0x20b   : > { %951 = vperm.xlu1 %7289, %v8504_v14  }
 0x20e   : > { %7280 = vset.pattern.permute.xlu0 %v11555_v33 }
 0x20f   : > { %7296 = vset.pattern.permute.xlu1 %v11555_v33  ;;  %1345 = vperm.xlu0 %7280, %v6506_v7  }
 0x210   : > { %1357 = vperm.xlu1 %7296, %v8504_v14  }
 0x213   : > { %7281 = vset.pattern.permute.xlu0 %v11553_v9 }
 0x214   : > { %1369 = vperm.xlu1 %7296, %v8508_v15   ;;  %1774 = vperm.xlu0 %7281, %v6506_v7  }
 0x218   : > { %7302 = vset.pattern.permute.xlu1 %v11557_v34  ;;  %7282 = vset.pattern.permute.xlu0 %v11559_v12 }
 0x219   : > { %961 = vperm.xlu1 %7302, %v8510_v16   ;;  %2195 = vperm.xlu0 %7282, %v6506_v7  }
 0x21d   : > { %7305 = vset.pattern.permute.xlu1 %v11559_v12  ;;  %7284 = vset.pattern.permute.xlu0 %v11553_v9 }
 0x21e   : > { %2215 = vperm.xlu1 %7305, %v8510_v16   ;;  %1770 = vperm.xlu0 %7284, %v850_v8  }
 0x222   : > { %7306 = vset.pattern.permute.xlu1 %v11557_v34  ;;  %7285 = vset.pattern.permute.xlu0 %v11559_v12 }
 0x223   : > { %976 = vperm.xlu1 %7306, %v8512_v18   ;;  %2191 = vperm.xlu0 %7285, %v850_v8  }
 0x227   : > { %971 = vperm.xlu1 %7306, %v8515_v19   ;;  %7286 = vset.pattern.permute.xlu0 %v11557_v34 }
 0x228   : > { %946 = vperm.xlu0 %7286, %v6509_v10  }
 0x22b   : > { %7310 = vset.pattern.permute.xlu1 %v11555_v33 }
 0x22c   : > { %1373 = vperm.xlu1 %7310, %v8515_v19   ;;  %7287 = vset.pattern.permute.xlu0 %v11553_v9 }
 0x22d   : > { %1782 = vperm.xlu0 %7287, %v6509_v10  }
 0x230   : > { %1385 = vperm.xlu1 %7310, %v8519_v20  }
 0x231   : > { %7288 = vset.pattern.permute.xlu0 %v11559_v12 }
 0x232   : > { %2203 = vperm.xlu0 %7288, %v6509_v10  }
 0x234   : > { %7316 = vset.pattern.permute.xlu1 %v11557_v34 }
 0x235   : > { %981 = vperm.xlu1 %7316, %v8521_v21  }
 0x236   : > { %7290 = vset.pattern.permute.xlu0 %v11555_v33 }
 0x237   : > { %1349 = vperm.xlu0 %7290, %v8499_v11  }
 0x239   : > { %7319 = vset.pattern.permute.xlu1 %v11559_v12 }
 0x23a   : > { %2231 = vperm.xlu1 %7319, %v8521_v21  }
 0x23b   : > { %7291 = vset.pattern.permute.xlu0 %v11553_v9 }
 0x23c   : > { %1778 = vperm.xlu0 %7291, %v8499_v11  }
 0x23e   : > { %7320 = vset.pattern.permute.xlu1 %v11557_v34 }
 0x23f   : > { %996 = vperm.xlu1 %7320, %v8525_v22  }
 0x240   : > { %7292 = vset.pattern.permute.xlu0 %v11559_v12 }
 0x241   : > { %2199 = vperm.xlu0 %7292, %v8499_v11  }
 0x243   : > { %7323 = vset.pattern.permute.xlu1 %v11559_v12 }
 0x244   : > { %2243 = vperm.xlu1 %7323, %v8525_v22  }
 0x245   : > { %7293 = vset.pattern.permute.xlu0 %v11555_v33 }
 0x246   : > { %1361 = vperm.xlu0 %7293, %v8502_v13  }
 0x248   : > { %7324 = vset.pattern.permute.xlu1 %v11557_v34 }
 0x249   : > { %991 = vperm.xlu1 %7324, %v8527_v23  }
 0x24a   : > { %7294 = vset.pattern.permute.xlu0 %v11553_v9 }
 0x24b   : > { %1790 = vperm.xlu0 %7294, %v8502_v13  }
 0x24d   : > { %7325 = vset.pattern.permute.xlu1 %v11555_v33 }
 0x24e   : > { %1389 = vperm.xlu1 %7325, %v8527_v23  }
 0x24f   : > { %7295 = vset.pattern.permute.xlu0 %v11559_v12 }
 0x250   : > { %2211 = vperm.xlu0 %7295, %v8502_v13  }
 0x254   : > { %7297 = vset.pattern.permute.xlu0 %v11553_v9 }
 0x255   : > { %1786 = vperm.xlu0 %7297, %v8504_v14  }
 0x259   : > { %7298 = vset.pattern.permute.xlu0 %v11559_v12 }
 0x25a   : > { %2207 = vperm.xlu0 %7298, %v8504_v14  }
 0x25e   : > { %7299 = vset.pattern.permute.xlu0 %v11557_v34 }
 0x25f   : > { %966 = vperm.xlu0 %7299, %v8508_v15  }
 0x263   : > { %7300 = vset.pattern.permute.xlu0 %v11553_v9 }
 0x264   : > { %1798 = vperm.xlu0 %7300, %v8508_v15  }
 0x268   : > { %7301 = vset.pattern.permute.xlu0 %v11559_v12 }
 0x269   : > { %2219 = vperm.xlu0 %7301, %v8508_v15   ;;  %v999_v15 = vlaneseq }
 0x26b   : > { %v8590_v24 = vpop.permute.xlu1 %1337  ;;  %v8595_v25 = vpop.permute.xlu0 %926 }
 0x26d   : > { %7303 = vset.pattern.permute.xlu0 %v11555_v33 }
 0x26e   : > { %1365 = vperm.xlu0 %7303, %v8510_v16  }
 0x270   : > { %v8597_v26 = vpop.permute.xlu1 %936  ;;  %v8603_v27 = vpop.permute.xlu0 %1766 }
 0x272   : > { %7304 = vset.pattern.permute.xlu0 %v11553_v9 }
 0x273   : > { %1794 = vperm.xlu0 %7304, %v8510_v16  }
 0x274   : > { %v8605_v28 = vpop.permute.xlu1 %931 }
 0x275   : > { %v8611_v30 = vpop.permute.xlu0 %2187 }
 0x277   : > { %742 = vxpose.xlu1.b32.start [1/16] (narrow) %v8467_v54, 8  ;;  %7307 = vset.pattern.permute.xlu0 %v11555_v33 }
 0x278   : > { %1377 = vperm.xlu0 %7307, %v8512_v18  }
 0x279   : > { %v8613_v31 = vpop.permute.xlu1 %1341 }
 0x27a   : > { %v8620_v36 = vpop.permute.xlu0 %921 }
 0x27b   : > { %743 = vxpose.xlu1.b32.cont [2/16] (narrow) %v8465_v53, 8 }
 0x27c   : > { %7308 = vset.pattern.permute.xlu0 %v11553_v9 }
 0x27d   : > { %1806 = vperm.xlu0 %7308, %v8512_v18   ;;  %v8622_v37 = vpop.permute.xlu1 %1353 }
 0x27f   : > { %744 = vxpose.xlu1.b32.cont [3/16] (narrow) %v8471_v56, 8  ;;  %v8627_v41 = vpop.permute.xlu0 %1333 }
 0x281   : > { %7309 = vset.pattern.permute.xlu0 %v11559_v12 }
 0x282   : > { %2227 = vperm.xlu0 %7309, %v8512_v18   ;;  %v8629_v44 = vpop.permute.xlu1 %941 }
 0x283   : > { %745 = vxpose.xlu1.b32.cont [4/16] (narrow) %v8469_v55, 8 }
 0x284   : > { %v8635_v47 = vpop.permute.xlu0 %1762 }
 0x286   : > { %7311 = vset.pattern.permute.xlu0 %v11553_v9  ;;  %v8637_v49 = vpop.permute.xlu1 %956 }
 0x287   : > { %746 = vxpose.xlu1.b32.cont [5/16] (narrow) %v8475_v58, 8  ;;  %1802 = vperm.xlu0 %7311, %v8515_v19  }
 0x289   : > { %v8642_v51 = vpop.permute.xlu0 %2183 }
 0x28a   : > { %v8644_v52 = vpop.permute.xlu1 %951 }
 0x28b   : > { %747 = vxpose.xlu1.b32.cont [6/16] (narrow) %v8473_v57, 8  ;;  %7312 = vset.pattern.permute.xlu0 %v11559_v12 }
 0x28c   : > { %2223 = vperm.xlu0 %7312, %v8515_v19   ;;  %v8717_v19 = vshrl.u32 %v999_v15, 7 }
 0x28e   : > { %v8651_v53 = vpop.permute.xlu0 %1345  ;;  %11702 = vst [vmem:[#allocation19_spill] sm:$0xff] %v8717_v19 }
 0x28f   : > { %748 = vxpose.xlu1.b32.cont [7/16] (narrow) %v8479_v60, 8  ;;  %v8653_v54 = vpop.permute.xlu1 %1357 }
 0x290   : > { %7313 = vset.pattern.permute.xlu0 %v11557_v34 }
 0x291   : > { %986 = vperm.xlu0 %7313, %v8519_v20  }
 0x293   : > { %749 = vxpose.xlu1.b32.cont [8/16] (narrow) %v8477_v59, 8  ;;  %v8659_v55 = vpop.permute.xlu1 %1369  ;;  %v8661_v56 = vpop.permute.xlu0 %1774 }
 0x295   : > { %7314 = vset.pattern.permute.xlu0 %v11553_v9 }
 0x296   : > { %1814 = vperm.xlu0 %7314, %v8519_v20  }
 0x297   : > { %750 = vxpose.xlu1.b32.cont [9/16] (narrow) %v8483_v62, 8 }
 0x298   : > { %v8667_v57 = vpop.permute.xlu1 %961  ;;  %v8669_v58 = vpop.permute.xlu0 %2195 }
 0x29a   : > { %7315 = vset.pattern.permute.xlu0 %v11559_v12 }
 0x29b   : > { %751 = vxpose.xlu1.b32.cont [10/16] (narrow) %v8481_v61, 8  ;;  %2235 = vperm.xlu0 %7315, %v8519_v20  }
 0x29d   : > { %v8672_v59 = vpop.permute.xlu1 %2215  ;;  %v8674_v60 = vpop.permute.xlu0 %1770 }
 0x29f   : > { %752 = vxpose.xlu1.b32.cont [11/16] (narrow) %v8487_v0, 8  ;;  %7317 = vset.pattern.permute.xlu0 %v11555_v33 }
 0x2a0   : > { %1381 = vperm.xlu0 %7317, %v8521_v21  }
 0x2a2   : > { %v8676_v61 = vpop.permute.xlu1 %976  ;;  %v8678_v62 = vpop.permute.xlu0 %2191 }
 0x2a3   : > { %753 = vxpose.xlu1.b32.cont [12/16] (narrow) %v8485_v63, 8 }
 0x2a4   : > { %7318 = vset.pattern.permute.xlu0 %v11553_v9 }
 0x2a5   : > { %1810 = vperm.xlu0 %7318, %v8521_v21  }
 0x2a6   : > { %v8680_v63 = vpop.permute.xlu1 %971 }
 0x2a7   : > { %754 = vxpose.xlu1.b32.cont [13/16] (narrow) %v8491_v2, 8  ;;  %v8682_v0 = vpop.permute.xlu0 %946 }
 0x2a9   : > { %7321 = vset.pattern.permute.xlu0 %v11555_v33 }
 0x2aa   : > { %1393 = vperm.xlu0 %7321, %v8525_v22  }
 0x2ab   : > { %755 = vxpose.xlu1.b32.cont [14/16] (narrow) %v8489_v1, 8  ;;  %v8684_v1 = vpop.permute.xlu1 %1373 }
 0x2ac   : > { %v8686_v2 = vpop.permute.xlu0 %1782 }
 0x2ae   : > { %7322 = vset.pattern.permute.xlu0 %v11553_v9 }
 0x2af   : > { %756 = vxpose.xlu1.b32.cont [15/16] (narrow) %v8495_v4, 8  ;;  %1822 = vperm.xlu0 %7322, %v8525_v22   ;;  %v8688_v4 = vpop.permute.xlu1 %1385  ;;  %v11565_v22 = vsub.s32 0, %v8717_v19 }
 0x2b1   : > { %v8690_v5 = vpop.permute.xlu0 %2203 }
 0x2b3   : > { %757 = vxpose.xlu1.b32.end [16/16] (narrow) %v8493_v3, 8 }
 0x2b4   : > { %v8694_v3 = vpop.permute.xlu1 %981 }
 0x2b6   : > { %v8696_v6 = vpop.permute.xlu0 %1349 }
 0x2b9   : > { %v8700_v7 = vpop.permute.xlu1 %2231 }
 0x2bb   : > { %v8702_v8 = vpop.permute.xlu0 %1778 }
 0x2be   : > { %v8705_v10 = vpop.permute.xlu1 %996 }
 0x2c0   : > { %v8707_v11 = vpop.permute.xlu0 %2199 }
 0x2c3   : > { %v8709_v13 = vpop.permute.xlu1 %2243 }
 0x2c5   : > { %v8711_v14 = vpop.permute.xlu0 %1361 }
 0x2c8   : > { %v8713_v16 = vpop.permute.xlu1 %991 }
 0x2ca   : > { %v8715_v18 = vpop.permute.xlu0 %1790 }
 0x2cd   : > { %v8719_v20 = vpop.permute.xlu1 %1389 }
 0x2cf   : > { %v8721_v21 = vpop.permute.xlu0 %2211 }
 0x2d1   : > { %7326 = vset.pattern.permute.xlu1 %v11553_v9  ;;  %v11569_v9 = vsub.s32 2, %v8717_v19 }
 0x2d2   : > { %1818 = vperm.xlu1 %7326, %v8527_v23  }
 0x2d4   : > { %v8739_v29 = vpop.permute.xlu0 %1786 }
 0x2d6   : > { %7327 = vset.pattern.permute.xlu1 %v11559_v12 }
 0x2d7   : > { %2239 = vperm.xlu1 %7327, %v8527_v23   ;;  %v11567_v23 = vsub.s32 1, %v8717_v19 }
 0x2d9   : > { %v8763_v39 = vpop.permute.xlu0 %2207 }
 0x2db   : > { %7328 = vset.pattern.permute.xlu1 %v11555_v33 }
 0x2f7   : > { %v758_v33 = vpop.trf.xlu1 }
 0x2f8   : > { %v8729_v12 = vrot.slane %v758_v33, %v11565_v22  ;;  %v8733_v15 = vrot.slane %v758_v33, %v11567_v23  ;;  %v8737_v48 = vrot.slane %v758_v33, %v11569_v9  ;;  %v11703_v23 = vsub.s32 3, %v8717_v19  ;;  %v404_v9 = vld [vmem:[%s11542_s1 + $0x8] sm:$0xff] }
 0x2fa   : > { %v1004_v43 = vadd.f32 %v8729_v12, %v8595_v25  ;;  %v1003_v34 = vadd.f32 %v8729_v12, %v8620_v36  ;;  %v1401_v22 = vadd.f32 %v8733_v15, %v8590_v24  ;;  %v1400_v46 = vadd.f32 %v8733_v15, %v8627_v41  ;;  %v403_v24 = vld [vmem:[%s11542_s1] sm:$0xff] }
 0x2fb   : > { %v8751_v50 = vrot.slane %v758_v33, %v11703_v23  ;;  %v1830_v25 = vadd.f32 %v8737_v48, %v8603_v27  ;;  %v1829_v33 = vadd.f32 %v8737_v48, %v8635_v47  ;;  %v1405_v17 = vadd.f32 %v8733_v15, %v8622_v37  ;;  %v408_v37 = vld [vmem:[%s11542_s1 + $0x28] sm:$0xff] }
 0x2fc   : > { %vm1020_vm1 = vcmp.gt.f32.partialorder %v1004_v43, 0.0  ;;  %v1036_v35 = vmul.f32 0.2, %v1004_v43  ;;  %vm1019_vm2 = vcmp.gt.f32.partialorder %v1003_v34, 0.0  ;;  %v1035_v36 = vmul.f32 0.2, %v1003_v34 }
 0x2fd   : > { %vm1417_vm3 = vcmp.gt.f32.partialorder %v1401_v22, 0.0  ;;  %v1433_v23 = vmul.f32 0.2, %v1401_v22  ;;  %vm1416_vm4 = vcmp.gt.f32.partialorder %v1400_v46, 0.0  ;;  %v1432_v19 = vmul.f32 0.2, %v1400_v46 }
 0x2fe   : > { %v1052_v41 = vsel %vm1020_vm1, %v1004_v43, %v1036_v35  ;;  %v1051_v45 = vsel %vm1019_vm2, %v1003_v34, %v1035_v36  ;;  %v2251_v40 = vadd.f32 %v8751_v50, %v8611_v30  ;;  %vm1846_vm5 = vcmp.gt.f32.partialorder %v1830_v25, 0.0 }
 0x2ff   : > { %v8765_v42 = vadd.f32 %v1052_v41, %v404_v9  ;;  %v8767_v27 = vadd.f32 %v1051_v45, %v403_v24  ;;  %v1449_v38 = vsel %vm1417_vm3, %v1401_v22, %v1433_v23  ;;  %v1448_v32 = vsel %vm1416_vm4, %v1400_v46, %v1432_v19  ;;  %v8781_v41 = vpop.permute.xlu0 %966 }
 0x300   : > { %v1862_v47 = vmul.f32 0.2, %v1830_v25  ;;  %vm1845_vm6 = vcmp.gt.f32.partialorder %v1829_v33, 0.0  ;;  %v1861_v35 = vmul.f32 0.2, %v1829_v33  ;;  %v8773_v43 = vadd.f32 %v1449_v38, %v404_v9 }
 0x301   : > { %1085 = vmax.xlane.f32.xlu1 %v8765_v42  ;;  %1083 = vmax.xlane.f32.xlu0 %v8767_v27  ;;  %v2250_v34 = vadd.f32 %v8751_v50, %v8642_v51  ;;  %v8777_v45 = vadd.f32 %v1448_v32, %v403_v24  ;;  %v2283_v36 = vmul.f32 0.2, %v2251_v40  ;;  %v1403_v30 = vadd.f32 %v8733_v15, %v8651_v53 }
 0x302   : > { %v1878_v22 = vsel %vm1846_vm5, %v1830_v25, %v1862_v47  ;;  %v1877_v46 = vsel %vm1845_vm6, %v1829_v33, %v1861_v35  ;;  %vm2267_vm7 = vcmp.gt.f32.partialorder %v2251_v40, 0.0  ;;  %v1006_v38 = vadd.f32 %v8729_v12, %v8597_v26 }
 0x303   : > { %v2282_v19 = vmul.f32 0.2, %v2250_v34  ;;  %vm2266_vm8 = vcmp.gt.f32.partialorder %v2250_v34, 0.0  ;;  %v8787_v32 = vadd.f32 %v1878_v22, %v404_v9  ;;  %v8789_v51 = vadd.f32 %v1877_v46, %v403_v24  ;;  %v8797_v35 = vpop.permute.xlu0 %1798 }
 0x304   : > { %v2299_v25 = vsel %vm2267_vm7, %v2251_v40, %v2283_v36  ;;  %v1435_v23 = vmul.f32 0.2, %v1403_v30  ;;  %v1832_v53 = vadd.f32 %v8737_v48, %v8661_v56  ;;  %v1038_v47 = vmul.f32 0.2, %v1006_v38  ;;  %v406_v56 = vld [vmem:[%s11542_s1 + $0x18] sm:$0xff] }
 0x305   : > { %1482 = vmax.xlane.f32.xlu1 %v8773_v43  ;;  %1480 = vmax.xlane.f32.xlu0 %v8777_v45  ;;  %v2298_v33 = vsel %vm2266_vm8, %v2250_v34, %v2282_v19  ;;  %vm1419_vm9 = vcmp.gt.f32.partialorder %v1403_v30, 0.0  ;;  %v1005_v26 = vadd.f32 %v8729_v12, %v8605_v28  ;;  %vm1022_vm10 = vcmp.gt.f32.partialorder %v1006_v38, 0.0 }
 0x306   : > { %v8799_v22 = vadd.f32 %v2299_v25, %v404_v9  ;;  %v8801_v40 = vadd.f32 %v2298_v33, %v403_v24  ;;  %v1451_v36 = vsel %vm1419_vm9, %v1403_v30, %v1435_v23  ;;  %v1864_v34 = vmul.f32 0.2, %v1832_v53 }
 0x307   : > { %v2253_v46 = vadd.f32 %v8751_v50, %v8669_v58  ;;  %v1054_v28 = vsel %vm1022_vm10, %v1006_v38, %v1038_v47  ;;  %v1037_v19 = vmul.f32 0.2, %v1005_v26  ;;  %vm1848_vm11 = vcmp.gt.f32.partialorder %v1832_v53, 0.0  ;;  %v8818_v33 = vpop.permute.xlu0 %2219 }
 0x308   : > { %v1402_v9 = vadd.f32 %v8733_v15, %v8613_v31  ;;  %vm1021_vm12 = vcmp.gt.f32.partialorder %v1005_v26, 0.0  ;;  %v8812_v24 = vadd.f32 %v1451_v36, %v406_v56  ;;  %v8814_v25 = vadd.f32 %v1054_v28, %v406_v56  ;;  %v405_v31 = vld [vmem:[%s11542_s1 + $0x10] sm:$0xff] }
 0x309   : > { %1911 = vmax.xlane.f32.xlu1 %v8787_v32  ;;  %1909 = vmax.xlane.f32.xlu0 %v8789_v51  ;;  %v1880_v30 = vsel %vm1848_vm11, %v1832_v53, %v1864_v34  ;;  %v2285_v23 = vmul.f32 0.2, %v2253_v46  ;;  %v1008_v58 = vadd.f32 %v8729_v12, %v8682_v0  ;;  %v1053_v38 = vsel %vm1021_vm12, %v1005_v26, %v1037_v19 }
 0x30a   : > { %v1434_v47 = vmul.f32 0.2, %v1402_v9  ;;  %vm2269_vm13 = vcmp.gt.f32.partialorder %v2253_v46, 0.0  ;;  %v1831_v36 = vadd.f32 %v8737_v48, %v8674_v60  ;;  %vm1418_vm14 = vcmp.gt.f32.partialorder %v1402_v9, 0.0 }
 0x30b   : > { %v8827_v53 = vadd.f32 %v1880_v30, %v406_v56  ;;  %v8829_v0 = vadd.f32 %v1053_v38, %v405_v31  ;;  %v2301_v34 = vsel %vm2269_vm13, %v2253_v46, %v2285_v23  ;;  %v1040_v28 = vmul.f32 0.2, %v1008_v58  ;;  %v8837_v30 = vpop.permute.xlu0 %1365 }
 0x30c   : > { %v1450_v26 = vsel %vm1418_vm14, %v1402_v9, %v1434_v47  ;;  %v1863_v19 = vmul.f32 0.2, %v1831_v36  ;;  %vm1024_vm15 = vcmp.gt.f32.partialorder %v1008_v58, 0.0  ;;  %v2252_v60 = vadd.f32 %v8751_v50, %v8678_v62 }
 0x30d   : > { %2332 = vmax.xlane.f32.xlu1 %v8799_v22  ;;  %2330 = vmax.xlane.f32.xlu0 %v8801_v40  ;;  %11704 = vst [vmem:[#allocation20_spill] sm:$0xff] %v8827_v53  ;;  %11705 = vst [vmem:[#allocation21_spill] sm:$0xff] %v8829_v0  ;;  %vm1847_vm0 = vcmp.gt.f32.partialorder %v1831_v36, 0.0  ;;  %v8839_v38 = vadd.f32 %v2301_v34, %v406_v56  ;;  %v8841_v46 = vadd.f32 %v1450_v26, %v405_v31 }
 0x30e   : > { %v1056_v23 = vsel %vm1024_vm15, %v1008_v58, %v1040_v28  ;;  %v1437_v9 = vmul.f32 0.2, %v1405_v17  ;;  %v1834_v47 = vadd.f32 %v8737_v48, %v8686_v2  ;;  %v1879_v62 = vsel %vm1847_vm0, %v1831_v36, %v1863_v19 }
 0x30f   : > { %11706 = vst [vmem:[#allocation22_spill] sm:$0xff] %v8839_v38  ;;  %vm1421_vm1 = vcmp.gt.f32.partialorder %v1405_v17, 0.0  ;;  %v1007_v56 = vadd.f32 %v8729_v12, %v8629_v44  ;;  %vm2268_vm2 = vcmp.gt.f32.partialorder %v2252_v60, 0.0  ;;  %v8852_v34 = vadd.f32 %v1056_v23, %v408_v37 }
 0x310   : > { %v8854_v26 = vadd.f32 %v1879_v62, %v405_v31  ;;  %v1453_v58 = vsel %vm1421_vm1, %v1405_v17, %v1437_v9  ;;  %v1866_v28 = vmul.f32 0.2, %v1834_v47  ;;  %v2255_v2 = vadd.f32 %v8751_v50, %v8690_v5 }
 0x311   : > { %1486 = vmax.xlane.f32.xlu1 %v8812_v24  ;;  %1089 = vmax.xlane.f32.xlu0 %v8814_v25  ;;  %v1039_v19 = vmul.f32 0.2, %v1007_v56  ;;  %vm1850_vm3 = vcmp.gt.f32.partialorder %v1834_v47, 0.0  ;;  %v1404_v44 = vadd.f32 %v8733_v15, %v8696_v6  ;;  %vm1023_vm4 = vcmp.gt.f32.partialorder %v1007_v56, 0.0 }
 0x312   : > { %v8864_v23 = vadd.f32 %v1453_v58, %v408_v37  ;;  %v1882_v9 = vsel %vm1850_vm3, %v1834_v47, %v1866_v28  ;;  %v2287_v62 = vmul.f32 0.2, %v2255_v2  ;;  %v1010_v5 = vadd.f32 %v8729_v12, %v8637_v49 }
 0x313   : > { %vm2271_vm5 = vcmp.gt.f32.partialorder %v2255_v2, 0.0  ;;  %v1436_v6 = vmul.f32 0.2, %v1404_v44  ;;  %v1833_v58 = vadd.f32 %v8737_v48, %v8702_v8  ;;  %vm1420_vm6 = vcmp.gt.f32.partialorder %v1404_v44, 0.0 }
 0x314   : > { %v8879_v47 = vadd.f32 %v1882_v9, %v408_v37  ;;  %v2303_v28 = vsel %vm2271_vm5, %v2255_v2, %v2287_v62  ;;  %vm1026_vm7 = vcmp.gt.f32.partialorder %v1010_v5, 0.0  ;;  %v2254_v8 = vadd.f32 %v8751_v50, %v8707_v11  ;;  %v410_v2 = vld [vmem:[%s11542_s1 + $0x38] sm:$0xff] }
 0x315   : > { %1915 = vmax.xlane.f32.xlu1 %v8827_v53  ;;  %1087 = vmax.xlane.f32.xlu0 %v8829_v0  ;;  %v2284_v0 = vmul.f32 0.2, %v2252_v60  ;;  %v8858_v53 = vpop.permute.xlu0 %1794  ;;  %vm1849_vm8 = vcmp.gt.f32.partialorder %v1833_v58, 0.0  ;;  %v8889_v9 = vadd.f32 %v2303_v28, %v408_v37  ;;  %v1009_v37 = vadd.f32 %v8729_v12, %v8644_v52 }
 0x316   : > { %vm2270_vm10 = vcmp.gt.f32.partialorder %v2254_v8, 0.0  ;;  %v1406_v52 = vadd.f32 %v8733_v15, %v8653_v54  ;;  %v409_v54 = vld [vmem:[%s11542_s1 + $0x30] sm:$0xff] }
 0x317   : > { %v2300_v36 = vsel %vm2268_vm2, %v2252_v60, %v2284_v0  ;;  %v407_v0 = vld [vmem:[%s11542_s1 + $0x20] sm:$0xff]  ;;  %v1055_v60 = vsel %vm1023_vm4, %v1007_v56, %v1039_v19  ;;  %v1452_v56 = vsel %vm1420_vm6, %v1404_v44, %v1436_v6  ;;  %v1865_v19 = vmul.f32 0.2, %v1833_v58  ;;  %11708 = vst [vmem:[#allocation24_spill] sm:$0xff] %v8889_v9 }
 0x318   : > { %v8866_v17 = vadd.f32 %v2300_v36, %v405_v31  ;;  %v8881_v49 = vadd.f32 %v1055_v60, %v407_v0  ;;  %v1042_v36 = vmul.f32 0.2, %v1010_v5  ;;  %v8891_v60 = vadd.f32 %v1452_v56, %v407_v0 }
 0x319   : > { %2336 = vmax.xlane.f32.xlu1 %v8839_v38  ;;  %1484 = vmax.xlane.f32.xlu0 %v8841_v46  ;;  %v8877_v31 = vpop.permute.xlu0 %1377  ;;  %v1407_v38 = vadd.f32 %v8733_v15, %v8711_v14  ;;  %v1836_v44 = vadd.f32 %v8737_v48, %v8715_v18  ;;  %v1881_v11 = vsel %vm1849_vm8, %v1833_v58, %v1865_v19  ;;  %v1041_v19 = vmul.f32 0.2, %v1009_v37 }
 0x31a   : > { %11707 = vst [vmem:[#allocation23_spill] sm:$0xff] %v8881_v49  ;;  %v1058_v14 = vsel %vm1026_vm7, %v1010_v5, %v1042_v36  ;;  %v8906_v5 = vadd.f32 %v1881_v11, %v407_v0  ;;  %v2257_v18 = vadd.f32 %v8751_v50, %v8721_v21  ;;  %vm1025_vm12 = vcmp.gt.f32.partialorder %v1009_v37, 0.0 }
 0x31b   : > { %v1439_v62 = vmul.f32 0.2, %v1407_v38  ;;  %vm1423_vm9 = vcmp.gt.f32.partialorder %v1407_v38, 0.0  ;;  %v8904_v28 = vadd.f32 %v1058_v14, %v410_v2  ;;  %v1868_v56 = vmul.f32 0.2, %v1836_v44 }
 0x31c   : > { %vm1852_vm11 = vcmp.gt.f32.partialorder %v1836_v44, 0.0  ;;  %v1012_v21 = vadd.f32 %v8729_v12, %v8781_v41  ;;  %vm2273_vm13 = vcmp.gt.f32.partialorder %v2257_v18, 0.0  ;;  %vm1422_vm14 = vcmp.gt.f32.partialorder %v1406_v52, 0.0 }
 0x31d   : > { %1093 = vmax.xlane.f32.xlu1 %v8852_v34  ;;  %1913 = vmax.xlane.f32.xlu0 %v8854_v26  ;;  %v8898_v6 = vpop.permute.xlu0 %1806  ;;  %v1455_v36 = vsel %vm1423_vm9, %v1407_v38, %v1439_v62  ;;  %v1884_v62 = vsel %vm1852_vm11, %v1836_v44, %v1868_v56 }
 0x31e   : > { %v8916_v11 = vadd.f32 %v1455_v36, %v410_v2  ;;  %v1835_v36 = vadd.f32 %v8737_v48, %v8739_v29  ;;  %v1044_v56 = vmul.f32 0.2, %v1012_v21  ;;  %vm1028_vm15 = vcmp.gt.f32.partialorder %v1012_v21, 0.0 }
 0x31f   : > { %v2256_v29 = vadd.f32 %v8751_v50, %v8763_v39 }
 0x320   : > { %11709 = vst [vmem:[#allocation25_spill] sm:$0xff] %v8916_v11  ;;  %vm1851_vm0 = vcmp.gt.f32.partialorder %v1835_v36, 0.0 }
 0x321   : > { %1490 = vmax.xlane.f32.xlu1 %v8864_v23  ;;  %2334 = vmax.xlane.f32.xlu0 %v8866_v17  ;;  %v8914_v14 = vpop.permute.xlu0 %2227  ;;  %v2288_v39 = vmul.f32 0.2, %v2256_v29  ;;  %vm2272_vm2 = vcmp.gt.f32.partialorder %v2256_v29, 0.0 }
 0x325   : > { %1919 = vmax.xlane.f32.xlu1 %v8879_v47  ;;  %1091 = vmax.xlane.f32.xlu0 %v8881_v49  ;;  %v2286_v49 = vmul.f32 0.2, %v2254_v8 }
 0x327   : > { %v2302_v58 = vsel %vm2270_vm10, %v2254_v8, %v2286_v49  ;;  %v1057_v49 = vsel %vm1025_vm12, %v1009_v37, %v1041_v19  ;;  %v1438_v8 = vmul.f32 0.2, %v1406_v52  ;;  %v1867_v19 = vmul.f32 0.2, %v1835_v36 }
 0x328   : > { %v8918_v38 = vadd.f32 %v2302_v58, %v407_v0  ;;  %v8929_v0 = vadd.f32 %v1884_v62, %v410_v2  ;;  %v8931_v44 = vadd.f32 %v1057_v49, %v409_v54  ;;  %v1409_v58 = vadd.f32 %v8733_v15, %v8659_v55  ;;  %v412_v55 = vld [vmem:[%s11542_s1 + $0x48] sm:$0xff] }
 0x329   : > { %2340 = vmax.xlane.f32.xlu1 %v8889_v9  ;;  %1488 = vmax.xlane.f32.xlu0 %v8891_v60  ;;  %v2289_v9 = vmul.f32 0.2, %v2257_v18  ;;  %v1454_v37 = vsel %vm1422_vm14, %v1406_v52, %v1438_v8  ;;  %v1838_v52 = vadd.f32 %v8737_v48, %v8797_v35  ;;  %v1883_v8 = vsel %vm1851_vm0, %v1835_v36, %v1867_v19 }
 0x32a   : > { %11710 = vst [vmem:[#allocation26_spill] sm:$0xff] %v8931_v44  ;;  %v1441_v49 = vmul.f32 0.2, %v1409_v58  ;;  %vm1425_vm1 = vcmp.gt.f32.partialorder %v1409_v58, 0.0  ;;  %v2259_v35 = vadd.f32 %v8751_v50, %v8818_v33  ;;  %v2304_v36 = vsel %vm2272_vm2, %v2256_v29, %v2288_v39  ;;  %v411_v29 = vld [vmem:[%s11542_s1 + $0x40] sm:$0xff] }
 0x32b   : > { %v2305_v41 = vsel %vm2273_vm13, %v2257_v18, %v2289_v9  ;;  %v8943_v9 = vadd.f32 %v1454_v37, %v409_v54  ;;  %v1060_v18 = vsel %vm1028_vm15, %v1012_v21, %v1044_v56  ;;  %v8958_v21 = vadd.f32 %v1883_v8, %v409_v54 }
 0x32c   : > { %v8941_v62 = vadd.f32 %v2305_v41, %v410_v2  ;;  %v1011_v2 = vadd.f32 %v8729_v12, %v8667_v57  ;;  %v8956_v37 = vadd.f32 %v1060_v18, %v412_v55  ;;  %v1457_v56 = vsel %vm1425_vm1, %v1409_v58, %v1441_v49 }
 0x32d   : > { %1097 = vmax.xlane.f32.xlu1 %v8904_v28  ;;  %1917 = vmax.xlane.f32.xlu0 %v8906_v5  ;;  %11711 = vst [vmem:[#allocation27_spill] sm:$0xff] %v8943_v9  ;;  %vm1854_vm3 = vcmp.gt.f32.partialorder %v1838_v52, 0.0  ;;  %v1408_v57 = vadd.f32 %v8733_v15, %v8837_v30  ;;  %v8966_v18 = vadd.f32 %v1457_v56, %v412_v55  ;;  %v2291_v49 = vmul.f32 0.2, %v2259_v35 }
 0x32e   : > { %11712 = vst [vmem:[#allocation28_spill] sm:$0xff] %v8956_v37  ;;  %v1043_v19 = vmul.f32 0.2, %v1011_v2  ;;  %vm1027_vm4 = vcmp.gt.f32.partialorder %v1011_v2, 0.0  ;;  %v8968_v8 = vadd.f32 %v2304_v36, %v409_v54  ;;  %v1014_v33 = vadd.f32 %v8729_v12, %v8676_v61 }
 0x32f   : > { %11713 = vst [vmem:[#allocation29_spill] sm:$0xff] %v8966_v18  ;;  %vm2275_vm5 = vcmp.gt.f32.partialorder %v2259_v35, 0.0  ;;  %v1440_v39 = vmul.f32 0.2, %v1408_v57  ;;  %v1837_v56 = vadd.f32 %v8737_v48, %v8858_v53  ;;  %vm1424_vm6 = vcmp.gt.f32.partialorder %v1408_v57, 0.0 }
 0x330   : > { %v1059_v30 = vsel %vm1027_vm4, %v1011_v2, %v1043_v19  ;;  %v1411_v61 = vadd.f32 %v8733_v15, %v8877_v31  ;;  %v1046_v36 = vmul.f32 0.2, %v1014_v33  ;;  %vm1030_vm7 = vcmp.gt.f32.partialorder %v1014_v33, 0.0 }
 0x331   : > { %1494 = vmax.xlane.f32.xlu1 %v8916_v11  ;;  %2338 = vmax.xlane.f32.xlu0 %v8918_v38  ;;  %v8935_v11 = vpop.permute.xlu0 %1802  ;;  %v1456_v2 = vsel %vm1424_vm6, %v1408_v57, %v1440_v39  ;;  %v1869_v19 = vmul.f32 0.2, %v1837_v56  ;;  %v2258_v53 = vadd.f32 %v8751_v50, %v8672_v59  ;;  %vm1853_vm8 = vcmp.gt.f32.partialorder %v1837_v56, 0.0  ;;  %v414_v57 = vld [vmem:[%s11542_s1 + $0x58] sm:$0xff] }
 0x332   : > { %v1840_v31 = vadd.f32 %v8737_v48, %v8898_v6  ;;  %vm1427_vm9 = vcmp.gt.f32.partialorder %v1411_v61, 0.0 }
 0x333   : > { %v1885_v59 = vsel %vm1853_vm8, %v1837_v56, %v1869_v19  ;;  %vm2274_vm10 = vcmp.gt.f32.partialorder %v2258_v53, 0.0 }
 0x334   : > { %v1872_v6 = vmul.f32 0.2, %v1840_v31  ;;  %vm1856_vm11 = vcmp.gt.f32.partialorder %v1840_v31, 0.0 }
 0x335   : > { %1923 = vmax.xlane.f32.xlu1 %v8929_v0  ;;  %1095 = vmax.xlane.f32.xlu0 %v8931_v44  ;;  %v8954_v41 = vpop.permute.xlu0 %2223  ;;  %v1870_v44 = vmul.f32 0.2, %v1838_v52 }
 0x337   : > { %v1886_v58 = vsel %vm1854_vm3, %v1838_v52, %v1870_v44  ;;  %v8983_v44 = vadd.f32 %v1059_v30, %v411_v29  ;;  %v2307_v52 = vsel %vm2275_vm5, %v2259_v35, %v2291_v49  ;;  %v8993_v35 = vadd.f32 %v1456_v2, %v411_v29 }
 0x338   : > { %v8979_v54 = vadd.f32 %v1886_v58, %v412_v55  ;;  %v1062_v49 = vsel %vm1030_vm7, %v1014_v33, %v1046_v36  ;;  %v2290_v30 = vmul.f32 0.2, %v2258_v53  ;;  %v9006_v2 = vadd.f32 %v1885_v59, %v411_v29 }
 0x339   : > { %2344 = vmax.xlane.f32.xlu1 %v8941_v62  ;;  %1492 = vmax.xlane.f32.xlu0 %v8943_v9  ;;  %v987_v9 = vpop.permute.xlu0 %986  ;;  %11714 = vst [vmem:[#allocation30_spill] sm:$0xff] %v8993_v35  ;;  %v9002_v39 = vadd.f32 %v1062_v49, %v414_v57 }
 0x33a   : > { %v2306_v56 = vsel %vm2274_vm10, %v2258_v53, %v2290_v30 }
 0x33b   : > { %11715 = vst [vmem:[#allocation31_spill] sm:$0xff] %v9002_v39  ;;  %v9015_v59 = vadd.f32 %v2306_v56, %v411_v29 }
 0x33d   : > { %1101 = vmax.xlane.f32.xlu1 %v8956_v37  ;;  %1921 = vmax.xlane.f32.xlu0 %v8958_v21  ;;  %v1815_v58 = vpop.permute.xlu0 %1814  ;;  %v1443_v37 = vmul.f32 0.2, %v1411_v61 }
 0x33f   : > { %v1459_v33 = vsel %vm1427_vm9, %v1411_v61, %v1443_v37  ;;  %v1888_v37 = vsel %vm1856_vm11, %v1840_v31, %v1872_v6  ;;  %v1839_v61 = vadd.f32 %v8737_v48, %v8935_v11  ;;  %v1413_v11 = vadd.f32 %v8733_v15, %v8688_v4 }
 0x340   : > { %v9012_v49 = vadd.f32 %v1459_v33, %v414_v57 }
 0x341   : > { %1498 = vmax.xlane.f32.xlu1 %v8966_v18  ;;  %2342 = vmax.xlane.f32.xlu0 %v8968_v8  ;;  %v8989_v18 = vadd.f32 %v2307_v52, %v412_v55  ;;  %v1013_v55 = vadd.f32 %v8729_v12, %v8680_v63  ;;  %v2261_v52 = vadd.f32 %v8751_v50, %v8914_v14  ;;  %v2236_v36 = vpop.permute.xlu0 %2235  ;;  %v1871_v56 = vmul.f32 0.2, %v1839_v61 }
 0x342   : > { %v1410_v63 = vadd.f32 %v8733_v15, %v8684_v1  ;;  %11716 = vst [vmem:[#allocation32_spill] sm:$0xff] %v9012_v49  ;;  %v1016_v14 = vadd.f32 %v8729_v12, %v987_v9  ;;  %v413_v1 = vld [vmem:[%s11542_s1 + $0x50] sm:$0xff]  ;;  %v9024_v9 = vadd.f32 %v1888_v37, %v414_v57  ;;  %vm1855_vm0 = vcmp.gt.f32.partialorder %v1839_v61, 0.0 }
 0x343   : > { %v1045_v19 = vmul.f32 0.2, %v1013_v55  ;;  %vm1029_vm12 = vcmp.gt.f32.partialorder %v1013_v55, 0.0  ;;  %vm2277_vm13 = vcmp.gt.f32.partialorder %v2261_v52, 0.0  ;;  %v1842_v37 = vadd.f32 %v8737_v48, %v1815_v58  ;;  %v416_v58 = vld [vmem:[%s11542_s1 + $0x68] sm:$0xff] }
 0x344   : > { %v1442_v30 = vmul.f32 0.2, %v1410_v63  ;;  %vm1426_vm14 = vcmp.gt.f32.partialorder %v1410_v63, 0.0  ;;  %v1048_v29 = vmul.f32 0.2, %v1016_v14  ;;  %vm1032_vm15 = vcmp.gt.f32.partialorder %v1016_v14, 0.0 }
 0x345   : > { %1927 = vmax.xlane.f32.xlu1 %v8979_v54  ;;  %1099 = vmax.xlane.f32.xlu0 %v8983_v44  ;;  %v1061_v53 = vsel %vm1029_vm12, %v1013_v55, %v1045_v19  ;;  %v1382_v33 = vpop.permute.xlu0 %1381  ;;  %vm1429_vm1 = vcmp.gt.f32.partialorder %v1413_v11, 0.0  ;;  %vm1858_vm3 = vcmp.gt.f32.partialorder %v1842_v37, 0.0 }
 0x346   : > { %v9026_v31 = vadd.f32 %v1061_v53, %v413_v1  ;;  %v1458_v55 = vsel %vm1426_vm14, %v1410_v63, %v1442_v30  ;;  %v1015_v63 = vadd.f32 %v8729_v12, %v8694_v3  ;;  %v2263_v30 = vadd.f32 %v8751_v50, %v2236_v36 }
 0x347   : > { %v9037_v53 = vadd.f32 %v1458_v55, %v413_v1 }
 0x348   : > { %11717 = vst [vmem:[#allocation33_spill] sm:$0xff] %v9026_v31  ;;  %vm1031_vm4 = vcmp.gt.f32.partialorder %v1015_v63, 0.0  ;;  %vm2279_vm5 = vcmp.gt.f32.partialorder %v2263_v30, 0.0 }
 0x349   : > { %2348 = vmax.xlane.f32.xlu1 %v8989_v18  ;;  %1496 = vmax.xlane.f32.xlu0 %v8993_v35  ;;  %v2293_v35 = vmul.f32 0.2, %v2261_v52 }
 0x34b   : > { %v2309_v6 = vsel %vm2277_vm13, %v2261_v52, %v2293_v35  ;;  %v1064_v35 = vsel %vm1032_vm15, %v1016_v14, %v1048_v29  ;;  %v1445_v52 = vmul.f32 0.2, %v1413_v11  ;;  %v1874_v14 = vmul.f32 0.2, %v1842_v37 }
 0x34c   : > { %v9034_v19 = vadd.f32 %v2309_v6, %v414_v57  ;;  %v9046_v57 = vadd.f32 %v1064_v35, %v416_v58  ;;  %v2295_v35 = vmul.f32 0.2, %v2263_v30 }
 0x34d   : > { %1105 = vmax.xlane.f32.xlu1 %v9002_v39  ;;  %1925 = vmax.xlane.f32.xlu0 %v9006_v2  ;;  %v1811_v39 = vpop.permute.xlu0 %1810  ;;  %v1461_v6 = vsel %vm1429_vm1, %v1413_v11, %v1445_v52  ;;  %v1890_v36 = vsel %vm1858_vm3, %v1842_v37, %v1874_v14  ;;  %v1018_v11 = vadd.f32 %v8729_v12, %v8705_v10  ;;  %vm11686_vm1 = vcmask 261120  }
 0x34e   : > { %11718 = vst [vmem:[#allocation34_spill] sm:$0xff] %v9034_v19  ;;  %v2311_v10 = vsel %vm2279_vm5, %v2263_v30, %v2295_v35  ;;  %v418_v30 = vld [vmem:[%s11542_s1 + $0x78] sm:$0xff]  ;;  %vm11684_vm3 = vcmask 785408  }
 0x34f   : > { %v1050_v14 = vmul.f32 0.2, %v1018_v11  ;;  %vm1034_vm7 = vcmp.gt.f32.partialorder %v1018_v11, 0.0 }
 0x351   : > { %1502 = vmax.xlane.f32.xlu1 %v9012_v49  ;;  %2346 = vmax.xlane.f32.xlu0 %v9015_v59  ;;  %v2260_v49 = vadd.f32 %v8751_v50, %v8954_v41  ;;  %v1887_v41 = vsel %vm1855_vm0, %v1839_v61, %v1871_v56  ;;  %v1412_v61 = vadd.f32 %v8733_v15, %v1382_v33  ;;  %v1047_v56 = vmul.f32 0.2, %v1015_v63  ;;  %v1394_v55 = vpop.permute.xlu0 %1393 }
 0x352   : > { %v9049_v29 = vadd.f32 %v1887_v41, %v413_v1  ;;  %v1841_v33 = vadd.f32 %v8737_v48, %v1811_v39  ;;  %v1415_v37 = vadd.f32 %v8733_v15, %v1394_v55  ;;  %v1066_v35 = vsel %vm1034_vm7, %v1018_v11, %v1050_v14 }
 0x353   : > { %v2292_v4 = vmul.f32 0.2, %v2260_v49  ;;  %vm2276_vm2 = vcmp.gt.f32.partialorder %v2260_v49, 0.0  ;;  %v1444_v52 = vmul.f32 0.2, %v1412_v61  ;;  %vm1428_vm6 = vcmp.gt.f32.partialorder %v1412_v61, 0.0 }
 0x354   : > { %vm1857_vm8 = vcmp.gt.f32.partialorder %v1841_v33, 0.0  ;;  %vm1431_vm9 = vcmp.gt.f32.partialorder %v1415_v37, 0.0  ;;  %v2265_v11 = vadd.f32 %v8751_v50, %v8709_v13  ;;  %v417_v13 = vld [vmem:[%s11542_s1 + $0x70] sm:$0xff] }
 0x355   : > { %1931 = vmax.xlane.f32.xlu1 %v9024_v9  ;;  %1103 = vmax.xlane.f32.xlu0 %v9026_v31  ;;  %v2308_v3 = vsel %vm2276_vm2, %v2260_v49, %v2292_v4  ;;  %v415_v49 = vld [vmem:[%s11542_s1 + $0x60] sm:$0xff]  ;;  %v1063_v4 = vsel %vm1031_vm4, %v1015_v63, %v1047_v56  ;;  %v1823_v39 = vpop.permute.xlu0 %1822  ;;  %v2262_v63 = vadd.f32 %v8751_v50, %v8700_v7  ;;  %vm11685_vm2 = vcmask 523264  }
 0x356   : > { %v9056_v31 = vadd.f32 %v2308_v3, %v413_v1  ;;  %v9066_v1 = vadd.f32 %v1890_v36, %v416_v58  ;;  %v9069_v41 = vadd.f32 %v1063_v4, %v415_v49  ;;  %v1460_v3 = vsel %vm1428_vm6, %v1412_v61, %v1444_v52 }
 0x357   : > { %v9075_v56 = vadd.f32 %v2311_v10, %v416_v58  ;;  %v1447_v36 = vmul.f32 0.2, %v1415_v37  ;;  %v1844_v55 = vadd.f32 %v8737_v48, %v1823_v39  ;;  %v9078_v4 = vadd.f32 %v1460_v3, %v415_v49  ;;  %v1819_v39 = vpop.permute.xlu1 %1818 }
 0x358   : > { %11719 = vst [vmem:[#allocation35_spill] sm:$0xff] %v9066_v1  ;;  %v2294_v7 = vmul.f32 0.2, %v2262_v63  ;;  %v1017_v52 = vadd.f32 %v8729_v12, %v8713_v16  ;;  %vm2278_vm10 = vcmp.gt.f32.partialorder %v2262_v63, 0.0  ;;  %v1414_v12 = vadd.f32 %v8733_v15, %v8719_v20 }
 0x359   : > { %2352 = vmax.xlane.f32.xlu1 %v9034_v19  ;;  %1500 = vmax.xlane.f32.xlu0 %v9037_v53  ;;  %v9054_v19 = vadd.f32 %v1461_v6, %v416_v58  ;;  %v1873_v6 = vmul.f32 0.2, %v1841_v33  ;;  %v9087_v58 = vadd.f32 %v1066_v35, %v418_v30  ;;  %v1876_v10 = vmul.f32 0.2, %v1844_v55 }
 0x35a   : > { %vm1860_vm11 = vcmp.gt.f32.partialorder %v1844_v55, 0.0  ;;  %v1049_v14 = vmul.f32 0.2, %v1017_v52  ;;  %vm1033_vm12 = vcmp.gt.f32.partialorder %v1017_v52, 0.0  ;;  %vm2281_vm13 = vcmp.gt.f32.partialorder %v2265_v11, 0.0 }
 0x35b   : > { %v1889_v61 = vsel %vm1857_vm8, %v1841_v33, %v1873_v6  ;;  %v2310_v33 = vsel %vm2278_vm10, %v2262_v63, %v2294_v7  ;;  %v1892_v35 = vsel %vm1860_vm11, %v1844_v55, %v1876_v10  ;;  %v2240_v20 = vpop.permute.xlu1 %2239  ;;  %vm1430_vm14 = vcmp.gt.f32.partialorder %v1414_v12, 0.0 }
 0x35c   : > { %v9089_v3 = vadd.f32 %v1889_v61, %v415_v49  ;;  %v9099_v6 = vadd.f32 %v2310_v33, %v415_v49  ;;  %v1065_v63 = vsel %vm1033_vm12, %v1017_v52, %v1049_v14  ;;  %v1446_v61 = vmul.f32 0.2, %v1414_v12 }
 0x35d   : > { %1109 = vmax.xlane.f32.xlu1 %v9046_v57  ;;  %1929 = vmax.xlane.f32.xlu0 %v9049_v29  ;;  %v9107_v15 = vadd.f32 %v1892_v35, %v418_v30  ;;  %v9109_v49 = vadd.f32 %v1065_v63, %v417_v13 }
 0x35e   : > { %v1462_v7 = vsel %vm1430_vm14, %v1414_v12, %v1446_v61 }
 0x35f   : > { %v9116_v10 = vadd.f32 %v1462_v7, %v417_v13 }
 0x361   : > { %1506 = vmax.xlane.f32.xlu1 %v9054_v19  ;;  %2350 = vmax.xlane.f32.xlu0 %v9056_v31 }
 0x365   : > { %1935 = vmax.xlane.f32.xlu1 %v9066_v1  ;;  %1107 = vmax.xlane.f32.xlu0 %v9069_v41  ;;  %v1463_v1 = vsel %vm1431_vm9, %v1415_v37, %v1447_v36  ;;  %v2297_v37 = vmul.f32 0.2, %v2265_v11  ;;  %v1843_v36 = vadd.f32 %v8737_v48, %v1819_v39  ;;  %v2264_v48 = vadd.f32 %v8751_v50, %v2240_v20 }
 0x366   : > { %v9097_v16 = vadd.f32 %v1463_v1, %v418_v30 }
 0x367   : > { %v2313_v1 = vsel %vm2281_vm13, %v2265_v11, %v2297_v37  ;;  %v1875_v55 = vmul.f32 0.2, %v1843_v36  ;;  %vm1859_vm15 = vcmp.gt.f32.partialorder %v1843_v36, 0.0  ;;  %v2296_v39 = vmul.f32 0.2, %v2264_v48 }
 0x368   : > { %v9114_v52 = vadd.f32 %v2313_v1, %v418_v30  ;;  %vm2280_vm0 = vcmp.gt.f32.partialorder %v2264_v48, 0.0 }
 0x369   : > { %2356 = vmax.xlane.f32.xlu1 %v9075_v56  ;;  %1504 = vmax.xlane.f32.xlu0 %v9078_v4  ;;  %v1891_v33 = vsel %vm1859_vm15, %v1843_v36, %v1875_v55  ;;  %v2312_v50 = vsel %vm2280_vm0, %v2264_v48, %v2296_v39 }
 0x36a   : > { %v9120_v11 = vadd.f32 %v1891_v33, %v417_v13  ;;  %v9123_v14 = vadd.f32 %v2312_v50, %v417_v13 }
 0x36d   : > { %1113 = vmax.xlane.f32.xlu1 %v9087_v58  ;;  %1933 = vmax.xlane.f32.xlu0 %v9089_v3 }
 0x371   : > { %1510 = vmax.xlane.f32.xlu1 %v9097_v16  ;;  %2354 = vmax.xlane.f32.xlu0 %v9099_v6 }
 0x375   : > { %1939 = vmax.xlane.f32.xlu1 %v9107_v15  ;;  %1111 = vmax.xlane.f32.xlu0 %v9109_v49 }
 0x379   : > { %2360 = vmax.xlane.f32.xlu1 %v9114_v52  ;;  %1508 = vmax.xlane.f32.xlu0 %v9116_v10 }
 0x37d   : > { %1937 = vmax.xlane.f32.xlu0 %v9120_v11 }
 0x381   : > { %2358 = vmax.xlane.f32.xlu0 %v9123_v14 }
 0x38e   : > { %v1086_v30 = vpop.xlane.xlu1 %1085  ;;  %v1084_v35 = vpop.xlane.xlu0 %1083 }
 0x38f   : > { %v1116_v12 = vsub.f32 %v8765_v42, %v1086_v30  ;;  %v1115_v39 = vsub.f32 %v8767_v27, %v1084_v35 }
 0x391   : > { %v1133_v37 = vmul.f32 1.442695, %v1116_v12 }
 0x392   : > { %v1483_v63 = vpop.xlane.xlu1 %1482  ;;  %v1481_v61 = vpop.xlane.xlu0 %1480 }
 0x393   : > { %7390 = vpow2.f32 %v1133_v37  ;;  %v1513_v36 = vsub.f32 %v8773_v43, %v1483_v63  ;;  %v1131_v63 = vmul.f32 1.442695, %v1115_v39 }
 0x395   : > { %v1530_v20 = vmul.f32 1.442695, %v1513_v36 }
 0x396   : > { %v1912_v1 = vpop.xlane.xlu1 %1911  ;;  %v1910_v48 = vpop.xlane.xlu0 %1909 }
 0x397   : > { %7392 = vpow2.f32 %v1530_v20  ;;  %v1942_v55 = vsub.f32 %v8787_v32, %v1912_v1  ;;  %v1512_v32 = vsub.f32 %v8777_v45, %v1481_v61 }
 0x399   : > { %v1959_v13 = vmul.f32 1.442695, %v1942_v55 }
 0x39a   : > { %v2333_v7 = vpop.xlane.xlu1 %2332  ;;  %v2331_v33 = vpop.xlane.xlu0 %2330 }
 0x39b   : > { %7394 = vpow2.f32 %v1959_v13  ;;  %v2363_v42 = vsub.f32 %v8799_v22, %v2333_v7  ;;  %v2362_v50 = vsub.f32 %v8801_v40, %v2331_v33  ;;  %v1528_v22 = vmul.f32 1.442695, %v1512_v32 }
 0x39c   : > { %v1941_v40 = vsub.f32 %v8789_v51, %v1910_v48 }
 0x39d   : > { %v9132_v30 = vpop.eup %7390  ;;  %v2380_v43 = vmul.f32 1.442695, %v2363_v42  ;;  %v2378_v12 = vmul.f32 1.442695, %v2362_v50 }
 0x39e   : > { %v1487_v37 = vpop.xlane.xlu1 %1486  ;;  %1165 = vadd.xlane.f32.xlu1 %v9132_v30  ;;  %v1090_v36 = vpop.xlane.xlu0 %1089  ;;  %v1957_v45 = vmul.f32 1.442695, %v1941_v40 }
 0x39f   : > { %7396 = vpow2.f32 %v2380_v43  ;;  %v1118_v61 = vsub.f32 %v8814_v25, %v1090_v36  ;;  %v1515_v51 = vsub.f32 %v8812_v24, %v1487_v37 }
 0x3a0   : > { %7398 = vpow2.f32 %v2378_v12 }
 0x3a1   : > { %v9136_v27 = vpop.eup %7392  ;;  %7400 = vpow2.f32 %v1131_v63  ;;  %v1137_v48 = vmul.f32 1.442695, %v1118_v61  ;;  %v1534_v36 = vmul.f32 1.442695, %v1515_v51 }
 0x3a2   : > { %v1916_v35 = vpop.xlane.xlu1 %1915  ;;  %1562 = vadd.xlane.f32.xlu1 %v9136_v27  ;;  %v1088_v20 = vpop.xlane.xlu0 %1087  ;;  %7402 = vpow2.f32 %v1528_v22  ;;  %v11723_v22 = vld [vmem:[#allocation20_spill] sm:$0xff] }
 0x3a3   : > { %7404 = vpow2.f32 %v1957_v45  ;;  %v1944_v40 = vsub.f32 %v11723_v22, %v1916_v35 }
 0x3a5   : > { %v9140_v1 = vpop.eup %7394 }
 0x3a6   : > { %11720 = vst [vmem:[#allocation36_spill] sm:$0xff] %v9140_v1  ;;  %v2337_v55 = vpop.xlane.xlu1 %2336  ;;  %1991 = vadd.xlane.f32.xlu0 %v9140_v1  ;;  %v1485_v13 = vpop.xlane.xlu0 %1484 }
 0x3a7   : > { %v1514_v7 = vsub.f32 %v8841_v46, %v1485_v13  ;;  %v11724_v13 = vld [vmem:[#allocation22_spill] sm:$0xff] }
 0x3a9   : > { %v9145_v39 = vpop.eup %7396  ;;  %v1532_v33 = vmul.f32 1.442695, %v1514_v7  ;;  %v2365_v7 = vsub.f32 %v11724_v13, %v2337_v55 }
 0x3aa   : > { %11721 = vst [vmem:[#allocation37_spill] sm:$0xff] %v9145_v39  ;;  %v9147_v42 = vpop.eup %7398  ;;  %v1094_v50 = vpop.xlane.xlu1 %1093  ;;  %2412 = vadd.xlane.f32.xlu1 %v9145_v39 }
 0x3ab   : > { %11722 = vst [vmem:[#allocation38_spill] sm:$0xff] %v9147_v42  ;;  %2410 = vadd.xlane.f32.xlu0 %v9147_v42  ;;  %v1914_v43 = vpop.xlane.xlu0 %1913  ;;  %7406 = vpow2.f32 %v1532_v33  ;;  %v1120_v25 = vsub.f32 %v8852_v34, %v1094_v50  ;;  %v9154_v12 = vpop.eup %7400 }
 0x3ac   : > { %v1943_v46 = vsub.f32 %v8854_v26, %v1914_v43  ;;  %7408 = vpow2.f32 %v1137_v48  ;;  %v9159_v61 = vpop.eup %7402  ;;  %v1963_v26 = vmul.f32 1.442695, %v1944_v40 }
 0x3ad   : > { %v1141_v37 = vmul.f32 1.442695, %v1120_v25  ;;  %v9165_v51 = vpop.eup %7404  ;;  %v2384_v25 = vmul.f32 1.442695, %v2365_v7 }
 0x3ae   : > { %v1961_v63 = vmul.f32 1.442695, %v1943_v46  ;;  %v1491_v32 = vpop.xlane.xlu1 %1490  ;;  %1163 = vadd.xlane.f32.xlu1 %v9154_v12 }
 0x3af   : > { %v2335_v24 = vpop.xlane.xlu0 %2334  ;;  %v1517_v45 = vsub.f32 %v8864_v23, %v1491_v32  ;;  %v11725_v23 = vld [vmem:[#allocation21_spill] sm:$0xff] }
 0x3b0   : > { %7410 = vpow2.f32 %v1961_v63  ;;  %v1117_v43 = vsub.f32 %v11725_v23, %v1088_v20 }
 0x3b1   : > { %7412 = vpow2.f32 %v1534_v36  ;;  %v1538_v50 = vmul.f32 1.442695, %v1517_v45 }
 0x3b2   : > { %v1920_v34 = vpop.xlane.xlu1 %1919  ;;  %1560 = vadd.xlane.f32.xlu1 %v9159_v61  ;;  %7414 = vpow2.f32 %v1141_v37  ;;  %v1135_v40 = vmul.f32 1.442695, %v1117_v43  ;;  %v2364_v37 = vsub.f32 %v8866_v17, %v2335_v24 }
 0x3b3   : > { %v9163_v33 = vpop.xlane.xlu0 %1091  ;;  %7416 = vpow2.f32 %v1963_v26  ;;  %v1946_v23 = vsub.f32 %v8879_v47, %v1920_v34 }
 0x3b4   : > { %7418 = vpow2.f32 %v1538_v50  ;;  %v2382_v50 = vmul.f32 1.442695, %v2364_v37 }
 0x3b5   : > { %v9167_v35 = vpop.eup %7406  ;;  %7420 = vpow2.f32 %v2384_v25 }
 0x3b6   : > { %v2341_v48 = vpop.xlane.xlu1 %2340  ;;  %1989 = vadd.xlane.f32.xlu1 %v9165_v51  ;;  %1564 = vadd.xlane.f32.xlu0 %v9167_v35  ;;  %v9173_v63 = vpop.eup %7408 }
 0x3b7   : > { %v1489_v46 = vpop.xlane.xlu0 %1488 }
 0x3b8   : > { %v1516_v55 = vsub.f32 %v8891_v60, %v1489_v46 }
 0x3ba   : > { %v9175_v32 = vpop.eup %7410  ;;  %v1536_v36 = vmul.f32 1.442695, %v1516_v55  ;;  %v1098_v22 = vpop.xlane.xlu1 %1097  ;;  %1169 = vadd.xlane.f32.xlu1 %v9173_v63 }
 0x3bb   : > { %11726 = vst [vmem:[#allocation20_spill] sm:$0xff] %v9175_v32  ;;  %1993 = vadd.xlane.f32.xlu0 %v9175_v32  ;;  %v1918_v20 = vpop.xlane.xlu0 %1917  ;;  %v9181_v26 = vpop.eup %7412  ;;  %v1122_v24 = vsub.f32 %v8904_v28, %v1098_v22  ;;  %v11729_v28 = vld [vmem:[#allocation25_spill] sm:$0xff] }
 0x3bc   : > { %7422 = vpow2.f32 %v1536_v36  ;;  %v1945_v45 = vsub.f32 %v8906_v5, %v1918_v20  ;;  %v9183_v60 = vpop.eup %7414  ;;  %v1967_v36 = vmul.f32 1.442695, %v1946_v23 }
 0x3bd   : > { %7424 = vpow2.f32 %v1135_v40  ;;  %v9190_v43 = vpop.eup %7416  ;;  %v11728_v40 = vld [vmem:[#allocation24_spill] sm:$0xff]  ;;  %v1145_v37 = vmul.f32 1.442695, %v1122_v24 }
 0x3be   : > { %v1965_v13 = vmul.f32 1.442695, %v1945_v45  ;;  %v1495_v7 = vpop.xlane.xlu1 %1494  ;;  %1566 = vadd.xlane.f32.xlu1 %v9181_v26  ;;  %11727 = vst [vmem:[#allocation22_spill] sm:$0xff] %v9190_v43  ;;  %v9192_v25 = vpop.eup %7418  ;;  %v2367_v47 = vsub.f32 %v11728_v40, %v2341_v48 }
 0x3bf   : > { %1173 = vadd.xlane.f32.xlu0 %v9183_v60  ;;  %v2339_v17 = vpop.xlane.xlu0 %2338  ;;  %v1519_v22 = vsub.f32 %v11729_v28, %v1495_v7 }
 0x3c0   : > { %7426 = vpow2.f32 %v1965_v13  ;;  %v2366_v5 = vsub.f32 %v8918_v38, %v2339_v17  ;;  %v9198_v38 = vpop.eup %7420  ;;  %v11731_v13 = vld [vmem:[#allocation23_spill] sm:$0xff]  ;;  %v2388_v23 = vmul.f32 1.442695, %v2367_v47 }
 0x3c1   : > { %7428 = vpow2.f32 %v2382_v50  ;;  %11730 = vst [vmem:[#allocation21_spill] sm:$0xff] %v9198_v38  ;;  %v1119_v50 = vsub.f32 %v11731_v13, %v9163_v33  ;;  %v1542_v17 = vmul.f32 1.442695, %v1519_v22 }
 0x3c2   : > { %v2386_v46 = vmul.f32 1.442695, %v2366_v5  ;;  %v1924_v55 = vpop.xlane.xlu1 %1923  ;;  %1995 = vadd.xlane.f32.xlu1 %v9190_v43 }
 0x3c3   : > { %1570 = vadd.xlane.f32.xlu0 %v9192_v25  ;;  %v1096_v34 = vpop.xlane.xlu0 %1095  ;;  %v1948_v7 = vsub.f32 %v8929_v0, %v1924_v55  ;;  %v1139_v40 = vmul.f32 1.442695, %v1119_v50 }
 0x3c4   : > { %7430 = vpow2.f32 %v2386_v46 }
 0x3c5   : > { %7432 = vpow2.f32 %v1967_v36  ;;  %v1971_v47 = vmul.f32 1.442695, %v1948_v7 }
 0x3c6   : > { %v9200_v20 = vpop.eup %7422  ;;  %v2345_v45 = vpop.xlane.xlu1 %2344  ;;  %2416 = vadd.xlane.f32.xlu1 %v9198_v38  ;;  %7434 = vpow2.f32 %v1145_v37  ;;  %v11733_v37 = vld [vmem:[#allocation26_spill] sm:$0xff] }
 0x3c7   : > { %1568 = vadd.xlane.f32.xlu0 %v9200_v20  ;;  %v1493_v48 = vpop.xlane.xlu0 %1492  ;;  %v9207_v24 = vpop.eup %7424  ;;  %7436 = vpow2.f32 %v2388_v23  ;;  %v2369_v36 = vsub.f32 %v8941_v62, %v2345_v45  ;;  %v1121_v28 = vsub.f32 %v11733_v37, %v1096_v34  ;;  %v11736_v45 = vld [vmem:[#allocation27_spill] sm:$0xff] }
 0x3c8   : > { %7438 = vpow2.f32 %v1542_v17  ;;  %v1518_v23 = vsub.f32 %v11736_v45, %v1493_v48 }
 0x3c9   : > { %7440 = vpow2.f32 %v1139_v40  ;;  %v2392_v13 = vmul.f32 1.442695, %v2369_v36  ;;  %v1143_v62 = vmul.f32 1.442695, %v1121_v28 }
 0x3ca   : > { %v9209_v5 = vpop.eup %7426  ;;  %v1102_v46 = vpop.xlane.xlu1 %1101  ;;  %1167 = vadd.xlane.f32.xlu1 %v9207_v24  ;;  %7442 = vpow2.f32 %v1971_v47  ;;  %v1540_v47 = vmul.f32 1.442695, %v1518_v23 }
 0x3cb   : > { %11732 = vst [vmem:[#allocation24_spill] sm:$0xff] %v9209_v5  ;;  %1997 = vadd.xlane.f32.xlu0 %v9209_v5  ;;  %v1922_v33 = vpop.xlane.xlu0 %1921  ;;  %v9215_v22 = vpop.eup %7428  ;;  %7444 = vpow2.f32 %v2392_v13  ;;  %v11762_v5 = vld [vmem:[#allocation35_spill] sm:$0xff] }
 0x3cc   : > { %11734 = vst [vmem:[#allocation25_spill] sm:$0xff] %v9215_v22  ;;  %7446 = vpow2.f32 %v1143_v62  ;;  %v1947_v48 = vsub.f32 %v8958_v21, %v1922_v33 }
 0x3ce   : > { %v9217_v0 = vpop.eup %7430  ;;  %v1499_v55 = vpop.xlane.xlu1 %1498  ;;  %2414 = vadd.xlane.f32.xlu1 %v9215_v22  ;;  %v1969_v23 = vmul.f32 1.442695, %v1947_v48 }
 0x3cf   : > { %11735 = vst [vmem:[#allocation23_spill] sm:$0xff] %v9217_v0  ;;  %2418 = vadd.xlane.f32.xlu0 %v9217_v0  ;;  %v2343_v50 = vpop.xlane.xlu0 %2342  ;;  %v9223_v7 = vpop.eup %7432 }
 0x3d0   : > { %v2368_v17 = vsub.f32 %v8968_v8, %v2343_v50  ;;  %11737 = vst [vmem:[#allocation26_spill] sm:$0xff] %v9223_v7  ;;  %v9225_v34 = vpop.eup %7434 }
 0x3d1   : > { %v9231_v28 = vpop.eup %7436 }
 0x3d2   : > { %v1928_v37 = vpop.xlane.xlu1 %1927  ;;  %1999 = vadd.xlane.f32.xlu1 %v9223_v7  ;;  %v2390_v38 = vmul.f32 1.442695, %v2368_v17  ;;  %11738 = vst [vmem:[#allocation27_spill] sm:$0xff] %v9231_v28  ;;  %v9233_v8 = vpop.eup %7438  ;;  %v11739_v17 = vld [vmem:[#allocation28_spill] sm:$0xff] }
 0x3d3   : > { %v1950_v40 = vsub.f32 %v8979_v54, %v1928_v37  ;;  %1177 = vadd.xlane.f32.xlu0 %v9225_v34  ;;  %v1100_v36 = vpop.xlane.xlu0 %1099  ;;  %v1124_v62 = vsub.f32 %v11739_v17, %v1102_v46  ;;  %v9239_v37 = vpop.eup %7440 }
 0x3d4   : > { %7448 = vpow2.f32 %v2390_v38  ;;  %v9241_v21 = vpop.eup %7442  ;;  %v1123_v38 = vsub.f32 %v8983_v44, %v1100_v36 }
 0x3d5   : > { %v1975_v45 = vmul.f32 1.442695, %v1950_v40  ;;  %7450 = vpow2.f32 %v1540_v47  ;;  %11740 = vst [vmem:[#allocation28_spill] sm:$0xff] %v9241_v21  ;;  %v11741_v47 = vld [vmem:[#allocation29_spill] sm:$0xff]  ;;  %v9247_v46 = vpop.eup %7444 }
 0x3d6   : > { %v2349_v50 = vpop.xlane.xlu1 %2348  ;;  %2420 = vadd.xlane.f32.xlu1 %v9231_v28  ;;  %v1521_v0 = vsub.f32 %v11741_v47, %v1499_v55  ;;  %11742 = vst [vmem:[#allocation29_spill] sm:$0xff] %v9247_v46  ;;  %v9249_v48 = vpop.eup %7446  ;;  %v1147_v28 = vmul.f32 1.442695, %v1123_v38 }
 0x3d7   : > { %v2371_v13 = vsub.f32 %v8989_v18, %v2349_v50  ;;  %1574 = vadd.xlane.f32.xlu0 %v9233_v8  ;;  %v1497_v54 = vpop.xlane.xlu0 %1496  ;;  %7452 = vpow2.f32 %v1975_v45  ;;  %v1149_v50 = vmul.f32 1.442695, %v1124_v62  ;;  %v11743_v45 = vld [vmem:[#allocation30_spill] sm:$0xff] }
 0x3d8   : > { %7454 = vpow2.f32 %v1969_v23  ;;  %v1520_v22 = vsub.f32 %v11743_v45, %v1497_v54  ;;  %v1546_v36 = vmul.f32 1.442695, %v1521_v0 }
 0x3d9   : > { %v2396_v40 = vmul.f32 1.442695, %v2371_v13 }
 0x3da   : > { %v1106_v33 = vpop.xlane.xlu1 %1105  ;;  %1171 = vadd.xlane.f32.xlu1 %v9239_v37  ;;  %v1544_v47 = vmul.f32 1.442695, %v1520_v22 }
 0x3db   : > { %2003 = vadd.xlane.f32.xlu0 %v9241_v21  ;;  %v1926_v18 = vpop.xlane.xlu0 %1925  ;;  %7456 = vpow2.f32 %v2396_v40 }
 0x3dc   : > { %7458 = vpow2.f32 %v1149_v50  ;;  %v1949_v13 = vsub.f32 %v9006_v2, %v1926_v18 }
 0x3dd   : > { %7460 = vpow2.f32 %v1147_v28  ;;  %v11747_v28 = vld [vmem:[#allocation31_spill] sm:$0xff] }
 0x3de   : > { %v1503_v17 = vpop.xlane.xlu1 %1502  ;;  %2424 = vadd.xlane.f32.xlu1 %v9247_v46  ;;  %v9255_v62 = vpop.eup %7448  ;;  %7462 = vpow2.f32 %v1546_v36  ;;  %v1973_v40 = vmul.f32 1.442695, %v1949_v13 }
 0x3df   : > { %1175 = vadd.xlane.f32.xlu0 %v9249_v48  ;;  %v2347_v44 = vpop.xlane.xlu0 %2346  ;;  %11744 = vst [vmem:[#allocation30_spill] sm:$0xff] %v9255_v62  ;;  %v9257_v55 = vpop.eup %7450  ;;  %7464 = vpow2.f32 %v1544_v47 }
 0x3e0   : > { %v2370_v38 = vsub.f32 %v9015_v59, %v2347_v44  ;;  %v1126_v59 = vsub.f32 %v11747_v28, %v1106_v33  ;;  %7466 = vpow2.f32 %v1973_v40 }
 0x3e1   : > { %v9262_v50 = vpop.eup %7452 }
 0x3e2   : > { %v1932_v23 = vpop.xlane.xlu1 %1931  ;;  %2422 = vadd.xlane.f32.xlu1 %v9255_v62  ;;  %11745 = vst [vmem:[#allocation39_spill] sm:$0xff] %v9262_v50  ;;  %v9264_v0 = vpop.eup %7454  ;;  %v2394_v18 = vmul.f32 1.442695, %v2370_v38  ;;  %v1153_v38 = vmul.f32 1.442695, %v1126_v59  ;;  %v11749_v62 = vld [vmem:[#allocation32_spill] sm:$0xff] }
 0x3e3   : > { %1572 = vadd.xlane.f32.xlu0 %v9257_v55  ;;  %v1104_v54 = vpop.xlane.xlu0 %1103  ;;  %11746 = vst [vmem:[#allocation40_spill] sm:$0xff] %v9264_v0 }
 0x3e4   : > { %7468 = vpow2.f32 %v2394_v18 }
 0x3e5   : > { %v9272_v44 = vpop.eup %7456 }
 0x3e6   : > { %v9266_v2 = vpop.xlane.xlu1 %2352  ;;  %2007 = vadd.xlane.f32.xlu1 %v9262_v50  ;;  %11748 = vst [vmem:[#allocation31_spill] sm:$0xff] %v9272_v44  ;;  %v9274_v36 = vpop.eup %7458  ;;  %v1523_v50 = vsub.f32 %v11749_v62, %v1503_v17  ;;  %v11751_v62 = vld [vmem:[#allocation33_spill] sm:$0xff] }
 0x3e7   : > { %2001 = vadd.xlane.f32.xlu0 %v9264_v0  ;;  %v1501_v22 = vpop.xlane.xlu0 %1500  ;;  %v9279_v33 = vpop.eup %7460 }
 0x3e8   : > { %v1522_v45 = vsub.f32 %v9037_v53, %v1501_v22  ;;  %v9281_v40 = vpop.eup %7462  ;;  %v1952_v22 = vsub.f32 %v9024_v9, %v1932_v23  ;;  %v1550_v18 = vmul.f32 1.442695, %v1523_v50 }
 0x3ea   : > { %v1548_v13 = vmul.f32 1.442695, %v1522_v45  ;;  %v1110_v46 = vpop.xlane.xlu1 %1109  ;;  %2428 = vadd.xlane.f32.xlu1 %v9272_v44  ;;  %v9288_v45 = vpop.eup %7464  ;;  %v1979_v17 = vmul.f32 1.442695, %v1952_v22 }
 0x3eb   : > { %1181 = vadd.xlane.f32.xlu0 %v9274_v36  ;;  %v1930_v47 = vpop.xlane.xlu0 %1929  ;;  %v9290_v59 = vpop.eup %7466 }
 0x3ec   : > { %7470 = vpow2.f32 %v1548_v13  ;;  %11750 = vst [vmem:[#allocation32_spill] sm:$0xff] %v9290_v59  ;;  %v1125_v13 = vsub.f32 %v11751_v62, %v1104_v54  ;;  %v1951_v22 = vsub.f32 %v9049_v29, %v1930_v47 }
 0x3ed   : > { %7472 = vpow2.f32 %v1153_v38 }
 0x3ee   : > { %v1507_v53 = vpop.xlane.xlu1 %1506  ;;  %1179 = vadd.xlane.f32.xlu1 %v9279_v33  ;;  %7474 = vpow2.f32 %v1550_v18  ;;  %v9298_v21 = vpop.eup %7468  ;;  %v1151_v0 = vmul.f32 1.442695, %v1125_v13  ;;  %v1128_v13 = vsub.f32 %v9046_v57, %v1110_v46 }
 0x3ef   : > { %1578 = vadd.xlane.f32.xlu0 %v9281_v40  ;;  %v9286_v28 = vpop.xlane.xlu0 %2350  ;;  %11752 = vst [vmem:[#allocation33_spill] sm:$0xff] %v9298_v21  ;;  %7476 = vpow2.f32 %v1979_v17  ;;  %v1525_v29 = vsub.f32 %v9054_v19, %v1507_v53 }
 0x3f2   : > { %1576 = vadd.xlane.f32.xlu1 %v9288_v45  ;;  %v9294_v44 = vpop.xlane.xlu1 %1935 }
 0x3f3   : > { %2005 = vadd.xlane.f32.xlu0 %v9290_v59  ;;  %v1108_v9 = vpop.xlane.xlu0 %1107  ;;  %v1954_v32 = vsub.f32 %v11762_v5, %v9294_v44 }
 0x3f4   : > { %v1127_v23 = vsub.f32 %v9069_v41, %v1108_v9 }
 0x3f6   : > { %v9300_v50 = vpop.eup %7470  ;;  %v1155_v38 = vmul.f32 1.442695, %v1127_v23  ;;  %v9306_v18 = vpop.xlane.xlu1 %2356  ;;  %v1977_v23 = vmul.f32 1.442695, %v1951_v22 }
 0x3f7   : > { %2426 = vadd.xlane.f32.xlu0 %v9298_v21  ;;  %1580 = vadd.xlane.f32.xlu1 %v9300_v50  ;;  %v1505_v54 = vpop.xlane.xlu0 %1504  ;;  %v9308_v41 = vpop.eup %7472 }
 0x3f8   : > { %7478 = vpow2.f32 %v1155_v38  ;;  %v1524_v62 = vsub.f32 %v9078_v4, %v1505_v54  ;;  %v9314_v21 = vpop.eup %7474  ;;  %v1157_v38 = vmul.f32 1.442695, %v1128_v13 }
 0x3f9   : > { %7480 = vpow2.f32 %v1151_v0  ;;  %v9320_v0 = vpop.eup %7476 }
 0x3fa   : > { %v1552_v9 = vmul.f32 1.442695, %v1524_v62  ;;  %v1114_v47 = vpop.xlane.xlu1 %1113  ;;  %11753 = vst [vmem:[#allocation41_spill] sm:$0xff] %v9320_v0  ;;  %v1554_v62 = vmul.f32 1.442695, %v1525_v29 }
 0x3fb   : > { %1185 = vadd.xlane.f32.xlu0 %v9308_v41  ;;  %v9311_v17 = vpop.xlane.xlu0 %1933  ;;  %v1130_v57 = vsub.f32 %v9087_v58, %v1114_v47 }
 0x3fc   : > { %7482 = vpow2.f32 %v1552_v9 }
 0x3fd   : > { %7484 = vpow2.f32 %v1977_v23  ;;  %v2372_v23 = vsub.f32 %v9056_v31, %v9286_v28  ;;  %v1161_v29 = vmul.f32 1.442695, %v1130_v57  ;;  %v11755_v31 = vld [vmem:[#allocation34_spill] sm:$0xff] }
 0x3fe   : > { %7486 = vpow2.f32 %v1157_v38  ;;  %v1511_v22 = vpop.xlane.xlu1 %1510  ;;  %v2373_v28 = vsub.f32 %v11755_v31, %v9266_v2 }
 0x3ff   : > { %1582 = vadd.xlane.f32.xlu0 %v9314_v21  ;;  %v9318_v4 = vpop.xlane.xlu0 %2354  ;;  %7488 = vpow2.f32 %v1554_v62  ;;  %v1527_v47 = vsub.f32 %v9097_v16, %v1511_v22 }
 0x400   : > { %v2400_v16 = vmul.f32 1.442695, %v2373_v28  ;;  %v11761_v28 = vld [vmem:[#allocation8_spill] sm:$0xff] }
 0x401   : > { %v1558_v62 = vmul.f32 1.442695, %v1527_v47 }
 0x402   : > { %v9322_v54 = vpop.eup %7478 }
 0x403   : > { %2011 = vadd.xlane.f32.xlu0 %v9320_v0  ;;  %1187 = vadd.xlane.f32.xlu1 %v9322_v54  ;;  %v1112_v46 = vpop.xlane.xlu0 %1111  ;;  %v9328_v53 = vpop.eup %7480  ;;  %v2398_v0 = vmul.f32 1.442695, %v2372_v23 }
 0x404   : > { %v1129_v19 = vsub.f32 %v9109_v49, %v1112_v46 }
 0x406   : > { %v9330_v9 = vpop.eup %7482  ;;  %v1159_v13 = vmul.f32 1.442695, %v1129_v19 }
 0x407   : > { %1183 = vadd.xlane.f32.xlu0 %v9328_v53  ;;  %1584 = vadd.xlane.f32.xlu1 %v9330_v9  ;;  %v1509_v58 = vpop.xlane.xlu0 %1508  ;;  %v9338_v38 = vpop.eup %7484 }
 0x408   : > { %7490 = vpow2.f32 %v1159_v13  ;;  %v1526_v49 = vsub.f32 %v9116_v10, %v1509_v58  ;;  %11754 = vst [vmem:[#allocation42_spill] sm:$0xff] %v9338_v38  ;;  %v9343_v57 = vpop.eup %7486 }
 0x409   : > { %7492 = vpow2.f32 %v1161_v29  ;;  %v9346_v10 = vpop.eup %7488  ;;  %v1940_v29 = vpop.xlane.xlu1 %1939 }
 0x40a   : > { %v1556_v46 = vmul.f32 1.442695, %v1526_v49  ;;  %v1956_v5 = vsub.f32 %v9107_v15, %v1940_v29 }
 0x40b   : > { %2009 = vadd.xlane.f32.xlu0 %v9338_v38  ;;  %v1938_v49 = vpop.xlane.xlu0 %1937 }
 0x40c   : > { %7494 = vpow2.f32 %v1556_v46  ;;  %v11760_v46 = vld [vmem:[#allocation6_spill] sm:$0xff]  ;;  %v1987_v15 = vmul.f32 1.442695, %v1956_v5 }
 0x40d   : > { %7496 = vpow2.f32 %v2398_v0  ;;  %v9367_v58 = vpop.xlane.xlu1 %2360 }
 0x40e   : > { %7498 = vpow2.f32 %v1558_v62 }
 0x40f   : > { %1189 = vadd.xlane.f32.xlu0 %v9343_v57  ;;  %7500 = vpow2.f32 %v2400_v16  ;;  %v2359_v62 = vpop.xlane.xlu0 %2358 }
 0x412   : > { %v9348_v19 = vpop.eup %7490 }
 0x413   : > { %1586 = vadd.xlane.f32.xlu0 %v9346_v10  ;;  %1191 = vadd.xlane.f32.xlu1 %v9348_v19  ;;  %v9352_v22 = vpop.eup %7492 }
 0x416   : > { %v9354_v2 = vpop.eup %7494 }
 0x417   : > { %11756 = vst [vmem:[#allocation34_spill] sm:$0xff] %v9354_v2  ;;  %1193 = vadd.xlane.f32.xlu0 %v9352_v22  ;;  %1588 = vadd.xlane.f32.xlu1 %v9354_v2  ;;  %v9358_v0 = vpop.eup %7496 }
 0x418   : > { %11757 = vst [vmem:[#allocation43_spill] sm:$0xff] %v9358_v0  ;;  %v9360_v13 = vpop.eup %7498 }
 0x419   : > { %11758 = vst [vmem:[#allocation44_spill] sm:$0xff] %v9360_v13  ;;  %v9364_v23 = vpop.eup %7500 }
 0x41a   : > { %11759 = vst [vmem:[#allocation45_spill] sm:$0xff] %v9364_v23 }
 0x41b   : > { %1590 = vadd.xlane.f32.xlu0 %v9360_v13  ;;  %2430 = vadd.xlane.f32.xlu1 %v9358_v0  ;;  %v1955_v13 = vsub.f32 %v9120_v11, %v1938_v49  ;;  %v2374_v11 = vsub.f32 %v9099_v6, %v9318_v4 }
 0x41d   : > { %v1985_v44 = vmul.f32 1.442695, %v1955_v13 }
 0x41f   : > { %2432 = vadd.xlane.f32.xlu1 %v9364_v23 }
 0x42b   : > { %v1166_v47 = vpop.xlane.xlu1 %1165 }
 0x42c   : > { %7502 = vrcp.f32 %v1166_v47 }
 0x42f   : > { %v1563_v31 = vpop.xlane.xlu1 %1562 }
 0x430   : > { %2492 = vrot.lane.b32.xlu1 %v11760_v46, %s11623_s14 }
 0x431   : > { %2071 = vrot.lane.b32.xlu0 %v11760_v46, %s11625_s26  ;;  %v1953_v46 = vsub.f32 %v9089_v3, %v9311_v17  ;;  %v2375_v3 = vsub.f32 %v9075_v56, %v9306_v18 }
 0x433   : > { %v9379_v0 = vpop.xlane.xlu0 %1991  ;;  %v1981_v47 = vmul.f32 1.442695, %v1953_v46  ;;  %v2404_v56 = vmul.f32 1.442695, %v2375_v3 }
 0x434   : > { %2494 = vrot.lane.b32.xlu1 %v11761_v28, %s11623_s14 }
 0x435   : > { %2073 = vrot.lane.b32.xlu0 %v11761_v28, %s11625_s26 }
 0x436   : > { %v7503_v7 = vpop.eup %7502 }
 0x437   : > { %v9377_v16 = vpop.xlane.xlu1 %2412 }
 0x438   : > { %v9381_v59 = vpop.xlane.xlu0 %2410 }
 0x43b   : > { %v1164_v23 = vpop.xlane.xlu1 %1163 }
 0x43c   : > { %7504 = vrcp.f32 %v1164_v23  ;;  %v1983_v23 = vmul.f32 1.442695, %v1954_v32 }
 0x43d   : > { %7506 = vrcp.f32 %v1563_v31 }
 0x43f   : > { %v1561_v38 = vpop.xlane.xlu1 %1560 }
 0x440   : > { %7508 = vrcp.f32 %v1561_v38  ;;  %v1212_v38 = vmul.f32 %v7503_v7, %v9132_v30  ;;  %v2376_v7 = vsub.f32 %v9123_v14, %v2359_v62 }
 0x441   : > { %7510 = vpow2.f32 %v1981_v47 }
 0x443   : > { %v9387_v28 = vpop.xlane.xlu1 %1989  ;;  %v1565_v43 = vpop.xlane.xlu0 %1564 }
 0x444   : > { %7512 = vrcp.f32 %v1565_v43  ;;  %v2406_v43 = vmul.f32 1.442695, %v2376_v7 }
 0x445   : > { %7514 = vpow2.f32 %v1983_v23 }
 0x446   : > { %v7505_v2 = vpop.eup %7504 }
 0x447   : > { %v1170_v31 = vpop.xlane.xlu1 %1169  ;;  %v1211_v39 = vmul.f32 %v7505_v2, %v9154_v12  ;;  %v7507_v42 = vpop.eup %7506  ;;  %v2402_v2 = vmul.f32 1.442695, %v2374_v11 }
 0x448   : > { %v9394_v17 = vpop.xlane.xlu0 %1993  ;;  %v1609_v32 = vmul.f32 %v7507_v42, %v9136_v27  ;;  %v2377_v27 = vsub.f32 %v9114_v52, %v9367_v58 }
 0x449   : > { %v1227_v46 = vpack.c.bf16 %v1212_v38, %v1211_v39 }
 0x44a   : > { %v7509_v1 = vpop.eup %7508  ;;  %v2408_v29 = vmul.f32 1.442695, %v2377_v27 }
 0x44b   : > { %6541 = vmatprep.mubr.bf16.mxu1 %v1227_v46  ;;  %v1567_v12 = vpop.xlane.xlu1 %1566  ;;  %v1608_v30 = vmul.f32 %v7509_v1, %v9159_v61  ;;  %v9408_v1 = vpop.eup %7510  ;;  %v11763_v46 = vld [vmem:[#allocation12_spill] sm:$0xff] }
 0x44c   : > { %7516 = vrcp.f32 %v1567_v12  ;;  %v9402_v18 = vpop.xlane.xlu0 %1173  ;;  %v11764_v12 = vld [vmem:[#allocation10_spill] sm:$0xff] }
 0x44d   : > { %7518 = vpow2.f32 %v1985_v44  ;;  %v1624_v39 = vpack.c.bf16 %v1609_v32, %v1608_v30 }
 0x44e   : > { %7520 = vpow2.f32 %v2404_v56  ;;  %v7513_v42 = vpop.eup %7512 }
 0x44f   : > { %6573 = vmatprep.mubr.bf16.mxu0 %v1624_v39  ;;  %v9404_v6 = vpop.xlane.xlu1 %1995  ;;  %7522 = vpow2.f32 %v1987_v15  ;;  %v9413_v13 = vpop.eup %7514  ;;  %v1610_v52 = vmul.f32 %v7513_v42, %v9167_v35 }
 0x450   : > { %v1571_v4 = vpop.xlane.xlu0 %1570  ;;  %7524 = vpow2.f32 %v2402_v2 }
 0x451   : > { %7526 = vrcp.f32 %v1571_v4 }
 0x452   : > { %7528 = vpow2.f32 %v2406_v43  ;;  %v11765_v43 = vld [vmem:[#allocation15_spill] sm:$0xff] }
 0x453   : > { %v9410_v14 = vpop.xlane.xlu1 %2416 }
 0x454   : > { %2013 = vadd.xlane.f32.xlu0 %v9408_v1  ;;  %v1569_v61 = vpop.xlane.xlu0 %1568 }
 0x455   : > { %7530 = vrcp.f32 %v1569_v61 }
 0x456   : > { %v7517_v49 = vpop.eup %7516  ;;  %7532 = vrcp.f32 %v1170_v31 }
 0x457   : > { %v9415_v62 = vpop.eup %7518  ;;  %v1611_v58 = vmul.f32 %v7517_v49, %v9181_v26  ;;  %v1168_v47 = vpop.xlane.xlu1 %1167  ;;  %v11766_v49 = vld [vmem:[#allocation13_spill] sm:$0xff] }
 0x458   : > { %7534 = vrcp.f32 %v1168_v47  ;;  %2015 = vadd.xlane.f32.xlu1 %v9413_v13  ;;  %2017 = vadd.xlane.f32.xlu0 %v9415_v62  ;;  %v9421_v23 = vpop.xlane.xlu0 %1997  ;;  %v9423_v3 = vpop.eup %7520  ;;  %v11769_v47 = vld [vmem:[#allocation18_spill] sm:$0xff] }
 0x459   : > { %7536 = vpow2.f32 %v2408_v29  ;;  %v1625_v38 = vpack.c.bf16 %v1611_v58, %v1610_v52  ;;  %v9425_v5 = vpop.eup %7522 }
 0x45a   : > { %v9429_v35 = vpop.eup %7524  ;;  %7538 = vrcp.f32 %v9402_v18  ;;  %v11770_v18 = vld [vmem:[#allocation16_spill] sm:$0xff] }
 0x45b   : > { %v9427_v31 = vpop.xlane.xlu1 %2414  ;;  %6574 = vmatmul.mubr.bf16.vlgmr.msra.gmra.mrb[16].mxu0 %v1625_v38  ;;  %v7527_v44 = vpop.eup %7526 }
 0x45c   : > { %2436 = vadd.xlane.f32.xlu1 %v9423_v3  ;;  %2019 = vadd.xlane.f32.xlu0 %v9425_v5  ;;  %v9433_v26 = vpop.xlane.xlu0 %2418  ;;  %v9436_v11 = vpop.eup %7528  ;;  %v1613_v39 = vmul.f32 %v7527_v44, %v9192_v25 }
 0x45d   : > { %6622 = vmatpush3.bf16.msra.mxu0 %v11763_v46 }
 0x45e   : > { %6623 = vmatprep.subr.bf16.mxu0 %v11764_v12 }
 0x45f   : > { %v7531_v30 = vpop.eup %7530  ;;  %v9439_v32 = vpop.xlane.xlu1 %1999 }
 0x460   : > { %v7533_v56 = vpop.eup %7532  ;;  %2434 = vadd.xlane.f32.xlu0 %v9429_v35  ;;  %2438 = vadd.xlane.f32.xlu1 %v9436_v11  ;;  %v1178_v7 = vpop.xlane.xlu0 %1177  ;;  %v1612_v15 = vmul.f32 %v7531_v30, %v9200_v20 }
 0x461   : > { %6624 = vmatpush3.bf16.msra.mxu0 %v11764_v12  ;;  %v1214_v42 = vmul.f32 %v7533_v56, %v9173_v63  ;;  %v11767_v63 = vld [vmem:[#allocation11_spill] sm:$0xff]  ;;  %v11771_v56 = vld [vmem:[#allocation14_spill] sm:$0xff] }
 0x462   : > { %v7535_v2 = vpop.eup %7534  ;;  %6625 = vmatprep.subr.bf16.mxu0 %v11765_v43  ;;  %v1626_v4 = vpack.c.bf16 %v1613_v39, %v1612_v15 }
 0x463   : > { %v9447_v27 = vpop.eup %7536  ;;  %v1213_v61 = vmul.f32 %v7535_v2, %v9207_v24  ;;  %v9451_v29 = vpop.xlane.xlu1 %2420  ;;  %v11768_v24 = vld [vmem:[#allocation9_spill] sm:$0xff] }
 0x464   : > { %2440 = vadd.xlane.f32.xlu1 %v9447_v27  ;;  %6577 = vmatprep.mubr.bf16.mxu0 %v1626_v4  ;;  %v1575_v20 = vpop.xlane.xlu0 %1574  ;;  %v7539_v12 = vpop.eup %7538 }
 0x465   : > { %6626 = vmatpush3.bf16.msra.mxu0 %v11765_v43  ;;  %v1228_v25 = vpack.c.bf16 %v1214_v42, %v1213_v61  ;;  %v1216_v2 = vmul.f32 %v7539_v12, %v9183_v60  ;;  %v11772_v42 = vld [vmem:[#allocation7_spill] sm:$0xff]  ;;  %v11773_v61 = vld [vmem:[#allocation17_spill] sm:$0xff] }
 0x466   : > { %6627 = vmatprep.subr.bf16.mxu0 %v11766_v49 }
 0x467   : > { %v1172_v52 = vpop.xlane.xlu1 %1171  ;;  %6542 = vmatmul.mubr.bf16.vlgmr.msra.gmra.mrb[32].mxu1 %v1228_v25 }
 0x468   : > { %7540 = vrcp.f32 %v1172_v52  ;;  %v9457_v58 = vpop.xlane.xlu0 %2003  ;;  %6590 = vmatpush3.bf16.msra.mxu1 %v11767_v63 }
 0x469   : > { %6628 = vmatpush3.bf16.msra.mxu0 %v11766_v49  ;;  %6591 = vmatprep.subr.bf16.mxu1 %v11768_v24  ;;  %7542 = vrcp.f32 %v1178_v7 }
 0x46a   : > { %6629 = vmatprep.subr.bf16.mxu0 %v11769_v47 }
 0x46b   : > { %v9463_v38 = vpop.xlane.xlu1 %2424 }
 0x46c   : > { %v1176_v44 = vpop.xlane.xlu0 %1175  ;;  %6592 = vmatpush3.bf16.msra.mxu1 %v11768_v24 }
 0x46d   : > { %6630 = vmatpush3.bf16.msra.mxu0 %v11769_v47  ;;  %7544 = vrcp.f32 %v1176_v44  ;;  %6593 = vmatprep.subr.bf16.mxu1 %v11770_v18 }
 0x46e   : > { %7546 = vrcp.f32 %v1575_v20 }
 0x46f   : > { %v9468_v46 = vpop.xlane.xlu1 %2422 }
 0x470   : > { %v1573_v30 = vpop.xlane.xlu0 %1572  ;;  %6594 = vmatpush3.bf16.msra.mxu1 %v11770_v18 }
 0x471   : > { %7548 = vrcp.f32 %v1573_v30  ;;  %6595 = vmatprep.subr.bf16.mxu1 %v11771_v56 }
 0x472   : > { %v7541_v7 = vpop.eup %7540 }
 0x473   : > { %v9472_v15 = vpop.xlane.xlu1 %2007  ;;  %v1215_v39 = vmul.f32 %v7541_v7, %v9239_v37  ;;  %v7543_v4 = vpop.eup %7542 }
 0x474   : > { %v9476_v43 = vpop.xlane.xlu0 %2001  ;;  %6596 = vmatpush3.bf16.msra.mxu1 %v11771_v56  ;;  %v1218_v52 = vmul.f32 %v7543_v4, %v9225_v34 }
 0x475   : > { %2496 = vrot.lane.b32.xlu1 %v11772_v42, %s11623_s14  ;;  %6597 = vmatprep.subr.bf16.mxu1 %v11773_v61  ;;  %v1229_v20 = vpack.c.bf16 %v1216_v2, %v1215_v39 }
 0x476   : > { %2075 = vrot.lane.b32.xlu0 %v11772_v42, %s11625_s26 }
 0x477   : > { %v7545_v25 = vpop.eup %7544  ;;  %v9484_v49 = vpop.xlane.xlu1 %2428  ;;  %6545 = vmatprep.mubr.bf16.mxu1 %v1229_v20 }
 0x478   : > { %v1182_v37 = vpop.xlane.xlu0 %1181  ;;  %6598 = vmatpush3.bf16.msra.mxu1 %v11773_v61  ;;  %v1217_v60 = vmul.f32 %v7545_v25, %v9249_v48  ;;  %v7547_v63 = vpop.eup %7546 }
 0x479   : > { %7550 = vrcp.f32 %v1182_v37  ;;  %v1615_v30 = vmul.f32 %v7547_v63, %v9233_v8 }
 0x47a   : > { %v1230_v24 = vpack.c.bf16 %v1218_v52, %v1217_v60 }
 0x47b   : > { %v7549_v47 = vpop.eup %7548  ;;  %v1180_v44 = vpop.xlane.xlu1 %1179 }
 0x47c   : > { %7552 = vrcp.f32 %v1180_v44  ;;  %v1579_v18 = vpop.xlane.xlu0 %1578  ;;  %6546 = vmatmul.mubr.bf16.gmra.mrb[36].mxu1 %v1230_v24  ;;  %v1614_v12 = vmul.f32 %v7549_v47, %v9257_v55 }
 0x47d   : > { %7554 = vrcp.f32 %v1579_v18 }
 0x47e   : > { %v1627_v56 = vpack.c.bf16 %v1615_v30, %v1614_v12 }
 0x47f   : > { %v1577_v7 = vpop.xlane.xlu1 %1576 }
 0x480   : > { %7556 = vrcp.f32 %v1577_v7  ;;  %6578 = vmatmul.mubr.bf16.gmra.mrb[20].mxu0 %v1627_v56  ;;  %v9491_v48 = vpop.xlane.xlu0 %2005 }
 0x483   : > { %v7551_v34 = vpop.eup %7550 }
 0x484   : > { %v9493_v39 = vpop.xlane.xlu0 %2426  ;;  %v1220_v42 = vmul.f32 %v7551_v34, %v9274_v36  ;;  %v1581_v20 = vpop.xlane.xlu1 %1580 }
 0x485   : > { %7558 = vrcp.f32 %v1581_v20 }
 0x486   : > { %v7553_v2 = vpop.eup %7552 }
 0x487   : > { %v1219_v4 = vmul.f32 %v7553_v2, %v9279_v33  ;;  %v7555_v61 = vpop.eup %7554 }
 0x488   : > { %v1186_v55 = vpop.xlane.xlu0 %1185  ;;  %v1617_v60 = vmul.f32 %v7555_v61, %v9281_v40 }
 0x489   : > { %v1231_v25 = vpack.c.bf16 %v1220_v42, %v1219_v4 }
 0x48a   : > { %v7557_v8 = vpop.eup %7556 }
 0x48b   : > { %6549 = vmatprep.mubr.bf16.mxu1 %v1231_v25  ;;  %v1616_v37 = vmul.f32 %v7557_v8, %v9288_v45 }
 0x48c   : > { %v1583_v52 = vpop.xlane.xlu0 %1582 }
 0x48d   : > { %7560 = vrcp.f32 %v1583_v52  ;;  %v1628_v63 = vpack.c.bf16 %v1617_v60, %v1616_v37 }
 0x48e   : > { %7562 = vrcp.f32 %v1186_v55 }
 0x48f   : > { %6581 = vmatprep.mubr.bf16.mxu0 %v1628_v63  ;;  %v7559_v36 = vpop.eup %7558 }
 0x490   : > { %v9499_v24 = vpop.xlane.xlu0 %2011  ;;  %v1188_v47 = vpop.xlane.xlu1 %1187  ;;  %v1618_v12 = vmul.f32 %v7559_v36, %v9300_v50 }
 0x494   : > { %v1184_v33 = vpop.xlane.xlu0 %1183  ;;  %v1585_v40 = vpop.xlane.xlu1 %1584 }
 0x495   : > { %7564 = vrcp.f32 %v1184_v33 }
 0x496   : > { %7566 = vrcp.f32 %v1188_v47 }
 0x497   : > { %v7561_v44 = vpop.eup %7560 }
 0x498   : > { %v9501_v18 = vpop.xlane.xlu0 %2009  ;;  %v1619_v45 = vmul.f32 %v7561_v44, %v9314_v21  ;;  %v7563_v7 = vpop.eup %7562 }
 0x499   : > { %v1222_v61 = vmul.f32 %v7563_v7, %v9308_v41 }
 0x49a   : > { %v1629_v30 = vpack.c.bf16 %v1619_v45, %v1618_v12 }
 0x49c   : > { %6582 = vmatmul.mubr.bf16.gmra.mrb[24].mxu0 %v1629_v30  ;;  %v1190_v56 = vpop.xlane.xlu0 %1189 }
 0x49d   : > { %7568 = vrcp.f32 %v1190_v56 }
 0x49e   : > { %7570 = vrcp.f32 %v1585_v40 }
 0x49f   : > { %v7565_v34 = vpop.eup %7564  ;;  %7572 = vrcp.f32 %v9379_v0 }
 0x4a0   : > { %v1192_v2 = vpop.xlane.xlu1 %1191  ;;  %v1587_v4 = vpop.xlane.xlu0 %1586  ;;  %v1221_v42 = vmul.f32 %v7565_v34, %v9328_v53 }
 0x4a1   : > { %7574 = vrcp.f32 %v1587_v4  ;;  %v7567_v55 = vpop.eup %7566 }
 0x4a2   : > { %7576 = vrcp.f32 %v9387_v28  ;;  %v1232_v21 = vpack.c.bf16 %v1222_v61, %v1221_v42  ;;  %v1223_v41 = vmul.f32 %v7567_v55, %v9322_v54  ;;  %v11777_v55 = vld [vmem:[#allocation34_spill] sm:$0xff] }
 0x4a3   : > { %7578 = vrcp.f32 %v1192_v2 }
 0x4a4   : > { %v1589_v50 = vpop.xlane.xlu1 %1588  ;;  %v1194_v20 = vpop.xlane.xlu0 %1193  ;;  %7580 = vrcp.f32 %v9377_v16  ;;  %6550 = vmatmul.mubr.bf16.gmra.mrb[40].mxu1 %v1232_v21  ;;  %v11775_v21 = vld [vmem:[#allocation38_spill] sm:$0xff] }
 0x4a5   : > { %7582 = vrcp.f32 %v1194_v20 }
 0x4a6   : > { %7584 = vrcp.f32 %v9381_v59 }
 0x4a7   : > { %v7569_v25 = vpop.eup %7568  ;;  %7586 = vrcp.f32 %v1589_v50 }
 0x4a8   : > { %v9511_v0 = vpop.xlane.xlu1 %2430  ;;  %v1591_v53 = vpop.xlane.xlu0 %1590  ;;  %v1224_v28 = vmul.f32 %v7569_v25, %v9343_v57  ;;  %v11778_v25 = vld [vmem:[#allocation44_spill] sm:$0xff] }
 0x4a9   : > { %v7571_v8 = vpop.eup %7570  ;;  %7588 = vrcp.f32 %v1591_v53 }
 0x4aa   : > { %v1233_v37 = vpack.c.bf16 %v1224_v28, %v1223_v41  ;;  %v7573_v60 = vpop.eup %7572  ;;  %v1620_v59 = vmul.f32 %v7571_v8, %v9330_v9  ;;  %v11774_v9 = vld [vmem:[#allocation36_spill] sm:$0xff]  ;;  %7590 = vrcp.f32 %v9404_v6 }
 0x4ab   : > { %v7575_v52 = vpop.eup %7574  ;;  %7592 = vrcp.f32 %v9439_v32 }
 0x4ac   : > { %v9515_v63 = vpop.xlane.xlu1 %2432  ;;  %v2072_v16 = vpop.permute.xlu0 %2071  ;;  %6553 = vmatprep.mubr.bf16.mxu1 %v1233_v37  ;;  %v1621_v36 = vmul.f32 %v7575_v52, %v9346_v10  ;;  %v2038_v10 = vmul.f32 %v7573_v60, %v11774_v9  ;;  %7594 = vrcp.f32 %v9394_v17  ;;  %v11786_v9 = vld [vmem:[#allocation23_spill] sm:$0xff] }
 0x4ad   : > { %v7577_v33 = vpop.eup %7576  ;;  %6599 = vmatprep.subr.bf16.mxu1 %v2072_v16  ;;  %7596 = vrcp.f32 %v9421_v23 }
 0x4ae   : > { %v7579_v47 = vpop.eup %7578  ;;  %6600 = vmatpush3.bf16.msra.mxu1 %v2072_v16  ;;  %v1630_v44 = vpack.c.bf16 %v1621_v36, %v1620_v59  ;;  %v2037_v30 = vmul.f32 %v7577_v33, %v9165_v51  ;;  %v11776_v51 = vld [vmem:[#allocation37_spill] sm:$0xff]  ;;  %7598 = vrcp.f32 %v9427_v31  ;;  %v11781_v36 = vld [vmem:[#allocation20_spill] sm:$0xff] }
 0x4af   : > { %v7581_v54 = vpop.eup %7580  ;;  %v1225_v56 = vmul.f32 %v7579_v47, %v9348_v19  ;;  %7600 = vrcp.f32 %v9451_v29  ;;  %v11779_v29 = vld [vmem:[#allocation22_spill] sm:$0xff] }
 0x4b0   : > { %v7583_v57 = vpop.eup %7582  ;;  %v2493_v12 = vpop.permute.xlu1 %2492  ;;  %6585 = vmatprep.mubr.bf16.mxu0 %v1630_v44  ;;  %v2053_v61 = vpack.c.bf16 %v2038_v10, %v2037_v30  ;;  %v2459_v20 = vmul.f32 %v7581_v54, %v11776_v51  ;;  %7602 = vrcp.f32 %v9410_v14  ;;  %v11783_v44 = vld [vmem:[#allocation25_spill] sm:$0xff] }
 0x4b1   : > { %v2074_v45 = vpop.permute.xlu0 %2073  ;;  %v7585_v40 = vpop.eup %7584  ;;  %v1226_v7 = vmul.f32 %v7583_v57, %v9352_v22  ;;  %6631 = vmatprep.subr.bf16.mxu0 %v2493_v12  ;;  %7604 = vrcp.f32 %v9433_v26 }
 0x4b2   : > { %6601 = vmatprep.subr.bf16.mxu1 %v2074_v45  ;;  %v7587_v34 = vpop.eup %7586  ;;  %6632 = vmatpush3.bf16.msra.mxu0 %v2493_v12  ;;  %v2458_v50 = vmul.f32 %v7585_v40, %v11775_v21  ;;  %7606 = vrcp.f32 %v9476_v43  ;;  %v11784_v40 = vld [vmem:[#allocation27_spill] sm:$0xff] }
 0x4b3   : > { %6602 = vmatpush3.bf16.msra.mxu1 %v2074_v45  ;;  %v1234_v2 = vpack.c.bf16 %v1226_v7, %v1225_v56  ;;  %v7589_v4 = vpop.eup %7588  ;;  %v1622_v19 = vmul.f32 %v7587_v34, %v11777_v55  ;;  %7608 = vrcp.f32 %v9491_v48  ;;  %v11785_v7 = vld [vmem:[#allocation21_spill] sm:$0xff]  ;;  %v11789_v55 = vld [vmem:[#allocation28_spill] sm:$0xff] }
 0x4b4   : > { %v2495_v42 = vpop.permute.xlu1 %2494  ;;  %v1623_v22 = vmul.f32 %v7589_v4, %v11778_v25  ;;  %v2474_v41 = vpack.c.bf16 %v2459_v20, %v2458_v50  ;;  %v7591_v17 = vpop.eup %7590  ;;  %7610 = vrcp.f32 %v9457_v58  ;;  %v11780_v58 = vld [vmem:[#allocation26_spill] sm:$0xff]  ;;  %v11787_v4 = vld [vmem:[#allocation40_spill] sm:$0xff]  ;;  %v11790_v25 = vld [vmem:[#allocation39_spill] sm:$0xff] }
 0x4b5   : > { %6554 = vmatmul.mubr.bf16.gmra.mrb[44].mxu1 %v1234_v2  ;;  %6633 = vmatprep.subr.bf16.mxu0 %v2495_v42  ;;  %v7593_v32 = vpop.eup %7592  ;;  %7612 = vrcp.f32 %v9472_v15  ;;  %v2040_v16 = vmul.f32 %v7591_v17, %v11779_v29  ;;  %v11788_v50 = vld [vmem:[#allocation32_spill] sm:$0xff] }
 0x4b6   : > { %6605 = vmatprep.mubr.bf16.mxu1 %v2053_v61  ;;  %6634 = vmatpush3.bf16.msra.mxu0 %v2495_v42  ;;  %v1631_v53 = vpack.c.bf16 %v1623_v22, %v1622_v19  ;;  %v7595_v31 = vpop.eup %7594  ;;  %7614 = vrcp.f32 %v9468_v46  ;;  %v2042_v33 = vmul.f32 %v7593_v32, %v11780_v58  ;;  %v11782_v46 = vld [vmem:[#allocation24_spill] sm:$0xff]  ;;  %v11795_v58 = vld [vmem:[#allocation42_spill] sm:$0xff] }
 0x4b7   : > { %v7597_v14 = vpop.eup %7596  ;;  %7616 = vrcp.f32 %v9493_v39  ;;  %v2039_v47 = vmul.f32 %v7595_v31, %v11781_v36 }
 0x4b8   : > { %6586 = vmatmul.mubr.bf16.gmra.mrb[28].mxu0 %v1631_v53  ;;  %v7599_v26 = vpop.eup %7598  ;;  %7618 = vrcp.f32 %v9463_v38  ;;  %v2041_v54 = vmul.f32 %v7597_v14, %v11782_v46 }
 0x4b9   : > { %6637 = vmatprep.mubr.bf16.mxu0 %v2474_v41  ;;  %v7601_v59 = vpop.eup %7600  ;;  %7620 = vrcp.f32 %v9484_v49  ;;  %v2460_v57 = vmul.f32 %v7599_v26, %v11783_v44  ;;  %v2054_v38 = vpack.c.bf16 %v2040_v16, %v2039_v47 }
 0x4ba   : > { %v7603_v15 = vpop.eup %7602  ;;  %7622 = vrcp.f32 %v9501_v18  ;;  %v2055_v30 = vpack.c.bf16 %v2042_v33, %v2041_v54  ;;  %v2463_v56 = vmul.f32 %v7601_v59, %v11784_v40 }
 0x4bb   : > { %v7605_v39 = vpop.eup %7604  ;;  %v2461_v34 = vmul.f32 %v7603_v15, %v11785_v7  ;;  %v11796_v15 = vld [vmem:[#allocation41_spill] sm:$0xff] }
 0x4bc   : > { %v7607_v12 = vpop.eup %7606  ;;  %v2462_v10 = vmul.f32 %v7605_v39, %v11786_v9 }
 0x4bd   : > { %v7609_v49 = vpop.eup %7608  ;;  %v2043_v42 = vmul.f32 %v7607_v12, %v11787_v4 }
 0x4be   : > { %v7611_v18 = vpop.eup %7610  ;;  %v2476_v21 = vpack.c.bf16 %v2463_v56, %v2462_v10  ;;  %v2045_v51 = vmul.f32 %v7609_v49, %v11788_v50 }
 0x4bf   : > { %v7613_v2 = vpop.eup %7612 }
 0x4c0   : > { %v7615_v61 = vpop.eup %7614  ;;  %v2046_v22 = vmul.f32 %v7613_v2, %v11790_v25 }
 0x4c1   : > { %v7617_v20 = vpop.eup %7616 }
 0x4c2   : > { %v7619_v19 = vpop.eup %7618 }
 0x4c3   : > { %v7621_v53 = vpop.eup %7620 }
 0x4c4   : > { %v7623_v17 = vpop.eup %7622 }
 0x4c5   : > { %v2047_v33 = vmul.f32 %v7623_v17, %v11795_v58 }
 0x4e1   : > { %v2014_v28 = vpop.xlane.xlu0 %2013 }
 0x4e5   : > { %v2016_v8 = vpop.xlane.xlu1 %2015  ;;  %v9530_v37 = vpop.xlane.xlu0 %2017 }
 0x4e6   : > { %7624 = vrcp.f32 %v2016_v8 }
 0x4e7   : > { %7626 = vrcp.f32 %v9499_v24  ;;  %v2475_v24 = vpack.c.bf16 %v2461_v34, %v2460_v57  ;;  %v11797_v57 = vld [vmem:[#allocation45_spill] sm:$0xff] }
 0x4e8   : > { %7628 = vrcp.f32 %v2014_v28  ;;  %v11791_v28 = vld [vmem:[#allocation30_spill] sm:$0xff] }
 0x4e9   : > { %v2437_v60 = vpop.xlane.xlu1 %2436  ;;  %v2020_v52 = vpop.xlane.xlu0 %2019  ;;  %7630 = vrcp.f32 %v9515_v63  ;;  %v2044_v63 = vmul.f32 %v7611_v18, %v11789_v55  ;;  %v2464_v8 = vmul.f32 %v7615_v61, %v11791_v28 }
 0x4eb   : > { %v2056_v41 = vpack.c.bf16 %v2044_v63, %v2043_v42 }
 0x4ed   : > { %v9540_v6 = vpop.xlane.xlu1 %2438  ;;  %v2435_v23 = vpop.xlane.xlu0 %2434 }
 0x4ee   : > { %7632 = vrcp.f32 %v2435_v23  ;;  %v11792_v23 = vld [vmem:[#allocation33_spill] sm:$0xff] }
 0x4ef   : > { %7634 = vrcp.f32 %v9511_v0  ;;  %v2057_v0 = vpack.c.bf16 %v2046_v22, %v2045_v51  ;;  %v2466_v32 = vmul.f32 %v7617_v20, %v11792_v23 }
 0x4f0   : > { %7636 = vrcp.f32 %v2437_v60  ;;  %v7625_v31 = vpop.eup %7624  ;;  %v11793_v60 = vld [vmem:[#allocation29_spill] sm:$0xff] }
 0x4f1   : > { %v2441_v43 = vpop.xlane.xlu1 %2440  ;;  %v2076_v48 = vpop.permute.xlu0 %2075  ;;  %7638 = vrcp.f32 %v2020_v52  ;;  %v2465_v14 = vmul.f32 %v7619_v19, %v11793_v60  ;;  %v11794_v52 = vld [vmem:[#allocation31_spill] sm:$0xff]  ;;  %v2050_v36 = vmul.f32 %v7625_v31, %v9413_v13 }
 0x4f2   : > { %6603 = vmatprep.subr.bf16.mxu1 %v2076_v48  ;;  %7640 = vrcp.f32 %v9530_v37  ;;  %v7627_v29 = vpop.eup %7626  ;;  %v2467_v16 = vmul.f32 %v7621_v53, %v11794_v52 }
 0x4f3   : > { %6604 = vmatpush3.bf16.msra.mxu1 %v2076_v48  ;;  %7642 = vrcp.f32 %v2441_v43  ;;  %v7629_v26 = vpop.eup %7628  ;;  %v2477_v48 = vpack.c.bf16 %v2465_v14, %v2464_v8  ;;  %v2048_v46 = vmul.f32 %v7627_v29, %v11796_v15 }
 0x4f4   : > { %v7631_v59 = vpop.eup %7630  ;;  %7644 = vrcp.f32 %v9540_v6  ;;  %v2478_v37 = vpack.c.bf16 %v2467_v16, %v2466_v32  ;;  %v2049_v43 = vmul.f32 %v7629_v26, %v9408_v1  ;;  %v11798_v6 = vld [vmem:[#allocation43_spill] sm:$0xff] }
 0x4f5   : > { %v2497_v45 = vpop.permute.xlu1 %2496  ;;  %v2058_v44 = vpack.c.bf16 %v2048_v46, %v2047_v33 }
 0x4f6   : > { %6606 = vmatmul.mubr.bf16.vlgmr.msra.gmra.mrb[48].mxu1 %v2054_v38  ;;  %6635 = vmatprep.subr.bf16.mxu0 %v2497_v45  ;;  %v2469_v38 = vmul.f32 %v7631_v59, %v11797_v57 }
 0x4f7   : > { %6609 = vmatprep.mubr.bf16.mxu1 %v2055_v30  ;;  %6636 = vmatpush3.bf16.msra.mxu0 %v2497_v45  ;;  %v2059_v45 = vpack.c.bf16 %v2050_v36, %v2049_v43 }
 0x4f8   : > { %v7633_v47 = vpop.eup %7632 }
 0x4f9   : > { %v7635_v54 = vpop.eup %7634  ;;  %v2470_v30 = vmul.f32 %v7633_v47, %v9429_v35 }
 0x4fa   : > { %6638 = vmatmul.mubr.bf16.vlgmr.msra.gmra.mrb[32].mxu0 %v2475_v24  ;;  %v7637_v39 = vpop.eup %7636  ;;  %v2468_v40 = vmul.f32 %v7635_v54, %v11798_v6 }
 0x4fb   : > { %6641 = vmatprep.mubr.bf16.mxu0 %v2476_v21  ;;  %v7639_v12 = vpop.eup %7638  ;;  %v2471_v56 = vmul.f32 %v7637_v39, %v9423_v3  ;;  %v7382_v39 = vld [vmem:[%s11546_s5] sm:$0xff]  }
 0x4fc   : > { %v7641_v13 = vpop.eup %7640  ;;  %v2479_v49 = vpack.c.bf16 %v2469_v38, %v2468_v40  ;;  %v2052_v7 = vmul.f32 %v7639_v12, %v9425_v5  ;;  %6653 = vmatprep.subr.bf16.mxu1 %v7382_v39  ;;  %v7383_v12 = vld [vmem:[%s11546_s5 + $0x8] sm:$0xff]  }
 0x4fd   : > { %v7643_v34 = vpop.eup %7642  ;;  %v2480_v1 = vpack.c.bf16 %v2471_v56, %v2470_v30  ;;  %v2051_v18 = vmul.f32 %v7641_v13, %v9415_v62  ;;  %6654 = vmatpush3.bf16.msra.mxu1 %v7382_v39  ;;  %v7384_v56 = vld [vmem:[%s11546_s5 + $0x10] sm:$0xff]   ;;  %v2967_v39 = vld [vmem:[%s11547_s6 + $0x48] sm:$0xff] }
 0x4fe   : > { %6610 = vmatmul.mubr.bf16.gmra.mrb[52].mxu1 %v2056_v41  ;;  %v7645_v9 = vpop.eup %7644  ;;  %v2473_v35 = vmul.f32 %v7643_v34, %v9447_v27  ;;  %6655 = vmatprep.subr.bf16.mxu1 %v7383_v12  ;;  %v7385_v34 = vld [vmem:[%s11546_s5 + $0x18] sm:$0xff]  }
 0x4ff   : > { %6613 = vmatprep.mubr.bf16.mxu1 %v2057_v0  ;;  %v2060_v10 = vpack.c.bf16 %v2052_v7, %v2051_v18  ;;  %v2472_v2 = vmul.f32 %v7645_v9, %v9436_v11 }
 0x501   : > { %v2481_v24 = vpack.c.bf16 %v2473_v35, %v2472_v2  ;;  %6656 = vmatpush3.bf16.msra.mxu1 %v7383_v12  ;;  %v2968_v12 = vld [vmem:[%s11547_s6 + $0x50] sm:$0xff] }
 0x502   : > { %6642 = vmatmul.mubr.bf16.gmra.mrb[36].mxu0 %v2477_v48  ;;  %6657 = vmatprep.subr.bf16.mxu1 %v7384_v56 }
 0x503   : > { %6645 = vmatprep.mubr.bf16.mxu0 %v2478_v37 }
 0x505   : > { %6658 = vmatpush3.bf16.msra.mxu1 %v7384_v56 }
 0x506   : > { %6614 = vmatmul.mubr.bf16.gmra.mrb[56].mxu1 %v2058_v44  ;;  %6659 = vmatprep.subr.bf16.mxu1 %v7385_v34 }
 0x507   : > { %6617 = vmatprep.mubr.bf16.mxu1 %v2059_v45 }
 0x509   : > { %6660 = vmatpush3.bf16.msra.mxu1 %v7385_v34 }
 0x50a   : > { %6646 = vmatmul.mubr.bf16.gmra.mrb[40].mxu0 %v2479_v49 }
 0x50b   : > { %6649 = vmatprep.mubr.bf16.mxu0 %v2480_v1 }
 0x50e   : > { %6618 = vmatmul.mubr.bf16.gmra.mrb[60].mxu1 %v2060_v10 }
 0x512   : > { %6650 = vmatmul.mubr.bf16.gmra.mrb[44].mxu0 %v2481_v24  ;;  %v7386_v24 = vld [vmem:[%s11546_s5 + $0x20] sm:$0xff]  }
 0x513   : > { %6661 = vmatprep.subr.bf16.mxu1 %v7386_v24 }
 0x514   : > { %6662 = vmatpush3.bf16.msra.mxu1 %v7386_v24 }
 0x52e   : > { %v6575_v4 = vpop.f32.mrb[16].mxu0 }
 0x52f   : > { %2623 = vrot.lane.b32.xlu0 %v6575_v4, %s11623_s14  ;;  %v1698_v3 = vpop.f32.mrb[17].mxu0 }
 0x530   : > { %v6576_v5 = vpop.f32.mrb[18].mxu0 }
 0x531   : > { %2625 = vrot.lane.b32.xlu1 %v6576_v5, %s11623_s14  ;;  %v1701_v42 = vpop.f32.mrb[19].mxu0  ;;  %v7387_v5 = vld [vmem:[%s11546_s5 + $0x28] sm:$0xff]  }
 0x532   : > { %6663 = vmatprep.subr.bf16.mxu1 %v7387_v5 }
 0x533   : > { %2619 = vrot.lane.b32.xlu0 %v1698_v3, %s11623_s14  ;;  %6664 = vmatpush3.bf16.msra.mxu1 %v7387_v5 }
 0x535   : > { %2621 = vrot.lane.b32.xlu1 %v1701_v42, %s11623_s14 }
 0x53a   : > { %v9585_v62 = vpop.f32.mrb[32].mxu1 }
 0x53b   : > { %v9587_v27 = vpop.f32.mrb[33].mxu1 }
 0x53c   : > { %v9589_v61 = vpop.f32.mrb[34].mxu1 }
 0x53d   : > { %v9591_v11 = vpop.f32.mrb[35].mxu1 }
 0x54f   : > { %v9593_v21 = vpop.f32.mrb[36].mxu1 }
 0x550   : > { %v9595_v50 = vpop.f32.mrb[37].mxu1 }
 0x551   : > { %v9597_v51 = vpop.f32.mrb[38].mxu1 }
 0x552   : > { %v9599_v20 = vpop.f32.mrb[39].mxu1 }
 0x553   : > { %v6579_v55 = vpop.f32.mrb[20].mxu0 }
 0x554   : > { %2631 = vrot.lane.b32.xlu0 %v6579_v55, %s11623_s14  ;;  %v1714_v63 = vpop.f32.mrb[21].mxu0 }
 0x555   : > { %v6580_v19 = vpop.f32.mrb[22].mxu0 }
 0x556   : > { %2633 = vrot.lane.b32.xlu1 %v6580_v19, %s11623_s14  ;;  %v1717_v25 = vpop.f32.mrb[23].mxu0  ;;  %v7388_v19 = vld [vmem:[%s11546_s5 + $0x30] sm:$0xff]  }
 0x557   : > { %6665 = vmatprep.subr.bf16.mxu1 %v7388_v19 }
 0x558   : > { %2627 = vrot.lane.b32.xlu0 %v1714_v63, %s11623_s14  ;;  %6666 = vmatpush3.bf16.msra.mxu1 %v7388_v19 }
 0x55a   : > { %2629 = vrot.lane.b32.xlu1 %v1717_v25, %s11623_s14  ;;  %v7389_v25 = vld [vmem:[%s11546_s5 + $0x38] sm:$0xff]  }
 0x55b   : > { %6667 = vmatprep.subr.bf16.mxu1 %v7389_v25 }
 0x55c   : > { %6668 = vmatpush3.bf16.msra.mxu1 %v7389_v25 }
 0x56f   : > { %v6583_v22 = vpop.f32.mrb[24].mxu0 }
 0x570   : > { %2639 = vrot.lane.b32.xlu0 %v6583_v22, %s11623_s14  ;;  %v1730_v53 = vpop.f32.mrb[25].mxu0  ;;  %v2958_v22 = vld [vmem:[%s11547_s6] sm:$0xff] }
 0x571   : > { %v6584_v41 = vpop.f32.mrb[26].mxu0 }
 0x572   : > { %2641 = vrot.lane.b32.xlu1 %v6584_v41, %s11623_s14  ;;  %v1733_v28 = vpop.f32.mrb[27].mxu0  ;;  %v2974_v41 = vld [vmem:[%s11548_s7] sm:$0xff] }
 0x574   : > { %2635 = vrot.lane.b32.xlu0 %v1730_v53, %s11623_s14  ;;  %v2959_v53 = vld [vmem:[%s11547_s6 + $0x8] sm:$0xff] }
 0x576   : > { %2637 = vrot.lane.b32.xlu1 %v1733_v28, %s11623_s14  ;;  %v7062_v28 = vpack.c.bf16 %v2959_v53, %v2958_v22 }
 0x577   : > { %v9609_v8 = vpop.f32.mrb[40].mxu1 }
 0x578   : > { %v9611_v17 = vpop.f32.mrb[41].mxu1  ;;  %7063 = vmatprep.subr.bf16.mxu0 %v7062_v28 }
 0x579   : > { %v9613_v0 = vpop.f32.mrb[42].mxu1  ;;  %7065 = vmatpush3.bf16.msra.mxu0 %v7062_v28 }
 0x57a   : > { %v9615_v23 = vpop.f32.mrb[43].mxu1 }
 0x588   : > { %v9617_v32 = vpop.f32.mrb[44].mxu1 }
 0x589   : > { %v9619_v31 = vpop.f32.mrb[45].mxu1 }
 0x58a   : > { %v9621_v60 = vpop.f32.mrb[46].mxu1 }
 0x58b   : > { %v9623_v14 = vpop.f32.mrb[47].mxu1  ;;  %v6587_v29 = vpop.f32.mrb[28].mxu0 }
 0x58c   : > { %2647 = vrot.lane.b32.xlu0 %v6587_v29, %s11623_s14  ;;  %v1746_v52 = vpop.f32.mrb[29].mxu0  ;;  %v2975_v29 = vld [vmem:[%s11548_s7 + $0x8] sm:$0xff] }
 0x58d   : > { %v6588_v16 = vpop.f32.mrb[30].mxu0 }
 0x58e   : > { %2649 = vrot.lane.b32.xlu1 %v6588_v16, %s11623_s14  ;;  %v1749_v26 = vpop.f32.mrb[31].mxu0  ;;  %v2961_v16 = vld [vmem:[%s11547_s6 + $0x18] sm:$0xff] }
 0x590   : > { %2643 = vrot.lane.b32.xlu0 %v1746_v52, %s11623_s14  ;;  %v2960_v52 = vld [vmem:[%s11547_s6 + $0x10] sm:$0xff] }
 0x592   : > { %2645 = vrot.lane.b32.xlu1 %v1749_v26, %s11623_s14  ;;  %v9703_v26 = vpack.c.bf16 %v2975_v29, %v2974_v41  ;;  %s8088_s14 = smov [#allocation3]  }
 0x593   : > { %s8018_s23 = sshll.u32 %s8088_s14, 4  ;;  %s8019_s23 = int_to_ptr.vmem [resolvable:$false] %s8018_s23 }
 0x594   : > { %7095 = vmatprep.subr.bf16.mxu1 %v9703_v26 }
 0x5c9   : > { %v6607_v48 = vpop.f32.mrb[48].mxu1 }
 0x5ca   : > { %2687 = vrot.lane.b32.xlu0 %v6607_v48, %s11625_s26  ;;  %v2119_v58 = vpop.f32.mrb[49].mxu1  ;;  %v7066_v48 = vpack.c.bf16 %v2961_v16, %v2960_v52 }
 0x5cb   : > { %v6608_v33 = vpop.f32.mrb[50].mxu1 }
 0x5cc   : > { %2689 = vrot.lane.b32.xlu1 %v6608_v33, %s11625_s26  ;;  %v2122_v59 = vpop.f32.mrb[51].mxu1  ;;  %v2624_v33 = vpop.permute.xlu0 %2623  ;;  %7067 = vmatprep.subr.bf16.mxu0 %v7066_v48 }
 0x5cd   : > { %v6639_v37 = vpop.f32.mrb[32].mxu0  ;;  %7069 = vmatpush3.bf16.msra.mxu0 %v7066_v48  ;;  %v2798_v5 = vsel %vm11686_vm1, %v9585_v62, %v2624_v33 }
 0x5ce   : > { %v2540_v36 = vpop.f32.mrb[33].mxu0  ;;  %2751 = vrot.lane.b32.xlu0 %v6639_v37, %s11627_s30  ;;  %v2626_v37 = vpop.permute.xlu1 %2625 }
 0x5cf   : > { %v6640_v47 = vpop.f32.mrb[34].mxu0 }
 0x5d0   : > { %v2543_v15 = vpop.f32.mrb[35].mxu0  ;;  %2753 = vrot.lane.b32.xlu1 %v6640_v47, %s11627_s30  ;;  %v2964_v47 = vld [vmem:[%s11547_s6 + $0x30] sm:$0xff] }
 0x5d1   : > { %v6611_v46 = vpop.f32.mrb[52].mxu1 }
 0x5d2   : > { %2683 = vrot.lane.b32.xlu0 %v2119_v58, %s11625_s26  ;;  %v2135_v54 = vpop.f32.mrb[53].mxu1  ;;  %v2962_v58 = vld [vmem:[%s11547_s6 + $0x20] sm:$0xff] }
 0x5d3   : > { %v6612_v43 = vpop.f32.mrb[54].mxu1 }
 0x5d4   : > { %2685 = vrot.lane.b32.xlu1 %v2122_v59, %s11625_s26  ;;  %v2138_v44 = vpop.f32.mrb[55].mxu1  ;;  %v2963_v59 = vld [vmem:[%s11547_s6 + $0x28] sm:$0xff] }
 0x5d5   : > { %v6643_v57 = vpop.f32.mrb[36].mxu0 }
 0x5d6   : > { %v2556_v38 = vpop.f32.mrb[37].mxu0  ;;  %2747 = vrot.lane.b32.xlu0 %v2540_v36, %s11627_s30  ;;  %v7070_v36 = vpack.c.bf16 %v2963_v59, %v2962_v58 }
 0x5d7   : > { %v6644_v45 = vpop.f32.mrb[38].mxu0 }
 0x5d8   : > { %v2559_v30 = vpop.f32.mrb[39].mxu0  ;;  %2749 = vrot.lane.b32.xlu1 %v2543_v15, %s11627_s30  ;;  %v2965_v15 = vld [vmem:[%s11547_s6 + $0x38] sm:$0xff]  ;;  %7071 = vmatprep.subr.bf16.mxu0 %v7070_v36 }
 0x5d9   : > { %v6615_v6 = vpop.f32.mrb[56].mxu1  ;;  %7073 = vmatpush3.bf16.msra.mxu0 %v7070_v36 }
 0x5da   : > { %2695 = vrot.lane.b32.xlu0 %v6611_v46, %s11625_s26  ;;  %v2151_v40 = vpop.f32.mrb[57].mxu1  ;;  %v2620_v46 = vpop.permute.xlu0 %2619 }
 0x5db   : > { %v6616_v13 = vpop.f32.mrb[58].mxu1  ;;  %v2796_v48 = vsel %vm11686_vm1, %v9587_v27, %v2620_v46 }
 0x5dc   : > { %2697 = vrot.lane.b32.xlu1 %v6612_v43, %s11625_s26  ;;  %v2154_v49 = vpop.f32.mrb[59].mxu1  ;;  %v2966_v43 = vld [vmem:[%s11547_s6 + $0x40] sm:$0xff] }
 0x5dd   : > { %v6647_v7 = vpop.f32.mrb[40].mxu0 }
 0x5de   : > { %v2572_v1 = vpop.f32.mrb[41].mxu0  ;;  %2759 = vrot.lane.b32.xlu0 %v6643_v57, %s11627_s30  ;;  %v9724_v57 = vpop.permute.xlu0 %2631 }
 0x5df   : > { %v6648_v18 = vpop.f32.mrb[42].mxu0 }
 0x5e0   : > { %v2575_v9 = vpop.f32.mrb[43].mxu0  ;;  %2761 = vrot.lane.b32.xlu1 %v6644_v45, %s11627_s30  ;;  %v2969_v45 = vld [vmem:[%s11547_s6 + $0x58] sm:$0xff] }
 0x5e1   : > { %v6619_v10 = vpop.f32.mrb[60].mxu1 }
 0x5e2   : > { %2691 = vrot.lane.b32.xlu0 %v2135_v54, %s11625_s26  ;;  %v2167_v35 = vpop.f32.mrb[61].mxu1  ;;  %v7074_v54 = vpack.c.bf16 %v2965_v15, %v2964_v47  ;;  %v9740_v56 = vpop.permute.xlu0 %2627 }
 0x5e3   : > { %v6620_v2 = vpop.f32.mrb[62].mxu1 }
 0x5e4   : > { %2693 = vrot.lane.b32.xlu1 %v2138_v44, %s11625_s26  ;;  %v2170_v4 = vpop.f32.mrb[63].mxu1  ;;  %v2622_v44 = vpop.permute.xlu1 %2621  ;;  %7075 = vmatprep.subr.bf16.mxu0 %v7074_v54 }
 0x5e5   : > { %v6651_v3 = vpop.f32.mrb[44].mxu0  ;;  %7077 = vmatpush3.bf16.msra.mxu0 %v7074_v54  ;;  %v2797_v33 = vsel %vm11686_vm1, %v9591_v11, %v2622_v44 }
 0x5e6   : > { %v2588_v42 = vpop.f32.mrb[45].mxu0  ;;  %2755 = vrot.lane.b32.xlu0 %v2556_v38, %s11627_s30  ;;  %v7078_v38 = vpack.c.bf16 %v2967_v39, %v2966_v43  ;;  %v9744_v34 = vpop.permute.xlu0 %2639 }
 0x5e7   : > { %v6652_v55 = vpop.f32.mrb[46].mxu0 }
 0x5e8   : > { %v2591_v63 = vpop.f32.mrb[47].mxu0  ;;  %2757 = vrot.lane.b32.xlu1 %v2559_v30, %s11627_s30  ;;  %v9732_v30 = vpop.permute.xlu1 %2633  ;;  %7079 = vmatprep.subr.bf16.mxu0 %v7078_v38 }
 0x5e9   : > { %7081 = vmatpush3.bf16.msra.mxu0 %v7078_v38  ;;  %v2802_v38 = vsel %vm11686_vm1, %v9593_v21, %v9724_v57 }
 0x5ea   : > { %2703 = vrot.lane.b32.xlu0 %v6615_v6, %s11625_s26  ;;  %v7082_v6 = vpack.c.bf16 %v2969_v45, %v2968_v12  ;;  %v2803_v45 = vsel %vm11686_vm1, %v9597_v51, %v9732_v30 }
 0x5ec   : > { %2705 = vrot.lane.b32.xlu1 %v6616_v13, %s11625_s26  ;;  %v2971_v13 = vld [vmem:[%s11547_s6 + $0x68] sm:$0xff]  ;;  %7083 = vmatprep.subr.bf16.mxu0 %v7082_v6 }
 0x5ed   : > { %7085 = vmatpush3.bf16.msra.mxu0 %v7082_v6 }
 0x5ee   : > { %2767 = vrot.lane.b32.xlu0 %v6647_v7, %s11627_s30 }
 0x5f0   : > { %2769 = vrot.lane.b32.xlu1 %v6648_v18, %s11627_s30  ;;  %v9748_v18 = vpop.permute.xlu0 %2635 }
 0x5f2   : > { %2699 = vrot.lane.b32.xlu0 %v2151_v40, %s11625_s26  ;;  %v2970_v40 = vld [vmem:[%s11547_s6 + $0x60] sm:$0xff] }
 0x5f3   : > { %v7086_v7 = vpack.c.bf16 %v2971_v13, %v2970_v40 }
 0x5f4   : > { %2701 = vrot.lane.b32.xlu1 %v2154_v49, %s11625_s26  ;;  %v9742_v49 = vpop.permute.xlu1 %2629 }
 0x5f5   : > { %7087 = vmatprep.subr.bf16.mxu0 %v7086_v7 }
 0x5f6   : > { %2763 = vrot.lane.b32.xlu0 %v2572_v1, %s11627_s30  ;;  %7089 = vmatpush3.bf16.msra.mxu0 %v7086_v7 }
 0x5f8   : > { %2765 = vrot.lane.b32.xlu1 %v2575_v9, %s11627_s30  ;;  %v9746_v1 = vpop.permute.xlu1 %2641 }
 0x5fa   : > { %2711 = vrot.lane.b32.xlu0 %v6619_v10, %s11625_s26 }
 0x5fc   : > { %2713 = vrot.lane.b32.xlu1 %v6620_v2, %s11625_s26  ;;  %v9750_v9 = vpop.permute.xlu1 %2637 }
 0x5fe   : > { %2775 = vrot.lane.b32.xlu0 %v6651_v3, %s11627_s30  ;;  %v9752_v10 = vpop.permute.xlu0 %2647 }
 0x600   : > { %2777 = vrot.lane.b32.xlu1 %v6652_v55, %s11627_s30 }
 0x602   : > { %2707 = vrot.lane.b32.xlu0 %v2167_v35, %s11625_s26  ;;  %v9754_v35 = vpop.permute.xlu1 %2649  ;;  %v9756_v2 = vpop.permute.xlu0 %2643 }
 0x604   : > { %2709 = vrot.lane.b32.xlu1 %v2170_v4, %s11625_s26 }
 0x606   : > { %2771 = vrot.lane.b32.xlu0 %v2588_v42, %s11627_s30  ;;  %v9758_v24 = vpop.permute.xlu1 %2645 }
 0x608   : > { %2773 = vrot.lane.b32.xlu1 %v2591_v63, %s11627_s30  ;;  %v2799_v63 = vsel %vm11686_vm1, %v9589_v61, %v2626_v37 }
 0x63c   : > { %v2688_v4 = vpop.permute.xlu0 %2687 }
 0x63d   : > { %v2815_v42 = vsel %vm11685_vm2, %v2798_v5, %v2688_v4 }
 0x63e   : > { %v2690_v3 = vpop.permute.xlu1 %2689 }
 0x63f   : > { %v2816_v25 = vsel %vm11685_vm2, %v2799_v63, %v2690_v3 }
 0x640   : > { %v2752_v55 = vpop.permute.xlu0 %2751 }
 0x641   : > { %v2832_v19 = vsel %vm11684_vm3, %v2815_v42, %v2752_v55 }
 0x642   : > { %v2864_v22 = vmin.f32 %v2832_v19, 0.0  ;;  %v2754_v53 = vpop.permute.xlu1 %2753  ;;  %vm2848_vm4 = vcmp.gt.f32.partialorder %v2832_v19, 0.0 }
 0x643   : > { %v2833_v41 = vsel %vm11684_vm3, %v2816_v25, %v2754_v53  ;;  %v2800_v53 = vsel %vm11686_vm1, %v9595_v50, %v9740_v56 }
 0x644   : > { %v2882_v28 = vmul.f32 1.442695, %v2864_v22  ;;  %v2865_v29 = vmin.f32 %v2833_v41, 0.0  ;;  %v2684_v52 = vpop.permute.xlu0 %2683  ;;  %vm2849_vm5 = vcmp.gt.f32.partialorder %v2833_v41, 0.0 }
 0x645   : > { %v2813_v61 = vsel %vm11685_vm2, %v2796_v48, %v2684_v52 }
 0x646   : > { %7646 = vpow2.f32 %v2882_v28  ;;  %v2884_v16 = vmul.f32 1.442695, %v2865_v29  ;;  %v2686_v62 = vpop.permute.xlu1 %2685 }
 0x647   : > { %v2814_v37 = vsel %vm11685_vm2, %v2797_v33, %v2686_v62  ;;  %v2976_v33 = vld [vmem:[%s11548_s7 + $0x10] sm:$0xff] }
 0x648   : > { %7648 = vpow2.f32 %v2884_v16  ;;  %v2748_v58 = vpop.permute.xlu0 %2747  ;;  %v2801_v16 = vsel %vm11686_vm1, %v9599_v20, %v9742_v49 }
 0x649   : > { %v2830_v59 = vsel %vm11684_vm3, %v2813_v61, %v2748_v58 }
 0x64a   : > { %v2862_v36 = vmin.f32 %v2830_v59, 0.0  ;;  %v2750_v47 = vpop.permute.xlu1 %2749  ;;  %vm2846_vm6 = vcmp.gt.f32.partialorder %v2830_v59, 0.0 }
 0x64b   : > { %v2831_v15 = vsel %vm11684_vm3, %v2814_v37, %v2750_v47 }
 0x64c   : > { %v2878_v54 = vmul.f32 1.442695, %v2862_v36  ;;  %v2863_v43 = vmin.f32 %v2831_v15, 0.0  ;;  %v2696_v39 = vpop.permute.xlu0 %2695  ;;  %vm2847_vm7 = vcmp.gt.f32.partialorder %v2831_v15, 0.0  ;;  %v2977_v36 = vld [vmem:[%s11548_s7 + $0x18] sm:$0xff] }
 0x64d   : > { %v2819_v11 = vsel %vm11685_vm2, %v2802_v38, %v2696_v39  ;;  %v7098_v38 = vpack.c.bf16 %v2977_v36, %v2976_v33  ;;  %v2985_v36 = vld [vmem:[%s11548_s7 + $0x58] sm:$0xff] }
 0x64e   : > { %7650 = vpow2.f32 %v2878_v54  ;;  %v2880_v27 = vmul.f32 1.442695, %v2863_v43  ;;  %v2698_v46 = vpop.permute.xlu1 %2697 }
 0x64f   : > { %v2820_v7 = vsel %vm11685_vm2, %v2803_v45, %v2698_v46  ;;  %v2806_v46 = vsel %vm11686_vm1, %v9609_v8, %v9744_v34  ;;  %v2807_v45 = vsel %vm11686_vm1, %v9613_v0, %v9746_v1  ;;  %v2980_v0 = vld [vmem:[%s11548_s7 + $0x30] sm:$0xff] }
 0x650   : > { %v7647_v12 = vpop.eup %7646  ;;  %7652 = vpow2.f32 %v2880_v27  ;;  %v2760_v44 = vpop.permute.xlu0 %2759 }
 0x651   : > { %v6014_v6 = vadd.f32 -1.0, %v7647_v12  ;;  %v9784_v40 = vsel %vm11684_vm3, %v2819_v11, %v2760_v44 }
 0x652   : > { %v7649_v13 = vpop.eup %7648  ;;  %v2868_v4 = vmin.f32 %v9784_v40, 0.0  ;;  %v2762_v3 = vpop.permute.xlu1 %2761  ;;  %vm2852_vm8 = vcmp.gt.f32.partialorder %v9784_v40, 0.0 }
 0x653   : > { %v6015_v21 = vadd.f32 -1.0, %v7649_v13  ;;  %v9789_v57 = vsel %vm11684_vm3, %v2820_v7, %v2762_v3  ;;  %v2928_v30 = vsel %vm2848_vm4, %v2832_v19, %v6014_v6 }
 0x654   : > { %v2890_v5 = vmul.f32 1.442695, %v2868_v4  ;;  %v2869_v42 = vmin.f32 %v9789_v57, 0.0  ;;  %v2692_v51 = vpop.permute.xlu0 %2691  ;;  %vm2853_vm9 = vcmp.gt.f32.partialorder %v9789_v57, 0.0 }
 0x655   : > { %v2929_v55 = vsel %vm2849_vm5, %v2833_v41, %v6015_v21  ;;  %v2817_v29 = vsel %vm11685_vm2, %v2800_v53, %v2692_v51  ;;  %v2804_v53 = vsel %vm11686_vm1, %v9611_v17, %v9748_v18 }
 0x656   : > { %v2991_v63 = vpack.c.bf16 %v2929_v55, %v2928_v30  ;;  %7654 = vpow2.f32 %v2890_v5  ;;  %v2892_v25 = vmul.f32 1.442695, %v2869_v42  ;;  %v2694_v22 = vpop.permute.xlu1 %2693 }
 0x657   : > { %v2818_v48 = vsel %vm11685_vm2, %v2801_v16, %v2694_v22 }
 0x658   : > { %v7651_v28 = vpop.eup %7650  ;;  %7656 = vpow2.f32 %v2892_v25  ;;  %v2756_v52 = vpop.permute.xlu0 %2755 }
 0x659   : > { %v6012_v62 = vadd.f32 -1.0, %v7651_v28  ;;  %v9800_v19 = vsel %vm11684_vm3, %v2817_v29, %v2756_v52 }
 0x65a   : > { %v7653_v41 = vpop.eup %7652  ;;  %v2866_v61 = vmin.f32 %v9800_v19, 0.0  ;;  %v2758_v58 = vpop.permute.xlu1 %2757  ;;  %vm2850_vm10 = vcmp.gt.f32.partialorder %v9800_v19, 0.0 }
 0x65b   : > { %v6013_v50 = vadd.f32 -1.0, %v7653_v41  ;;  %v9805_v56 = vsel %vm11684_vm3, %v2818_v48, %v2758_v58  ;;  %v2926_v47 = vsel %vm2846_vm6, %v2830_v59, %v6012_v62  ;;  %v2978_v59 = vld [vmem:[%s11548_s7 + $0x20] sm:$0xff]  ;;  %v2805_v62 = vsel %vm11686_vm1, %v9615_v23, %v9750_v9  ;;  %v2984_v23 = vld [vmem:[%s11548_s7 + $0x50] sm:$0xff] }
 0x65c   : > { %v2886_v20 = vmul.f32 1.442695, %v2866_v61  ;;  %v2867_v49 = vmin.f32 %v9805_v56, 0.0  ;;  %v2704_v37 = vpop.permute.xlu0 %2703  ;;  %vm2851_vm11 = vcmp.gt.f32.partialorder %v9805_v56, 0.0 }
 0x65d   : > { %v2927_v54 = vsel %vm2847_vm7, %v2831_v15, %v6013_v50  ;;  %v2823_v11 = vsel %vm11685_vm2, %v2806_v46, %v2704_v37  ;;  %v2979_v15 = vld [vmem:[%s11548_s7 + $0x28] sm:$0xff]  ;;  %v2810_v46 = vsel %vm11686_vm1, %v9617_v32, %v9752_v10  ;;  %v2811_v32 = vsel %vm11686_vm1, %v9621_v60, %v9754_v35 }
 0x65e   : > { %7658 = vpow2.f32 %v2886_v20  ;;  %v2888_v43 = vmul.f32 1.442695, %v2867_v49  ;;  %v2706_v39 = vpop.permute.xlu1 %2705  ;;  %v2990_v27 = vpack.c.bf16 %v2927_v54, %v2926_v47  ;;  %v7102_v5 = vpack.c.bf16 %v2979_v15, %v2978_v59 }
 0x65f   : > { %v2824_v13 = vsel %vm11685_vm2, %v2807_v45, %v2706_v39 }
 0x660   : > { %v7655_v12 = vpop.eup %7654  ;;  %7660 = vpow2.f32 %v2888_v43  ;;  %6669 = vmatprep.mubr.bf16.mxu1 %v2990_v27  ;;  %v2768_v44 = vpop.permute.xlu0 %2767 }
 0x661   : > { %v6018_v8 = vadd.f32 -1.0, %v7655_v12  ;;  %v9828_v34 = vsel %vm11684_vm3, %v2823_v11, %v2768_v44  ;;  %6670 = vmatmul.mubr.bf16.vlgmr.msra.gmra.mrb[64].mxu1 %v2991_v63 }
 0x662   : > { %v7657_v6 = vpop.eup %7656  ;;  %v2872_v7 = vmin.f32 %v9828_v34, 0.0  ;;  %v2770_v4 = vpop.permute.xlu1 %2769  ;;  %7097 = vmatpush3.bf16.msra.mxu1 %v9703_v26  ;;  %v2981_v26 = vld [vmem:[%s11548_s7 + $0x38] sm:$0xff]  ;;  %vm2856_vm12 = vcmp.gt.f32.partialorder %v9828_v34, 0.0 }
 0x663   : > { %v6019_v3 = vadd.f32 -1.0, %v7657_v6  ;;  %v9834_v21 = vsel %vm11684_vm3, %v2824_v13, %v2770_v4  ;;  %7099 = vmatprep.subr.bf16.mxu1 %v7098_v38  ;;  %v2932_v30 = vsel %vm2852_vm8, %v9784_v40, %v6018_v8  ;;  %v7106_v28 = vpack.c.bf16 %v2981_v26, %v2980_v0  ;;  %v2982_v40 = vld [vmem:[%s11548_s7 + $0x40] sm:$0xff] }
 0x664   : > { %v2898_v1 = vmul.f32 1.442695, %v2872_v7  ;;  %v2873_v42 = vmin.f32 %v9834_v21, 0.0  ;;  %v2700_v51 = vpop.permute.xlu0 %2699  ;;  %vm2857_vm13 = vcmp.gt.f32.partialorder %v9834_v21, 0.0  ;;  %v2808_v26 = vsel %vm11686_vm1, %v9619_v31, %v9756_v2 }
 0x665   : > { %v2933_v55 = vsel %vm2853_vm9, %v9789_v57, %v6019_v3  ;;  %v2821_v52 = vsel %vm11685_vm2, %v2804_v53, %v2700_v51  ;;  %v2983_v57 = vld [vmem:[%s11548_s7 + $0x48] sm:$0xff] }
 0x666   : > { %7662 = vpow2.f32 %v2898_v1  ;;  %v2900_v63 = vmul.f32 1.442695, %v2873_v42  ;;  %v2702_v25 = vpop.permute.xlu1 %2701  ;;  %v2993_v22 = vpack.c.bf16 %v2933_v55, %v2932_v30  ;;  %7101 = vmatpush3.bf16.msra.mxu1 %v7098_v38  ;;  %v7110_v20 = vpack.c.bf16 %v2983_v57, %v2982_v40 }
 0x667   : > { %7103 = vmatprep.subr.bf16.mxu1 %v7102_v5  ;;  %v2822_v48 = vsel %vm11685_vm2, %v2805_v62, %v2702_v25  ;;  %v7114_v38 = vpack.c.bf16 %v2985_v36, %v2984_v23  ;;  %v2972_v36 = vld [vmem:[%s11547_s6 + $0x70] sm:$0xff] }
 0x668   : > { %v7659_v29 = vpop.eup %7658  ;;  %7664 = vpow2.f32 %v2900_v63  ;;  %v2764_v16 = vpop.permute.xlu0 %2763 }
 0x669   : > { %v6016_v17 = vadd.f32 -1.0, %v7659_v29  ;;  %v9861_v18 = vsel %vm11684_vm3, %v2821_v52, %v2764_v16 }
 0x66a   : > { %v7661_v41 = vpop.eup %7660  ;;  %v2870_v61 = vmin.f32 %v9861_v18, 0.0  ;;  %v2766_v58 = vpop.permute.xlu1 %2765  ;;  %7105 = vmatpush3.bf16.msra.mxu1 %v7102_v5  ;;  %vm2854_vm14 = vcmp.gt.f32.partialorder %v9861_v18, 0.0 }
 0x66b   : > { %v6017_v50 = vadd.f32 -1.0, %v7661_v41  ;;  %v9866_v33 = vsel %vm11684_vm3, %v2822_v48, %v2766_v58  ;;  %7107 = vmatprep.subr.bf16.mxu1 %v7106_v28  ;;  %v2930_v47 = vsel %vm2850_vm10, %v9800_v19, %v6016_v17  ;;  %v2986_v19 = vld [vmem:[%s11548_s7 + $0x60] sm:$0xff] }
 0x66c   : > { %v2894_v9 = vmul.f32 1.442695, %v2870_v61  ;;  %v2871_v49 = vmin.f32 %v9866_v33, 0.0  ;;  %v2712_v37 = vpop.permute.xlu0 %2711  ;;  %vm2855_vm15 = vcmp.gt.f32.partialorder %v9866_v33, 0.0 }
 0x66d   : > { %v2931_v54 = vsel %vm2851_vm11, %v9805_v56, %v6017_v50  ;;  %v2827_v11 = vsel %vm11685_vm2, %v2810_v46, %v2712_v37  ;;  %v2987_v56 = vld [vmem:[%s11548_s7 + $0x68] sm:$0xff] }
 0x66e   : > { %7666 = vpow2.f32 %v2894_v9  ;;  %v2896_v43 = vmul.f32 1.442695, %v2871_v49  ;;  %v2714_v39 = vpop.permute.xlu1 %2713  ;;  %v2992_v27 = vpack.c.bf16 %v2931_v54, %v2930_v47  ;;  %7109 = vmatpush3.bf16.msra.mxu1 %v7106_v28  ;;  %v7118_v4 = vpack.c.bf16 %v2987_v56, %v2986_v19  ;;  %v2973_v47 = vld [vmem:[%s11547_s6 + $0x78] sm:$0xff]  ;;  %v2988_v54 = vld [vmem:[%s11548_s7 + $0x70] sm:$0xff] }
 0x66f   : > { %7111 = vmatprep.subr.bf16.mxu1 %v7110_v20  ;;  %v2828_v45 = vsel %vm11685_vm2, %v2811_v32, %v2714_v39  ;;  %v2989_v39 = vld [vmem:[%s11548_s7 + $0x78] sm:$0xff] }
 0x670   : > { %v7663_v12 = vpop.eup %7662  ;;  %7668 = vpow2.f32 %v2896_v43  ;;  %6673 = vmatprep.mubr.bf16.mxu1 %v2992_v27  ;;  %v2776_v44 = vpop.permute.xlu0 %2775  ;;  %v7090_v43 = vpack.c.bf16 %v2973_v47, %v2972_v36  ;;  %v7122_v27 = vpack.c.bf16 %v2989_v39, %v2988_v54 }
 0x671   : > { %v6022_v10 = vadd.f32 -1.0, %v7663_v12  ;;  %v2844_v59 = vsel %vm11684_vm3, %v2827_v11, %v2776_v44  ;;  %6674 = vmatmul.mubr.bf16.gmra.mrb[68].mxu1 %v2993_v22 }
 0x672   : > { %v7665_v15 = vpop.eup %7664  ;;  %v2876_v8 = vmin.f32 %v2844_v59, 0.0  ;;  %v2778_v6 = vpop.permute.xlu1 %2777  ;;  %7113 = vmatpush3.bf16.msra.mxu1 %v7110_v20  ;;  %vm2860_vm0 = vcmp.gt.f32.partialorder %v2844_v59, 0.0  ;;  %7091 = vmatprep.subr.bf16.mxu0 %v7090_v43 }
 0x673   : > { %v6023_v13 = vadd.f32 -1.0, %v7665_v15  ;;  %v2845_v7 = vsel %vm11684_vm3, %v2828_v45, %v2778_v6  ;;  %7115 = vmatprep.subr.bf16.mxu1 %v7114_v38  ;;  %v2936_v5 = vsel %vm2856_vm12, %v9828_v34, %v6022_v10  ;;  %v2809_v34 = vsel %vm11686_vm1, %v9623_v14, %v9758_v24  ;;  %7093 = vmatpush3.bf16.msra.mxu0 %v7090_v43 }
 0x674   : > { %v2906_v60 = vmul.f32 1.442695, %v2876_v8  ;;  %v2877_v35 = vmin.f32 %v2845_v7, 0.0  ;;  %v2708_v3 = vpop.permute.xlu0 %2707  ;;  %vm2861_vm4 = vcmp.gt.f32.partialorder %v2845_v7, 0.0 }
 0x675   : > { %v2937_v0 = vsel %vm2857_vm13, %v9834_v21, %v6023_v13  ;;  %v2825_v55 = vsel %vm11685_vm2, %v2808_v26, %v2708_v3 }
 0x676   : > { %7670 = vpow2.f32 %v2906_v60  ;;  %v2908_v1 = vmul.f32 1.442695, %v2877_v35  ;;  %v2710_v42 = vpop.permute.xlu1 %2709  ;;  %v2995_v51 = vpack.c.bf16 %v2937_v0, %v2936_v5  ;;  %7117 = vmatpush3.bf16.msra.mxu1 %v7114_v38 }
 0x677   : > { %7119 = vmatprep.subr.bf16.mxu1 %v7118_v4  ;;  %v2826_v53 = vsel %vm11685_vm2, %v2809_v34, %v2710_v42  ;;  %vm5752_vm2 = vcmask 1045504  }
 0x678   : > { %v7667_v30 = vpop.eup %7666  ;;  %7672 = vpow2.f32 %v2908_v1  ;;  %v2772_v63 = vpop.permute.xlu0 %2771 }
 0x679   : > { %v6020_v21 = vadd.f32 -1.0, %v7667_v30  ;;  %v2842_v25 = vsel %vm11684_vm3, %v2825_v55, %v2772_v63 }
 0x67a   : > { %v7669_v22 = vpop.eup %7668  ;;  %v2874_v28 = vmin.f32 %v2842_v25, 0.0  ;;  %v2774_v29 = vpop.permute.xlu1 %2773  ;;  %7121 = vmatpush3.bf16.msra.mxu1 %v7118_v4  ;;  %vm2858_vm5 = vcmp.gt.f32.partialorder %v2842_v25, 0.0 }
 0x67b   : > { %v6021_v31 = vadd.f32 -1.0, %v7669_v22  ;;  %v2843_v2 = vsel %vm11684_vm3, %v2826_v53, %v2774_v29  ;;  %v2934_v14 = vsel %vm2854_vm14, %v9861_v18, %v6020_v21  ;;  %7123 = vmatprep.subr.bf16.mxu1 %v7122_v27  ;;  %vm5750_vm3 = vcmask 1044480  }
 0x67c   : > { %v2902_v52 = vmul.f32 1.442695, %v2874_v28  ;;  %v2875_v16 = vmin.f32 %v2843_v2, 0.0  ;;  %vm2859_vm6 = vcmp.gt.f32.partialorder %v2843_v2, 0.0 }
 0x67d   : > { %v2935_v24 = vsel %vm2855_vm15, %v9866_v33, %v6021_v31  ;;  %v11807_v31 = vmov 3  }
 0x67e   : > { %7674 = vpow2.f32 %v2902_v52  ;;  %v2904_v40 = vmul.f32 1.442695, %v2875_v16  ;;  %v2994_v57 = vpack.c.bf16 %v2935_v24, %v2934_v14  ;;  %7125 = vmatpush3.bf16.msra.mxu1 %v7122_v27  ;;  %v11809_v16 = vmov 1  }
 0x680   : > { %v7671_v62 = vpop.eup %7670  ;;  %7676 = vpow2.f32 %v2904_v40  ;;  %6677 = vmatprep.mubr.bf16.mxu1 %v2994_v57 }
 0x681   : > { %v6026_v17 = vadd.f32 -1.0, %v7671_v62  ;;  %6678 = vmatmul.mubr.bf16.gmra.mrb[72].mxu1 %v2995_v51 }
 0x682   : > { %v7673_v41 = vpop.eup %7672 }
 0x683   : > { %v6027_v48 = vadd.f32 -1.0, %v7673_v41  ;;  %v2940_v61 = vsel %vm2860_vm0, %v2844_v59, %v6026_v17  ;;  %v11810_v17 = vmov 2  }
 0x685   : > { %v2941_v58 = vsel %vm2861_vm4, %v2845_v7, %v6027_v48 }
 0x686   : > { %v2997_v50 = vpack.c.bf16 %v2941_v58, %v2940_v61 }
 0x688   : > { %v7675_v20 = vpop.eup %7674 }
 0x689   : > { %v6024_v23 = vadd.f32 -1.0, %v7675_v20 }
 0x68a   : > { %v7677_v18 = vpop.eup %7676 }
 0x68b   : > { %v6025_v9 = vadd.f32 -1.0, %v7677_v18  ;;  %v2938_v33 = vsel %vm2858_vm5, %v2842_v25, %v6024_v23 }
 0x68d   : > { %v2939_v49 = vsel %vm2859_vm6, %v2843_v2, %v6025_v9  ;;  %v11808_v2 = vmov 0  }
 0x68e   : > { %v2996_v37 = vpack.c.bf16 %v2939_v49, %v2938_v33 }
 0x690   : > { %6681 = vmatprep.mubr.bf16.mxu1 %v2996_v37 }
 0x691   : > { %6682 = vmatmul.mubr.bf16.gmra.mrb[76].mxu1 %v2997_v50 }
 0x734   : > { %v6671_v46 = vpop.f32.mrb[64].mxu1 }
 0x735   : > { %v3080_v38 = vpop.f32.mrb[65].mxu1 }
 0x736   : > { %v6672_v12 = vpop.f32.mrb[66].mxu1  ;;  %6717 = vmatprep.mubr.f32.mxu0 %v3080_v38  ;;  %6773 = vmatprep.mubr.f32.mxu1 %v3080_v38 }
 0x737   : > { %v9925_v11 = vpack.c.bf16 %v6672_v12, %v6671_v46  ;;  %v3083_v44 = vpop.f32.mrb[67].mxu1 }
 0x738   : > { %v9927_v19 = vpack.c.bf16 %v3083_v44, %v3080_v38  ;;  %6718 = vmatmul.mubr.f32.vlgmr.msra.gmra.mrb[48].mxu0 %v3083_v44  ;;  %6774 = vmatmul.mubr.f32.vlgmr.msra.gmra.mrb[80].mxu1 %v3083_v44 }
 0x739   : > { %11799 = vst [vmem:[#allocation6_spill] sm:$0xff] %v9925_v11  ;;  %4099 = vrot.lane.b32.xlu0 %v9925_v11, %s11801_s18  ;;  %6720 = vmatprep.mubr.f32.mxu0 %v6671_v46 }
 0x73a   : > { %11800 = vst [vmem:[#allocation8_spill] sm:$0xff] %v9927_v19  ;;  %6776 = vmatprep.mubr.f32.mxu1 %v6671_v46 }
 0x73c   : > { %6721 = vmatmul.mubr.f32.gmra.mrb[50].mxu0 %v6672_v12  ;;  %6777 = vmatmul.mubr.f32.gmra.mrb[82].mxu1 %v6672_v12 }
 0x73d   : > { %4097 = vrot.lane.b32.xlu0 %v9927_v19, %s11801_s18 }
 0x744   : > { %v6675_v56 = vpop.f32.mrb[68].mxu1 }
 0x745   : > { %v3096_v32 = vpop.f32.mrb[69].mxu1 }
 0x746   : > { %v6676_v10 = vpop.f32.mrb[70].mxu1  ;;  %6723 = vmatprep.mubr.f32.mxu0 %v3096_v32  ;;  %6779 = vmatprep.mubr.f32.mxu1 %v3096_v32 }
 0x747   : > { %v9933_v59 = vpack.c.bf16 %v6676_v10, %v6675_v56  ;;  %v3099_v15 = vpop.f32.mrb[71].mxu1 }
 0x748   : > { %v9935_v45 = vpack.c.bf16 %v3099_v15, %v3096_v32  ;;  %6724 = vmatmul.mubr.f32.gmra.mrb[52].mxu0 %v3099_v15  ;;  %6780 = vmatmul.mubr.f32.gmra.mrb[84].mxu1 %v3099_v15 }
 0x749   : > { %11802 = vst [vmem:[#allocation35_spill] sm:$0xff] %v9933_v59  ;;  %4103 = vrot.lane.b32.xlu1 %v9933_v59, %s11801_s18  ;;  %6726 = vmatprep.mubr.f32.mxu0 %v6675_v56 }
 0x74a   : > { %11803 = vst [vmem:[#allocation12_spill] sm:$0xff] %v9935_v45  ;;  %6782 = vmatprep.mubr.f32.mxu1 %v6675_v56 }
 0x74c   : > { %6727 = vmatmul.mubr.f32.gmra.mrb[54].mxu0 %v6676_v10  ;;  %6783 = vmatmul.mubr.f32.gmra.mrb[86].mxu1 %v6676_v10 }
 0x74d   : > { %4101 = vrot.lane.b32.xlu1 %v9935_v45, %s11801_s18 }
 0x754   : > { %v6679_v8 = vpop.f32.mrb[72].mxu1 }
 0x755   : > { %v3112_v6 = vpop.f32.mrb[73].mxu1 }
 0x756   : > { %v6680_v13 = vpop.f32.mrb[74].mxu1  ;;  %6729 = vmatprep.mubr.f32.mxu0 %v3112_v6  ;;  %6785 = vmatprep.mubr.f32.mxu1 %v3112_v6 }
 0x757   : > { %v9941_v7 = vpack.c.bf16 %v6680_v13, %v6679_v8  ;;  %v3115_v4 = vpop.f32.mrb[75].mxu1 }
 0x758   : > { %v9943_v60 = vpack.c.bf16 %v3115_v4, %v3112_v6  ;;  %6730 = vmatmul.mubr.f32.gmra.mrb[56].mxu0 %v3115_v4  ;;  %6786 = vmatmul.mubr.f32.gmra.mrb[88].mxu1 %v3115_v4 }
 0x759   : > { %6732 = vmatprep.mubr.f32.mxu0 %v6679_v8  ;;  %6788 = vmatprep.mubr.f32.mxu1 %v6679_v8 }
 0x75a   : > { %11804 = vst [vmem:[#allocation10_spill] sm:$0xff] %v9943_v60  ;;  %4105 = vrot.lane.b32.xlu0 %v9943_v60, %s11801_s18 }
 0x75c   : > { %6733 = vmatmul.mubr.f32.gmra.mrb[58].mxu0 %v6680_v13  ;;  %6789 = vmatmul.mubr.f32.gmra.mrb[90].mxu1 %v6680_v13 }
 0x764   : > { %v6683_v35 = vpop.f32.mrb[76].mxu1 }
 0x765   : > { %v3128_v3 = vpop.f32.mrb[77].mxu1 }
 0x766   : > { %v6684_v5 = vpop.f32.mrb[78].mxu1  ;;  %6735 = vmatprep.mubr.f32.mxu0 %v3128_v3  ;;  %6791 = vmatprep.mubr.f32.mxu1 %v3128_v3 }
 0x767   : > { %v9947_v0 = vpack.c.bf16 %v6684_v5, %v6683_v35  ;;  %v3131_v1 = vpop.f32.mrb[79].mxu1 }
 0x768   : > { %v9949_v42 = vpack.c.bf16 %v3131_v1, %v3128_v3  ;;  %6736 = vmatmul.mubr.f32.gmra.mrb[60].mxu0 %v3131_v1  ;;  %6792 = vmatmul.mubr.f32.gmra.mrb[92].mxu1 %v3131_v1 }
 0x769   : > { %11805 = vst [vmem:[#allocation15_spill] sm:$0xff] %v9947_v0  ;;  %6738 = vmatprep.mubr.f32.mxu0 %v6683_v35  ;;  %6794 = vmatprep.mubr.f32.mxu1 %v6683_v35 }
 0x76a   : > { %11806 = vst [vmem:[#allocation13_spill] sm:$0xff] %v9949_v42 }
 0x76c   : > { %6739 = vmatmul.mubr.f32.gmra.mrb[62].mxu0 %v6684_v5  ;;  %6795 = vmatmul.mubr.f32.gmra.mrb[94].mxu1 %v6684_v5 }
 0x7ab   : > { %v4100_v51 = vpop.permute.xlu0 %4099 }
 0x7af   : > { %v4098_v26 = vpop.permute.xlu0 %4097 }
 0x7b0   : > { %6797 = vmatprep.subr.bf16.mxu0 %v4098_v26 }
 0x7b1   : > { %6798 = vmatpush3.bf16.msra.mxu0 %v4098_v26 }
 0x7b2   : > { %6799 = vmatprep.subr.bf16.mxu0 %v4100_v51 }
 0x7b5   : > { %6800 = vmatpush3.bf16.msra.mxu0 %v4100_v51 }
 0x7bb   : > { %v4104_v30 = vpop.permute.xlu1 %4103 }
 0x7bf   : > { %v4102_v55 = vpop.permute.xlu1 %4101 }
 0x7c0   : > { %6801 = vmatprep.subr.bf16.mxu0 %v4102_v55 }
 0x7c1   : > { %6802 = vmatpush3.bf16.msra.mxu0 %v4102_v55 }
 0x7c2   : > { %6803 = vmatprep.subr.bf16.mxu0 %v4104_v30 }
 0x7c5   : > { %6804 = vmatpush3.bf16.msra.mxu0 %v4104_v30 }
 0x7cc   : > { %v4106_v63 = vpop.permute.xlu0 %4105 }
 0x7cd   : > { %6805 = vmatprep.subr.bf16.mxu0 %v4106_v63 }
 0x7ce   : > { %6806 = vmatpush3.bf16.msra.mxu0 %v4106_v63 }
 0x80b   : > { %v9951_v34 = vpop.f32.mrb[48].mxu0  ;;  %v6775_v21 = vpop.f32.mrb[80].mxu1 }
 0x80c   : > { %v9953_v25 = vpop.f32.mrb[49].mxu0  ;;  %4223 = vperm.xlu0 %7322, %v6775_v21   ;;  %3794 = vperm.xlu1 %7328, %v6775_v21   ;;  %v3394_v22 = vpop.f32.mrb[81].mxu1 }
 0x80f   : > { %v9955_v53 = vpop.f32.mrb[50].mxu0  ;;  %v6778_v28 = vpop.f32.mrb[82].mxu1 }
 0x810   : > { %v9957_v29 = vpop.f32.mrb[51].mxu0  ;;  %7329 = vset.pattern.permute.xlu0 %v11807_v31  ;;  %7338 = vset.pattern.permute.xlu1 %v11808_v2  ;;  %v9961_v52 = vpop.f32.mrb[83].mxu1 }
 0x811   : > { %4644 = vperm.xlu0 %7329, %v6775_v21   ;;  %3490 = vperm.xlu1 %7338, %v6778_v28  }
 0x815   : > { %7330 = vset.pattern.permute.xlu0 %v11808_v2  ;;  %7339 = vset.pattern.permute.xlu1 %v11809_v16 }
 0x816   : > { %3480 = vperm.xlu0 %7330, %v6775_v21   ;;  %3798 = vperm.xlu1 %7339, %v9961_v52  }
 0x81a   : > { %7331 = vset.pattern.permute.xlu0 %v11809_v16  ;;  %7345 = vset.pattern.permute.xlu1 %v11807_v31 }
 0x81b   : > { %v9968_v14 = vpop.f32.mrb[52].mxu0  ;;  %3790 = vperm.xlu0 %7331, %v3394_v22   ;;  %v9970_v24 = vpop.f32.mrb[84].mxu1 }
 0x81c   : > { %v9972_v40 = vpop.f32.mrb[53].mxu0  ;;  %4660 = vperm.xlu1 %7345, %v9970_v24   ;;  %v9975_v57 = vpop.f32.mrb[85].mxu1 }
 0x81f   : > { %v9977_v62 = vpop.f32.mrb[54].mxu0  ;;  %7332 = vset.pattern.permute.xlu0 %v11810_v17  ;;  %v9980_v41 = vpop.f32.mrb[86].mxu1 }
 0x820   : > { %v9982_v48 = vpop.f32.mrb[55].mxu0  ;;  %4219 = vperm.xlu0 %7332, %v3394_v22   ;;  %7346 = vset.pattern.permute.xlu1 %v11808_v2  ;;  %v9985_v61 = vpop.f32.mrb[87].mxu1 }
 0x821   : > { %3500 = vperm.xlu1 %7346, %v9970_v24  }
 0x824   : > { %7333 = vset.pattern.permute.xlu0 %v11807_v31 }
 0x825   : > { %4640 = vperm.xlu0 %7333, %v3394_v22   ;;  %7347 = vset.pattern.permute.xlu1 %v11809_v16 }
 0x826   : > { %3806 = vperm.xlu1 %7347, %v9975_v57  }
 0x829   : > { %7334 = vset.pattern.permute.xlu0 %v11808_v2 }
 0x82a   : > { %3475 = vperm.xlu0 %7334, %v3394_v22   ;;  %7352 = vset.pattern.permute.xlu1 %v11807_v31 }
 0x82b   : > { %v9993_v58 = vpop.f32.mrb[56].mxu0  ;;  %4668 = vperm.xlu1 %7352, %v9980_v41   ;;  %v9996_v50 = vpop.f32.mrb[88].mxu1 }
 0x82c   : > { %v9998_v20 = vpop.f32.mrb[57].mxu0  ;;  %v10000_v23 = vpop.f32.mrb[89].mxu1 }
 0x82e   : > { %7335 = vset.pattern.permute.xlu0 %v11809_v16 }
 0x82f   : > { %v10003_v18 = vpop.f32.mrb[58].mxu0  ;;  %3802 = vperm.xlu0 %7335, %v6778_v28   ;;  %7353 = vset.pattern.permute.xlu1 %v11808_v2  ;;  %v10006_v9 = vpop.f32.mrb[90].mxu1 }
 0x830   : > { %v10008_v33 = vpop.f32.mrb[59].mxu0  ;;  %3510 = vperm.xlu1 %7353, %v9980_v41   ;;  %v10011_v49 = vpop.f32.mrb[91].mxu1 }
 0x833   : > { %7336 = vset.pattern.permute.xlu0 %v11810_v17 }
 0x834   : > { %4231 = vperm.xlu0 %7336, %v6778_v28   ;;  %7354 = vset.pattern.permute.xlu1 %v11809_v16 }
 0x835   : > { %3814 = vperm.xlu1 %7354, %v9985_v61  }
 0x838   : > { %7337 = vset.pattern.permute.xlu0 %v11807_v31 }
 0x839   : > { %4652 = vperm.xlu0 %7337, %v6778_v28   ;;  %7359 = vset.pattern.permute.xlu1 %v11807_v31 }
 0x83a   : > { %4676 = vperm.xlu1 %7359, %v9996_v50  }
 0x83b   : > { %v10019_v37 = vpop.f32.mrb[60].mxu0  ;;  %v10021_v36 = vpop.f32.mrb[92].mxu1 }
 0x83c   : > { %11811 = vst [vmem:[#allocation11_spill] sm:$0xff] %v10021_v36  ;;  %v10023_v47 = vpop.f32.mrb[61].mxu0  ;;  %v10025_v54 = vpop.f32.mrb[93].mxu1 }
 0x83d   : > { %11812 = vst [vmem:[#allocation9_spill] sm:$0xff] %v10025_v54  ;;  %7340 = vset.pattern.permute.xlu0 %v11810_v17 }
 0x83e   : > { %4227 = vperm.xlu0 %7340, %v9961_v52   ;;  %7360 = vset.pattern.permute.xlu1 %v11808_v2 }
 0x83f   : > { %3520 = vperm.xlu1 %7360, %v9996_v50   ;;  %v10031_v43 = vpop.f32.mrb[62].mxu0  ;;  %v10033_v39 = vpop.f32.mrb[94].mxu1 }
 0x840   : > { %11813 = vst [vmem:[#allocation18_spill] sm:$0xff] %v10033_v39  ;;  %v10035_v27 = vpop.f32.mrb[63].mxu0  ;;  %v10037_v46 = vpop.f32.mrb[95].mxu1 }
 0x841   : > { %11814 = vst [vmem:[#allocation16_spill] sm:$0xff] %v10037_v46 }
 0x842   : > { %7341 = vset.pattern.permute.xlu0 %v11807_v31 }
 0x843   : > { %4648 = vperm.xlu0 %7341, %v9961_v52   ;;  %7361 = vset.pattern.permute.xlu1 %v11809_v16 }
 0x844   : > { %3822 = vperm.xlu1 %7361, %v10000_v23  }
 0x847   : > { %7342 = vset.pattern.permute.xlu0 %v11808_v2 }
 0x848   : > { %3485 = vperm.xlu0 %7342, %v9961_v52   ;;  %7365 = vset.pattern.permute.xlu1 %v11807_v31 }
 0x849   : > { %4684 = vperm.xlu1 %7365, %v10006_v9  }
 0x84c   : > { %7343 = vset.pattern.permute.xlu0 %v11809_v16 }
 0x84d   : > { %3810 = vperm.xlu0 %7343, %v9970_v24   ;;  %7366 = vset.pattern.permute.xlu1 %v11808_v2 }
 0x84e   : > { %3530 = vperm.xlu1 %7366, %v10006_v9  }
 0x851   : > { %7344 = vset.pattern.permute.xlu0 %v11810_v17 }
 0x852   : > { %4239 = vperm.xlu0 %7344, %v9970_v24   ;;  %7367 = vset.pattern.permute.xlu1 %v11809_v16 }
 0x853   : > { %3830 = vperm.xlu1 %7367, %v10011_v49  }
 0x856   : > { %4235 = vperm.xlu0 %7344, %v9975_v57  }
 0x857   : > { %7371 = vset.pattern.permute.xlu1 %v11807_v31 }
 0x858   : > { %4692 = vperm.xlu1 %7371, %v10021_v36  }
 0x85a   : > { %7348 = vset.pattern.permute.xlu0 %v11807_v31 }
 0x85b   : > { %4656 = vperm.xlu0 %7348, %v9975_v57  }
 0x85c   : > { %7372 = vset.pattern.permute.xlu1 %v11809_v16 }
 0x85d   : > { %3838 = vperm.xlu1 %7372, %v10025_v54  }
 0x85f   : > { %7349 = vset.pattern.permute.xlu0 %v11808_v2 }
 0x860   : > { %3495 = vperm.xlu0 %7349, %v9975_v57  }
 0x861   : > { %7376 = vset.pattern.permute.xlu1 %v11807_v31 }
 0x862   : > { %4700 = vperm.xlu1 %7376, %v10033_v39  }
 0x864   : > { %7350 = vset.pattern.permute.xlu0 %v11809_v16 }
 0x865   : > { %3818 = vperm.xlu0 %7350, %v9980_v41  }
 0x866   : > { %7377 = vset.pattern.permute.xlu1 %v11809_v16 }
 0x867   : > { %3846 = vperm.xlu1 %7377, %v10037_v46  }
 0x869   : > { %7351 = vset.pattern.permute.xlu0 %v11810_v17 }
 0x86a   : > { %4247 = vperm.xlu0 %7351, %v9980_v41  }
 0x86e   : > { %4243 = vperm.xlu0 %7351, %v9985_v61  }
 0x872   : > { %7355 = vset.pattern.permute.xlu0 %v11807_v31 }
 0x873   : > { %4664 = vperm.xlu0 %7355, %v9985_v61  }
 0x877   : > { %7356 = vset.pattern.permute.xlu0 %v11808_v2 }
 0x878   : > { %3505 = vperm.xlu0 %7356, %v9985_v61  }
 0x87c   : > { %7357 = vset.pattern.permute.xlu0 %v11809_v16 }
 0x87d   : > { %3826 = vperm.xlu0 %7357, %v9996_v50  }
 0x881   : > { %7358 = vset.pattern.permute.xlu0 %v11810_v17 }
 0x882   : > { %4255 = vperm.xlu0 %7358, %v9996_v50  }
 0x886   : > { %4251 = vperm.xlu0 %7358, %v10000_v23  }
 0x88a   : > { %7362 = vset.pattern.permute.xlu0 %v11807_v31 }
 0x88b   : > { %v10083_v38 = vpop.permute.xlu0 %4223  ;;  %4672 = vperm.xlu0 %7362, %v10000_v23   ;;  %v10104_v32 = vpop.permute.xlu1 %3794 }
 0x88f   : > { %7363 = vset.pattern.permute.xlu0 %v11809_v16 }
 0x890   : > { %v10087_v12 = vpop.permute.xlu0 %4644  ;;  %3834 = vperm.xlu0 %7363, %v10006_v9   ;;  %3296 = vxpose.xlu1.b32.start [1/16] (narrow) %v9953_v25, 8  ;;  %v10112_v15 = vpop.permute.xlu1 %3490 }
 0x894   : > { %7364 = vset.pattern.permute.xlu0 %v11810_v17  ;;  %3297 = vxpose.xlu1.b32.cont [2/16] (narrow) %v9951_v34, 8 }
 0x895   : > { %4263 = vperm.xlu0 %7364, %v10006_v9   ;;  %v10094_v44 = vpop.permute.xlu0 %3480  ;;  %v10120_v6 = vpop.permute.xlu1 %3798 }
 0x898   : > { %3298 = vxpose.xlu1.b32.cont [3/16] (narrow) %v9957_v29, 8 }
 0x899   : > { %4259 = vperm.xlu0 %7364, %v10011_v49  }
 0x89a   : > { %v10098_v56 = vpop.permute.xlu0 %3790 }
 0x89b   : > { %v10127_v4 = vpop.permute.xlu1 %4660 }
 0x89c   : > { %3299 = vxpose.xlu1.b32.cont [4/16] (narrow) %v9955_v53, 8 }
 0x89d   : > { %7368 = vset.pattern.permute.xlu0 %v11807_v31 }
 0x89e   : > { %4680 = vperm.xlu0 %7368, %v10011_v49  }
 0x89f   : > { %v10106_v10 = vpop.permute.xlu0 %4219 }
 0x8a0   : > { %3300 = vxpose.xlu1.b32.cont [5/16] (narrow) %v9972_v40, 8  ;;  %v10132_v3 = vpop.permute.xlu1 %3500 }
 0x8a2   : > { %7369 = vset.pattern.permute.xlu0 %v11809_v16 }
 0x8a3   : > { %3842 = vperm.xlu0 %7369, %v10021_v36  }
 0x8a4   : > { %3301 = vxpose.xlu1.b32.cont [6/16] (narrow) %v9968_v14, 8  ;;  %v10114_v8 = vpop.permute.xlu0 %4640 }
 0x8a5   : > { %v10140_v1 = vpop.permute.xlu1 %3806 }
 0x8a7   : > { %7370 = vset.pattern.permute.xlu0 %v11810_v17 }
 0x8a8   : > { %4271 = vperm.xlu0 %7370, %v10021_v36   ;;  %3302 = vxpose.xlu1.b32.cont [7/16] (narrow) %v9982_v48, 8 }
 0x8a9   : > { %v10122_v13 = vpop.permute.xlu0 %3475 }
 0x8aa   : > { %v10147_v26 = vpop.permute.xlu1 %4668 }
 0x8ac   : > { %4267 = vperm.xlu0 %7370, %v10025_v54   ;;  %3303 = vxpose.xlu1.b32.cont [8/16] (narrow) %v9977_v62, 8 }
 0x8ae   : > { %v3803_v35 = vpop.permute.xlu0 %3802 }
 0x8af   : > { %v10155_v55 = vpop.permute.xlu1 %3510 }
 0x8b0   : > { %7373 = vset.pattern.permute.xlu0 %v11807_v31  ;;  %3304 = vxpose.xlu1.b32.cont [9/16] (narrow) %v9998_v20, 8 }
 0x8b1   : > { %4688 = vperm.xlu0 %7373, %v10025_v54  }
 0x8b3   : > { %v10135_v5 = vpop.permute.xlu0 %4231 }
 0x8b4   : > { %3305 = vxpose.xlu1.b32.cont [10/16] (narrow) %v9993_v58, 8  ;;  %v10160_v34 = vpop.permute.xlu1 %3814 }
 0x8b5   : > { %7374 = vset.pattern.permute.xlu0 %v11809_v16 }
 0x8b6   : > { %3850 = vperm.xlu0 %7374, %v10033_v39  }
 0x8b8   : > { %3306 = vxpose.xlu1.b32.cont [11/16] (narrow) %v10008_v33, 8  ;;  %v10143_v51 = vpop.permute.xlu0 %4652 }
 0x8b9   : > { %v10164_v25 = vpop.permute.xlu1 %4676 }
 0x8ba   : > { %7375 = vset.pattern.permute.xlu0 %v11810_v17 }
 0x8bb   : > { %4279 = vperm.xlu0 %7375, %v10033_v39  }
 0x8bc   : > { %3307 = vxpose.xlu1.b32.cont [12/16] (narrow) %v10003_v18, 8  ;;  %v11815_v18 = vld [vmem:[#allocation19_spill] sm:$0xff] }
 0x8bd   : > { %v10151_v30 = vpop.permute.xlu0 %4227  ;;  %v11816_v9 = vsub.s32 1, %v11815_v18 }
 0x8be   : > { %v10168_v53 = vpop.permute.xlu1 %3520 }
 0x8bf   : > { %4275 = vperm.xlu0 %7375, %v10037_v46  }
 0x8c0   : > { %3308 = vxpose.xlu1.b32.cont [13/16] (narrow) %v10023_v47, 8 }
 0x8c2   : > { %v10157_v63 = vpop.permute.xlu0 %4648 }
 0x8c3   : > { %7378 = vset.pattern.permute.xlu0 %v11807_v31  ;;  %v10172_v29 = vpop.permute.xlu1 %3822 }
 0x8c4   : > { %4696 = vperm.xlu0 %7378, %v10037_v46   ;;  %3309 = vxpose.xlu1.b32.cont [14/16] (narrow) %v10019_v37, 8  ;;  %v11817_v37 = vsub.s32 2, %v11815_v18 }
 0x8c7   : > { %v10162_v21 = vpop.permute.xlu0 %3485 }
 0x8c8   : > { %3310 = vxpose.xlu1.b32.cont [15/16] (narrow) %v10035_v27, 8  ;;  %7379 = vset.pattern.permute.xlu0 %v11808_v2  ;;  %v10176_v52 = vpop.permute.xlu1 %4684 }
 0x8cc   : > { %3311 = vxpose.xlu1.b32.end [16/16] (narrow) %v10031_v43, 8  ;;  %v10166_v22 = vpop.permute.xlu0 %3810  ;;  %v11818_v43 = vsub.s32 3, %v11815_v18 }
 0x8cd   : > { %v10181_v14 = vpop.permute.xlu1 %3530 }
 0x8d1   : > { %v10170_v28 = vpop.permute.xlu0 %4239 }
 0x8d2   : > { %v10185_v40 = vpop.permute.xlu1 %3830 }
 0x8d5   : > { %v10174_v31 = vpop.permute.xlu0 %4235 }
 0x8d7   : > { %v10189_v62 = vpop.permute.xlu1 %4692 }
 0x8da   : > { %v10178_v16 = vpop.permute.xlu0 %4656 }
 0x8dc   : > { %v10193_v41 = vpop.permute.xlu1 %3838 }
 0x8df   : > { %v10183_v24 = vpop.permute.xlu0 %3495 }
 0x8e1   : > { %v10197_v61 = vpop.permute.xlu1 %4700 }
 0x8e4   : > { %v10187_v57 = vpop.permute.xlu0 %3818 }
 0x8e9   : > { %v10191_v17 = vpop.permute.xlu0 %4247 }
 0x8ea   : > { %7380 = vset.pattern.permute.xlu1 %v11808_v2  ;;  %v10201_v2 = vpop.permute.xlu1 %3846 }
 0x8ed   : > { %v10195_v48 = vpop.permute.xlu0 %4243 }
 0x8f2   : > { %v10199_v58 = vpop.permute.xlu0 %4664 }
 0x8f7   : > { %v10203_v50 = vpop.permute.xlu0 %3505 }
 0x8fc   : > { %v10224_v11 = vpop.permute.xlu0 %3826 }
 0x910   : > { %v3312_v20 = vpop.trf.xlu1 }
 0x911   : > { %v10207_v33 = vrot.slane %v3312_v20, %v11816_v9  ;;  %v10211_v47 = vrot.slane %v3312_v20, %v11817_v37  ;;  %v10215_v27 = vrot.slane %v3312_v20, %v11818_v43  ;;  %v11819_v37 = vsub.s32 0, %v11815_v18 }
 0x913   : > { %v3858_v60 = vadd.f32 %v10207_v33, %v10104_v32  ;;  %v3857_v45 = vadd.f32 %v10207_v33, %v10098_v56  ;;  %v3860_v59 = vadd.f32 %v10207_v33, %v3803_v35  ;;  %v4286_v9 = vadd.f32 %v10211_v47, %v10106_v10 }
 0x914   : > { %v10228_v39 = vrot.slane %v3312_v20, %v11819_v37  ;;  %v4287_v32 = vadd.f32 %v10211_v47, %v10083_v38  ;;  %v4707_v35 = vadd.f32 %v10215_v27, %v10114_v8  ;;  %v7998_v20 = vld [vmem:[%s11542_s1 + $0x8] sm:$0xff]  ;;  %v7999_v38 = vld [vmem:[%s11542_s1] sm:$0xff]  ;;  %v4289_v8 = vadd.f32 %v10211_v47, %v10135_v5 }
 0x915   : > { %vm3874_vm7 = vcmp.gt.f32.partialorder %v3858_v60, 0.0  ;;  %v3890_v43 = vmul.f32 0.2, %v3858_v60  ;;  %vm3873_vm8 = vcmp.gt.f32.partialorder %v3857_v45, 0.0  ;;  %v3889_v0 = vmul.f32 0.2, %v3857_v45 }
 0x916   : > { %vm3876_vm9 = vcmp.gt.f32.partialorder %v3860_v59, 0.0  ;;  %v3892_v56 = vmul.f32 0.2, %v3860_v59  ;;  %vm4302_vm10 = vcmp.gt.f32.partialorder %v4286_v9, 0.0  ;;  %v4318_v10 = vmul.f32 0.2, %v4286_v9 }
 0x917   : > { %v3906_v36 = vsel %vm3874_vm7, %v3858_v60, %v3890_v43  ;;  %v3905_v37 = vsel %vm3873_vm8, %v3857_v45, %v3889_v0  ;;  %v3557_v60 = vadd.f32 %v10228_v39, %v10122_v13  ;;  %v10248_v43 = vpop.permute.xlu0 %4255  ;;  %vm4303_vm11 = vcmp.gt.f32.partialorder %v4287_v32, 0.0 }
 0x918   : > { %v10237_v18 = vadd.f32 %v7998_v20, %v3906_v36  ;;  %v10242_v19 = vadd.f32 %v7999_v38, %v3905_v37  ;;  %v3908_v46 = vsel %vm3876_vm9, %v3860_v59, %v3892_v56  ;;  %v4334_v36 = vsel %vm4302_vm10, %v4286_v9, %v4318_v10  ;;  %v8000_v59 = vld [vmem:[%s11542_s1 + $0x18] sm:$0xff] }
 0x919   : > { %v4319_v45 = vmul.f32 0.2, %v4287_v32  ;;  %v4739_v0 = vmul.f32 0.2, %v4707_v35  ;;  %vm4723_vm12 = vcmp.gt.f32.partialorder %v4707_v35, 0.0  ;;  %v10255_v56 = vadd.f32 %v8000_v59, %v3908_v46 }
 0x91a   : > { %11820 = vst [vmem:[#allocation14_spill] sm:$0xff] %v10237_v18  ;;  %11821 = vst [vmem:[#allocation7_spill] sm:$0xff] %v10242_v19  ;;  %3939 = vmax.xlane.f32.xlu1 %v10237_v18  ;;  %3937 = vmax.xlane.f32.xlu0 %v10242_v19  ;;  %v10257_v5 = vadd.f32 %v7999_v38, %v4334_v36  ;;  %v4321_v37 = vmul.f32 0.2, %v4289_v8  ;;  %v4708_v54 = vadd.f32 %v10215_v27, %v10087_v12 }
 0x91b   : > { %v4335_v13 = vsel %vm4303_vm11, %v4287_v32, %v4319_v45  ;;  %v4755_v9 = vsel %vm4723_vm12, %v4707_v35, %v4739_v0  ;;  %vm4305_vm13 = vcmp.gt.f32.partialorder %v4289_v8, 0.0  ;;  %v3589_v10 = vmul.f32 0.2, %v3557_v60  ;;  %v10265_v46 = vpop.permute.xlu0 %4251 }
 0x91c   : > { %11822 = vst [vmem:[#allocation17_spill] sm:$0xff] %v10257_v5  ;;  %v3558_v18 = vadd.f32 %v10228_v39, %v10094_v44  ;;  %vm3573_vm14 = vcmp.gt.f32.partialorder %v3557_v60, 0.0  ;;  %v10267_v36 = vadd.f32 %v7998_v20, %v4335_v13  ;;  %v10269_v32 = vadd.f32 %v7999_v38, %v4755_v9 }
 0x91d   : > { %v4337_v45 = vsel %vm4305_vm13, %v4289_v8, %v4321_v37  ;;  %v4740_v19 = vmul.f32 0.2, %v4708_v54  ;;  %v4710_v12 = vadd.f32 %v10215_v27, %v10143_v51  ;;  %v3605_v35 = vsel %vm3573_vm14, %v3557_v60, %v3589_v10 }
 0x91e   : > { %3943 = vmax.xlane.f32.xlu1 %v10255_v56  ;;  %4366 = vmax.xlane.f32.xlu0 %v10257_v5  ;;  %11823 = vst [vmem:[#allocation36_spill] sm:$0xff] %v10269_v32  ;;  %vm4724_vm15 = vcmp.gt.f32.partialorder %v4708_v54, 0.0  ;;  %v3590_v0 = vmul.f32 0.2, %v3558_v18  ;;  %v3560_v44 = vadd.f32 %v10228_v39, %v10112_v15  ;;  %vm3574_vm0 = vcmp.gt.f32.partialorder %v3558_v18, 0.0 }
 0x91f   : > { %v10277_v13 = vadd.f32 %v8000_v59, %v4337_v45  ;;  %v10279_v9 = vadd.f32 %v7999_v38, %v3605_v35  ;;  %v4756_v8 = vsel %vm4724_vm15, %v4708_v54, %v4740_v19  ;;  %v4742_v37 = vmul.f32 0.2, %v4710_v12  ;;  %v10283_v5 = vpop.permute.xlu0 %4672 }
 0x920   : > { %v3862_v51 = vadd.f32 %v10207_v33, %v10166_v22  ;;  %v3606_v60 = vsel %vm3574_vm0, %v3558_v18, %v3590_v0  ;;  %vm4726_vm4 = vcmp.gt.f32.partialorder %v4710_v12, 0.0  ;;  %v3592_v10 = vmul.f32 0.2, %v3560_v44 }
 0x921   : > { %11824 = vst [vmem:[#allocation38_spill] sm:$0xff] %v10279_v9  ;;  %v3859_v15 = vadd.f32 %v10207_v33, %v10120_v6  ;;  %vm3576_vm5 = vcmp.gt.f32.partialorder %v3560_v44, 0.0  ;;  %v10289_v38 = vadd.f32 %v7998_v20, %v4756_v8  ;;  %v10291_v19 = vadd.f32 %v7998_v20, %v3606_v60 }
 0x922   : > { %4368 = vmax.xlane.f32.xlu1 %v10267_v36  ;;  %4787 = vmax.xlane.f32.xlu0 %v10269_v32  ;;  %v4758_v54 = vsel %vm4726_vm4, %v4710_v12, %v4742_v37  ;;  %v3894_v45 = vmul.f32 0.2, %v3862_v51  ;;  %v4291_v22 = vadd.f32 %v10211_v47, %v10170_v28  ;;  %v3608_v18 = vsel %vm3576_vm5, %v3560_v44, %v3592_v10 }
 0x923   : > { %11825 = vst [vmem:[#allocation37_spill] sm:$0xff] %v10289_v38  ;;  %11826 = vst [vmem:[#allocation34_spill] sm:$0xff] %v10291_v19  ;;  %vm3878_vm6 = vcmp.gt.f32.partialorder %v3862_v51, 0.0  ;;  %v3891_v35 = vmul.f32 0.2, %v3859_v15  ;;  %v4288_v6 = vadd.f32 %v10211_v47, %v10151_v30  ;;  %vm3875_vm7 = vcmp.gt.f32.partialorder %v3859_v15, 0.0  ;;  %v10299_v0 = vpop.permute.xlu0 %3834 }
 0x924   : > { %v10301_v20 = vadd.f32 %v8000_v59, %v4758_v54  ;;  %v10303_v12 = vadd.f32 %v8000_v59, %v3608_v18  ;;  %v3910_v8 = vsel %vm3878_vm6, %v3862_v51, %v3894_v45  ;;  %v4323_v37 = vmul.f32 0.2, %v4291_v22  ;;  %v8001_v59 = vld [vmem:[%s11542_s1 + $0x28] sm:$0xff] }
 0x925   : > { %v4712_v28 = vadd.f32 %v10215_v27, %v10127_v4  ;;  %v3907_v44 = vsel %vm3875_vm7, %v3859_v15, %v3891_v35  ;;  %vm4307_vm8 = vcmp.gt.f32.partialorder %v4291_v22, 0.0  ;;  %v4320_v60 = vmul.f32 0.2, %v4288_v6  ;;  %v8002_v4 = vld [vmem:[%s11542_s1 + $0x10] sm:$0xff] }
 0x926   : > { %4372 = vmax.xlane.f32.xlu1 %v10277_v13  ;;  %3637 = vmax.xlane.f32.xlu0 %v10279_v9  ;;  %11827 = vst [vmem:[#allocation44_spill] sm:$0xff] %v10301_v20  ;;  %11828 = vst [vmem:[#allocation22_spill] sm:$0xff] %v10303_v12  ;;  %v4709_v30 = vadd.f32 %v10215_v27, %v10157_v63  ;;  %vm4304_vm9 = vcmp.gt.f32.partialorder %v4288_v6, 0.0  ;;  %v10314_v51 = vadd.f32 %v8001_v59, %v3910_v8 }
 0x927   : > { %v10319_v10 = vadd.f32 %v8002_v4, %v3907_v44  ;;  %v4339_v15 = vsel %vm4307_vm8, %v4291_v22, %v4323_v37  ;;  %v4744_v54 = vmul.f32 0.2, %v4712_v28  ;;  %v3561_v63 = vadd.f32 %v10228_v39, %v10183_v24  ;;  %v10323_v45 = vpop.permute.xlu0 %4263 }
 0x928   : > { %v4336_v18 = vsel %vm4304_vm9, %v4288_v6, %v4320_v60  ;;  %vm4728_vm10 = vcmp.gt.f32.partialorder %v4712_v28, 0.0  ;;  %v4741_v35 = vmul.f32 0.2, %v4709_v30  ;;  %v3559_v8 = vadd.f32 %v10228_v39, %v10162_v21 }
 0x929   : > { %vm4725_vm11 = vcmp.gt.f32.partialorder %v4709_v30, 0.0  ;;  %v10329_v44 = vadd.f32 %v8001_v59, %v4339_v15  ;;  %v10331_v22 = vadd.f32 %v8002_v4, %v4336_v18  ;;  %v4760_v37 = vsel %vm4728_vm10, %v4712_v28, %v4744_v54 }
 0x92a   : > { %4789 = vmax.xlane.f32.xlu1 %v10289_v38  ;;  %3639 = vmax.xlane.f32.xlu0 %v10291_v19  ;;  %v3864_v24 = vadd.f32 %v10207_v33, %v10187_v57  ;;  %v4757_v6 = vsel %vm4725_vm11, %v4709_v30, %v4741_v35  ;;  %vm3577_vm12 = vcmp.gt.f32.partialorder %v3561_v63, 0.0  ;;  %v3591_v60 = vmul.f32 0.2, %v3559_v8 }
 0x92b   : > { %11829 = vst [vmem:[#allocation26_spill] sm:$0xff] %v10329_v44  ;;  %v3562_v21 = vadd.f32 %v10228_v39, %v10132_v3  ;;  %vm3575_vm13 = vcmp.gt.f32.partialorder %v3559_v8, 0.0  ;;  %v10339_v15 = vpop.permute.xlu0 %4259  ;;  %v10341_v18 = vadd.f32 %v8001_v59, %v4760_v37  ;;  %v10343_v28 = vadd.f32 %v8002_v4, %v4757_v6  ;;  %v8003_v37 = vld [vmem:[%s11542_s1 + $0x20] sm:$0xff] }
 0x92c   : > { %v3896_v19 = vmul.f32 0.2, %v3864_v24  ;;  %v4293_v57 = vadd.f32 %v10211_v47, %v10191_v17  ;;  %v3607_v30 = vsel %vm3575_vm13, %v3559_v8, %v3591_v60  ;;  %vm3880_vm14 = vcmp.gt.f32.partialorder %v3864_v24, 0.0 }
 0x92d   : > { %11830 = vst [vmem:[#allocation20_spill] sm:$0xff] %v10341_v18  ;;  %11831 = vst [vmem:[#allocation24_spill] sm:$0xff] %v10343_v28  ;;  %v3594_v35 = vmul.f32 0.2, %v3562_v21  ;;  %v3861_v3 = vadd.f32 %v10207_v33, %v10140_v1  ;;  %vm3578_vm15 = vcmp.gt.f32.partialorder %v3562_v21, 0.0  ;;  %v4714_v8 = vadd.f32 %v10215_v27, %v10147_v26 }
 0x92e   : > { %4793 = vmax.xlane.f32.xlu1 %v10301_v20  ;;  %3643 = vmax.xlane.f32.xlu0 %v10303_v12  ;;  %v3593_v12 = vmul.f32 0.2, %v3561_v63  ;;  %v3912_v17 = vsel %vm3880_vm14, %v3864_v24, %v3896_v19  ;;  %v4325_v6 = vmul.f32 0.2, %v4293_v57  ;;  %vm4309_vm0 = vcmp.gt.f32.partialorder %v4293_v57, 0.0  ;;  %v8004_v19 = vld [vmem:[%s11542_s1 + $0x38] sm:$0xff] }
 0x92f   : > { %v10360_v60 = vpop.permute.xlu0 %4680  ;;  %v3610_v1 = vsel %vm3578_vm15, %v3562_v21, %v3594_v35  ;;  %v3893_v9 = vmul.f32 0.2, %v3861_v3  ;;  %vm3877_vm4 = vcmp.gt.f32.partialorder %v3861_v3, 0.0  ;;  %v3563_v21 = vadd.f32 %v10228_v39, %v10203_v50 }
 0x930   : > { %v3609_v54 = vsel %vm3577_vm12, %v3561_v63, %v3593_v12  ;;  %v10356_v63 = vadd.f32 %v8002_v4, %v3607_v30  ;;  %v10369_v4 = vadd.f32 %v8004_v19, %v3912_v17  ;;  %v10371_v26 = vadd.f32 %v8001_v59, %v3610_v1 }
 0x931   : > { %v10354_v12 = vadd.f32 %v8003_v37, %v3609_v54  ;;  %v4341_v24 = vsel %vm4309_vm0, %v4293_v57, %v4325_v6  ;;  %v4746_v54 = vmul.f32 0.2, %v4714_v8  ;;  %v3909_v30 = vsel %vm3877_vm4, %v3861_v3, %v3893_v9 }
 0x932   : > { %3947 = vmax.xlane.f32.xlu1 %v10314_v51  ;;  %3941 = vmax.xlane.f32.xlu0 %v10319_v10  ;;  %11833 = vst [vmem:[#allocation27_spill] sm:$0xff] %v10356_v63  ;;  %11834 = vst [vmem:[#allocation21_spill] sm:$0xff] %v10371_v26  ;;  %vm4730_vm5 = vcmp.gt.f32.partialorder %v4714_v8, 0.0  ;;  %v4711_v35 = vadd.f32 %v10215_v27, %v10178_v16  ;;  %v10381_v59 = vadd.f32 %v8004_v19, %v4341_v24 }
 0x933   : > { %11832 = vst [vmem:[#allocation25_spill] sm:$0xff] %v10354_v12  ;;  %v10379_v17 = vpop.permute.xlu0 %3842  ;;  %v10383_v57 = vadd.f32 %v8003_v37, %v3909_v30  ;;  %v4762_v6 = vsel %vm4730_vm5, %v4714_v8, %v4746_v54  ;;  %v3595_v1 = vmul.f32 0.2, %v3563_v21  ;;  %v3866_v50 = vadd.f32 %v10207_v33, %v10224_v11 }
 0x934   : > { %11835 = vst [vmem:[#allocation23_spill] sm:$0xff] %v10381_v59  ;;  %vm3579_vm7 = vcmp.gt.f32.partialorder %v3563_v21, 0.0  ;;  %v4743_v3 = vmul.f32 0.2, %v4711_v35  ;;  %v3564_v16 = vadd.f32 %v10228_v39, %v10155_v55  ;;  %vm4727_vm8 = vcmp.gt.f32.partialorder %v4711_v35, 0.0 }
 0x935   : > { %v10391_v24 = vadd.f32 %v8004_v19, %v4762_v6  ;;  %v3611_v8 = vsel %vm3579_vm7, %v3563_v21, %v3595_v1  ;;  %v3898_v54 = vmul.f32 0.2, %v3866_v50  ;;  %v4295_v11 = vadd.f32 %v10211_v47, %v10248_v43  ;;  %v8005_v21 = vld [vmem:[%s11542_s1 + $0x30] sm:$0xff] }
 0x936   : > { %4376 = vmax.xlane.f32.xlu1 %v10329_v44  ;;  %4370 = vmax.xlane.f32.xlu0 %v10331_v22  ;;  %vm3882_vm9 = vcmp.gt.f32.partialorder %v3866_v50, 0.0  ;;  %v3863_v55 = vadd.f32 %v10207_v33, %v10160_v34  ;;  %vm3580_vm10 = vcmp.gt.f32.partialorder %v3564_v16, 0.0  ;;  %v10406_v6 = vadd.f32 %v8005_v21, %v3611_v8 }
 0x937   : > { %11836 = vst [vmem:[#allocation40_spill] sm:$0xff] %v10391_v24  ;;  %v3914_v1 = vsel %vm3882_vm9, %v3866_v50, %v3898_v54  ;;  %vm4311_vm11 = vcmp.gt.f32.partialorder %v4295_v11, 0.0 }
 0x938   : > { %11837 = vst [vmem:[#allocation32_spill] sm:$0xff] %v10406_v6  ;;  %v3895_v34 = vmul.f32 0.2, %v3863_v55  ;;  %vm3879_vm12 = vcmp.gt.f32.partialorder %v3863_v55, 0.0 }
 0x93a   : > { %4797 = vmax.xlane.f32.xlu1 %v10341_v18  ;;  %4791 = vmax.xlane.f32.xlu0 %v10343_v28  ;;  %v4290_v18 = vadd.f32 %v10211_v47, %v10174_v31 }
 0x93c   : > { %v4322_v31 = vmul.f32 0.2, %v4290_v18  ;;  %vm4306_vm6 = vcmp.gt.f32.partialorder %v4290_v18, 0.0 }
 0x93e   : > { %3645 = vmax.xlane.f32.xlu1 %v10354_v12  ;;  %3641 = vmax.xlane.f32.xlu0 %v10356_v63  ;;  %v4338_v9 = vsel %vm4306_vm6, %v4290_v18, %v4322_v31  ;;  %v4759_v18 = vsel %vm4727_vm8, %v4711_v35, %v4743_v3  ;;  %v3596_v31 = vmul.f32 0.2, %v3564_v16  ;;  %v4716_v35 = vadd.f32 %v10215_v27, %v10164_v25 }
 0x93f   : > { %v10393_v30 = vadd.f32 %v8003_v37, %v4338_v9  ;;  %v10408_v43 = vadd.f32 %v8003_v37, %v4759_v18  ;;  %v4327_v9 = vmul.f32 0.2, %v4295_v11  ;;  %v4292_v63 = vadd.f32 %v10211_v47, %v10195_v48  ;;  %v10421_v37 = vld [vmem:[%s11542_s1 + $0x48] sm:$0xff] }
 0x940   : > { %v3612_v3 = vsel %vm3580_vm10, %v3564_v16, %v3596_v31  ;;  %v10424_v25 = vadd.f32 %v10421_v37, %v3914_v1  ;;  %v4748_v54 = vmul.f32 0.2, %v4716_v35  ;;  %v3868_v48 = vadd.f32 %v10207_v33, %v10299_v0 }
 0x941   : > { %11838 = vst [vmem:[#allocation28_spill] sm:$0xff] %v10408_v43  ;;  %v10426_v50 = vadd.f32 %v8004_v19, %v3612_v3  ;;  %v4343_v16 = vsel %vm4311_vm11, %v4295_v11, %v4327_v9  ;;  %v3911_v18 = vsel %vm3879_vm12, %v3863_v55, %v3895_v34  ;;  %vm4732_vm13 = vcmp.gt.f32.partialorder %v4716_v35, 0.0 }
 0x942   : > { %3951 = vmax.xlane.f32.xlu1 %v10369_v4  ;;  %3647 = vmax.xlane.f32.xlu0 %v10371_v26  ;;  %v10397_v26 = vpop.permute.xlu0 %4271  ;;  %v4324_v31 = vmul.f32 0.2, %v4292_v63  ;;  %vm4308_vm14 = vcmp.gt.f32.partialorder %v4292_v63, 0.0  ;;  %v10435_v1 = vadd.f32 %v10421_v37, %v4343_v16  ;;  %v4297_v19 = vadd.f32 %v10211_v47, %v10323_v45 }
 0x943   : > { %11839 = vst [vmem:[#allocation39_spill] sm:$0xff] %v10426_v50  ;;  %v10439_v11 = vadd.f32 %v8005_v21, %v3911_v18  ;;  %v4764_v0 = vsel %vm4732_vm13, %v4716_v35, %v4748_v54  ;;  %v3900_v9 = vmul.f32 0.2, %v3868_v48  ;;  %vm3884_vm15 = vcmp.gt.f32.partialorder %v3868_v48, 0.0 }
 0x944   : > { %11840 = vst [vmem:[#allocation30_spill] sm:$0xff] %v10435_v1  ;;  %v4340_v55 = vsel %vm4308_vm14, %v4292_v63, %v4324_v31  ;;  %v10446_v16 = vadd.f32 %v10421_v37, %v4764_v0  ;;  %v4329_v45 = vmul.f32 0.2, %v4297_v19  ;;  %v4718_v54 = vadd.f32 %v10215_v27, %v10176_v52 }
 0x945   : > { %v10448_v18 = vadd.f32 %v8005_v21, %v4340_v55  ;;  %v3916_v35 = vsel %vm3884_vm15, %v3868_v48, %v3900_v9  ;;  %vm4313_vm4 = vcmp.gt.f32.partialorder %v4297_v19, 0.0  ;;  %v10459_v55 = vld [vmem:[%s11542_s1 + $0x58] sm:$0xff]  ;;  %v3870_v52 = vadd.f32 %v10207_v33, %v10379_v17  ;;  %v10478_v17 = vld [vmem:[%s11542_s1 + $0x40] sm:$0xff] }
 0x946   : > { %4380 = vmax.xlane.f32.xlu1 %v10381_v59  ;;  %3945 = vmax.xlane.f32.xlu0 %v10383_v57  ;;  %v10416_v8 = vpop.permute.xlu0 %4267  ;;  %11841 = vst [vmem:[#allocation33_spill] sm:$0xff] %v10446_v16  ;;  %v10462_v48 = vadd.f32 %v10459_v55, %v3916_v35  ;;  %v4345_v9 = vsel %vm4313_vm4, %v4297_v19, %v4329_v45  ;;  %vm4734_vm6 = vcmp.gt.f32.partialorder %v4718_v54, 0.0 }
 0x947   : > { %v10473_v35 = vadd.f32 %v10459_v55, %v4345_v9  ;;  %v3902_v12 = vmul.f32 0.2, %v3870_v52  ;;  %vm3886_vm8 = vcmp.gt.f32.partialorder %v3870_v52, 0.0 }
 0x949   : > { %11843 = vst [vmem:[#allocation31_spill] sm:$0xff] %v10473_v35 }
 0x94a   : > { %4801 = vmax.xlane.f32.xlu1 %v10391_v24  ;;  %4374 = vmax.xlane.f32.xlu0 %v10393_v30  ;;  %v4689_v3 = vpop.permute.xlu0 %4688 }
 0x94e   : > { %3649 = vmax.xlane.f32.xlu1 %v10406_v6  ;;  %4795 = vmax.xlane.f32.xlu0 %v10408_v43  ;;  %v4713_v6 = vadd.f32 %v10215_v27, %v10199_v58  ;;  %v3865_v58 = vadd.f32 %v10207_v33, %v10172_v29  ;;  %v4294_v29 = vadd.f32 %v10211_v47, %v10265_v46  ;;  %v3851_v0 = vpop.permute.xlu0 %3850 }
 0x950   : > { %v4745_v34 = vmul.f32 0.2, %v4713_v6  ;;  %vm4729_vm0 = vcmp.gt.f32.partialorder %v4713_v6, 0.0  ;;  %v3897_v31 = vmul.f32 0.2, %v3865_v58  ;;  %vm3881_vm5 = vcmp.gt.f32.partialorder %v3865_v58, 0.0 }
 0x951   : > { %vm4310_vm7 = vcmp.gt.f32.partialorder %v4294_v29, 0.0 }
 0x952   : > { %3955 = vmax.xlane.f32.xlu1 %v10424_v25  ;;  %3651 = vmax.xlane.f32.xlu0 %v10426_v50  ;;  %v4761_v63 = vsel %vm4729_vm0, %v4713_v6, %v4745_v34  ;;  %v4750_v34 = vmul.f32 0.2, %v4718_v54  ;;  %v3913_v46 = vsel %vm3881_vm5, %v3865_v58, %v3897_v31  ;;  %v4326_v50 = vmul.f32 0.2, %v4294_v29 }
 0x953   : > { %v10466_v6 = vadd.f32 %v8005_v21, %v4761_v63  ;;  %v10481_v21 = vadd.f32 %v10478_v17, %v3913_v46  ;;  %v4720_v58 = vadd.f32 %v10215_v27, %v10189_v62  ;;  %v3867_v31 = vadd.f32 %v10207_v33, %v10185_v40 }
 0x954   : > { %v4766_v19 = vsel %vm4734_vm6, %v4718_v54, %v4750_v34  ;;  %v4342_v45 = vsel %vm4310_vm7, %v4294_v29, %v4326_v50  ;;  %v4719_v54 = vadd.f32 %v10215_v27, %v4689_v3  ;;  %v3918_v62 = vsel %vm3886_vm8, %v3870_v52, %v3902_v12  ;;  %v10505_v3 = vld [vmem:[%s11542_s1 + $0x68] sm:$0xff] }
 0x955   : > { %11842 = vst [vmem:[#allocation29_spill] sm:$0xff] %v10466_v6  ;;  %v10490_v9 = vadd.f32 %v10459_v55, %v4766_v19  ;;  %v10494_v34 = vadd.f32 %v10478_v17, %v4342_v45  ;;  %v4752_v46 = vmul.f32 0.2, %v4720_v58  ;;  %v4296_v50 = vadd.f32 %v10211_v47, %v10339_v15 }
 0x956   : > { %4384 = vmax.xlane.f32.xlu1 %v10435_v1  ;;  %3949 = vmax.xlane.f32.xlu0 %v10439_v11  ;;  %vm4736_vm10 = vcmp.gt.f32.partialorder %v4720_v58, 0.0  ;;  %v3899_v40 = vmul.f32 0.2, %v3867_v31  ;;  %vm3883_vm11 = vcmp.gt.f32.partialorder %v3867_v31, 0.0  ;;  %v10508_v12 = vadd.f32 %v10505_v3, %v3918_v62 }
 0x957   : > { %11844 = vst [vmem:[#allocation42_spill] sm:$0xff] %v10490_v9  ;;  %v4751_v52 = vmul.f32 0.2, %v4719_v54  ;;  %v3872_v15 = vadd.f32 %v10207_v33, %v3851_v0  ;;  %v4768_v45 = vsel %vm4736_vm10, %v4720_v58, %v4752_v46  ;;  %vm4735_vm12 = vcmp.gt.f32.partialorder %v4719_v54, 0.0  ;;  %v10525_v58 = vld [vmem:[%s11542_s1 + $0x50] sm:$0xff] }
 0x958   : > { %v3915_v24 = vsel %vm3883_vm11, %v3867_v31, %v3899_v40  ;;  %vm4312_vm13 = vcmp.gt.f32.partialorder %v4296_v50, 0.0  ;;  %v10519_v62 = vadd.f32 %v10505_v3, %v4768_v45  ;;  %v4299_v31 = vadd.f32 %v10211_v47, %v10397_v26 }
 0x959   : > { %v3904_v20 = vmul.f32 0.2, %v3872_v15  ;;  %v4767_v46 = vsel %vm4735_vm12, %v4719_v54, %v4751_v52  ;;  %vm3888_vm14 = vcmp.gt.f32.partialorder %v3872_v15, 0.0 }
 0x95a   : > { %4805 = vmax.xlane.f32.xlu1 %v10446_v16  ;;  %4378 = vmax.xlane.f32.xlu0 %v10448_v18  ;;  %v4715_v16 = vadd.f32 %v10215_v27, %v10283_v5  ;;  %v4280_v5 = vpop.permute.xlu0 %4279  ;;  %11846 = vst [vmem:[#allocation45_spill] sm:$0xff] %v10519_v62  ;;  %vm4315_vm4 = vcmp.gt.f32.partialorder %v4299_v31, 0.0 }
 0x95b   : > { %v4301_v0 = vadd.f32 %v10211_v47, %v4280_v5  ;;  %v10537_v5 = vld [vmem:[%s11542_s1 + $0x60] sm:$0xff]  ;;  %v3920_v38 = vsel %vm3888_vm14, %v3872_v15, %v3904_v20 }
 0x95c   : > { %v4747_v63 = vmul.f32 0.2, %v4715_v16  ;;  %vm4731_vm9 = vcmp.gt.f32.partialorder %v4715_v16, 0.0 }
 0x95d   : > { %v4333_v54 = vmul.f32 0.2, %v4301_v0  ;;  %vm4317_vm0 = vcmp.gt.f32.partialorder %v4301_v0, 0.0 }
 0x95e   : > { %3959 = vmax.xlane.f32.xlu1 %v10462_v48  ;;  %4799 = vmax.xlane.f32.xlu0 %v10466_v6  ;;  %v4763_v29 = vsel %vm4731_vm9, %v4715_v16, %v4747_v63  ;;  %v10500_v19 = vpop.permute.xlu0 %4275  ;;  %v4328_v63 = vmul.f32 0.2, %v4296_v50 }
 0x95f   : > { %v10512_v16 = vadd.f32 %v10478_v17, %v4763_v29 }
 0x960   : > { %v4344_v45 = vsel %vm4312_vm13, %v4296_v50, %v4328_v63  ;;  %v3869_v63 = vadd.f32 %v10207_v33, %v10193_v41 }
 0x961   : > { %11845 = vst [vmem:[#allocation41_spill] sm:$0xff] %v10512_v16  ;;  %v10544_v26 = vadd.f32 %v10525_v58, %v4344_v45  ;;  %v4349_v45 = vsel %vm4317_vm0, %v4301_v0, %v4333_v54 }
 0x962   : > { %4388 = vmax.xlane.f32.xlu1 %v10473_v35  ;;  %3953 = vmax.xlane.f32.xlu0 %v10481_v21  ;;  %v4697_v40 = vpop.permute.xlu0 %4696  ;;  %vm3885_vm6 = vcmp.gt.f32.partialorder %v3869_v63, 0.0 }
 0x963   : > { %v4721_v52 = vadd.f32 %v10215_v27, %v4697_v40 }
 0x965   : > { %v4753_v20 = vmul.f32 0.2, %v4721_v52  ;;  %vm4737_vm5 = vcmp.gt.f32.partialorder %v4721_v52, 0.0 }
 0x966   : > { %4809 = vmax.xlane.f32.xlu1 %v10490_v9  ;;  %4382 = vmax.xlane.f32.xlu0 %v10494_v34  ;;  %v4717_v9 = vadd.f32 %v10215_v27, %v10360_v60  ;;  %v10528_v60 = vadd.f32 %v10525_v58, %v3915_v24  ;;  %v10540_v24 = vadd.f32 %v10537_v5, %v4767_v46  ;;  %v10553_v46 = vld [vmem:[%s11542_s1 + $0x78] sm:$0xff] }
 0x967   : > { %v10556_v40 = vadd.f32 %v10553_v46, %v3920_v38 }
 0x968   : > { %v4749_v29 = vmul.f32 0.2, %v4717_v9  ;;  %vm4733_vm15 = vcmp.gt.f32.partialorder %v4717_v9, 0.0  ;;  %11847 = vst [vmem:[#allocation43_spill] sm:$0xff] %v10540_v24 }
 0x96a   : > { %3963 = vmax.xlane.f32.xlu1 %v10508_v12  ;;  %4803 = vmax.xlane.f32.xlu0 %v10512_v16  ;;  %v4765_v50 = vsel %vm4733_vm15, %v4717_v9, %v4749_v29  ;;  %v4298_v9 = vadd.f32 %v10211_v47, %v10416_v8  ;;  %v3901_v29 = vmul.f32 0.2, %v3869_v63  ;;  %v4722_v8 = vadd.f32 %v10215_v27, %v10197_v61 }
 0x96b   : > { %v10559_v15 = vadd.f32 %v10525_v58, %v4765_v50  ;;  %v4769_v50 = vsel %vm4737_vm5, %v4721_v52, %v4753_v20  ;;  %v3871_v61 = vadd.f32 %v10207_v33, %v10201_v2  ;;  %v4300_v20 = vadd.f32 %v10211_v47, %v10500_v19 }
 0x96c   : > { %v4330_v16 = vmul.f32 0.2, %v4298_v9  ;;  %v3917_v0 = vsel %vm3885_vm6, %v3869_v63, %v3901_v29  ;;  %vm4314_vm7 = vcmp.gt.f32.partialorder %v4298_v9, 0.0  ;;  %v4754_v63 = vmul.f32 0.2, %v4722_v8 }
 0x96d   : > { %11848 = vst [vmem:[#allocation19_spill] sm:$0xff] %v10559_v15  ;;  %v10584_v54 = vadd.f32 %v10537_v5, %v3917_v0  ;;  %vm4738_vm8 = vcmp.gt.f32.partialorder %v4722_v8, 0.0  ;;  %vm3887_vm9 = vcmp.gt.f32.partialorder %v3871_v61, 0.0  ;;  %vm4316_vm10 = vcmp.gt.f32.partialorder %v4300_v20, 0.0 }
 0x96e   : > { %4813 = vmax.xlane.f32.xlu1 %v10519_v62  ;;  %3957 = vmax.xlane.f32.xlu0 %v10528_v60  ;;  %v4331_v62 = vmul.f32 0.2, %v4299_v31  ;;  %v4346_v52 = vsel %vm4314_vm7, %v4298_v9, %v4330_v16  ;;  %v4332_v9 = vmul.f32 0.2, %v4300_v20  ;;  %vm5791_vm6 = vcmask 256000  }
 0x96f   : > { %v10591_v27 = vadd.f32 %v10537_v5, %v4346_v52  ;;  %vm5822_vm7 = vcmask 261125  }
 0x970   : > { %v4347_v41 = vsel %vm4315_vm4, %v4299_v31, %v4331_v62  ;;  %v10578_v62 = vld [vmem:[%s11542_s1 + $0x70] sm:$0xff]  ;;  %v4348_v33 = vsel %vm4316_vm10, %v4300_v20, %v4332_v9  ;;  %vm5700_vm10 = vcmask 254976  }
 0x971   : > { %v10569_v38 = vadd.f32 %v10505_v3, %v4347_v41  ;;  %v10581_v31 = vadd.f32 %v10578_v62, %v4769_v50  ;;  %v3903_v41 = vmul.f32 0.2, %v3871_v61  ;;  %v10605_v47 = vadd.f32 %v10578_v62, %v4348_v33 }
 0x972   : > { %4811 = vmax.xlane.f32.xlu1 %v10540_v24  ;;  %4386 = vmax.xlane.f32.xlu0 %v10544_v26  ;;  %v10566_v24 = vadd.f32 %v10553_v46, %v4349_v45  ;;  %v4770_v45 = vsel %vm4738_vm8, %v4722_v8, %v4754_v63  ;;  %vm5698_vm8 = vcmask 261124  }
 0x973   : > { %11850 = vst [vmem:[#allocation47_spill] sm:$0xff] %v10569_v38  ;;  %11851 = vst [vmem:[#allocation48_spill] sm:$0xff] %v10581_v31  ;;  %v10597_v16 = vadd.f32 %v10553_v46, %v4770_v45  ;;  %v3919_v29 = vsel %vm3887_vm9, %v3871_v61, %v3903_v41  ;;  %vm5689_vm9 = vcmask 257024  }
 0x974   : > { %11849 = vst [vmem:[#allocation46_spill] sm:$0xff] %v10566_v24  ;;  %v10601_v2 = vadd.f32 %v10578_v62, %v3919_v29  ;;  %v3566_v29 = vadd.f32 %v10228_v39, %v10168_v53 }
 0x975   : > { %11852 = vst [vmem:[#allocation49_spill] sm:$0xff] %v10597_v16 }
 0x976   : > { %3967 = vmax.xlane.f32.xlu1 %v10556_v40  ;;  %4807 = vmax.xlane.f32.xlu0 %v10559_v15  ;;  %vm3582_vm11 = vcmp.gt.f32.partialorder %v3566_v29, 0.0 }
 0x97a   : > { %4396 = vmax.xlane.f32.xlu1 %v10566_v24  ;;  %4392 = vmax.xlane.f32.xlu0 %v10569_v38 }
 0x97e   : > { %4815 = vmax.xlane.f32.xlu1 %v10581_v31  ;;  %3961 = vmax.xlane.f32.xlu0 %v10584_v54 }
 0x982   : > { %4390 = vmax.xlane.f32.xlu0 %v10591_v27 }
 0x986   : > { %4817 = vmax.xlane.f32.xlu0 %v10597_v16 }
 0x98a   : > { %3965 = vmax.xlane.f32.xlu0 %v10601_v2 }
 0x98e   : > { %4394 = vmax.xlane.f32.xlu0 %v10605_v47 }
 0x98f   : > { %4107 = vrot.lane.b32.xlu1 %v9941_v7, %s11801_s18 }
 0x9a4   : > { %3515 = vperm.xlu0 %7379, %v10000_v23  }
 0x9a7   : > { %v10611_v19 = vpop.xlane.xlu1 %3939  ;;  %v10613_v50 = vpop.xlane.xlu0 %3937 }
 0x9a8   : > { %3525 = vperm.xlu0 %7379, %v10011_v49  }
 0x9ab   : > { %v10616_v0 = vpop.xlane.xlu1 %3943  ;;  %v10618_v8 = vpop.xlane.xlu0 %4366 }
 0x9ac   : > { %4109 = vrot.lane.b32.xlu0 %v9949_v42, %s11801_s18 }
 0x9af   : > { %v10622_v52 = vpop.xlane.xlu1 %4368  ;;  %v10624_v63 = vpop.xlane.xlu0 %4787 }
 0x9b0   : > { %11853 = vst [vmem:[#allocation50_spill] sm:$0xff] %v10624_v63 }
 0x9b3   : > { %v10626_v61 = vpop.xlane.xlu1 %4372  ;;  %v10628_v23 = vpop.xlane.xlu0 %3637 }
 0x9b4   : > { %11854 = vst [vmem:[#allocation51_spill] sm:$0xff] %v10628_v23  ;;  %v3598_v23 = vmul.f32 0.2, %v3566_v29 }
 0x9b7   : > { %v10630_v20 = vpop.xlane.xlu1 %4789  ;;  %v10632_v45 = vpop.xlane.xlu0 %3639 }
 0x9b8   : > { %11855 = vst [vmem:[#allocation52_spill] sm:$0xff] %v10630_v20  ;;  %11856 = vst [vmem:[#allocation53_spill] sm:$0xff] %v10632_v45 }
 0x9bb   : > { %v10634_v49 = vpop.xlane.xlu1 %4793  ;;  %v10636_v41 = vpop.xlane.xlu0 %3643 }
 0x9bc   : > { %11857 = vst [vmem:[#allocation54_spill] sm:$0xff] %v10634_v49  ;;  %11858 = vst [vmem:[#allocation55_spill] sm:$0xff] %v10636_v41  ;;  %v3614_v49 = vsel %vm3582_vm11, %v3566_v29, %v3598_v23  ;;  %vm5709_vm11 = vcmask 261122  }
 0x9bd   : > { %v10652_v24 = vadd.f32 %v10421_v37, %v3614_v49 }
 0x9bf   : > { %v3948_v9 = vpop.xlane.xlu1 %3947  ;;  %v10641_v16 = vpop.xlane.xlu0 %3941  ;;  %11861 = vst [vmem:[#allocation58_spill] sm:$0xff] %v10652_v24 }
 0x9c0   : > { %v3974_v33 = vsub.f32 %v10314_v51, %v3948_v9 }
 0x9c2   : > { %v3995_v31 = vmul.f32 1.442695, %v3974_v33 }
 0x9c3   : > { %v10643_v15 = vpop.xlane.xlu1 %4376  ;;  %v10645_v20 = vpop.xlane.xlu0 %4370 }
 0x9c4   : > { %7678 = vpow2.f32 %v3995_v31 }
 0x9c7   : > { %v10647_v45 = vpop.xlane.xlu1 %4797  ;;  %v10649_v41 = vpop.xlane.xlu0 %4791 }
 0x9c8   : > { %11859 = vst [vmem:[#allocation56_spill] sm:$0xff] %v10647_v45  ;;  %11860 = vst [vmem:[#allocation57_spill] sm:$0xff] %v10649_v41  ;;  %v11884_v41 = vld [vmem:[#allocation7_spill] sm:$0xff] }
 0x9c9   : > { %v3969_v32 = vsub.f32 %v11884_v41, %v10613_v50  ;;  %v11887_v41 = vld [vmem:[#allocation9_spill] sm:$0xff] }
 0x9cb   : > { %v10654_v53 = vpop.xlane.xlu1 %3645  ;;  %v10656_v51 = vpop.xlane.xlu0 %3641  ;;  %3655 = vmax.xlane.f32.xlu0 %v10652_v24 }
 0x9cc   : > { %11862 = vst [vmem:[#allocation59_spill] sm:$0xff] %v10654_v53  ;;  %11863 = vst [vmem:[#allocation60_spill] sm:$0xff] %v10656_v51 }
 0x9ce   : > { %v10659_v9 = vpop.eup %7678 }
 0x9cf   : > { %v3952_v31 = vpop.xlane.xlu1 %3951  ;;  %v10662_v38 = vpop.xlane.xlu0 %3647  ;;  %4027 = vadd.xlane.f32.xlu0 %v10659_v9 }
 0x9d0   : > { %v3976_v33 = vsub.f32 %v10369_v4, %v3952_v31  ;;  %11864 = vst [vmem:[#allocation61_spill] sm:$0xff] %v10662_v38 }
 0x9d2   : > { %v3999_v23 = vmul.f32 1.442695, %v3976_v33 }
 0x9d3   : > { %v10665_v29 = vpop.xlane.xlu1 %4380  ;;  %v10667_v37 = vpop.xlane.xlu0 %3945 }
 0x9d4   : > { %11865 = vst [vmem:[#allocation62_spill] sm:$0xff] %v10665_v29  ;;  %7680 = vpow2.f32 %v3999_v23 }
 0x9d7   : > { %v10669_v49 = vpop.xlane.xlu1 %4801  ;;  %v10671_v51 = vpop.xlane.xlu0 %4374 }
 0x9d8   : > { %11866 = vst [vmem:[#allocation63_spill] sm:$0xff] %v10669_v49 }
 0x9db   : > { %v10673_v24 = vpop.xlane.xlu1 %3649  ;;  %v10675_v53 = vpop.xlane.xlu0 %4795 }
 0x9dc   : > { %11867 = vst [vmem:[#allocation64_spill] sm:$0xff] %v10673_v24  ;;  %11868 = vst [vmem:[#allocation65_spill] sm:$0xff] %v10675_v53 }
 0x9de   : > { %v10677_v45 = vpop.eup %7680 }
 0x9df   : > { %v3956_v4 = vpop.xlane.xlu1 %3955  ;;  %4031 = vadd.xlane.f32.xlu0 %v10677_v45  ;;  %v10680_v31 = vpop.xlane.xlu0 %3651 }
 0x9e0   : > { %11869 = vst [vmem:[#allocation66_spill] sm:$0xff] %v10680_v31  ;;  %v3978_v38 = vsub.f32 %v10424_v25, %v3956_v4 }
 0x9e2   : > { %v4003_v43 = vmul.f32 1.442695, %v3978_v38 }
 0x9e3   : > { %v10682_v33 = vpop.xlane.xlu1 %4384  ;;  %v3950_v23 = vpop.xlane.xlu0 %3949 }
 0x9e4   : > { %11870 = vst [vmem:[#allocation67_spill] sm:$0xff] %v10682_v33  ;;  %v3975_v49 = vsub.f32 %v10439_v11, %v3950_v23 }
 0x9e6   : > { %v3997_v42 = vmul.f32 1.442695, %v3975_v49 }
 0x9e7   : > { %v10686_v6 = vpop.xlane.xlu1 %4805  ;;  %v10688_v24 = vpop.xlane.xlu0 %4378 }
 0x9e8   : > { %11871 = vst [vmem:[#allocation68_spill] sm:$0xff] %v10686_v6  ;;  %7682 = vpow2.f32 %v3997_v42 }
 0x9e9   : > { %7684 = vpow2.f32 %v4003_v43 }
 0x9eb   : > { %v3960_v53 = vpop.xlane.xlu1 %3959  ;;  %v10691_v1 = vpop.xlane.xlu0 %4799 }
 0x9ec   : > { %v3980_v35 = vsub.f32 %v10462_v48, %v3960_v53  ;;  %11872 = vst [vmem:[#allocation69_spill] sm:$0xff] %v10691_v1 }
 0x9ee   : > { %v4007_v31 = vmul.f32 1.442695, %v3980_v35 }
 0x9ef   : > { %v10693_v33 = vpop.xlane.xlu1 %4388  ;;  %v10695_v25 = vpop.xlane.xlu0 %3953 }
 0x9f0   : > { %11873 = vst [vmem:[#allocation70_spill] sm:$0xff] %v10693_v33  ;;  %7686 = vpow2.f32 %v4007_v31 }
 0x9f2   : > { %v10697_v11 = vpop.eup %7682 }
 0x9f3   : > { %v10699_v49 = vpop.xlane.xlu1 %4809  ;;  %v10701_v4 = vpop.xlane.xlu0 %4382  ;;  %4029 = vadd.xlane.f32.xlu0 %v10697_v11 }
 0x9f4   : > { %11874 = vst [vmem:[#allocation71_spill] sm:$0xff] %v10699_v49  ;;  %v10704_v42 = vpop.eup %7684 }
 0x9f7   : > { %v3964_v48 = vpop.xlane.xlu1 %3963  ;;  %v10707_v43 = vpop.xlane.xlu0 %4803  ;;  %4035 = vadd.xlane.f32.xlu0 %v10704_v42 }
 0x9f8   : > { %v3982_v38 = vsub.f32 %v10508_v12, %v3964_v48  ;;  %11875 = vst [vmem:[#allocation72_spill] sm:$0xff] %v10707_v43 }
 0x9fa   : > { %v10710_v35 = vpop.eup %7686  ;;  %v4011_v53 = vmul.f32 1.442695, %v3982_v38 }
 0x9fb   : > { %v10712_v31 = vpop.xlane.xlu1 %4813  ;;  %v10714_v23 = vpop.xlane.xlu0 %3957  ;;  %4039 = vadd.xlane.f32.xlu0 %v10710_v35 }
 0x9fc   : > { %11876 = vst [vmem:[#allocation73_spill] sm:$0xff] %v10712_v31  ;;  %7688 = vpow2.f32 %v4011_v53  ;;  %v3568_v31 = vadd.f32 %v10228_v39, %v10181_v14 }
 0x9fe   : > { %vm3584_vm12 = vcmp.gt.f32.partialorder %v3568_v31, 0.0 }
 0x9ff   : > { %v10717_v49 = vpop.xlane.xlu1 %4811  ;;  %v10719_v6 = vpop.xlane.xlu0 %4386 }
 0xa00   : > { %11877 = vst [vmem:[#allocation74_spill] sm:$0xff] %v10717_v49 }
 0xa03   : > { %v3968_v1 = vpop.xlane.xlu1 %3967  ;;  %v10722_v48 = vpop.xlane.xlu0 %4807 }
 0xa04   : > { %v3984_v12 = vsub.f32 %v10556_v40, %v3968_v1  ;;  %11878 = vst [vmem:[#allocation75_spill] sm:$0xff] %v10722_v48  ;;  %v3600_v1 = vmul.f32 0.2, %v3568_v31 }
 0xa06   : > { %v10724_v43 = vpop.eup %7688  ;;  %v4015_v33 = vmul.f32 1.442695, %v3984_v12 }
 0xa07   : > { %v10726_v38 = vpop.xlane.xlu1 %4396  ;;  %4043 = vadd.xlane.f32.xlu0 %v10724_v43  ;;  %v10729_v53 = vpop.xlane.xlu0 %4392 }
 0xa08   : > { %11879 = vst [vmem:[#allocation76_spill] sm:$0xff] %v10726_v38  ;;  %7690 = vpow2.f32 %v4015_v33  ;;  %11880 = vst [vmem:[#allocation77_spill] sm:$0xff] %v10729_v53  ;;  %v3616_v38 = vsel %vm3584_vm12, %v3568_v31, %v3600_v1  ;;  %v3985_v31 = vmul.f32 1.442695, %v3969_v32  ;;  %vm5800_vm12 = vcmask 261123  }
 0xa09   : > { %v10745_v14 = vadd.f32 %v10459_v55, %v3616_v38  ;;  %v3972_v38 = vsub.f32 %v10255_v56, %v10616_v0 }
 0xa0a   : > { %7692 = vpow2.f32 %v3985_v31 }
 0xa0b   : > { %v10733_v49 = vpop.xlane.xlu1 %4815  ;;  %v10735_v28 = vpop.xlane.xlu0 %3961  ;;  %11883 = vst [vmem:[#allocation80_spill] sm:$0xff] %v10745_v14 }
 0xa0c   : > { %11881 = vst [vmem:[#allocation78_spill] sm:$0xff] %v10733_v49 }
 0xa0f   : > { %v4108_v40 = vpop.permute.xlu1 %4107  ;;  %v10737_v48 = vpop.xlane.xlu0 %4390 }
 0xa10   : > { %6807 = vmatprep.subr.bf16.mxu0 %v4108_v40 }
 0xa11   : > { %6808 = vmatpush3.bf16.msra.mxu0 %v4108_v40  ;;  %v11885_v40 = vld [vmem:[#allocation14_spill] sm:$0xff] }
 0xa12   : > { %v10739_v12 = vpop.eup %7690  ;;  %v3970_v63 = vsub.f32 %v11885_v40, %v10611_v19 }
 0xa13   : > { %4047 = vadd.xlane.f32.xlu0 %v10739_v12  ;;  %v10742_v33 = vpop.xlane.xlu0 %4817 }
 0xa14   : > { %11882 = vst [vmem:[#allocation79_spill] sm:$0xff] %v10742_v33  ;;  %v3987_v29 = vmul.f32 1.442695, %v3970_v63  ;;  %v3971_v63 = vsub.f32 %v10319_v10, %v10641_v16  ;;  %v3977_v16 = vsub.f32 %v10481_v21, %v10695_v25  ;;  %v3981_v21 = vsub.f32 %v10584_v54, %v10735_v28 }
 0xa16   : > { %7694 = vpow2.f32 %v3987_v29  ;;  %v11889_v29 = vld [vmem:[#allocation16_spill] sm:$0xff] }
 0xa17   : > { %3659 = vmax.xlane.f32.xlu0 %v10745_v14  ;;  %v3966_v49 = vpop.xlane.xlu0 %3965 }
 0xa1b   : > { %v10748_v53 = vpop.xlane.xlu0 %4394 }
 0xa23   : > { %v3516_v59 = vpop.permute.xlu0 %3515 }
 0xa24   : > { %v3565_v1 = vadd.f32 %v10228_v39, %v3516_v59  ;;  %v3991_v59 = vmul.f32 1.442695, %v3972_v38 }
 0xa26   : > { %vm3581_vm13 = vcmp.gt.f32.partialorder %v3565_v1, 0.0  ;;  %v3597_v33 = vmul.f32 0.2, %v3565_v1  ;;  %7696 = vpow2.f32 %v3991_v59  ;;  %v11894_v59 = vld [vmem:[#allocation17_spill] sm:$0xff] }
 0xa27   : > { %v3526_v55 = vpop.permute.xlu0 %3525 }
 0xa28   : > { %v3567_v14 = vadd.f32 %v10228_v39, %v3526_v55  ;;  %v3613_v44 = vsel %vm3581_vm13, %v3565_v1, %v3597_v33  ;;  %v10772_v33 = vpop.eup %7692  ;;  %v4399_v1 = vsub.f32 %v10267_v36, %v10622_v52  ;;  %v4009_v55 = vmul.f32 1.442695, %v3981_v21  ;;  %v11892_v52 = vld [vmem:[#allocation11_spill] sm:$0xff] }
 0xa29   : > { %v10759_v50 = vadd.f32 %v10478_v17, %v3613_v44  ;;  %v3989_v44 = vmul.f32 1.442695, %v3971_v63  ;;  %v3973_v17 = vsub.f32 %v10383_v57, %v10667_v37  ;;  %v4001_v57 = vmul.f32 1.442695, %v3977_v16 }
 0xa2a   : > { %vm3583_vm14 = vcmp.gt.f32.partialorder %v3567_v14, 0.0  ;;  %v3599_v19 = vmul.f32 0.2, %v3567_v14  ;;  %v3979_v37 = vsub.f32 %v10528_v60, %v10714_v23  ;;  %v3983_v60 = vsub.f32 %v10601_v2, %v3966_v49  ;;  %v11893_v49 = vld [vmem:[#allocation15_spill] sm:$0xff] }
 0xa2b   : > { %11886 = vst [vmem:[#allocation7_spill] sm:$0xff] %v10759_v50  ;;  %3653 = vmax.xlane.f32.xlu1 %v10759_v50  ;;  %v4110_v32 = vpop.permute.xlu0 %4109  ;;  %7698 = vpow2.f32 %v3989_v44  ;;  %v3993_v10 = vmul.f32 1.442695, %v3973_v17  ;;  %v4416_v38 = vmul.f32 1.442695, %v4399_v1  ;;  %v4398_v63 = vsub.f32 %v11894_v59, %v10618_v8 }
 0xa2c   : > { %6809 = vmatprep.subr.bf16.mxu0 %v4110_v32  ;;  %v3615_v56 = vsel %vm3583_vm14, %v3567_v14, %v3599_v19  ;;  %v10779_v14 = vpop.eup %7694  ;;  %v4005_v31 = vmul.f32 1.442695, %v3979_v37  ;;  %v4013_v19 = vmul.f32 1.442695, %v3983_v60  ;;  %v4400_v8 = vsub.f32 %v10331_v22, %v10645_v20 }
 0xa2d   : > { %3535 = vperm.xlu0 %7379, %v11887_v41   ;;  %6810 = vmatpush3.bf16.msra.mxu0 %v4110_v32  ;;  %v10766_v0 = vadd.f32 %v10525_v58, %v3615_v56  ;;  %v11891_v58 = vld [vmem:[#allocation8_spill] sm:$0xff]  ;;  %7700 = vpow2.f32 %v3993_v10  ;;  %v4414_v41 = vmul.f32 1.442695, %v4398_v63  ;;  %v4402_v50 = vsub.f32 %v10393_v30, %v10671_v51 }
 0xa2e   : > { %7702 = vpow2.f32 %v4001_v57  ;;  %v4418_v1 = vmul.f32 1.442695, %v4400_v8  ;;  %vm5867_vm13 = vcmask 260096   ;;  %vm5679_vm14 = vcmask 259072  }
 0xa2f   : > { %11888 = vst [vmem:[#allocation14_spill] sm:$0xff] %v10766_v0  ;;  %3657 = vmax.xlane.f32.xlu1 %v10766_v0  ;;  %7704 = vpow2.f32 %v4005_v31 }
 0xa30   : > { %v10784_v40 = vpop.eup %7696  ;;  %7706 = vpow2.f32 %v4009_v55 }
 0xa31   : > { %3545 = vperm.xlu0 %7379, %v11889_v29   ;;  %7708 = vpow2.f32 %v4416_v38 }
 0xa32   : > { %7710 = vpow2.f32 %v4013_v19 }
 0xa33   : > { %4017 = vadd.xlane.f32.xlu1 %v10772_v33  ;;  %7712 = vpow2.f32 %v4414_v41 }
 0xa34   : > { %7714 = vpow2.f32 %v4418_v1 }
 0xa35   : > { %4518 = vrot.lane.b32.xlu0 %v11891_v58, %s11890_s16  ;;  %v10789_v25 = vpop.eup %7698 }
 0xa37   : > { %4019 = vadd.xlane.f32.xlu1 %v10779_v14  ;;  %v10795_v23 = vpop.eup %7700 }
 0xa38   : > { %v10798_v32 = vpop.eup %7702 }
 0xa39   : > { %v10801_v36 = vpop.eup %7704 }
 0xa3a   : > { %v10804_v28 = vpop.eup %7706 }
 0xa3b   : > { %4023 = vadd.xlane.f32.xlu1 %v10784_v40  ;;  %v10807_v54 = vpop.eup %7708 }
 0xa3c   : > { %v10809_v2 = vpop.eup %7710 }
 0xa3d   : > { %v10820_v29 = vpop.eup %7712 }
 0xa3e   : > { %v10839_v22 = vpop.eup %7714 }
 0xa3f   : > { %4021 = vadd.xlane.f32.xlu1 %v10789_v25 }
 0xa43   : > { %4025 = vadd.xlane.f32.xlu1 %v10795_v23 }
 0xa47   : > { %4033 = vadd.xlane.f32.xlu1 %v10798_v32 }
 0xa4b   : > { %4037 = vadd.xlane.f32.xlu1 %v10801_v36 }
 0xa4f   : > { %4041 = vadd.xlane.f32.xlu1 %v10804_v28 }
 0xa53   : > { %4045 = vadd.xlane.f32.xlu1 %v10809_v2 }
 0xa54   : > { %4448 = vadd.xlane.f32.xlu0 %v10807_v54 }
 0xa58   : > { %v10818_v56 = vpop.xlane.xlu0 %3655 }
 0xa59   : > { %11895 = vst [vmem:[#allocation9_spill] sm:$0xff] %v10818_v56 }
 0xa5c   : > { %v4028_v44 = vpop.xlane.xlu0 %4027 }
 0xa64   : > { %3540 = vperm.xlu1 %7380, %v11892_v52  }
 0xa68   : > { %4111 = vrot.lane.b32.xlu1 %v11893_v49, %s11801_s18 }
 0xa6c   : > { %v4032_v17 = vpop.xlane.xlu0 %4031 }
 0xa80   : > { %v4030_v10 = vpop.xlane.xlu0 %4029 }
 0xa84   : > { %v4036_v16 = vpop.xlane.xlu0 %4035 }
 0xa88   : > { %v10823_v57 = vpop.xlane.xlu0 %4039 }
 0xa8c   : > { %4446 = vadd.xlane.f32.xlu1 %v10820_v29 }
 0xa94   : > { %v10825_v37 = vpop.xlane.xlu0 %4043 }
 0xaa0   : > { %v10827_v31 = vpop.xlane.xlu0 %4047 }
 0xaa4   : > { %v10831_v21 = vpop.xlane.xlu0 %3659 }
 0xaa5   : > { %11896 = vst [vmem:[#allocation16_spill] sm:$0xff] %v10831_v21  ;;  %v11901_v21 = vld [vmem:[#allocation6_spill] sm:$0xff] }
 0xaac   : > { %v3536_v55 = vpop.permute.xlu0 %3535 }
 0xaad   : > { %v3569_v60 = vadd.f32 %v10228_v39, %v3536_v55 }
 0xaaf   : > { %vm3585_vm15 = vcmp.gt.f32.partialorder %v3569_v60, 0.0  ;;  %v3601_v38 = vmul.f32 0.2, %v3569_v60 }
 0xab0   : > { %v3546_v19 = vpop.permute.xlu0 %3545 }
 0xab1   : > { %v3571_v52 = vadd.f32 %v10228_v39, %v3546_v19  ;;  %v3617_v59 = vsel %vm3585_vm15, %v3569_v60, %v3601_v38  ;;  %vm5762_vm15 = vcmask 261127  }
 0xab2   : > { %v10836_v63 = vadd.f32 %v10537_v5, %v3617_v59  ;;  %v11900_v59 = vld [vmem:[#allocation18_spill] sm:$0xff] }
 0xab3   : > { %v3603_v41 = vmul.f32 0.2, %v3571_v52  ;;  %vm3587_vm0 = vcmp.gt.f32.partialorder %v3571_v52, 0.0 }
 0xab4   : > { %11897 = vst [vmem:[#allocation8_spill] sm:$0xff] %v10836_v63  ;;  %3661 = vmax.xlane.f32.xlu1 %v10836_v63 }
 0xab5   : > { %v3619_v20 = vsel %vm3587_vm0, %v3571_v52, %v3603_v41  ;;  %vm5773_vm0 = vcmask 253952  }
 0xab6   : > { %v10845_v1 = vadd.f32 %v10578_v62, %v3619_v20 }
 0xab8   : > { %4450 = vadd.xlane.f32.xlu1 %v10839_v22  ;;  %v10842_v8 = vpop.xlane.xlu1 %3653 }
 0xab9   : > { %11898 = vst [vmem:[#allocation11_spill] sm:$0xff] %v10842_v8 }
 0xabc   : > { %3665 = vmax.xlane.f32.xlu1 %v10845_v1  ;;  %v10848_v55 = vpop.xlane.xlu1 %3657 }
 0xabd   : > { %11899 = vst [vmem:[#allocation15_spill] sm:$0xff] %v10848_v55 }
 0xac0   : > { %v4018_v5 = vpop.xlane.xlu1 %4017 }
 0xac1   : > { %7716 = vrcp.f32 %v4018_v5 }
 0xac4   : > { %v4020_v60 = vpop.xlane.xlu1 %4019 }
 0xac5   : > { %7718 = vrcp.f32 %v4020_v60  ;;  %v4401_v60 = vsub.f32 %v10277_v13, %v10626_v61 }
 0xac7   : > { %v4420_v56 = vmul.f32 1.442695, %v4401_v60 }
 0xac8   : > { %v4024_v38 = vpop.xlane.xlu1 %4023 }
 0xacb   : > { %v7717_v52 = vpop.eup %7716 }
 0xacc   : > { %v4022_v19 = vpop.xlane.xlu1 %4021  ;;  %v4065_v62 = vmul.f32 %v7717_v52, %v10772_v33  ;;  %v4404_v33 = vsub.f32 %v10448_v18, %v10688_v24 }
 0xacd   : > { %3550 = vperm.xlu1 %7380, %v11900_v59   ;;  %7720 = vrcp.f32 %v4022_v19 }
 0xacf   : > { %v7719_v41 = vpop.eup %7718 }
 0xad0   : > { %v4026_v63 = vpop.xlane.xlu1 %4025  ;;  %v4066_v20 = vmul.f32 %v7719_v41, %v10779_v14  ;;  %v4422_v14 = vmul.f32 1.442695, %v4402_v50 }
 0xad1   : > { %4520 = vrot.lane.b32.xlu1 %v11901_v21, %s11890_s16  ;;  %7722 = vrcp.f32 %v4026_v63  ;;  %v4426_v63 = vmul.f32 1.442695, %v4404_v33 }
 0xad2   : > { %v4081_v0 = vpack.c.bf16 %v4066_v20, %v4065_v62  ;;  %7724 = vrcp.f32 %v4024_v38 }
 0xad3   : > { %7726 = vrcp.f32 %v4028_v44 }
 0xad4   : > { %6813 = vmatprep.mubr.bf16.mxu0 %v4081_v0  ;;  %v4034_v55 = vpop.xlane.xlu1 %4033  ;;  %7728 = vpow2.f32 %v4420_v56 }
 0xad5   : > { %7730 = vrcp.f32 %v4030_v10 }
 0xad6   : > { %7732 = vrcp.f32 %v4034_v55 }
 0xad7   : > { %v7721_v0 = vpop.eup %7720  ;;  %7734 = vrcp.f32 %v4032_v17  ;;  %v4519_v17 = vpop.permute.xlu0 %4518 }
 0xad8   : > { %v4038_v5 = vpop.xlane.xlu1 %4037  ;;  %7736 = vrcp.f32 %v4036_v16  ;;  %v4067_v30 = vmul.f32 %v7721_v0, %v10789_v25 }
 0xad9   : > { %7738 = vpow2.f32 %v4422_v14 }
 0xada   : > { %7740 = vpow2.f32 %v4426_v63 }
 0xadb   : > { %v7723_v61 = vpop.eup %7722  ;;  %7742 = vrcp.f32 %v4038_v5 }
 0xadc   : > { %v4042_v59 = vpop.xlane.xlu1 %4041  ;;  %v7725_v44 = vpop.eup %7724  ;;  %v4069_v18 = vmul.f32 %v7723_v61, %v10795_v23 }
 0xadd   : > { %v7727_v19 = vpop.eup %7726  ;;  %v4068_v24 = vmul.f32 %v7725_v44, %v10784_v40  ;;  %7744 = vrcp.f32 %v4042_v59 }
 0xade   : > { %v4070_v16 = vmul.f32 %v7727_v19, %v10659_v9  ;;  %v10869_v25 = vpop.eup %7728  ;;  %7746 = vrcp.f32 %v10823_v57 }
 0xadf   : > { %v4082_v55 = vpack.c.bf16 %v4068_v24, %v4067_v30  ;;  %v7731_v52 = vpop.eup %7730  ;;  %7748 = vrcp.f32 %v10825_v37 }
 0xae0   : > { %v4046_v8 = vpop.xlane.xlu1 %4045  ;;  %v4083_v40 = vpack.c.bf16 %v4070_v16, %v4069_v18  ;;  %v7733_v23 = vpop.eup %7732  ;;  %v4071_v9 = vmul.f32 %v7731_v52, %v10697_v11 }
 0xae1   : > { %v7735_v41 = vpop.eup %7734  ;;  %v4073_v62 = vmul.f32 %v7733_v23, %v10798_v32  ;;  %7750 = vrcp.f32 %v4046_v8  ;;  %v4410_v23 = vsub.f32 %v10591_v27, %v10737_v48  ;;  %v11904_v27 = vld [vmem:[#allocation26_spill] sm:$0xff] }
 0xae2   : > { %v4072_v20 = vmul.f32 %v7735_v41, %v10677_v45  ;;  %7752 = vrcp.f32 %v10827_v31  ;;  %v4403_v48 = vsub.f32 %v11904_v27, %v10643_v15 }
 0xae3   : > { %v4438_v41 = vmul.f32 1.442695, %v4410_v23 }
 0xae4   : > { %v3541_v13 = vpop.permute.xlu1 %3540  ;;  %v4084_v37 = vpack.c.bf16 %v4072_v20, %v4071_v9  ;;  %v4424_v20 = vmul.f32 1.442695, %v4403_v48 }
 0xae5   : > { %v3570_v38 = vadd.f32 %v10228_v39, %v3541_v13 }
 0xae7   : > { %vm3586_vm4 = vcmp.gt.f32.partialorder %v3570_v38, 0.0  ;;  %v3602_v51 = vmul.f32 0.2, %v3570_v38 }
 0xae8   : > { %v4112_v56 = vpop.permute.xlu1 %4111 }
 0xae9   : > { %6811 = vmatprep.subr.bf16.mxu0 %v4112_v56  ;;  %v3618_v50 = vsel %vm3586_vm4, %v3570_v38, %v3602_v51  ;;  %v4408_v51 = vsub.f32 %v10544_v26, %v10719_v6  ;;  %vm5859_vm4 = vcmask 261121  }
 0xaea   : > { %6812 = vmatpush3.bf16.msra.mxu0 %v4112_v56  ;;  %v10866_v10 = vadd.f32 %v10505_v3, %v3618_v50  ;;  %v7737_v3 = vpop.eup %7736 }
 0xaeb   : > { %6829 = vmatprep.subr.bf16.mxu0 %v4519_v17  ;;  %v10878_v57 = vpop.eup %7738  ;;  %v4074_v5 = vmul.f32 %v7737_v3, %v10704_v42  ;;  %v4412_v3 = vsub.f32 %v10605_v47, %v10748_v53  ;;  %v11906_v47 = vld [vmem:[#allocation23_spill] sm:$0xff] }
 0xaec   : > { %3663 = vmax.xlane.f32.xlu0 %v10866_v10  ;;  %v10881_v60 = vpop.eup %7740 }
 0xaed   : > { %6814 = vmatmul.mubr.bf16.vlgmr.msra.gmra.mrb[64].mxu0 %v4082_v55  ;;  %v7743_v59 = vpop.eup %7742  ;;  %v4085_v11 = vpack.c.bf16 %v4074_v5, %v4073_v62  ;;  %v11905_v5 = vld [vmem:[#allocation62_spill] sm:$0xff] }
 0xaee   : > { %6817 = vmatprep.mubr.bf16.mxu0 %v4083_v40  ;;  %6830 = vmatpush3.bf16.msra.mxu0 %v4519_v17  ;;  %v7745_v33 = vpop.eup %7744  ;;  %v4075_v45 = vmul.f32 %v7743_v59, %v10801_v36  ;;  %v11902_v36 = vld [vmem:[#allocation35_spill] sm:$0xff]  ;;  %v4405_v53 = vsub.f32 %v11906_v47, %v11905_v5  ;;  %v11922_v47 = vld [vmem:[#allocation77_spill] sm:$0xff] }
 0xaef   : > { %v7747_v0 = vpop.eup %7746  ;;  %v4077_v42 = vmul.f32 %v7745_v33, %v10804_v28  ;;  %v4449_v28 = vpop.xlane.xlu0 %4448  ;;  %v11907_v33 = vld [vmem:[#allocation50_spill] sm:$0xff] }
 0xaf0   : > { %4452 = vadd.xlane.f32.xlu0 %v10869_v25  ;;  %v7749_v32 = vpop.eup %7748  ;;  %v4076_v8 = vmul.f32 %v7747_v0, %v10710_v35  ;;  %7754 = vrcp.f32 %v4449_v28  ;;  %v11908_v0 = vld [vmem:[#allocation36_spill] sm:$0xff]  ;;  %v11914_v28 = vld [vmem:[#allocation70_spill] sm:$0xff] }
 0xaf1   : > { %v4078_v14 = vmul.f32 %v7749_v32, %v10724_v43  ;;  %v7751_v31 = vpop.eup %7750  ;;  %v4406_v43 = vsub.f32 %v10494_v34, %v10701_v4  ;;  %v4819_v32 = vsub.f32 %v11908_v0, %v11907_v33  ;;  %v11924_v33 = vld [vmem:[#allocation76_spill] sm:$0xff]  ;;  %v11925_v0 = vld [vmem:[#allocation46_spill] sm:$0xff] }
 0xaf2   : > { %v4086_v13 = vpack.c.bf16 %v4076_v8, %v4075_v45  ;;  %v7753_v63 = vpop.eup %7752  ;;  %v4079_v38 = vmul.f32 %v7751_v31, %v10809_v2  ;;  %v4434_v2 = vmul.f32 1.442695, %v4408_v51  ;;  %v11909_v45 = vld [vmem:[#allocation57_spill] sm:$0xff] }
 0xaf3   : > { %v4087_v61 = vpack.c.bf16 %v4078_v14, %v4077_v42  ;;  %v4080_v44 = vmul.f32 %v7753_v63, %v10739_v12  ;;  %v4430_v30 = vmul.f32 1.442695, %v4406_v43  ;;  %v4835_v15 = vmul.f32 1.442695, %v4819_v32  ;;  %v11910_v42 = vld [vmem:[#allocation24_spill] sm:$0xff]  ;;  %v11912_v63 = vld [vmem:[#allocation67_spill] sm:$0xff] }
 0xaf4   : > { %v4821_v8 = vsub.f32 %v11910_v42, %v11909_v45  ;;  %v4413_v32 = vsub.f32 %v11925_v0, %v11924_v33 }
 0xaf5   : > { %4454 = vadd.xlane.f32.xlu1 %v10878_v57  ;;  %6818 = vmatmul.mubr.bf16.gmra.mrb[68].mxu0 %v4084_v37  ;;  %v4088_v19 = vpack.c.bf16 %v4080_v44, %v4079_v38  ;;  %v4428_v37 = vmul.f32 1.442695, %v4405_v53  ;;  %v11913_v38 = vld [vmem:[#allocation30_spill] sm:$0xff]  ;;  %v11923_v53 = vld [vmem:[#allocation47_spill] sm:$0xff] }
 0xaf6   : > { %6821 = vmatprep.mubr.bf16.mxu0 %v4085_v11  ;;  %v4839_v14 = vmul.f32 1.442695, %v4821_v8  ;;  %v4407_v44 = vsub.f32 %v11913_v38, %v11912_v63  ;;  %v4444_v45 = vmul.f32 1.442695, %v4413_v32  ;;  %v11927_v63 = vld [vmem:[#allocation41_spill] sm:$0xff] }
 0xaf9   : > { %4458 = vadd.xlane.f32.xlu1 %v10881_v60 }
 0xafa   : > { %v7755_v56 = vpop.eup %7754 }
 0xafb   : > { %v4495_v24 = vmul.f32 %v7755_v56, %v10807_v54 }
 0xafd   : > { %6822 = vmatmul.mubr.bf16.gmra.mrb[72].mxu0 %v4086_v13 }
 0xafe   : > { %6825 = vmatprep.mubr.bf16.mxu0 %v4087_v61  ;;  %v11911_v61 = vld [vmem:[#allocation10_spill] sm:$0xff] }
 0xb05   : > { %6826 = vmatmul.mubr.bf16.gmra.mrb[76].mxu0 %v4088_v19  ;;  %v4432_v19 = vmul.f32 1.442695, %v4407_v44 }
 0xb0a   : > { %4524 = vrot.lane.b32.xlu1 %v11902_v36, %s11890_s16 }
 0xb19   : > { %v4447_v35 = vpop.xlane.xlu1 %4446 }
 0xb1a   : > { %7756 = vrcp.f32 %v4447_v35  ;;  %v11915_v35 = vld [vmem:[#allocation31_spill] sm:$0xff] }
 0xb1b   : > { %7758 = vpow2.f32 %v4430_v30  ;;  %v4409_v43 = vsub.f32 %v11915_v35, %v11914_v28  ;;  %v11929_v28 = vld [vmem:[#allocation19_spill] sm:$0xff] }
 0xb1c   : > { %7760 = vpow2.f32 %v4434_v2  ;;  %v11917_v2 = vld [vmem:[#allocation65_spill] sm:$0xff] }
 0xb1d   : > { %7762 = vpow2.f32 %v4438_v41  ;;  %v4436_v30 = vmul.f32 1.442695, %v4409_v43 }
 0xb24   : > { %v7757_v12 = vpop.eup %7756 }
 0xb25   : > { %v4494_v18 = vmul.f32 %v7757_v12, %v10820_v29  ;;  %v10900_v17 = vpop.eup %7758  ;;  %v11918_v12 = vld [vmem:[#allocation28_spill] sm:$0xff] }
 0xb26   : > { %v10903_v34 = vpop.eup %7760 }
 0xb27   : > { %v4510_v50 = vpack.c.bf16 %v4495_v24, %v4494_v18  ;;  %v10923_v9 = vpop.eup %7762  ;;  %v4823_v18 = vsub.f32 %v11918_v12, %v11917_v2 }
 0xb29   : > { %6845 = vmatprep.mubr.bf16.mxu0 %v4510_v50  ;;  %v4843_v24 = vmul.f32 1.442695, %v4823_v18  ;;  %v11919_v50 = vld [vmem:[#allocation69_spill] sm:$0xff] }
 0xb2e   : > { %4462 = vadd.xlane.f32.xlu1 %v10900_v17 }
 0xb32   : > { %4466 = vadd.xlane.f32.xlu1 %v10903_v34 }
 0xb41   : > { %v10906_v6 = vpop.xlane.xlu1 %3661 }
 0xb43   : > { %4528 = vrot.lane.b32.xlu1 %v9941_v7, %s11890_s16 }
 0xb45   : > { %v10910_v26 = vpop.xlane.xlu1 %4450 }
 0xb49   : > { %v10912_v4 = vpop.xlane.xlu1 %3665 }
 0xb4d   : > { %v3551_v54 = vpop.permute.xlu1 %3550 }
 0xb4e   : > { %v3572_v29 = vadd.f32 %v10228_v39, %v3551_v54  ;;  %v4442_v39 = vmul.f32 1.442695, %v4412_v3  ;;  %v11920_v54 = vld [vmem:[#allocation29_spill] sm:$0xff] }
 0xb4f   : > { %v11921_v3 = vld [vmem:[#allocation13_spill] sm:$0xff] }
 0xb50   : > { %vm3588_vm5 = vcmp.gt.f32.partialorder %v3572_v29, 0.0  ;;  %v3604_v16 = vmul.f32 0.2, %v3572_v29  ;;  %7764 = vpow2.f32 %v4442_v39 }
 0xb51   : > { %v4521_v55 = vpop.permute.xlu1 %4520  ;;  %7766 = vpow2.f32 %v4424_v20 }
 0xb52   : > { %6831 = vmatprep.subr.bf16.mxu0 %v4521_v55  ;;  %v3620_v52 = vsel %vm3588_vm5, %v3572_v29, %v3604_v16  ;;  %7768 = vpow2.f32 %v4428_v37  ;;  %v4825_v29 = vsub.f32 %v11920_v54, %v11919_v50  ;;  %v4411_v37 = vsub.f32 %v11923_v53, %v11922_v47  ;;  %v11932_v53 = vld [vmem:[#allocation54_spill] sm:$0xff] }
 0xb53   : > { %6832 = vmatpush3.bf16.msra.mxu0 %v4521_v55  ;;  %v10916_v40 = vadd.f32 %v10553_v46, %v3620_v52  ;;  %v11903_v46 = vld [vmem:[#allocation12_spill] sm:$0xff]  ;;  %7770 = vpow2.f32 %v4835_v15  ;;  %vm5742_vm5 = vcmask 1040384  }
 0xb54   : > { %7772 = vpow2.f32 %v4839_v14  ;;  %v4847_v16 = vmul.f32 1.442695, %v4825_v29  ;;  %v4440_v15 = vmul.f32 1.442695, %v4411_v37  ;;  %v11926_v14 = vld [vmem:[#allocation72_spill] sm:$0xff] }
 0xb55   : > { %3667 = vmax.xlane.f32.xlu0 %v10916_v40  ;;  %7774 = vpow2.f32 %v4432_v19  ;;  %v4827_v38 = vsub.f32 %v11927_v63, %v11926_v14  ;;  %v11928_v19 = vld [vmem:[#allocation75_spill] sm:$0xff]  ;;  %v11933_v37 = vld [vmem:[#allocation44_spill] sm:$0xff] }
 0xb56   : > { %7776 = vpow2.f32 %v4436_v30  ;;  %v4829_v35 = vsub.f32 %v11929_v28, %v11928_v19  ;;  %v4822_v33 = vsub.f32 %v11933_v37, %v11932_v53  ;;  %v11935_v14 = vld [vmem:[#allocation43_spill] sm:$0xff]  ;;  %v11937_v19 = vld [vmem:[#allocation48_spill] sm:$0xff] }
 0xb57   : > { %7778 = vpow2.f32 %v4843_v24  ;;  %v4851_v44 = vmul.f32 1.442695, %v4827_v38 }
 0xb58   : > { %7780 = vpow2.f32 %v4847_v16  ;;  %v4855_v43 = vmul.f32 1.442695, %v4829_v35  ;;  %v11930_v16 = vld [vmem:[#allocation52_spill] sm:$0xff]  ;;  %v4841_v0 = vmul.f32 1.442695, %v4822_v33 }
 0xb59   : > { %7782 = vpow2.f32 %v4440_v15 }
 0xb5a   : > { %v10926_v62 = vpop.eup %7764  ;;  %7784 = vpow2.f32 %v4444_v45  ;;  %v11934_v45 = vld [vmem:[#allocation74_spill] sm:$0xff] }
 0xb5b   : > { %v10937_v59 = vpop.eup %7766  ;;  %7786 = vpow2.f32 %v4851_v44  ;;  %v4831_v63 = vsub.f32 %v11935_v14, %v11934_v45  ;;  %v11936_v44 = vld [vmem:[#allocation78_spill] sm:$0xff] }
 0xb5c   : > { %v10940_v11 = vpop.eup %7768  ;;  %7788 = vpow2.f32 %v4855_v43  ;;  %v4833_v28 = vsub.f32 %v11937_v19, %v11936_v44 }
 0xb5d   : > { %v10947_v13 = vpop.eup %7770  ;;  %v4859_v38 = vmul.f32 1.442695, %v4831_v63  ;;  %v11940_v63 = vld [vmem:[#allocation63_spill] sm:$0xff] }
 0xb5e   : > { %v10950_v31 = vpop.eup %7772  ;;  %v4863_v35 = vmul.f32 1.442695, %v4833_v28 }
 0xb5f   : > { %v10961_v51 = vpop.eup %7774 }
 0xb60   : > { %v10964_v56 = vpop.eup %7776 }
 0xb61   : > { %v10971_v55 = vpop.eup %7778 }
 0xb62   : > { %v10976_v23 = vpop.eup %7780 }
 0xb63   : > { %v10993_v42 = vpop.eup %7782 }
 0xb64   : > { %v10996_v8 = vpop.eup %7784 }
 0xb65   : > { %v11003_v30 = vpop.eup %7786 }
 0xb66   : > { %v11006_v2 = vpop.eup %7788 }
 0xb67   : > { %4470 = vadd.xlane.f32.xlu1 %v10923_v9 }
 0xb6b   : > { %4474 = vadd.xlane.f32.xlu1 %v10926_v62  ;;  %4522 = vrot.lane.b32.xlu0 %v11903_v46, %s11890_s16 }
 0xb79   : > { %v10973_v52 = vpop.xlane.xlu0 %3663 }
 0xb7c   : > { %4532 = vrot.lane.b32.xlu1 %v11893_v49, %s11890_s16 }
 0xb7d   : > { %v4453_v39 = vpop.xlane.xlu0 %4452 }
 0xb82   : > { %v10978_v41 = vpop.xlane.xlu1 %4454 }
 0xb86   : > { %v10983_v27 = vpop.xlane.xlu1 %4458 }
 0xb8a   : > { %4456 = vadd.xlane.f32.xlu0 %v10937_v59  ;;  %v4525_v5 = vpop.permute.xlu1 %4524 }
 0xb8e   : > { %4460 = vadd.xlane.f32.xlu0 %v10940_v11 }
 0xba0   : > { %4867 = vadd.xlane.f32.xlu1 %v10947_v13 }
 0xba4   : > { %4871 = vadd.xlane.f32.xlu1 %v10950_v31  ;;  %4526 = vrot.lane.b32.xlu0 %v11911_v61, %s11890_s16 }
 0xbb5   : > { %4941 = vrot.lane.b32.xlu1 %v11901_v21, %s11916_s17 }
 0xbbb   : > { %v4463_v12 = vpop.xlane.xlu1 %4462 }
 0xbbf   : > { %v4467_v24 = vpop.xlane.xlu1 %4466 }
 0xbc3   : > { %4464 = vadd.xlane.f32.xlu0 %v10961_v51  ;;  %v4529_v29 = vpop.permute.xlu1 %4528 }
 0xbc7   : > { %4468 = vadd.xlane.f32.xlu0 %v10964_v56 }
 0xbd9   : > { %4875 = vadd.xlane.f32.xlu1 %v10971_v55 }
 0xbdd   : > { %4879 = vadd.xlane.f32.xlu1 %v10976_v23  ;;  %4530 = vrot.lane.b32.xlu0 %v11921_v3, %s11890_s16 }
 0xbe2   : > { %v10985_v48 = vpop.xlane.xlu0 %3667 }
 0xbe6   : > { %v4523_v20 = vpop.permute.xlu0 %4522 }
 0xbe7   : > { %6833 = vmatprep.subr.bf16.mxu0 %v4523_v20 }
 0xbe8   : > { %6834 = vmatpush3.bf16.msra.mxu0 %v4523_v20  ;;  %v11931_v20 = vld [vmem:[#allocation37_spill] sm:$0xff] }
 0xbe9   : > { %6835 = vmatprep.subr.bf16.mxu0 %v4525_v5 }
 0xbec   : > { %6836 = vmatpush3.bf16.msra.mxu0 %v4525_v5  ;;  %v4820_v5 = vsub.f32 %v11931_v20, %v11930_v16 }
 0xbee   : > { %4945 = vrot.lane.b32.xlu1 %v11902_v36, %s11916_s17  ;;  %v4837_v47 = vmul.f32 1.442695, %v4820_v5 }
 0xbf0   : > { %7790 = vpow2.f32 %v4837_v47 }
 0xbf1   : > { %7792 = vpow2.f32 %v4841_v0  ;;  %v11939_v0 = vld [vmem:[#allocation20_spill] sm:$0xff] }
 0xbf2   : > { %7794 = vpow2.f32 %v4859_v38  ;;  %v11941_v38 = vld [vmem:[#allocation40_spill] sm:$0xff] }
 0xbf3   : > { %7796 = vpow2.f32 %v4863_v35  ;;  %v4826_v44 = vsub.f32 %v11941_v38, %v11940_v63 }
 0xbf4   : > { %7798 = vrcp.f32 %v4453_v39 }
 0xbfa   : > { %v11017_v32 = vpop.eup %7790 }
 0xbfb   : > { %v11020_v15 = vpop.eup %7792 }
 0xbfc   : > { %4472 = vadd.xlane.f32.xlu0 %v10993_v42  ;;  %v11027_v43 = vpop.eup %7794 }
 0xc00   : > { %4476 = vadd.xlane.f32.xlu0 %v10996_v8 }
 0xc12   : > { %4883 = vadd.xlane.f32.xlu1 %v11003_v30 }
 0xc16   : > { %4887 = vadd.xlane.f32.xlu1 %v11006_v2  ;;  %4939 = vrot.lane.b32.xlu0 %v11891_v58, %s11916_s17 }
 0xc17   : > { %v4457_v18 = vpop.xlane.xlu0 %4456 }
 0xc18   : > { %7800 = vrcp.f32 %v4457_v18 }
 0xc19   : > { %7802 = vrcp.f32 %v10910_v26  ;;  %v11938_v26 = vld [vmem:[#allocation56_spill] sm:$0xff] }
 0xc1a   : > { %7804 = vrcp.f32 %v10978_v41  ;;  %v4824_v45 = vsub.f32 %v11939_v0, %v11938_v26 }
 0xc1b   : > { %v4461_v50 = vpop.xlane.xlu0 %4460 }
 0xc1c   : > { %7806 = vrcp.f32 %v4461_v50 }
 0xc1f   : > { %v4527_v54 = vpop.permute.xlu0 %4526 }
 0xc20   : > { %6837 = vmatprep.subr.bf16.mxu0 %v4527_v54 }
 0xc21   : > { %6838 = vmatpush3.bf16.msra.mxu0 %v4527_v54  ;;  %v11030_v54 = vpop.eup %7796 }
 0xc22   : > { %6839 = vmatprep.subr.bf16.mxu0 %v4529_v29  ;;  %v7799_v47 = vpop.eup %7798 }
 0xc23   : > { %v7801_v18 = vpop.eup %7800  ;;  %v4497_v41 = vmul.f32 %v7799_v47, %v10869_v25 }
 0xc24   : > { %v7803_v53 = vpop.eup %7802  ;;  %v4499_v50 = vmul.f32 %v7801_v18, %v10937_v59 }
 0xc25   : > { %6840 = vmatpush3.bf16.msra.mxu0 %v4529_v29  ;;  %v11032_v29 = vpop.xlane.xlu1 %4470  ;;  %v7805_v33 = vpop.eup %7804  ;;  %v4496_v14 = vmul.f32 %v7803_v53, %v10839_v22 }
 0xc26   : > { %v7807_v28 = vpop.eup %7806 }
 0xc27   : > { %4949 = vrot.lane.b32.xlu1 %v9941_v7, %s11916_s17  ;;  %v4511_v19 = vpack.c.bf16 %v4497_v41, %v4496_v14 }
 0xc29   : > { %v11039_v20 = vpop.xlane.xlu1 %4474 }
 0xc2d   : > { %v4533_v37 = vpop.permute.xlu1 %4532 }
 0xc35   : > { %4869 = vadd.xlane.f32.xlu0 %v11017_v32 }
 0xc39   : > { %4873 = vadd.xlane.f32.xlu0 %v11020_v15 }
 0xc4b   : > { %4891 = vadd.xlane.f32.xlu1 %v11027_v43 }
 0xc4f   : > { %4895 = vadd.xlane.f32.xlu1 %v11030_v54  ;;  %4943 = vrot.lane.b32.xlu0 %v11903_v46, %s11916_s17 }
 0xc50   : > { %v4465_v16 = vpop.xlane.xlu0 %4464 }
 0xc51   : > { %7808 = vrcp.f32 %v4465_v16  ;;  %v4849_v16 = vmul.f32 1.442695, %v4826_v44 }
 0xc52   : > { %7810 = vrcp.f32 %v10983_v27  ;;  %v4498_v27 = vmul.f32 %v7805_v33, %v10878_v57  ;;  %v4501_v57 = vmul.f32 %v7807_v28, %v10940_v11  ;;  %v11944_v28 = vld [vmem:[#allocation68_spill] sm:$0xff] }
 0xc53   : > { %7812 = vrcp.f32 %v4463_v12  ;;  %v4845_v12 = vmul.f32 1.442695, %v4824_v45 }
 0xc54   : > { %v4469_v5 = vpop.xlane.xlu0 %4468  ;;  %v4512_v25 = vpack.c.bf16 %v4499_v50, %v4498_v27  ;;  %v3683_v50 = vsub.f32 %v10845_v1, %v10912_v4  ;;  %v4868_v27 = vpop.xlane.xlu1 %4867 }
 0xc55   : > { %7814 = vrcp.f32 %v4469_v5 }
 0xc56   : > { %7816 = vrcp.f32 %v4467_v24 }
 0xc57   : > { %7818 = vpow2.f32 %v4845_v12 }
 0xc58   : > { %v4531_v39 = vpop.permute.xlu0 %4530  ;;  %7820 = vpow2.f32 %v4849_v16  ;;  %v4872_v1 = vpop.xlane.xlu1 %4871 }
 0xc59   : > { %6841 = vmatprep.subr.bf16.mxu0 %v4531_v39 }
 0xc5a   : > { %6842 = vmatpush3.bf16.msra.mxu0 %v4531_v39 }
 0xc5b   : > { %6843 = vmatprep.subr.bf16.mxu0 %v4533_v37  ;;  %v7809_v35 = vpop.eup %7808 }
 0xc5c   : > { %v7811_v59 = vpop.eup %7810  ;;  %v4503_v5 = vmul.f32 %v7809_v35, %v10961_v51  ;;  %v4942_v44 = vpop.permute.xlu1 %4941 }
 0xc5d   : > { %v7813_v22 = vpop.eup %7812  ;;  %v4500_v47 = vmul.f32 %v7811_v59, %v10881_v60  ;;  %v11942_v60 = vld [vmem:[#allocation59_spill] sm:$0xff] }
 0xc5e   : > { %6844 = vmatpush3.bf16.msra.mxu0 %v4533_v37  ;;  %v4502_v39 = vmul.f32 %v7813_v22, %v10900_v17  ;;  %v11943_v17 = vld [vmem:[#allocation25_spill] sm:$0xff] }
 0xc5f   : > { %v4513_v24 = vpack.c.bf16 %v4501_v57, %v4500_v47  ;;  %v7815_v18 = vpop.eup %7814  ;;  %v3673_v45 = vsub.f32 %v11943_v17, %v11942_v60  ;;  %v11947_v47 = vld [vmem:[#allocation42_spill] sm:$0xff] }
 0xc60   : > { %4953 = vrot.lane.b32.xlu1 %v11893_v49, %s11916_s17  ;;  %v4514_v53 = vpack.c.bf16 %v4503_v5, %v4502_v39  ;;  %v7817_v37 = vpop.eup %7816  ;;  %v4505_v33 = vmul.f32 %v7815_v18, %v10964_v56  ;;  %v3713_v56 = vmul.f32 1.442695, %v3683_v50  ;;  %v11946_v5 = vld [vmem:[#allocation71_spill] sm:$0xff]  ;;  %v11949_v50 = vld [vmem:[#allocation45_spill] sm:$0xff] }
 0xc61   : > { %6846 = vmatmul.mubr.bf16.vlgmr.msra.gmra.mrb[64].mxu0 %v4511_v19  ;;  %v11057_v26 = vpop.eup %7818  ;;  %v4504_v0 = vmul.f32 %v7817_v37, %v10903_v34  ;;  %v3693_v41 = vmul.f32 1.442695, %v3673_v45  ;;  %v4830_v39 = vsub.f32 %v11947_v47, %v11946_v5  ;;  %v11956_v47 = vld [vmem:[#allocation60_spill] sm:$0xff] }
 0xc62   : > { %6849 = vmatprep.mubr.bf16.mxu0 %v4512_v25  ;;  %v11061_v51 = vpop.eup %7820 }
 0xc63   : > { %v4515_v11 = vpack.c.bf16 %v4505_v33, %v4504_v0  ;;  %7822 = vpow2.f32 %v3693_v41  ;;  %v4857_v37 = vmul.f32 1.442695, %v4830_v39  ;;  %v11948_v41 = vld [vmem:[#allocation73_spill] sm:$0xff]  ;;  %v11957_v39 = vld [vmem:[#allocation27_spill] sm:$0xff] }
 0xc64   : > { %7824 = vpow2.f32 %v3713_v56  ;;  %v4832_v56 = vsub.f32 %v11949_v50, %v11948_v41 }
 0xc65   : > { %7826 = vrcp.f32 %v11032_v29  ;;  %v11945_v29 = vld [vmem:[#allocation33_spill] sm:$0xff] }
 0xc66   : > { %v4828_v25 = vsub.f32 %v11945_v29, %v11944_v28  ;;  %v11092_v33 = vpop.xlane.xlu1 %4875 }
 0xc68   : > { %v4853_v57 = vmul.f32 1.442695, %v4828_v25 }
 0xc69   : > { %6850 = vmatmul.mubr.bf16.gmra.mrb[68].mxu0 %v4513_v24 }
 0xc6a   : > { %6853 = vmatprep.mubr.bf16.mxu0 %v4514_v53 }
 0xc6d   : > { %v11068_v14 = vpop.eup %7822 }
 0xc6e   : > { %4877 = vadd.xlane.f32.xlu0 %v11057_v26  ;;  %v11071_v34 = vpop.eup %7824 }
 0xc6f   : > { %v7827_v38 = vpop.eup %7826 }
 0xc70   : > { %v4506_v35 = vmul.f32 %v7827_v38, %v10923_v9  ;;  %v4861_v38 = vmul.f32 1.442695, %v4832_v56  ;;  %v11962_v56 = vld [vmem:[#allocation64_spill] sm:$0xff] }
 0xc71   : > { %6854 = vmatmul.mubr.bf16.gmra.mrb[72].mxu0 %v4515_v11 }
 0xc72   : > { %4881 = vadd.xlane.f32.xlu0 %v11061_v51 }
 0xc84   : > { %3725 = vadd.xlane.f32.xlu1 %v11068_v14 }
 0xc88   : > { %3745 = vadd.xlane.f32.xlu1 %v11071_v34  ;;  %4947 = vrot.lane.b32.xlu0 %v11911_v61, %s11916_s17 }
 0xc89   : > { %v4473_v12 = vpop.xlane.xlu0 %4472 }
 0xc8a   : > { %7828 = vrcp.f32 %v4473_v12 }
 0xc8b   : > { %7830 = vrcp.f32 %v11039_v20 }
 0xc8d   : > { %v4477_v4 = vpop.xlane.xlu0 %4476 }
 0xc8e   : > { %7832 = vrcp.f32 %v4477_v4 }
 0xc8f   : > { %7834 = vpow2.f32 %v4853_v57  ;;  %v11955_v57 = vld [vmem:[#allocation34_spill] sm:$0xff] }
 0xc90   : > { %7836 = vpow2.f32 %v4857_v37 }
 0xc91   : > { %v4940_v63 = vpop.permute.xlu0 %4939  ;;  %7838 = vrcp.f32 %v4868_v27 }
 0xc92   : > { %6861 = vmatprep.subr.bf16.mxu0 %v4940_v63 }
 0xc93   : > { %6862 = vmatpush3.bf16.msra.mxu0 %v4940_v63 }
 0xc94   : > { %v7829_v19 = vpop.eup %7828  ;;  %6863 = vmatprep.subr.bf16.mxu0 %v4942_v44 }
 0xc95   : > { %v4507_v59 = vmul.f32 %v7829_v19, %v10993_v42  ;;  %v7831_v22 = vpop.eup %7830  ;;  %v11951_v19 = vld [vmem:[#allocation49_spill] sm:$0xff] }
 0xc96   : > { %v4508_v24 = vmul.f32 %v7831_v22, %v10926_v62 }
 0xc97   : > { %6864 = vmatpush3.bf16.msra.mxu0 %v4942_v44  ;;  %v4516_v20 = vpack.c.bf16 %v4507_v59, %v4506_v35  ;;  %v11950_v44 = vld [vmem:[#allocation79_spill] sm:$0xff] }
 0xc98   : > { %v7833_v16 = vpop.eup %7832  ;;  %v4834_v28 = vsub.f32 %v11951_v19, %v11950_v44  ;;  %v11952_v35 = vld [vmem:[#allocation51_spill] sm:$0xff] }
 0xc99   : > { %6857 = vmatprep.mubr.bf16.mxu0 %v4516_v20  ;;  %v4509_v18 = vmul.f32 %v7833_v16, %v10996_v8  ;;  %v11086_v9 = vpop.eup %7834  ;;  %v11096_v8 = vpop.xlane.xlu1 %4879  ;;  %v11954_v16 = vld [vmem:[#allocation53_spill] sm:$0xff] }
 0xc9a   : > { %v11089_v42 = vpop.eup %7836  ;;  %v4865_v22 = vmul.f32 1.442695, %v4834_v28  ;;  %v3670_v5 = vsub.f32 %v11955_v57, %v11954_v16  ;;  %v11969_v16 = vld [vmem:[#allocation58_spill] sm:$0xff] }
 0xc9b   : > { %v4517_v53 = vpack.c.bf16 %v4509_v18, %v4508_v24  ;;  %v7839_v60 = vpop.eup %7838  ;;  %v11958_v18 = vld [vmem:[#allocation55_spill] sm:$0xff] }
 0xc9c   : > { %v4915_v27 = vmul.f32 %v7839_v60, %v10947_v13  ;;  %v11960_v60 = vld [vmem:[#allocation61_spill] sm:$0xff] }
 0xc9d   : > { %6858 = vmatmul.mubr.bf16.gmra.mrb[76].mxu0 %v4517_v53  ;;  %v4946_v17 = vpop.permute.xlu1 %4945  ;;  %v11959_v53 = vld [vmem:[#allocation22_spill] sm:$0xff] }
 0xc9e   : > { %v3672_v37 = vsub.f32 %v11959_v53, %v11958_v18 }
 0xca1   : > { %v4884_v53 = vpop.xlane.xlu1 %4883 }
 0xca7   : > { %4885 = vadd.xlane.f32.xlu0 %v11086_v9 }
 0xcab   : > { %4889 = vadd.xlane.f32.xlu0 %v11089_v42 }
 0xcc1   : > { %4951 = vrot.lane.b32.xlu0 %v11921_v3, %s11916_s17 }
 0xcc2   : > { %v4870_v62 = vpop.xlane.xlu0 %4869 }
 0xcc3   : > { %7840 = vrcp.f32 %v4870_v62 }
 0xcc4   : > { %7842 = vrcp.f32 %v4872_v1 }
 0xcc6   : > { %v4874_v0 = vpop.xlane.xlu0 %4873 }
 0xcc7   : > { %7844 = vrcp.f32 %v4874_v0 }
 0xcc8   : > { %7846 = vpow2.f32 %v4861_v38  ;;  %v11965_v38 = vld [vmem:[#allocation39_spill] sm:$0xff] }
 0xcc9   : > { %7848 = vpow2.f32 %v4865_v22 }
 0xcca   : > { %v4944_v11 = vpop.permute.xlu0 %4943 }
 0xccb   : > { %6865 = vmatprep.subr.bf16.mxu0 %v4944_v11 }
 0xccc   : > { %6866 = vmatpush3.bf16.msra.mxu0 %v4944_v11  ;;  %v3691_v11 = vmul.f32 1.442695, %v3672_v37 }
 0xccd   : > { %v7841_v45 = vpop.eup %7840  ;;  %6867 = vmatprep.subr.bf16.mxu0 %v4946_v17 }
 0xcce   : > { %v4916_v12 = vmul.f32 %v7841_v45, %v11017_v32  ;;  %v7843_v4 = vpop.eup %7842  ;;  %v11953_v32 = vld [vmem:[#allocation38_spill] sm:$0xff] }
 0xccf   : > { %v11105_v29 = vmul.f32 %v7843_v4, %v10950_v31  ;;  %v3669_v59 = vsub.f32 %v11953_v32, %v11952_v35  ;;  %v3687_v31 = vmul.f32 1.442695, %v3670_v5  ;;  %v11966_v35 = vld [vmem:[#allocation11_spill] sm:$0xff] }
 0xcd0   : > { %6868 = vmatpush3.bf16.msra.mxu0 %v4946_v17  ;;  %v4931_v1 = vpack.c.bf16 %v4916_v12, %v4915_v27  ;;  %v11961_v17 = vld [vmem:[#allocation21_spill] sm:$0xff]  ;;  %v11963_v27 = vld [vmem:[#allocation32_spill] sm:$0xff]  ;;  %v11967_v32 = vld [vmem:[#allocation7_spill] sm:$0xff] }
 0xcd1   : > { %v7845_v63 = vpop.eup %7844  ;;  %v3685_v20 = vmul.f32 1.442695, %v3669_v59  ;;  %v3674_v45 = vsub.f32 %v11961_v17, %v11960_v60  ;;  %v3675_v12 = vsub.f32 %v11963_v27, %v11962_v56  ;;  %v3677_v59 = vsub.f32 %v11967_v32, %v11966_v35  ;;  %v11973_v60 = vld [vmem:[#allocation80_spill] sm:$0xff]  ;;  %v4888_v56 = vpop.xlane.xlu1 %4887 }
 0xcd2   : > { %v11108_v25 = vmul.f32 %v7845_v63, %v11020_v15  ;;  %6877 = vmatprep.mubr.bf16.mxu0 %v4931_v1  ;;  %v3671_v15 = vsub.f32 %v11957_v39, %v11956_v47  ;;  %v11118_v24 = vpop.eup %7846  ;;  %v11964_v63 = vld [vmem:[#allocation66_spill] sm:$0xff]  ;;  %v11970_v39 = vld [vmem:[#allocation15_spill] sm:$0xff]  ;;  %v3682_v35 = vsub.f32 %v10866_v10, %v10973_v52 }
 0xcd3   : > { %7850 = vpow2.f32 %v3685_v20  ;;  %v11123_v0 = vpop.eup %7848  ;;  %v3695_v50 = vmul.f32 1.442695, %v3674_v45  ;;  %v3697_v1 = vmul.f32 1.442695, %v3675_v12  ;;  %v3676_v44 = vsub.f32 %v11965_v38, %v11964_v63  ;;  %v11968_v20 = vld [vmem:[#allocation9_spill] sm:$0xff] }
 0xcd4   : > { %v4932_v13 = vpack.c.bf16 %v11108_v25, %v11105_v29  ;;  %7852 = vpow2.f32 %v3687_v31  ;;  %v3689_v62 = vmul.f32 1.442695, %v3671_v15  ;;  %v3678_v57 = vsub.f32 %v11969_v16, %v11968_v20  ;;  %v11971_v15 = vld [vmem:[#allocation14_spill] sm:$0xff] }
 0xcd5   : > { %v3699_v28 = vmul.f32 1.442695, %v3676_v44  ;;  %v3701_v5 = vmul.f32 1.442695, %v3677_v59  ;;  %v3679_v18 = vsub.f32 %v11971_v15, %v11970_v39  ;;  %v4950_v32 = vpop.permute.xlu1 %4949  ;;  %v3684_v20 = vsub.f32 %v10916_v40, %v10985_v48 }
 0xcd6   : > { %7854 = vpow2.f32 %v3689_v62  ;;  %v3703_v47 = vmul.f32 1.442695, %v3678_v57 }
 0xcd7   : > { %7856 = vpow2.f32 %v3691_v11  ;;  %v11972_v11 = vld [vmem:[#allocation16_spill] sm:$0xff]  ;;  %v3705_v45 = vmul.f32 1.442695, %v3679_v18  ;;  %v3715_v57 = vmul.f32 1.442695, %v3684_v20  ;;  %v5205_v18 = vld [vmem:[%s11549_s8] sm:$0xff] }
 0xcd8   : > { %7858 = vpow2.f32 %v3695_v50  ;;  %v3680_v17 = vsub.f32 %v11973_v60, %v11972_v11  ;;  %v5206_v11 = vld [vmem:[%s11549_s8 + $0x8] sm:$0xff] }
 0xcd9   : > { %7860 = vpow2.f32 %v3697_v1  ;;  %v11974_v1 = vld [vmem:[#allocation8_spill] sm:$0xff]  ;;  %v11188_v48 = vpop.xlane.xlu1 %4891  ;;  %v7126_v60 = vpack.c.bf16 %v5206_v11, %v5205_v18 }
 0xcda   : > { %7862 = vpow2.f32 %v3699_v28  ;;  %v3707_v12 = vmul.f32 1.442695, %v3680_v17  ;;  %v3681_v63 = vsub.f32 %v11974_v1, %v10906_v6  ;;  %v3711_v6 = vmul.f32 1.442695, %v3682_v35 }
 0xcdb   : > { %7864 = vpow2.f32 %v3701_v5  ;;  %7127 = vmatprep.subr.bf16.mxu1 %v7126_v60 }
 0xcdc   : > { %7866 = vpow2.f32 %v3703_v47  ;;  %v3709_v28 = vmul.f32 1.442695, %v3681_v63  ;;  %7129 = vmatpush3.bf16.msra.mxu1 %v7126_v60 }
 0xcdd   : > { %v11128_v41 = vpop.eup %7850  ;;  %7868 = vpow2.f32 %v3705_v45  ;;  %v4896_v39 = vpop.xlane.xlu1 %4895 }
 0xcde   : > { %v11133_v4 = vpop.eup %7852  ;;  %7870 = vpow2.f32 %v3707_v12 }
 0xcdf   : > { %7872 = vpow2.f32 %v3709_v28 }
 0xce0   : > { %4893 = vadd.xlane.f32.xlu0 %v11118_v24  ;;  %v11138_v19 = vpop.eup %7854  ;;  %7874 = vpow2.f32 %v3711_v6 }
 0xce1   : > { %v11143_v22 = vpop.eup %7856  ;;  %7876 = vpow2.f32 %v3715_v57 }
 0xce2   : > { %v11148_v31 = vpop.eup %7858 }
 0xce3   : > { %v11153_v37 = vpop.eup %7860 }
 0xce4   : > { %4897 = vadd.xlane.f32.xlu0 %v11123_v0  ;;  %v11158_v50 = vpop.eup %7862 }
 0xce5   : > { %v11163_v38 = vpop.eup %7864 }
 0xce6   : > { %v11168_v59 = vpop.eup %7866 }
 0xce7   : > { %v11173_v16 = vpop.eup %7868 }
 0xce8   : > { %3717 = vadd.xlane.f32.xlu0 %v11128_v41  ;;  %v11176_v10 = vpop.eup %7870 }
 0xce9   : > { %v11179_v52 = vpop.eup %7872 }
 0xcea   : > { %v11182_v5 = vpop.eup %7874 }
 0xceb   : > { %v11185_v40 = vpop.eup %7876 }
 0xcec   : > { %3719 = vadd.xlane.f32.xlu0 %v11133_v4 }
 0xcf0   : > { %3721 = vadd.xlane.f32.xlu0 %v11138_v19 }
 0xcf4   : > { %3723 = vadd.xlane.f32.xlu0 %v11143_v22 }
 0xcf8   : > { %3727 = vadd.xlane.f32.xlu0 %v11148_v31 }
 0xcfb   : > { %v4878_v62 = vpop.xlane.xlu0 %4877 }
 0xcfc   : > { %3729 = vadd.xlane.f32.xlu0 %v11153_v37  ;;  %7878 = vrcp.f32 %v4878_v62 }
 0xcfd   : > { %7880 = vrcp.f32 %v11092_v33  ;;  %v4954_v33 = vpop.permute.xlu1 %4953 }
 0xcff   : > { %v4882_v27 = vpop.xlane.xlu0 %4881 }
 0xd00   : > { %3731 = vadd.xlane.f32.xlu0 %v11158_v50  ;;  %7882 = vrcp.f32 %v4882_v27 }
 0xd03   : > { %v4948_v44 = vpop.permute.xlu0 %4947 }
 0xd04   : > { %3733 = vadd.xlane.f32.xlu0 %v11163_v38  ;;  %6869 = vmatprep.subr.bf16.mxu0 %v4948_v44 }
 0xd05   : > { %6870 = vmatpush3.bf16.msra.mxu0 %v4948_v44 }
 0xd06   : > { %6871 = vmatprep.subr.bf16.mxu0 %v4950_v32  ;;  %v7879_v62 = vpop.eup %7878 }
 0xd07   : > { %v7881_v45 = vpop.eup %7880  ;;  %v4920_v12 = vmul.f32 %v7879_v62, %v11057_v26 }
 0xd08   : > { %3735 = vadd.xlane.f32.xlu0 %v11168_v59  ;;  %v4919_v27 = vmul.f32 %v7881_v45, %v10971_v55 }
 0xd09   : > { %6872 = vmatpush3.bf16.msra.mxu0 %v4950_v32 }
 0xd0a   : > { %v7883_v1 = vpop.eup %7882 }
 0xd0b   : > { %v4922_v26 = vmul.f32 %v7883_v1, %v11061_v51 }
 0xd0c   : > { %3737 = vadd.xlane.f32.xlu0 %v11173_v16 }
 0xd10   : > { %3739 = vadd.xlane.f32.xlu0 %v11176_v10 }
 0xd14   : > { %3741 = vadd.xlane.f32.xlu0 %v11179_v52 }
 0xd18   : > { %3743 = vadd.xlane.f32.xlu0 %v11182_v5 }
 0xd1c   : > { %3747 = vadd.xlane.f32.xlu0 %v11185_v40 }
 0xd34   : > { %v4886_v47 = vpop.xlane.xlu0 %4885 }
 0xd35   : > { %7884 = vrcp.f32 %v4886_v47 }
 0xd36   : > { %7886 = vrcp.f32 %v11096_v8  ;;  %v4933_v8 = vpack.c.bf16 %v4920_v12, %v4919_v27 }
 0xd37   : > { %7888 = vrcp.f32 %v4884_v53 }
 0xd38   : > { %v4890_v15 = vpop.xlane.xlu0 %4889 }
 0xd39   : > { %7890 = vrcp.f32 %v4890_v15 }
 0xd3a   : > { %7892 = vrcp.f32 %v4888_v56 }
 0xd3b   : > { %7894 = vrcp.f32 %v11188_v48  ;;  %v3726_v48 = vpop.xlane.xlu1 %3725 }
 0xd3c   : > { %v4952_v17 = vpop.permute.xlu0 %4951 }
 0xd3d   : > { %6873 = vmatprep.subr.bf16.mxu0 %v4952_v17 }
 0xd3e   : > { %6874 = vmatpush3.bf16.msra.mxu0 %v4952_v17 }
 0xd3f   : > { %6875 = vmatprep.subr.bf16.mxu0 %v4954_v33  ;;  %v7885_v63 = vpop.eup %7884 }
 0xd40   : > { %v7887_v53 = vpop.eup %7886  ;;  %v4924_v55 = vmul.f32 %v7885_v63, %v11086_v9 }
 0xd41   : > { %v7889_v44 = vpop.eup %7888  ;;  %v4921_v28 = vmul.f32 %v7887_v53, %v10976_v23 }
 0xd42   : > { %6876 = vmatpush3.bf16.msra.mxu0 %v4954_v33  ;;  %v4923_v56 = vmul.f32 %v7889_v44, %v11003_v30 }
 0xd43   : > { %6893 = vmatprep.subr.bf16.mxu0 %v11891_v58  ;;  %v4934_v29 = vpack.c.bf16 %v4922_v26, %v4921_v28  ;;  %v7891_v25 = vpop.eup %7890 }
 0xd44   : > { %v4926_v51 = vmul.f32 %v7891_v25, %v11089_v42 }
 0xd45   : > { %6878 = vmatmul.mubr.bf16.vlgmr.msra.gmra.mrb[64].mxu0 %v4932_v13  ;;  %v4935_v13 = vpack.c.bf16 %v4924_v55, %v4923_v56 }
 0xd46   : > { %6881 = vmatprep.mubr.bf16.mxu0 %v4933_v8  ;;  %6894 = vmatpush3.bf16.msra.mxu0 %v11891_v58  ;;  %v7893_v58 = vpop.eup %7892 }
 0xd47   : > { %6895 = vmatprep.subr.bf16.mxu0 %v11901_v21  ;;  %v4925_v23 = vmul.f32 %v7893_v58, %v11006_v2  ;;  %v7895_v30 = vpop.eup %7894  ;;  %v3746_v58 = vpop.xlane.xlu1 %3745 }
 0xd48   : > { %v4927_v9 = vmul.f32 %v7895_v30, %v11027_v43 }
 0xd4a   : > { %6896 = vmatpush3.bf16.msra.mxu0 %v11901_v21  ;;  %v4936_v21 = vpack.c.bf16 %v4926_v51, %v4925_v23 }
 0xd4b   : > { %6897 = vmatprep.subr.bf16.mxu0 %v11903_v46 }
 0xd4d   : > { %6882 = vmatmul.mubr.bf16.gmra.mrb[68].mxu0 %v4934_v29 }
 0xd4e   : > { %6885 = vmatprep.mubr.bf16.mxu0 %v4935_v13  ;;  %6898 = vmatpush3.bf16.msra.mxu0 %v11903_v46 }
 0xd4f   : > { %6899 = vmatprep.subr.bf16.mxu0 %v11902_v36 }
 0xd52   : > { %6900 = vmatpush3.bf16.msra.mxu0 %v11902_v36 }
 0xd53   : > { %6901 = vmatprep.subr.bf16.mxu0 %v11911_v61 }
 0xd55   : > { %6886 = vmatmul.mubr.bf16.gmra.mrb[72].mxu0 %v4936_v21 }
 0xd56   : > { %6902 = vmatpush3.bf16.msra.mxu0 %v11911_v61 }
 0xd57   : > { %6903 = vmatprep.subr.bf16.mxu0 %v9941_v7 }
 0xd5a   : > { %6904 = vmatpush3.bf16.msra.mxu0 %v9941_v7 }
 0xd5b   : > { %6905 = vmatprep.subr.bf16.mxu0 %v11921_v3 }
 0xd5e   : > { %6906 = vmatpush3.bf16.msra.mxu0 %v11921_v3 }
 0xd5f   : > { %6907 = vmatprep.subr.bf16.mxu0 %v11893_v49 }
 0xd62   : > { %6908 = vmatpush3.bf16.msra.mxu0 %v11893_v49 }
 0xd6d   : > { %v4894_v36 = vpop.xlane.xlu0 %4893 }
 0xd6e   : > { %7896 = vrcp.f32 %v4894_v36 }
 0xd6f   : > { %7898 = vrcp.f32 %v4896_v39 }
 0xd71   : > { %v4898_v46 = vpop.xlane.xlu0 %4897 }
 0xd72   : > { %7900 = vrcp.f32 %v4898_v46 }
 0xd75   : > { %v3718_v61 = vpop.xlane.xlu0 %3717 }
 0xd76   : > { %7902 = vrcp.f32 %v3718_v61 }
 0xd78   : > { %v7897_v2 = vpop.eup %7896 }
 0xd79   : > { %v3720_v7 = vpop.xlane.xlu0 %3719  ;;  %v4928_v3 = vmul.f32 %v7897_v2, %v11118_v24  ;;  %v7899_v42 = vpop.eup %7898 }
 0xd7a   : > { %7904 = vrcp.f32 %v3720_v7  ;;  %v4929_v6 = vmul.f32 %v7899_v42, %v11030_v54 }
 0xd7b   : > { %v4937_v35 = vpack.c.bf16 %v4928_v3, %v4927_v9 }
 0xd7c   : > { %v7901_v49 = vpop.eup %7900 }
 0xd7d   : > { %6889 = vmatprep.mubr.bf16.mxu0 %v4937_v35  ;;  %v3722_v32 = vpop.xlane.xlu0 %3721  ;;  %v4930_v20 = vmul.f32 %v7901_v49, %v11123_v0 }
 0xd7e   : > { %7906 = vrcp.f32 %v3722_v32 }
 0xd7f   : > { %v4938_v57 = vpack.c.bf16 %v4930_v20, %v4929_v6 }
 0xd80   : > { %v7903_v39 = vpop.eup %7902 }
 0xd81   : > { %6890 = vmatmul.mubr.bf16.gmra.mrb[76].mxu0 %v4938_v57  ;;  %v3724_v47 = vpop.xlane.xlu0 %3723  ;;  %v3765_v15 = vmul.f32 %v7903_v39, %v11128_v41 }
 0xd82   : > { %7908 = vrcp.f32 %v3724_v47 }
 0xd83   : > { %7910 = vrcp.f32 %v3726_v48 }
 0xd84   : > { %v7905_v43 = vpop.eup %7904 }
 0xd85   : > { %v3728_v24 = vpop.xlane.xlu0 %3727  ;;  %v3766_v18 = vmul.f32 %v7905_v43, %v11133_v4 }
 0xd86   : > { %7912 = vrcp.f32 %v3728_v24 }
 0xd87   : > { %v3781_v11 = vpack.c.bf16 %v3766_v18, %v3765_v15 }
 0xd88   : > { %v7907_v60 = vpop.eup %7906 }
 0xd89   : > { %6909 = vmatprep.mubr.bf16.mxu0 %v3781_v11  ;;  %v3730_v54 = vpop.xlane.xlu0 %3729  ;;  %v3767_v17 = vmul.f32 %v7907_v60, %v11138_v19 }
 0xd8a   : > { %7914 = vrcp.f32 %v3730_v54 }
 0xd8c   : > { %v7909_v0 = vpop.eup %7908 }
 0xd8d   : > { %v3768_v62 = vmul.f32 %v7909_v0, %v11143_v22  ;;  %v3732_v33 = vpop.xlane.xlu0 %3731  ;;  %v7911_v45 = vpop.eup %7910 }
 0xd8e   : > { %7916 = vrcp.f32 %v3732_v33  ;;  %v3769_v4 = vmul.f32 %v7911_v45, %v11068_v14 }
 0xd8f   : > { %v3782_v12 = vpack.c.bf16 %v3768_v62, %v3767_v17 }
 0xd90   : > { %v7913_v27 = vpop.eup %7912 }
 0xd91   : > { %6910 = vmatmul.mubr.bf16.vlgmr.msra.gmra.mrb[64].mxu0 %v3782_v12  ;;  %v3734_v41 = vpop.xlane.xlu0 %3733  ;;  %v3770_v1 = vmul.f32 %v7913_v27, %v11148_v31 }
 0xd92   : > { %7918 = vrcp.f32 %v3734_v41 }
 0xd93   : > { %v3783_v8 = vpack.c.bf16 %v3770_v1, %v3769_v4 }
 0xd94   : > { %v7915_v53 = vpop.eup %7914 }
 0xd95   : > { %6913 = vmatprep.mubr.bf16.mxu0 %v3783_v8  ;;  %v3736_v63 = vpop.xlane.xlu0 %3735  ;;  %v3771_v22 = vmul.f32 %v7915_v53, %v11153_v37 }
 0xd96   : > { %7920 = vrcp.f32 %v3736_v63 }
 0xd98   : > { %v7917_v19 = vpop.eup %7916 }
 0xd99   : > { %v3738_v44 = vpop.xlane.xlu0 %3737  ;;  %v3772_v26 = vmul.f32 %v7917_v19, %v11158_v50 }
 0xd9a   : > { %7922 = vrcp.f32 %v3738_v44 }
 0xd9b   : > { %v3784_v55 = vpack.c.bf16 %v3772_v26, %v3771_v22 }
 0xd9c   : > { %v7919_v56 = vpop.eup %7918 }
 0xd9d   : > { %6914 = vmatmul.mubr.bf16.gmra.mrb[68].mxu0 %v3784_v55  ;;  %v3740_v28 = vpop.xlane.xlu0 %3739  ;;  %v3773_v29 = vmul.f32 %v7919_v56, %v11163_v38 }
 0xd9e   : > { %7924 = vrcp.f32 %v3740_v28 }
 0xda0   : > { %v7921_v14 = vpop.eup %7920 }
 0xda1   : > { %v3742_v31 = vpop.xlane.xlu0 %3741  ;;  %v3774_v25 = vmul.f32 %v7921_v14, %v11168_v59 }
 0xda2   : > { %7926 = vrcp.f32 %v3742_v31 }
 0xda3   : > { %v3785_v13 = vpack.c.bf16 %v3774_v25, %v3773_v29 }
 0xda4   : > { %v7923_v37 = vpop.eup %7922 }
 0xda5   : > { %6917 = vmatprep.mubr.bf16.mxu0 %v3785_v13  ;;  %v3744_v51 = vpop.xlane.xlu0 %3743  ;;  %v3775_v21 = vmul.f32 %v7923_v37, %v11173_v16 }
 0xda6   : > { %7928 = vrcp.f32 %v3744_v51 }
 0xda7   : > { %7930 = vrcp.f32 %v3746_v58 }
 0xda8   : > { %v7925_v50 = vpop.eup %7924 }
 0xda9   : > { %v3748_v23 = vpop.xlane.xlu0 %3747  ;;  %v3776_v36 = vmul.f32 %v7925_v50, %v11176_v10  ;;  %v5207_v10 = vld [vmem:[%s11549_s8 + $0x10] sm:$0xff] }
 0xdaa   : > { %7932 = vrcp.f32 %v3748_v23 }
 0xdab   : > { %v3786_v46 = vpack.c.bf16 %v3776_v36, %v3775_v21 }
 0xdac   : > { %v7927_v38 = vpop.eup %7926 }
 0xdad   : > { %6918 = vmatmul.mubr.bf16.gmra.mrb[72].mxu0 %v3786_v46  ;;  %v3777_v59 = vmul.f32 %v7927_v38, %v11179_v52  ;;  %v5208_v52 = vld [vmem:[%s11549_s8 + $0x18] sm:$0xff] }
 0xdae   : > { %v7130_v35 = vpack.c.bf16 %v5208_v52, %v5207_v10 }
 0xdb0   : > { %v7929_v61 = vpop.eup %7928  ;;  %7131 = vmatprep.subr.bf16.mxu1 %v7130_v35 }
 0xdb1   : > { %v3778_v30 = vmul.f32 %v7929_v61, %v11182_v5  ;;  %v7931_v2 = vpop.eup %7930  ;;  %7133 = vmatpush3.bf16.msra.mxu1 %v7130_v35 }
 0xdb2   : > { %v3779_v3 = vmul.f32 %v7931_v2, %v11071_v34 }
 0xdb3   : > { %v3787_v7 = vpack.c.bf16 %v3778_v30, %v3777_v59 }
 0xdb4   : > { %v7933_v9 = vpop.eup %7932 }
 0xdb5   : > { %6921 = vmatprep.mubr.bf16.mxu0 %v3787_v7  ;;  %v3780_v42 = vmul.f32 %v7933_v9, %v11185_v40 }
 0xdb7   : > { %v3788_v16 = vpack.c.bf16 %v3780_v42, %v3779_v3 }
 0xdb9   : > { %6922 = vmatmul.mubr.bf16.gmra.mrb[76].mxu0 %v3788_v16 }
 0xe64   : > { %v6911_v5 = vpop.f32.mrb[64].mxu0 }
 0xe65   : > { %v5094_v49 = vpop.f32.mrb[65].mxu0  ;;  %v11258_v20 = vmul.f32 0.25, %v6911_v5 }
 0xe66   : > { %v11252_v32 = vmul.f32 0.25, %v5094_v49  ;;  %v6912_v34 = vpop.f32.mrb[66].mxu0 }
 0xe67   : > { %v5097_v6 = vpop.f32.mrb[67].mxu0  ;;  %v11264_v57 = vmul.f32 0.25, %v6912_v34 }
 0xe68   : > { %v11254_v40 = vmul.f32 0.25, %v5097_v6  ;;  %6933 = vmatprep.mubr.msk.f32.mxu1 %vm11686_vm1, %v11252_v32 }
 0xe6a   : > { %6934 = vmatmul.mubr.msk.f32.vlgmr.msra.gmra.mrb[96].mxu1 %vm11686_vm1, %v11254_v40 }
 0xe6b   : > { %6936 = vmatprep.mubr.msk.f32.mxu1 %vm11686_vm1, %v11258_v20 }
 0xe6e   : > { %6937 = vmatmul.mubr.msk.f32.gmra.mrb[98].mxu1 %vm11686_vm1, %v11264_v57 }
 0xe70   : > { %v6915_v48 = vpop.f32.mrb[68].mxu0 }
 0xe71   : > { %v5110_v47 = vpop.f32.mrb[69].mxu0  ;;  %v11274_v18 = vmul.f32 0.25, %v6915_v48 }
 0xe72   : > { %v11268_v39 = vmul.f32 0.25, %v5110_v47  ;;  %v6916_v43 = vpop.f32.mrb[70].mxu0 }
 0xe73   : > { %v5113_v24 = vpop.f32.mrb[71].mxu0  ;;  %v11280_v11 = vmul.f32 0.25, %v6916_v43 }
 0xe74   : > { %v11270_v15 = vmul.f32 0.25, %v5113_v24  ;;  %6939 = vmatprep.mubr.msk.f32.mxu1 %vm11686_vm1, %v11268_v39 }
 0xe76   : > { %6940 = vmatmul.mubr.msk.f32.gmra.mrb[100].mxu1 %vm11686_vm1, %v11270_v15 }
 0xe77   : > { %6942 = vmatprep.mubr.msk.f32.mxu1 %vm11686_vm1, %v11274_v18 }
 0xe7a   : > { %6943 = vmatmul.mubr.msk.f32.gmra.mrb[102].mxu1 %vm11686_vm1, %v11280_v11 }
 0xe80   : > { %v6919_v54 = vpop.f32.mrb[72].mxu0 }
 0xe81   : > { %v11284_v60 = vmul.f32 0.25, %v6919_v54  ;;  %v5126_v0 = vpop.f32.mrb[73].mxu0 }
 0xe82   : > { %v11286_v17 = vmul.f32 0.25, %v5126_v0  ;;  %v6920_v62 = vpop.f32.mrb[74].mxu0 }
 0xe83   : > { %v11288_v33 = vmul.f32 0.25, %v6920_v62  ;;  %v5129_v45 = vpop.f32.mrb[75].mxu0  ;;  %v5832_v27 = vsel %vm5698_vm8, %v11284_v60, -inf  ;;  %v5824_v4 = vsel %vm5689_vm9, %v11284_v60, -inf }
 0xe84   : > { %v11290_v12 = vmul.f32 0.25, %v5129_v45  ;;  %6945 = vmatprep.mubr.msk.f32.mxu1 %vm11686_vm1, %v11286_v17 }
 0xe85   : > { %v5833_v41 = vsel %vm5791_vm6, %v11288_v33, -inf  ;;  %v5841_v13 = vsel %vm5800_vm12, %v11288_v33, -inf }
 0xe86   : > { %v5834_v1 = vmax.f32 %v5832_v27, %v5833_v41  ;;  %v5823_v8 = vsel %vm5822_vm7, %v11290_v12, -inf  ;;  %6946 = vmatmul.mubr.msk.f32.gmra.mrb[104].mxu1 %vm11686_vm1, %v11290_v12  ;;  %vm5744_vm7 = vcmask 1041408  }
 0xe87   : > { %v5825_v63 = vmax.f32 %v5823_v8, %v5824_v4  ;;  %6948 = vmatprep.mubr.msk.f32.mxu1 %vm11686_vm1, %v11284_v60 }
 0xe88   : > { %v5835_v53 = vrot.slane %v5834_v1, 4 }
 0xe89   : > { %v5826_v19 = vrot.slane %v5825_v63, 4 }
 0xe8a   : > { %v5836_v44 = vmax.f32 %v5834_v1, %v5835_v53  ;;  %6949 = vmatmul.mubr.msk.f32.gmra.mrb[106].mxu1 %vm11686_vm1, %v11288_v33 }
 0xe8b   : > { %v5827_v22 = vmax.f32 %v5825_v63, %v5826_v19 }
 0xe8c   : > { %v5837_v26 = vrot.slane %v5836_v44, 2  ;;  %v6923_v55 = vpop.f32.mrb[76].mxu0 }
 0xe8d   : > { %v5828_v28 = vrot.slane %v5827_v22, 2  ;;  %v11307_v56 = vmul.f32 0.25, %v6923_v55  ;;  %v5142_v14 = vpop.f32.mrb[77].mxu0 }
 0xe8e   : > { %v5838_v31 = vmax.f32 %v5836_v44, %v5837_v26  ;;  %v11309_v29 = vmul.f32 0.25, %v5142_v14  ;;  %v6924_v25 = vpop.f32.mrb[78].mxu0 }
 0xe8f   : > { %v5829_v58 = vmax.f32 %v5827_v22, %v5828_v28  ;;  %v5868_v51 = vsel %vm5867_vm13, %v11307_v56, -inf  ;;  %v11314_v37 = vmul.f32 0.25, %v6924_v25  ;;  %v5145_v50 = vpop.f32.mrb[79].mxu0  ;;  %v5875_v46 = vsel %vm5762_vm15, %v11307_v56, -inf }
 0xe90   : > { %v5839_v23 = vrot.slane %v5838_v31, 1  ;;  %v5869_v21 = vrot.slane %v5868_v51, 4  ;;  %v5842_v36 = vsel %vm5700_vm10, %v11309_v29, -inf  ;;  %6951 = vmatprep.mubr.msk.f32.mxu1 %vm11686_vm1, %v11309_v29  ;;  %v11324_v30 = vmul.f32 0.25, %v5145_v50 }
 0xe91   : > { %v5830_v38 = vrot.slane %v5829_v58, 1  ;;  %v5843_v61 = vmax.f32 %v5841_v13, %v5842_v36  ;;  %v5876_v59 = vsel %vm5679_vm14, %v11314_v37, -inf  ;;  %v5850_v9 = vsel %vm5709_vm11, %v11309_v29, -inf }
 0xe92   : > { %v5840_v2 = vmax.f32 %v5838_v31, %v5839_v23  ;;  %v5870_v7 = vmax.f32 %v5868_v51, %v5869_v21  ;;  %v5877_v3 = vmax.f32 %v5875_v46, %v5876_v59  ;;  %v5851_v10 = vsel %vm5773_vm0, %v11324_v30, -inf  ;;  %6952 = vmatmul.mubr.msk.f32.gmra.mrb[108].mxu1 %vm11686_vm1, %v11324_v30 }
 0xe93   : > { %v5831_v42 = vmax.f32 %v5829_v58, %v5830_v38  ;;  %v5844_v16 = vrot.slane %v5843_v61, 4  ;;  %v5860_v52 = vsel %vm5859_vm4, %v11324_v30, -inf  ;;  %v5852_v5 = vmax.f32 %v5850_v9, %v5851_v10  ;;  %6954 = vmatprep.mubr.msk.f32.mxu1 %vm11686_vm1, %v11307_v56 }
 0xe94   : > { %v5878_v35 = vrot.slane %v5877_v3, 4  ;;  %v5861_v49 = vrot.slane %v5860_v52, 4  ;;  %v5871_v6 = vrot.slane %v5870_v7, 2  ;;  %vm5746_vm13 = vcmask 1042432  }
 0xe95   : > { %v5845_v34 = vmax.f32 %v5843_v61, %v5844_v16  ;;  %v5853_v47 = vrot.slane %v5852_v5, 4  ;;  %v5884_v54 = vsel %vm5742_vm5, %v5831_v42, %v5840_v2  ;;  %vm5748_vm4 = vcmask 1043456  }
 0xe96   : > { %v5879_v48 = vmax.f32 %v5877_v3, %v5878_v35  ;;  %v5862_v43 = vmax.f32 %v5860_v52, %v5861_v49  ;;  %6955 = vmatmul.mubr.msk.f32.gmra.mrb[110].mxu1 %vm11686_vm1, %v11314_v37  ;;  %v5872_v41 = vmax.f32 %v5870_v7, %v5871_v6  ;;  %v11346_v21 = vstv %s5209_s25  ;;  %s6074_s25 = sshll.u32 %s8173_s9, 8  ;;  %s5923_s9 = scalar_lea.sflag [#allocation4], %s378_s13 }
 0xe97   : > { %v5846_v24 = vrot.slane %v5845_v34, 2  ;;  %v5854_v62 = vmax.f32 %v5852_v5, %v5853_v47  ;;  %vm5687_vm1 = vcmask 261126   ;;  %s11498_s26 = scalar_lea.hbm %s11552_s11, %s6074_s25 }
 0xe98   : > { %v5880_v0 = vrot.slane %v5879_v48, 2  ;;  %v5863_v45 = vrot.slane %v5862_v43, 2  ;;  %v5873_v26 = vrot.slane %v5872_v41, 1 }
 0xe99   : > { %v5847_v27 = vmax.f32 %v5845_v34, %v5846_v24  ;;  %v5855_v4 = vrot.slane %v5854_v62, 2 }
 0xe9a   : > { %v5864_v1 = vmax.f32 %v5862_v43, %v5863_v45  ;;  %v5881_v63 = vmax.f32 %v5879_v48, %v5880_v0  ;;  %v5874_v25 = vmax.f32 %v5872_v41, %v5873_v26 }
 0xe9b   : > { %v5848_v8 = vrot.slane %v5847_v27, 1  ;;  %v5856_v53 = vmax.f32 %v5854_v62, %v5855_v4 }
 0xe9c   : > { %v5865_v44 = vrot.slane %v5864_v1, 1  ;;  %v5882_v55 = vrot.slane %v5881_v63, 1 }
 0xe9d   : > { %v5849_v19 = vmax.f32 %v5847_v27, %v5848_v8  ;;  %v5857_v22 = vrot.slane %v5856_v53, 1 }
 0xe9e   : > { %v5866_v31 = vmax.f32 %v5864_v1, %v5865_v44  ;;  %v5883_v58 = vmax.f32 %v5881_v63, %v5882_v55 }
 0xe9f   : > { %v5885_v28 = vsel %vm5744_vm7, %v5884_v54, %v5849_v19  ;;  %v5858_v14 = vmax.f32 %v5856_v53, %v5857_v22 }
 0xea1   : > { %v5886_v13 = vsel %vm5746_vm13, %v5885_v28, %v5858_v14 }
 0xea2   : > { %v5887_v51 = vsel %vm5748_vm4, %v5886_v13, %v5866_v31  ;;  %v5710_v31 = vsel %vm5709_vm11, %v11258_v20, -inf  ;;  %vm5782_vm11 = vcmask 259073  }
 0xea3   : > { %v5888_v50 = vsel %vm5750_vm3, %v5887_v51, %v5874_v25 }
 0xea4   : > { %v11344_v23 = vsel %vm5752_vm2, %v5888_v50, %v5883_v58  ;;  %v5701_v58 = vsel %vm5700_vm10, %v11258_v20, -inf }
 0xf3d   : > { %v6935_v36 = vpop.f32.mrb[96].mxu1 }
 0xf3e   : > { %v5331_v46 = vadd.f32 %v6935_v36, %v11346_v21  ;;  %v5325_v38 = vpop.f32.mrb[97].mxu1 }
 0xf3f   : > { %v5326_v61 = vadd.f32 %v5325_v38, %v11346_v21 }
 0xf40   : > { %v6053_v59 = vmul.f32 -1.442695, %v5331_v46  ;;  %v5690_v46 = vsel %vm5689_vm9, %v11254_v40, -inf }
 0xf41   : > { %v6052_v2 = vmul.f32 -1.442695, %v5326_v61  ;;  %v6938_v7 = vpop.f32.mrb[98].mxu1 }
 0xf42   : > { %7934 = vpow2.f32 %v6053_v59  ;;  %v5341_v9 = vadd.f32 %v6938_v7, %v11346_v21  ;;  %v5335_v3 = vpop.f32.mrb[99].mxu1  ;;  %v5699_v7 = vsel %vm5698_vm8, %v11254_v40, -inf }
 0xf43   : > { %7936 = vpow2.f32 %v6052_v2  ;;  %v5336_v42 = vadd.f32 %v5335_v3, %v11346_v21  ;;  %v5711_v2 = vrot.slane %v5710_v31, 4 }
 0xf44   : > { %v6055_v16 = vmul.f32 -1.442695, %v5341_v9 }
 0xf45   : > { %v6054_v10 = vmul.f32 -1.442695, %v5336_v42  ;;  %v8085_v42 = vmov 0.0|0.0  }
 0xf46   : > { %7938 = vpow2.f32 %v6055_v16  ;;  %7134 = vmatprep.subr.bf16.mxu0 %v8085_v42  ;;  %7158 = vmatprep.subr.bf16.mxu1 %v8085_v42 }
 0xf47   : > { %7940 = vpow2.f32 %v6054_v10  ;;  %v5688_v10 = vsel %vm5687_vm1, %v11252_v32, -inf }
 0xf49   : > { %v6941_v52 = vpop.f32.mrb[100].mxu1 }
 0xf4a   : > { %v5351_v35 = vadd.f32 %v6941_v52, %v11346_v21  ;;  %v5345_v5 = vpop.f32.mrb[101].mxu1  ;;  %v5680_v52 = vsel %vm5679_vm14, %v11252_v32, -inf }
 0xf4b   : > { %v5346_v49 = vadd.f32 %v5345_v5, %v11346_v21  ;;  %v5691_v5 = vmax.f32 %v5688_v10, %v5690_v46 }
 0xf4c   : > { %v7935_v34 = vpop.eup %7934  ;;  %v6057_v6 = vmul.f32 -1.442695, %v5351_v35 }
 0xf4d   : > { %v7937_v48 = vpop.eup %7936  ;;  %v5453_v47 = vadd.f32 1.0, %v7935_v34  ;;  %v6056_v43 = vmul.f32 -1.442695, %v5346_v49  ;;  %v6944_v24 = vpop.f32.mrb[102].mxu1 }
 0xf4e   : > { %v5452_v54 = vadd.f32 1.0, %v7937_v48  ;;  %7942 = vpow2.f32 %v6057_v6  ;;  %v5361_v0 = vadd.f32 %v6944_v24, %v11346_v21  ;;  %v5355_v62 = vpop.f32.mrb[103].mxu1  ;;  %v5702_v6 = vmax.f32 %v5699_v7, %v5701_v58 }
 0xf4f   : > { %7944 = vrcp.f32 %v5453_v47  ;;  %v5356_v45 = vadd.f32 %v5355_v62, %v11346_v21  ;;  %v11376_v24 = vsel %vm5679_vm14, %v11264_v57, -inf  ;;  %v5763_v62 = vsel %vm5762_vm15, %v11270_v15, -inf }
 0xf50   : > { %v7939_v27 = vpop.eup %7938  ;;  %7946 = vrcp.f32 %v5452_v54  ;;  %v6059_v41 = vmul.f32 -1.442695, %v5361_v0  ;;  %v11378_v54 = vmax.f32 %v5710_v31, %v5711_v2  ;;  %v5692_v0 = vrot.slane %v5691_v5, 4 }
 0xf51   : > { %v7941_v4 = vpop.eup %7940  ;;  %v5455_v1 = vadd.f32 1.0, %v7939_v27  ;;  %7948 = vpow2.f32 %v6056_v43  ;;  %v6058_v8 = vmul.f32 -1.442695, %v5356_v45  ;;  %v5681_v43 = vrot.slane %v5680_v52, 4 }
 0xf52   : > { %7950 = vpow2.f32 %v6059_v41  ;;  %v5454_v63 = vadd.f32 1.0, %v7941_v4  ;;  %v5703_v27 = vrot.slane %v5702_v6, 4  ;;  %v5764_v41 = vsel %vm5689_vm9, %v11274_v18, -inf }
 0xf53   : > { %7952 = vrcp.f32 %v5455_v1  ;;  %v5725_v4 = vsel %vm5689_vm9, %v11268_v39, -inf  ;;  %vm5754_vm14 = vcmask 260098   ;;  %vm5920_vm9 = vcmask 522240  }
 0xf54   : > { %7954 = vpow2.f32 %v6058_v8  ;;  %v5724_v8 = vsel %vm5687_vm1, %v11264_v57, -inf  ;;  %v5755_v46 = vsel %vm5754_vm14, %v11270_v15, -inf }
 0xf55   : > { %7956 = vrcp.f32 %v5454_v63  ;;  %v5718_v63 = vrot.slane %v11376_v24, 4  ;;  %v5726_v58 = vmax.f32 %v5724_v8, %v5725_v4  ;;  %v5783_v4 = vsel %vm5782_vm11, %v11280_v11, -inf }
 0xf58   : > { %v7943_v53 = vpop.eup %7942 }
 0xf59   : > { %v7945_v19 = vpop.eup %7944  ;;  %v5457_v44 = vadd.f32 1.0, %v7943_v53  ;;  %v6947_v22 = vpop.f32.mrb[104].mxu1  ;;  %v5765_v53 = vmax.f32 %v5763_v62, %v5764_v41 }
 0xf5a   : > { %v7947_v26 = vpop.eup %7946  ;;  %v5371_v55 = vadd.f32 %v6947_v22, %v11346_v21  ;;  %5510 = vperm.xlu0 %7379, %v7945_v19   ;;  %v5365_v28 = vpop.f32.mrb[105].mxu1 }
 0xf5b   : > { %v7949_v14 = vpop.eup %7948  ;;  %7958 = vrcp.f32 %v5457_v44  ;;  %v5366_v25 = vadd.f32 %v5365_v28, %v11346_v21  ;;  %5505 = vperm.xlu1 %7380, %v7947_v26   ;;  %v5713_v26 = vrot.slane %v11378_v54, 2  ;;  %v5682_v28 = vmax.f32 %v5680_v52, %v5681_v43 }
 0xf5c   : > { %v7951_v13 = vpop.eup %7950  ;;  %v5456_v51 = vadd.f32 1.0, %v7949_v14  ;;  %v6061_v50 = vmul.f32 -1.442695, %v5371_v55  ;;  %v5693_v55 = vmax.f32 %v5691_v5, %v5692_v0  ;;  %v5766_v7 = vrot.slane %v5765_v53, 4 }
 0xf5d   : > { %v7953_v36 = vpop.eup %7952  ;;  %v5459_v38 = vadd.f32 1.0, %v7951_v13  ;;  %v6060_v61 = vmul.f32 -1.442695, %v5366_v25  ;;  %v6950_v59 = vpop.f32.mrb[106].mxu1  ;;  %v11392_v25 = vmax.f32 %v5702_v6, %v5703_v27  ;;  %v5772_v13 = vsel %vm5698_vm8, %v11274_v18, -inf }
 0xf5e   : > { %7960 = vrcp.f32 %v5456_v51  ;;  %v5381_v9 = vadd.f32 %v6950_v59, %v11346_v21  ;;  %v5375_v3 = vpop.f32.mrb[107].mxu1  ;;  %v7955_v16 = vpop.eup %7954  ;;  %v5792_v52 = vsel %vm5791_vm6, %v11286_v17, -inf  ;;  %v5756_v43 = vrot.slane %v5755_v46, 4 }
 0xf5f   : > { %7962 = vrcp.f32 %v5459_v38  ;;  %v5376_v35 = vadd.f32 %v5375_v3, %v11346_v21  ;;  %5520 = vperm.xlu1 %7380, %v7953_v36   ;;  %v5458_v49 = vadd.f32 1.0, %v7955_v16  ;;  %v7957_v47 = vpop.eup %7956  ;;  %v5734_v36 = vsel %vm5700_vm10, %v11270_v15, -inf }
 0xf60   : > { %7964 = vpow2.f32 %v6061_v50  ;;  %v6063_v34 = vmul.f32 -1.442695, %v5381_v9  ;;  %v5774_v38 = vsel %vm5773_vm0, %v11280_v11, -inf  ;;  %v5683_v8 = vrot.slane %v5682_v28, 2 }
 0xf61   : > { %7966 = vpow2.f32 %v6060_v61  ;;  %v6062_v48 = vmul.f32 -1.442695, %v5376_v35  ;;  %v5775_v6 = vmax.f32 %v5772_v13, %v5774_v38  ;;  %v11414_v38 = vmax.f32 %v11378_v54, %v5713_v26 }
 0xf62   : > { %7968 = vrcp.f32 %v5458_v49  ;;  %vm8086_vm6 = vmmov 0  }
 0xf63   : > { %7970 = vpow2.f32 %v6063_v34  ;;  %5515 = vperm.xlu1 %7380, %v7957_v47   ;;  %v5790_v34 = vsel %vm5687_vm1, %v11280_v11, -inf  ;;  %vm5808_vm1 = vcmask 258048  }
 0xf64   : > { %7972 = vpow2.f32 %v6062_v48  ;;  %v5793_v27 = vmax.f32 %v5790_v34, %v5792_v52 }
 0xf65   : > { %v7959_v45 = vpop.eup %7958  ;;  %v6953_v1 = vpop.f32.mrb[108].mxu1 }
 0xf66   : > { %v5391_v19 = vadd.f32 %v6953_v1, %v11346_v21  ;;  %v5385_v44 = vpop.f32.mrb[109].mxu1  ;;  %v5767_v1 = vmax.f32 %v5765_v53, %v5766_v7  ;;  %v5719_v53 = vmax.f32 %v11376_v24, %v5718_v63 }
 0xf67   : > { %5530 = vperm.xlu1 %7380, %v7959_v45   ;;  %v5386_v14 = vadd.f32 %v5385_v44, %v11346_v21  ;;  %v5694_v45 = vrot.slane %v5693_v55, 2 }
 0xf68   : > { %v7961_v22 = vpop.eup %7960  ;;  %v6065_v51 = vmul.f32 -1.442695, %v5391_v19  ;;  %v5776_v19 = vrot.slane %v5775_v6, 4 }
 0xf69   : > { %v7963_v31 = vpop.eup %7962  ;;  %5525 = vperm.xlu0 %7379, %v7961_v22   ;;  %v6064_v61 = vmul.f32 -1.442695, %v5386_v14  ;;  %v6956_v59 = vpop.f32.mrb[110].mxu1  ;;  %v5705_v22 = vrot.slane %v11392_v25, 2  ;;  %v5727_v14 = vrot.slane %v5726_v58, 4  ;;  %v5695_v13 = vmax.f32 %v5693_v55, %v5694_v45 }
 0xf6a   : > { %v7965_v50 = vpop.eup %7964  ;;  %7974 = vpow2.f32 %v6065_v51  ;;  %v5401_v3 = vadd.f32 %v6956_v59, %v11346_v21  ;;  %v5395_v16 = vpop.f32.mrb[111].mxu1  ;;  %v5784_v51 = vrot.slane %v5783_v4, 4  ;;  %v5777_v7 = vmax.f32 %v5775_v6, %v5776_v19 }
 0xf6b   : > { %v7967_v2 = vpop.eup %7966  ;;  %v5461_v9 = vadd.f32 1.0, %v7965_v50  ;;  %5540 = vperm.xlu1 %7380, %v7963_v31   ;;  %7976 = vpow2.f32 %v6064_v61  ;;  %v5396_v5 = vadd.f32 %v5395_v16, %v11346_v21  ;;  %v5733_v21 = vsel %vm5698_vm8, %v11268_v39, -inf }
 0xf6c   : > { %v7969_v10 = vpop.eup %7968  ;;  %v5460_v35 = vadd.f32 1.0, %v7967_v2  ;;  %v6067_v48 = vmul.f32 -1.442695, %v5401_v3  ;;  %v5735_v44 = vmax.f32 %v5733_v21, %v5734_v36  ;;  %v5757_v31 = vmax.f32 %v5755_v46, %v5756_v43 }
 0xf6d   : > { %v7971_v49 = vpop.eup %7970  ;;  %7978 = vrcp.f32 %v5461_v9  ;;  %5535 = vperm.xlu0 %7379, %v7969_v10   ;;  %v6066_v62 = vmul.f32 -1.442695, %v5396_v5  ;;  %v5794_v50 = vrot.slane %v5793_v27, 4  ;;  %v5768_v61 = vrot.slane %v5767_v1, 2 }
 0xf6e   : > { %v7973_v47 = vpop.eup %7972  ;;  %7980 = vrcp.f32 %v5460_v35  ;;  %v5463_v0 = vadd.f32 1.0, %v7971_v49  ;;  %v5801_v36 = vsel %vm5800_vm12, %v11286_v17, -inf  ;;  %v5684_v2 = vmax.f32 %v5682_v28, %v5683_v8 }
 0xf6f   : > { %v5462_v41 = vadd.f32 1.0, %v7973_v47  ;;  %7982 = vpow2.f32 %v6067_v48  ;;  %v5736_v46 = vrot.slane %v5735_v44, 4  ;;  %v5706_v55 = vmax.f32 %v11392_v25, %v5705_v22 }
 0xf70   : > { %7984 = vrcp.f32 %v5463_v0  ;;  %v5728_v3 = vmax.f32 %v5726_v58, %v5727_v14  ;;  %v5758_v16 = vrot.slane %v5757_v31, 2  ;;  %v5696_v10 = vrot.slane %v5695_v13, 1 }
 0xf71   : > { %7986 = vrcp.f32 %v5462_v41  ;;  %v5785_v52 = vmax.f32 %v5783_v4, %v5784_v51  ;;  %v5795_v35 = vmax.f32 %v5793_v27, %v5794_v50  ;;  %v5802_v63 = vrot.slane %v5801_v36, 4 }
 0xf72   : > { %7988 = vpow2.f32 %v6066_v62  ;;  %v5809_v49 = vsel %vm5808_vm1, %v11290_v12, -inf  ;;  %v5769_v34 = vmax.f32 %v5767_v1, %v5768_v61  ;;  %v5720_v6 = vrot.slane %v5719_v53, 2 }
 0xf73   : > { %v5778_v48 = vrot.slane %v5777_v7, 2  ;;  %v5737_v25 = vmax.f32 %v5735_v44, %v5736_v46  ;;  %v5729_v47 = vrot.slane %v5728_v3, 2  ;;  %v5759_v43 = vmax.f32 %v5757_v31, %v5758_v16 }
 0xf74   : > { %v7975_v59 = vpop.eup %7974  ;;  %v5685_v0 = vrot.slane %v5684_v2, 1  ;;  %v5697_v27 = vmax.f32 %v5695_v13, %v5696_v10  ;;  %v5707_v41 = vrot.slane %v5706_v55, 1  ;;  %v5796_v21 = vrot.slane %v5795_v35, 2 }
 0xf75   : > { %v7977_v9 = vpop.eup %7976  ;;  %v5465_v54 = vadd.f32 1.0, %v7975_v59  ;;  %v5810_v4 = vrot.slane %v5809_v49, 4  ;;  %v5786_v1 = vrot.slane %v5785_v52, 2  ;;  %v5803_v19 = vmax.f32 %v5801_v36, %v5802_v63 }
 0xf76   : > { %v5464_v5 = vadd.f32 1.0, %v7977_v9  ;;  %v5770_v22 = vrot.slane %v5769_v34, 1  ;;  %v5715_v14 = vrot.slane %v11414_v38, 1  ;;  %v5779_v51 = vmax.f32 %v5777_v7, %v5778_v48 }
 0xf77   : > { %v7979_v26 = vpop.eup %7978  ;;  %7990 = vrcp.f32 %v5465_v54  ;;  %v5738_v50 = vrot.slane %v5737_v25, 2  ;;  %v5760_v31 = vrot.slane %v5759_v43, 1  ;;  %v5686_v61 = vmax.f32 %v5684_v2, %v5685_v0 }
 0xf78   : > { %v7981_v24 = vpop.eup %7980  ;;  %5550 = vperm.xlu1 %7380, %v7979_v26   ;;  %7992 = vrcp.f32 %v5464_v5  ;;  %v5721_v59 = vmax.f32 %v5719_v53, %v5720_v6  ;;  %v5730_v46 = vmax.f32 %v5728_v3, %v5729_v47  ;;  %v5708_v13 = vmax.f32 %v5706_v55, %v5707_v41 }
 0xf79   : > { %v7983_v28 = vpop.eup %7982  ;;  %5545 = vperm.xlu0 %7379, %v7981_v24   ;;  %v5797_v9 = vmax.f32 %v5795_v35, %v5796_v21  ;;  %v5811_v16 = vmax.f32 %v5809_v49, %v5810_v4  ;;  %v5787_v54 = vmax.f32 %v5785_v52, %v5786_v1  ;;  %v5804_v26 = vrot.slane %v5803_v19, 2 }
 0xf7a   : > { %v7985_v58 = vpop.eup %7984  ;;  %v5467_v62 = vadd.f32 1.0, %v7983_v28  ;;  %v5771_v36 = vmax.f32 %v5769_v34, %v5770_v22  ;;  %v5743_v10 = vsel %vm5742_vm5, %v5686_v61, %v5697_v27  ;;  %v5780_v5 = vrot.slane %v5779_v51, 1 }
 0xf7b   : > { %v7987_v45 = vpop.eup %7986  ;;  %v5739_v24 = vmax.f32 %v5737_v25, %v5738_v50  ;;  %v5761_v7 = vmax.f32 %v5759_v43, %v5760_v31  ;;  %v5731_v28 = vrot.slane %v5730_v46, 1  ;;  %v5722_v2 = vrot.slane %v5721_v59, 1 }
 0xf7c   : > { %v7989_v8 = vpop.eup %7988  ;;  %7994 = vrcp.f32 %v5467_v62  ;;  %5560 = vperm.xlu1 %7380, %v7985_v58   ;;  %v5812_v58 = vrot.slane %v5811_v16, 2  ;;  %v5745_v53 = vsel %vm5744_vm7, %v5743_v10, %v5708_v13  ;;  %v5798_v55 = vrot.slane %v5797_v9, 1 }
 0xf7d   : > { %v5466_v44 = vadd.f32 1.0, %v7989_v8  ;;  %5555 = vperm.xlu0 %7379, %v7987_v45   ;;  %v5716_v3 = vmax.f32 %v11414_v38, %v5715_v14  ;;  %v5805_v35 = vmax.f32 %v5803_v19, %v5804_v26  ;;  %v5788_v52 = vrot.slane %v5787_v54, 1 }
 0xf7e   : > { %v5816_v49 = vsel %vm5742_vm5, %v5761_v7, %v5771_v36  ;;  %v5740_v34 = vrot.slane %v5739_v24, 1  ;;  %v5781_v6 = vmax.f32 %v5779_v51, %v5780_v5  ;;  %v5732_v47 = vmax.f32 %v5730_v46, %v5731_v28 }
 0xf7f   : > { %7996 = vrcp.f32 %v5466_v44  ;;  %v5747_v43 = vsel %vm5746_vm13, %v5745_v53, %v5716_v3  ;;  %v5723_v0 = vmax.f32 %v5721_v59, %v5722_v2  ;;  %v5799_v62 = vmax.f32 %v5797_v9, %v5798_v55 }
 0xf80   : > { %v5813_v45 = vmax.f32 %v5811_v16, %v5812_v58  ;;  %v5817_v27 = vsel %vm5744_vm7, %v5816_v49, %v5781_v6  ;;  %v5789_v41 = vmax.f32 %v5787_v54, %v5788_v52  ;;  %v5806_v21 = vrot.slane %v5805_v35, 1 }
 0xf81   : > { %v7991_v63 = vpop.eup %7990  ;;  %v5741_v4 = vmax.f32 %v5739_v24, %v5740_v34  ;;  %v5749_v8 = vsel %vm5748_vm4, %v5747_v43, %v5723_v0  ;;  %v8087_v61 = vmov 0.0   ;;  %vm11977_vm8 = vcmask 785408  }
 0xf82   : > { %v7993_v48 = vpop.eup %7992  ;;  %5570 = vperm.xlu1 %7380, %v7991_v63   ;;  %v5751_v1 = vsel %vm5750_vm3, %v5749_v8, %v5732_v47  ;;  %v5818_v19 = vsel %vm5746_vm13, %v5817_v27, %v5789_v41  ;;  %v5814_v22 = vrot.slane %v5813_v45, 1  ;;  %v5807_v51 = vmax.f32 %v5805_v35, %v5806_v21  ;;  %6989 = vmatprep.mubr.msk.f32.mxu0 %vm8086_vm6, %v8087_v61 }
 0xf83   : > { %5565 = vperm.xlu0 %7379, %v7993_v48   ;;  %v5819_v14 = vsel %vm5748_vm4, %v5818_v19, %v5799_v62  ;;  %v5753_v44 = vsel %vm5752_vm2, %v5751_v1, %v5741_v4  ;;  %6992 = vmatprep.mubr.msk.f32.mxu1 %vm8086_vm6, %v8087_v61 }
 0xf84   : > { %v5820_v50 = vsel %vm5750_vm3, %v5819_v14, %v5807_v51  ;;  %v5815_v31 = vmax.f32 %v5813_v45, %v5814_v22  ;;  %vm11976_vm3 = vcmask 523264  }
 0xf86   : > { %v7995_v25 = vpop.eup %7994  ;;  %v5821_v59 = vsel %vm5752_vm2, %v5820_v50, %v5815_v31  ;;  %vm11975_vm2 = vcmask 261120  }
 0xf87   : > { %5580 = vperm.xlu1 %7380, %v7995_v25   ;;  %vm11978_vm10 = vmmov %vm11975_vm2 }
 0xf89   : > { %v7997_v38 = vpop.eup %7996 }
 0xf8a   : > { %5575 = vperm.xlu0 %7379, %v7997_v38  }
 0xf8e   : > { %5891 = vrot.lane.b32.xlu0 %v5753_v44, %s11916_s17 }
 0xf92   : > { %5903 = vrot.lane.b32.xlu0 %v5821_v59, %s11801_s18 }
 0xfd9   : > { %v5511_v46 = vpop.permute.xlu0 %5510 }
 0xfda   : > { %v5584_v13 = vmul.f32 %v5511_v46, %v11254_v40  ;;  %v5506_v9 = vpop.permute.xlu1 %5505 }
 0xfdb   : > { %v5583_v16 = vmul.f32 %v5506_v9, %v11252_v32 }
 0xfdd   : > { %v7135_v54 = vpack.c.bf16 %v5584_v13, %v5583_v16 }
 0xfde   : > { %v5521_v26 = vpop.permute.xlu1 %5520 }
 0xfdf   : > { %7136 = vmatpush3.bf16.msra.mxu0 %v7135_v54  ;;  %7166 = vmatpush3.bf16.msra.mxu1 %v7135_v54  ;;  %v5586_v10 = vmul.f32 %v5521_v26, %v11264_v57 }
 0xfe0   : > { %7137 = vmatprep.subr.bf16.mxu0 %v8085_v42  ;;  %7159 = vmatprep.subr.bf16.mxu1 %v8085_v42 }
 0xfe2   : > { %v5516_v36 = vpop.permute.xlu1 %5515 }
 0xfe3   : > { %v5585_v5 = vmul.f32 %v5516_v36, %v11258_v20 }
 0xfe5   : > { %v7138_v24 = vpack.c.bf16 %v5586_v10, %v5585_v5 }
 0xfe6   : > { %v5531_v63 = vpop.permute.xlu1 %5530 }
 0xfe7   : > { %v5588_v40 = vmul.f32 %v5531_v63, %v11270_v15  ;;  %7139 = vmatpush3.bf16.msra.mxu0 %v7138_v24  ;;  %7167 = vmatpush3.bf16.msra.mxu1 %v7138_v24 }
 0xfe8   : > { %v5526_v32 = vpop.permute.xlu0 %5525  ;;  %7140 = vmatprep.subr.bf16.mxu0 %v8085_v42  ;;  %7160 = vmatprep.subr.bf16.mxu1 %v8085_v42 }
 0xfe9   : > { %v5587_v7 = vmul.f32 %v5526_v32, %v11268_v39 }
 0xfea   : > { %v5541_v28 = vpop.permute.xlu1 %5540 }
 0xfeb   : > { %v7141_v48 = vpack.c.bf16 %v5588_v40, %v5587_v7  ;;  %v5590_v58 = vmul.f32 %v5541_v28, %v11280_v11 }
 0xfec   : > { %v5536_v57 = vpop.permute.xlu0 %5535 }
 0xfed   : > { %v5589_v20 = vmul.f32 %v5536_v57, %v11274_v18  ;;  %7142 = vmatpush3.bf16.msra.mxu0 %v7141_v48  ;;  %7168 = vmatpush3.bf16.msra.mxu1 %v7141_v48 }
 0xfee   : > { %7143 = vmatprep.subr.bf16.mxu0 %v8085_v42  ;;  %7161 = vmatprep.subr.bf16.mxu1 %v8085_v42 }
 0xfef   : > { %v7144_v15 = vpack.c.bf16 %v5590_v58, %v5589_v20 }
 0xff1   : > { %7145 = vmatpush3.bf16.msra.mxu0 %v7144_v15  ;;  %7169 = vmatpush3.bf16.msra.mxu1 %v7144_v15 }
 0xff2   : > { %7146 = vmatprep.subr.bf16.mxu0 %v8085_v42  ;;  %7162 = vmatprep.subr.bf16.mxu1 %v8085_v42 }
 0xff7   : > { %v5551_v39 = vpop.permute.xlu1 %5550 }
 0xff8   : > { %v5592_v2 = vmul.f32 %v5551_v39, %v11290_v12  ;;  %v5546_v11 = vpop.permute.xlu0 %5545 }
 0xff9   : > { %v5591_v53 = vmul.f32 %v5546_v11, %v11286_v17 }
 0xffb   : > { %v7147_v18 = vpack.c.bf16 %v5592_v2, %v5591_v53  ;;  %v5561_v55 = vpop.permute.xlu1 %5560 }
 0xffc   : > { %v5594_v3 = vmul.f32 %v5561_v55, %v11288_v33  ;;  %v5556_v35 = vpop.permute.xlu0 %5555 }
 0xffd   : > { %v5593_v52 = vmul.f32 %v5556_v35, %v11284_v60  ;;  %7148 = vmatpush3.bf16.msra.mxu0 %v7147_v18  ;;  %7170 = vmatpush3.bf16.msra.mxu1 %v7147_v18 }
 0xffe   : > { %7149 = vmatprep.subr.bf16.mxu0 %v8085_v42  ;;  %7163 = vmatprep.subr.bf16.mxu1 %v8085_v42 }
 0xfff   : > { %v7150_v49 = vpack.c.bf16 %v5594_v3, %v5593_v52 }
0x1001   : > { %7151 = vmatpush3.bf16.msra.mxu0 %v7150_v49  ;;  %7171 = vmatpush3.bf16.msra.mxu1 %v7150_v49  ;;  %v5571_v12 = vpop.permute.xlu1 %5570 }
0x1002   : > { %7152 = vmatprep.subr.bf16.mxu0 %v8085_v42  ;;  %7164 = vmatprep.subr.bf16.mxu1 %v8085_v42  ;;  %v5596_v17 = vmul.f32 %v5571_v12, %v11324_v30  ;;  %v5566_v33 = vpop.permute.xlu0 %5565 }
0x1003   : > { %v5595_v34 = vmul.f32 %v5566_v33, %v11309_v29  ;;  %v5500_v29 = vld [vmem:[%s11551_s10] sm:$0xff] }
0x1005   : > { %v7153_v60 = vpack.c.bf16 %v5596_v17, %v5595_v34 }
0x1006   : > { %v5581_v6 = vpop.permute.xlu1 %5580 }
0x1007   : > { %v5598_v25 = vmul.f32 %v5581_v6, %v11314_v37  ;;  %7154 = vmatpush3.bf16.msra.mxu0 %v7153_v60  ;;  %7172 = vmatpush3.bf16.msra.mxu1 %v7153_v60  ;;  %v5501_v37 = vld [vmem:[%s11551_s10 + $0x8] sm:$0xff] }
0x1008   : > { %7155 = vmatprep.subr.bf16.mxu0 %v8085_v42  ;;  %7165 = vmatprep.subr.bf16.mxu1 %v8085_v42 }
0x1009   : > { %v5576_v47 = vpop.permute.xlu0 %5575 }
0x100a   : > { %v5597_v43 = vmul.f32 %v5576_v47, %v11307_v56  ;;  %v5502_v56 = vld [vmem:[%s11551_s10 + $0x10] sm:$0x1f] }
0x100c   : > { %v7156_v0 = vpack.c.bf16 %v5598_v25, %v5597_v43 }
0x100d   : > { %v5892_v22 = vpop.permute.xlu0 %5891 }
0x100e   : > { %7157 = vmatpush3.bf16.msra.mxu0 %v7156_v0  ;;  %7173 = vmatpush3.bf16.msra.mxu1 %v7156_v0 }
0x1011   : > { %6990 = vmatmul.mubr.f32.vlgmr.msra.gmra.mrb[80].mxu0 %v5500_v29  ;;  %6993 = vmatmul.mubr.f32.vlgmr.msra.gmra.mrb[112].mxu1 %v5501_v37  ;;  %v5904_v44 = vpop.permute.xlu0 %5903 }
0x1012   : > { %6995 = vmatprep.mubr.msk.f32.mxu1 %vm8086_vm6, %v8087_v61 }
0x1015   : > { %6996 = vmatmul.mubr.f32.gmra.mrb[114].mxu1 %v5502_v56 }
0x10e4   : > { %v5665_v30 = vpop.f32.mrb[80].mxu0  ;;  %v5670_v42 = vpop.f32.mrb[112].mxu1 }
0x10e5   : > { %v5896_v62 = vrot.slane %v5665_v30, 7  ;;  %v5897_v45 = vrot.slane %v5670_v42, 7  ;;  %v6991_v27 = vpop.f32.mrb[81].mxu0  ;;  %v6994_v41 = vpop.f32.mrb[113].mxu1  ;;  %v5907_v4 = vrot.slane %v5670_v42, 6  ;;  %v5915_v14 = vsel %vm11975_vm2, %v5665_v30, %v5892_v22 }
0x10e7   : > { %v5898_v21 = vsel %vm5742_vm5, %v5896_v62, %v5897_v45 }
0x10e8   : > { %v5675_v38 = vpop.f32.mrb[114].mxu1  ;;  %5899 = vrot.lane.b32.xlu1 %v5898_v21, %s11890_s16  ;;  %s380_s16 = scalar_lea.vmem [#allocation3], %s6000_s15  ;;  %s8020_s15 = scalar_lea.vmem %s8019_s23, 512 }
0x10e9   : > { %v5908_v8 = vrot.slane %v5675_v38, 6  ;;  %v6997_v1 = vpop.f32.mrb[115].mxu1  ;;  %s5937_s18 = sshll.u32 %s380_s16, 4  ;;  %s11500_s18 = int_to_ptr.vmem [resolvable:$true] %s5937_s18 }
0x10ea   : > { %s8014_s30 = scalar_lea.vmem %s11500_s18, 256  ;;  %p8021_p0 = scmp.lt.s32.totalorder %s11500_s18, %s8019_s23 }
0x10eb   : > { %v5909_v19 = vsel %vm5744_vm7, %v5907_v4, %v5908_v8  ;;  %p8015_p11 = scmp.ne.s32.totalorder %s11500_s18, %s8014_s30  ;;  %p8022_p1 = scmp.lt.s32.totalorder %s8020_s15, %s8014_s30 }
0x10ec   : > { %5912 = vrot.lane.b32.xlu1 %v11344_v23, %s11916_s17 }
0x10ed   : > { %p8016_p12 = pnand %p8015_p11, %p8190_p5  ;;  %p8023_p2 = por %p8022_p1, %p8021_p0 }
0x10ef   : > { %p8017_p13 = pneg %p8016_p12 }
0x10f1   : > { %p8024_p3 = pnand %p8023_p2, %p8017_p13 }
0x115a   : > { %v5900_v51 = vpop.permute.xlu1 %5899 }
0x115b   : > { %v5916_v50 = vsel %vm11976_vm3, %v5915_v14, %v5900_v51 }
0x115c   : > { %v5917_v31 = vsel %vm11977_vm8, %v5916_v50, %v5904_v44 }
0x115d   : > { %5919 = vst [vmem:[%s380_s16] sm:$0x7f] %v5917_v31 }
0x115e   : > { %v5913_v61 = vpop.permute.xlu1 %5912 }
0x115f   : > { %v5918_v23 = vsel %vm11978_vm10, %v5909_v19, %v5913_v61 }
0x1160   : > { %5921 = vst.msk [vmem:[%s380_s16 + $0x8] sm:$0x7f] %vm5920_vm9, %v5918_v23 }
0x1161   : > { %8027 = shalt.err (!%p8024_p3)
}
0x1162   : > { %s8028_s13 = scalar_lea.hbm %s11498_s26, 256  ;;  %s8032_s12 = scalar_lea.hbm %s11552_s11, 768 }
0x1163   : > { %p8029_p4 = scmp.ne.s32.totalorder %s11498_s26, %s8028_s13  ;;  %p8033_p9 = scmp.lt.u32.totalorder %s11498_s26, %s11552_s11 }
0x1164   : > { %p8034_p10 = scmp.lt.u32.totalorder %s8032_s12, %s8028_s13  ;;  %p8036_p12 = scmp.lt.u32.totalorder %s8028_s13, %s11498_s26 }
0x1165   : > { %p8030_p7 = pnand %p8029_p4, %p8190_p5 }
0x1166   : > { %p8035_p11 = por %p8034_p10, %p8033_p9 }
0x1167   : > { %p8031_p8 = pneg %p8030_p7 }
0x1168   : > { %p8037_p13 = por %p8036_p12, %p8035_p11 }
0x116a   : > { %p8038_p0 = pnand %p8037_p13, %p8031_p8 }
0x116c   : > { %8041 = shalt.err (!%p8038_p0)
}
0x116d   : > { %7222 = dma.vmem_to_hbm [thread:$0]  (%p8190_p5), %s11500_s18, 256, %s11498_s26, %s5923_s9  }
0x116e PF: > { %p7228_p1 = scmp.ge.s32.totalorder %s8076_s22, 2  ;;  %s5949_s30 = sand.u32 1, %s8064_s19  }
0x116f   : > { %s5950_s23 = scalar_lea.sflag [#allocation4], %s5949_s30 }
0x1170   : > { %p7225_p2 = pnand %p7228_p1, %p8194_p6 }
0x1172   : > { %8059 = dma.done.wait (!%p7225_p2), %s5950_s23, 256  }
0x1173   : > { %8061 = vsyncadd (!%p7225_p2), %s5950_s23, 4294967040  ;;  %p22_p3 = scmp.ge.s32.totalorder %s8177_s24, 5   ;;  %s11979_s19 = smov %s8068_s20 }
0x1174   : > { %s11980_s20 = smov %s8072_s21  ;;  %s11981_s21 = smov %s8188_s27 }
0x1175   : > { %s11982_s22 = smov %s8177_s24  ;;  %24 = sbr.rel (!%p22_p3) target bundleno = 5 (0x5), region = 99 }
0x117c   :  { %5955 = vsyncpa [#allocation4], 1 }
0x117d   :  { %5957 = vsyncpa [#allocation4 + $0x1], 1 }

</bundles_post_ra>
